<compile_context>
chip_gen: v7x
topology: tpu7x:2x2x1
jax: 0.10.0
libtpu: 0.0.40
codegen_flags: <defaults>
</compile_context>

<pallas_src>
import numpy as np
import jax
import jax.numpy as jnp
from jax import lax
from jax.experimental import pallas as pl
from jax.experimental.pallas import tpu as pltpu

# ----------------------- scaled-down VGG16 configuration ---------------------
VGG_CFG = [4, 4, "M", 8, 8, "M", 16, 16, 16, "M", 32, 32, 32, "M", 32, 32, 32, "M"]
FC_DIM = 128      # stands in for VGG16 classifier width 4096
MLP_HIDDEN = 64   # stands in for mlp_hidden_dim = 512
INPUT_HW = 32     # stands in for 224
IN_CH = 3
MAXL = 128        # lane padding of the packed banded conv-weight stack


def _layer_plan():
    """Static plan of the VGG feature stack in the lane-dense [H, W*C] layout.

    conv entries: ("conv", idx, Lin, Lout)  -- banded-GEMM lane widths
    pool entries: ("pool", C)               -- C = channels (lane roll amount)
    Per-conv layout (Win, sin, Cin, Cout): sin=2 means the input row is the un-compacted
    output of a 2x2 maxpool (valid data every other channel group along the lanes).
    """
    plan, layouts = [], []
    win, cin, sin, li = INPUT_HW, IN_CH, 1, 0
    for v in VGG_CFG:
        if v == "M":
            plan.append(("pool", cin))
            win //= 2
            sin = 2
        else:
            plan.append(("conv", li, win * sin * cin, win * v))
            layouts.append((win, sin, cin, v))
            cin, sin, li = v, 1, li + 1
    return plan, layouts, cin


LAYER_PLAN, CONV_LAYOUTS, FEAT_CH = _layer_plan()
N_CONV = len(CONV_LAYOUTS)
FEAT_LANES = CONV_LAYOUTS[-1][0] * CONV_LAYOUTS[-1][3]   # lane width of final feature row


# ------------------------------ the fused kernel ------------------------------
def _grasp_kernel(x_ref, wc_ref, bc_ref, w1_ref, b1_ref, w2_ref, b2_ref,
                  wml_ref, wmr_ref, bm1_ref, wm2_ref, bm2_ref, o_ref):
    """One grid step = one batch element: left tower + right tower + fused head."""

    def conv3x3_relu(x, li, lin, lout):
        # x: [H, Lin] f32.  out[h] = sum_dy x[h+dy-1] @ B_dy, where B_dy is the banded
        # bf16 weight (built at init) that folds the 3 dx taps + the Cin contraction.
        zero = jnp.zeros((1, x.shape[1]), x.dtype)
        x_up = jnp.concatenate([zero, x[:-1, :]], axis=0)     # x[h-1], 0 at top edge
        x_dn = jnp.concatenate([x[1:, :], zero], axis=0)      # x[h+1], 0 at bottom edge
        acc = jnp.dot(x_up.astype(jnp.bfloat16), wc_ref[3 * li + 0, :lin, :lout],
                      preferred_element_type=jnp.float32)
        acc = acc + jnp.dot(x.astype(jnp.bfloat16), wc_ref[3 * li + 1, :lin, :lout],
                            preferred_element_type=jnp.float32)
        acc = acc + jnp.dot(x_dn.astype(jnp.bfloat16), wc_ref[3 * li + 2, :lin, :lout],
                            preferred_element_type=jnp.float32)
        return jnp.maximum(acc + bc_ref[pl.ds(li, 1), :lout], 0.0)

    def maxpool2x2(x, c):
        # x: [H, W*c] f32 (dense).  Output [H/2, W*c]: the pooled value for output column
        # wo sits at lane 2*wo*c (un-compacted -- the next conv's banded weight reads the
        # stride-2 lane layout directly, so no lane gather is needed).
        h, lanes = x.shape
        x_dn = jnp.concatenate([x[1:, :], x[:1, :]], axis=0)
        v = jnp.maximum(x, x_dn)                              # vertical pair max (even rows)
        if h == 2:
            ve = v[0:1, :]
        else:
            r = lax.broadcasted_iota(jnp.int32, (h // 2, h), 0)
            k = lax.broadcasted_iota(jnp.int32, (h // 2, h), 1)
            sel = (k == 2 * r).astype(jnp.float32)            # 0/1 even-row selector
            ve = jnp.dot(sel, v, preferred_element_type=jnp.float32)
        return jnp.maximum(ve, pltpu.roll(ve, lanes - c, axis=1))   # horizontal pair max

    def tower(img):
        x = img
        for step in LAYER_PLAN:
            if step[0] == "conv":
                _, li, lin, lout = step
                x = conv3x3_relu(x, li, lin, lout)
            else:
                x = maxpool2x2(x, step[1])
        # x: [1, FEAT_LANES] f32; channel c sits at lane c (lanes >= FEAT_CH hit zero rows
        # of w1).  VGG classifier minus its last layer; dropout = identity at inference.
        h = jnp.dot(x.astype(jnp.bfloat16), w1_ref[...],
                    preferred_element_type=jnp.float32) + b1_ref[...]
        h = jnp.maximum(h, 0.0)
        h = jnp.dot(h.astype(jnp.bfloat16), w2_ref[...],
                    preferred_element_type=jnp.float32) + b2_ref[...]
        return jnp.maximum(h, 0.0)                            # [1, FC_DIM]

    f_l = tower(x_ref[0, 0, :, :])
    f_r = tower(x_ref[0, 1, :, :])
    # concat([f_l, f_r], -1) @ Wm1  ==  f_l @ Wm1[:FC] + f_r @ Wm1[FC:]  (no row split)
    g = (jnp.dot(f_l.astype(jnp.bfloat16), wml_ref[...], preferred_element_type=jnp.float32)
         + jnp.dot(f_r.astype(jnp.bfloat16), wmr_ref[...], preferred_element_type=jnp.float32)
         + bm1_ref[...])
    g = jnp.maximum(g, 0.0)                                   # [1, MLP_HIDDEN]
    # Final N=1 layer as a VPU multiply + lane reduction (no wasted MXU pass).
    logit = jnp.sum(g * wm2_ref[...], axis=-1, keepdims=True) + bm2_ref[...]
    o_ref[0] = jax.nn.sigmoid(logit)


# ------------------------------- parameters ----------------------------------
def init_params(seed=0):
    """Packed Pallas params + raw f32 params (for the pure-JAX reference check).

    TODO(synk): pretrained ImageNet VGG16 weights cannot be loaded in a file-free
    synthetic script; deterministic random weights are used instead.
    """
    rng = np.random.default_rng(seed)

    wc = np.zeros((3 * N_CONV, MAXL, MAXL), np.float32)
    bc = np.zeros((N_CONV, MAXL), np.float32)
    raw_convs = []
    for li, (win, sin, cin, cout) in enumerate(CONV_LAYOUTS):
        w = (rng.standard_normal((3, 3, cin, cout)) * np.sqrt(2.0 / (9 * cin))).astype(np.float32)
        b = (rng.standard_normal((cout,)) * 0.01).astype(np.float32)
        raw_convs.append((w, b))
        lin, lout = win * sin * cin, win * cout
        assert lin <= MAXL and lout <= MAXL
        for dy in range(3):
            for dx in range(3):
                for wo in range(win):
                    wi = wo + dx - 1
                    if 0 <= wi < win:
                        wc[3 * li + dy,
                           wi * sin * cin:wi * sin * cin + cin,
                           wo * cout:(wo + 1) * cout] = w[dy, dx]
        bc[li, :lout] = np.tile(b, win)

    def linear(din, dout):
        w = (rng.standard_normal((din, dout)) / np.sqrt(din)).astype(np.float32)
        b = (rng.standard_normal((dout,)) * 0.01).astype(np.float32)
        return w, b

    flat_dim = FEAT_CH * 7 * 7
    w1, b1 = linear(flat_dim, FC_DIM)
    w2, b2 = linear(FC_DIM, FC_DIM)
    wm1, bm1 = linear(2 * FC_DIM, MLP_HIDDEN)
    wm2, bm2 = linear(MLP_HIDDEN, 1)

    # Fold adaptive-avg-pool(7,7) replication of the 1x1 final map + torch NCHW flatten
    # into fc1:  w1_eff[c] = sum_p w1[c*49 + p].  Exact for this scaled config only; at
    # the real 224 input the 7x7 pool is identity and the flatten order must be kept.
    w1_eff = np.zeros((FEAT_LANES, FC_DIM), np.float32)
    w1_eff[:FEAT_CH] = w1.reshape(FEAT_CH, 7 * 7, FC_DIM).sum(axis=1)

    params = dict(
        wc=jnp.asarray(wc, jnp.bfloat16),
        bc=jnp.asarray(bc, jnp.float32),
        w1=jnp.asarray(w1_eff, jnp.bfloat16),
        b1=jnp.asarray(b1[None, :], jnp.float32),
        w2=jnp.asarray(w2, jnp.bfloat16),
        b2=jnp.asarray(b2[None, :], jnp.float32),
        wm1_l=jnp.asarray(wm1[:FC_DIM], jnp.bfloat16),
        wm1_r=jnp.asarray(wm1[FC_DIM:], jnp.bfloat16),
        bm1=jnp.asarray(bm1[None, :], jnp.float32),
        wm2=jnp.asarray(wm2.T, jnp.float32),              # [1, MLP_HIDDEN] row for VPU dot
        bm2=jnp.asarray(bm2[None, :], jnp.float32),       # [1, 1]
    )
    raw = dict(convs=raw_convs, w1=w1, b1=b1, w2=w2, b2=b2,
               wm1=wm1, bm1=bm1, wm2=wm2, bm2=bm2)
    return params, raw


# --------------------------------- forward -----------------------------------
def grasp_inf_forward(params, delta_l, delta_r):
    b, h, w, c = delta_l.shape
    # Both towers share weights: pair them per batch element so a single grid step (one
    # per TensorCore on v7x) computes left tower + right tower + the fused head.
    x = jnp.stack([delta_l, delta_r], axis=1).reshape(b, 2, h, w * c)

    def full(arr):
        nd = arr.ndim
        return pl.BlockSpec(arr.shape, lambda i: (0,) * nd)

    p = params
    out = pl.pallas_call(
        _grasp_kernel,
        out_shape=jax.ShapeDtypeStruct((b, 1, 1), jnp.float32),
        grid=(b,),
        in_specs=[
            pl.BlockSpec((1, 2, h, w * c), lambda i: (i, 0, 0, 0)),
            full(p["wc"]), full(p["bc"]),
            full(p["w1"]), full(p["b1"]), full(p["w2"]), full(p["b2"]),
            full(p["wm1_l"]), full(p["wm1_r"]), full(p["bm1"]),
            full(p["wm2"]), full(p["bm2"]),
        ],
        out_specs=pl.BlockSpec((1, 1, 1), lambda i: (i, 0, 0)),
        compiler_params=pltpu.CompilerParams(dimension_semantics=("parallel",)),
    )(x, p["wc"], p["bc"], p["w1"], p["b1"], p["w2"], p["b2"],
      p["wm1_l"], p["wm1_r"], p["bm1"], p["wm2"], p["bm2"])
    return out[:, 0, 0]


# ----------------------- pure-JAX f32 reference (for checking) ----------------
def reference_forward(raw, delta_l, delta_r):
    def touch(imgs):                                          # [B, H, W, 3]
        x = imgs
        ci = 0
        for v in VGG_CFG:
            if v == "M":
                x = lax.reduce_window(x, -jnp.inf, lax.max,
                                      (1, 2, 2, 1), (1, 2, 2, 1), "VALID")
            else:
                w, b = raw["convs"][ci]
                x = lax.conv_general_dilated(x, w, (1, 1), "SAME",
                                             dimension_numbers=("NHWC", "HWIO", "NHWC"))
                x = jnp.maximum(x + b, 0.0)
                ci += 1
        x = jnp.broadcast_to(x, (x.shape[0], 7, 7, x.shape[-1]))    # adaptive avg pool 1x1->7x7
        f = jnp.transpose(x, (0, 3, 1, 2)).reshape(x.shape[0], -1)  # torch NCHW flatten
        f = jnp.maximum(f @ raw["w1"] + raw["b1"], 0.0)
        f = jnp.maximum(f @ raw["w2"] + raw["b2"], 0.0)
        return f

    f_l, f_r = touch(delta_l), touch(delta_r)
    g = jnp.maximum(jnp.concatenate([f_l, f_r], axis=1) @ raw["wm1"] + raw["bm1"], 0.0)
    return jax.nn.sigmoid(g @ raw["wm2"] + raw["bm2"])[:, 0]


# ----------------------------------- main -------------------------------------
if __name__ == "__main__":
    B = 2
    key = jax.random.PRNGKey(0)
    k_l, k_r = jax.random.split(key)
    delta_l = jax.random.normal(k_l, (B, INPUT_HW, INPUT_HW, IN_CH), jnp.float32)
    delta_r = jax.random.normal(k_r, (B, INPUT_HW, INPUT_HW, IN_CH), jnp.float32)
    params, raw = init_params(seed=0)

    fwd = jax.jit(grasp_inf_forward)
    prob = jax.block_until_ready(fwd(params, delta_l, delta_r))

    assert prob.shape == (B,), prob.shape
    assert prob.dtype == jnp.float32
    assert bool(jnp.all((prob >= 0.0) & (prob <= 1.0)))

    # Validate against a pure-JAX f32 reference (kernel uses bf16 MXU inputs / f32
    # accumulation, so allow a loose tolerance on the [0,1] probabilities).
    prob_ref = reference_forward(raw, delta_l, delta_r)
    err = float(jnp.max(jnp.abs(prob - prob_ref)))
    assert err < 5e-2, f"kernel vs reference mismatch: {err}"

    print("KERNEL_OK")
</pallas_src>

<mosaic_0001>
module attributes {stable_mosaic.version = 11 : i64} {
  func.func @_grasp_kernel(%arg0: i32, %arg1: memref<1x2x32x96xf32, #tpu.memory_space<vmem>>, %arg2: memref<39x128x128xbf16, #tpu.memory_space<vmem>>, %arg3: memref<13x128xf32, #tpu.memory_space<vmem>>, %arg4: memref<64x128xbf16, #tpu.memory_space<vmem>>, %arg5: memref<1x128xf32, #tpu.memory_space<vmem>>, %arg6: memref<128x128xbf16, #tpu.memory_space<vmem>>, %arg7: memref<1x128xf32, #tpu.memory_space<vmem>>, %arg8: memref<128x64xbf16, #tpu.memory_space<vmem>>, %arg9: memref<128x64xbf16, #tpu.memory_space<vmem>>, %arg10: memref<1x64xf32, #tpu.memory_space<vmem>>, %arg11: memref<1x64xf32, #tpu.memory_space<vmem>>, %arg12: memref<1x1xf32, #tpu.memory_space<vmem>>, %arg13: memref<1x1x1xf32, #tpu.memory_space<vmem>>) attributes {dimension_semantics = [#tpu.dimension_semantics<parallel>], iteration_bounds = array<i64: 2>, scalar_prefetch = 0 : i64, scratch_operands = 0 : i64, tpu.core_type = #tpu.core_type<tc>, window_params = [{transform_indices = @transform_0, window_bounds = array<i64: 1, 2, 32, 96>}, {pipeline_mode = #tpu.pipeline_mode<synchronous>, transform_indices = @transform_1, window_bounds = array<i64: 39, 128, 128>}, {pipeline_mode = #tpu.pipeline_mode<synchronous>, transform_indices = @transform_2, window_bounds = array<i64: 13, 128>}, {pipeline_mode = #tpu.pipeline_mode<synchronous>, transform_indices = @transform_3, window_bounds = array<i64: 64, 128>}, {pipeline_mode = #tpu.pipeline_mode<synchronous>, transform_indices = @transform_4, window_bounds = array<i64: 1, 128>}, {pipeline_mode = #tpu.pipeline_mode<synchronous>, transform_indices = @transform_5, window_bounds = array<i64: 128, 128>}, {pipeline_mode = #tpu.pipeline_mode<synchronous>, transform_indices = @transform_6, window_bounds = array<i64: 1, 128>}, {pipeline_mode = #tpu.pipeline_mode<synchronous>, transform_indices = @transform_7, window_bounds = array<i64: 128, 64>}, {pipeline_mode = #tpu.pipeline_mode<synchronous>, transform_indices = @transform_8, window_bounds = array<i64: 128, 64>}, {pipeline_mode = #tpu.pipeline_mode<synchronous>, transform_indices = @transform_9, window_bounds = array<i64: 1, 64>}, {pipeline_mode = #tpu.pipeline_mode<synchronous>, transform_indices = @transform_10, window_bounds = array<i64: 1, 64>}, {pipeline_mode = #tpu.pipeline_mode<synchronous>, transform_indices = @transform_11, window_bounds = array<i64: 1, 1>}, {transform_indices = @transform_12, window_bounds = array<i64: 1, 1, 1>}]} {
    %c0 = arith.constant 0 : index
    %c0_0 = arith.constant 0 : index
    %c0_1 = arith.constant 0 : index
    %c0_2 = arith.constant 0 : index
    %0 = vector.load %arg1[%c0, %c0_0, %c0_1, %c0_2] : memref<1x2x32x96xf32, #tpu.memory_space<vmem>>, vector<1x1x32x96xf32>
    %1 = vector.shape_cast %0 : vector<1x1x32x96xf32> to vector<32x96xf32>
    %cst = arith.constant 0.000000e+00 : f32
    %2 = vector.broadcast %cst : f32 to vector<1x96xf32>
    %3 = vector.extract_strided_slice %1 {offsets = [0, 0], sizes = [31, 96], strides = [1, 1]} : vector<32x96xf32> to vector<31x96xf32>
    %4 = tpu.concatenate %2, %3 in 0 : vector<1x96xf32>, vector<31x96xf32> -> vector<32x96xf32>
    %5 = vector.extract_strided_slice %1 {offsets = [1, 0], sizes = [31, 96], strides = [1, 1]} : vector<32x96xf32> to vector<31x96xf32>
    %6 = tpu.concatenate %5, %2 in 0 : vector<31x96xf32>, vector<1x96xf32> -> vector<32x96xf32>
    %7 = arith.truncf %4 : vector<32x96xf32> to vector<32x96xbf16>
    %c0_3 = arith.constant 0 : index
    %c0_4 = arith.constant 0 : index
    %c0_5 = arith.constant 0 : index
    %8 = vector.load %arg2[%c0_3, %c0_4, %c0_5] : memref<39x128x128xbf16, #tpu.memory_space<vmem>>, vector<1x96x128xbf16>
    %9 = vector.shape_cast %8 : vector<1x96x128xbf16> to vector<96x128xbf16>
    %cst_6 = arith.constant dense<0.000000e+00> : vector<32x128xf32>
    %10 = tpu.matmul %7, %9, %cst_6 {dimension_numbers = #tpu.dot_dimension_numbers<[1], [0], [0], [1], [0, 0, 1, 1], [], []>} : vector<32x96xbf16>, vector<96x128xbf16>, vector<32x128xf32> -> vector<32x128xf32>
    %11 = arith.truncf %1 : vector<32x96xf32> to vector<32x96xbf16>
    %c1 = arith.constant 1 : index
    %c0_7 = arith.constant 0 : index
    %c0_8 = arith.constant 0 : index
    %12 = vector.load %arg2[%c1, %c0_7, %c0_8] : memref<39x128x128xbf16, #tpu.memory_space<vmem>>, vector<1x96x128xbf16>
    %13 = vector.shape_cast %12 : vector<1x96x128xbf16> to vector<96x128xbf16>
    %cst_9 = arith.constant dense<0.000000e+00> : vector<32x128xf32>
    %14 = tpu.matmul %11, %13, %cst_9 {dimension_numbers = #tpu.dot_dimension_numbers<[1], [0], [0], [1], [0, 0, 1, 1], [], []>} : vector<32x96xbf16>, vector<96x128xbf16>, vector<32x128xf32> -> vector<32x128xf32>
    %15 = arith.addf %10, %14 : vector<32x128xf32>
    %16 = arith.truncf %6 : vector<32x96xf32> to vector<32x96xbf16>
    %c2 = arith.constant 2 : index
    %c0_10 = arith.constant 0 : index
    %c0_11 = arith.constant 0 : index
    %17 = vector.load %arg2[%c2, %c0_10, %c0_11] : memref<39x128x128xbf16, #tpu.memory_space<vmem>>, vector<1x96x128xbf16>
    %18 = vector.shape_cast %17 : vector<1x96x128xbf16> to vector<96x128xbf16>
    %cst_12 = arith.constant dense<0.000000e+00> : vector<32x128xf32>
    %19 = tpu.matmul %16, %18, %cst_12 {dimension_numbers = #tpu.dot_dimension_numbers<[1], [0], [0], [1], [0, 0, 1, 1], [], []>} : vector<32x96xbf16>, vector<96x128xbf16>, vector<32x128xf32> -> vector<32x128xf32>
    %20 = arith.addf %15, %19 : vector<32x128xf32>
    %c0_13 = arith.constant 0 : index
    %c0_14 = arith.constant 0 : index
    %21 = vector.load %arg3[%c0_13, %c0_14] : memref<13x128xf32, #tpu.memory_space<vmem>>, vector<1x128xf32>
    %22 = vector.broadcast %21 : vector<1x128xf32> to vector<32x128xf32>
    %23 = arith.addf %20, %22 : vector<32x128xf32>
    %cst_15 = arith.constant 0.000000e+00 : f32
    %24 = vector.broadcast %cst_15 : f32 to vector<32x128xf32>
    %25 = arith.maximumf %23, %24 : vector<32x128xf32>
    %cst_16 = arith.constant 0.000000e+00 : f32
    %26 = vector.broadcast %cst_16 : f32 to vector<1x128xf32>
    %27 = vector.extract_strided_slice %25 {offsets = [0, 0], sizes = [31, 128], strides = [1, 1]} : vector<32x128xf32> to vector<31x128xf32>
    %28 = tpu.concatenate %26, %27 in 0 : vector<1x128xf32>, vector<31x128xf32> -> vector<32x128xf32>
    %29 = vector.extract_strided_slice %25 {offsets = [1, 0], sizes = [31, 128], strides = [1, 1]} : vector<32x128xf32> to vector<31x128xf32>
    %30 = tpu.concatenate %29, %26 in 0 : vector<31x128xf32>, vector<1x128xf32> -> vector<32x128xf32>
    %31 = arith.truncf %28 : vector<32x128xf32> to vector<32x128xbf16>
    %c3 = arith.constant 3 : index
    %c0_17 = arith.constant 0 : index
    %c0_18 = arith.constant 0 : index
    %32 = vector.load %arg2[%c3, %c0_17, %c0_18] : memref<39x128x128xbf16, #tpu.memory_space<vmem>>, vector<1x128x128xbf16>
    %33 = vector.shape_cast %32 : vector<1x128x128xbf16> to vector<128x128xbf16>
    %cst_19 = arith.constant dense<0.000000e+00> : vector<32x128xf32>
    %34 = tpu.matmul %31, %33, %cst_19 {dimension_numbers = #tpu.dot_dimension_numbers<[1], [0], [0], [1], [0, 0, 1, 1], [], []>} : vector<32x128xbf16>, vector<128x128xbf16>, vector<32x128xf32> -> vector<32x128xf32>
    %35 = arith.truncf %25 : vector<32x128xf32> to vector<32x128xbf16>
    %c4 = arith.constant 4 : index
    %c0_20 = arith.constant 0 : index
    %c0_21 = arith.constant 0 : index
    %36 = vector.load %arg2[%c4, %c0_20, %c0_21] : memref<39x128x128xbf16, #tpu.memory_space<vmem>>, vector<1x128x128xbf16>
    %37 = vector.shape_cast %36 : vector<1x128x128xbf16> to vector<128x128xbf16>
    %cst_22 = arith.constant dense<0.000000e+00> : vector<32x128xf32>
    %38 = tpu.matmul %35, %37, %cst_22 {dimension_numbers = #tpu.dot_dimension_numbers<[1], [0], [0], [1], [0, 0, 1, 1], [], []>} : vector<32x128xbf16>, vector<128x128xbf16>, vector<32x128xf32> -> vector<32x128xf32>
    %39 = arith.addf %34, %38 : vector<32x128xf32>
    %40 = arith.truncf %30 : vector<32x128xf32> to vector<32x128xbf16>
    %c5 = arith.constant 5 : index
    %c0_23 = arith.constant 0 : index
    %c0_24 = arith.constant 0 : index
    %41 = vector.load %arg2[%c5, %c0_23, %c0_24] : memref<39x128x128xbf16, #tpu.memory_space<vmem>>, vector<1x128x128xbf16>
    %42 = vector.shape_cast %41 : vector<1x128x128xbf16> to vector<128x128xbf16>
    %cst_25 = arith.constant dense<0.000000e+00> : vector<32x128xf32>
    %43 = tpu.matmul %40, %42, %cst_25 {dimension_numbers = #tpu.dot_dimension_numbers<[1], [0], [0], [1], [0, 0, 1, 1], [], []>} : vector<32x128xbf16>, vector<128x128xbf16>, vector<32x128xf32> -> vector<32x128xf32>
    %44 = arith.addf %39, %43 : vector<32x128xf32>
    %c1_26 = arith.constant 1 : index
    %c0_27 = arith.constant 0 : index
    %45 = vector.load %arg3[%c1_26, %c0_27] : memref<13x128xf32, #tpu.memory_space<vmem>>, vector<1x128xf32>
    %46 = vector.broadcast %45 : vector<1x128xf32> to vector<32x128xf32>
    %47 = arith.addf %44, %46 : vector<32x128xf32>
    %cst_28 = arith.constant 0.000000e+00 : f32
    %48 = vector.broadcast %cst_28 : f32 to vector<32x128xf32>
    %49 = arith.maximumf %47, %48 : vector<32x128xf32>
    %50 = vector.extract_strided_slice %49 {offsets = [1, 0], sizes = [31, 128], strides = [1, 1]} : vector<32x128xf32> to vector<31x128xf32>
    %51 = vector.extract_strided_slice %49 {offsets = [0, 0], sizes = [1, 128], strides = [1, 1]} : vector<32x128xf32> to vector<1x128xf32>
    %52 = tpu.concatenate %50, %51 in 0 : vector<31x128xf32>, vector<1x128xf32> -> vector<32x128xf32>
    %53 = arith.maximumf %49, %52 : vector<32x128xf32>
    %54 = tpu.iota {dimensions = array<i32: 0>} : vector<16x32xi32>
    %55 = tpu.iota {dimensions = array<i32: 1>} : vector<16x32xi32>
    %c2_i32 = arith.constant 2 : i32
    %56 = vector.broadcast %c2_i32 : i32 to vector<16x32xi32>
    %57 = arith.muli %56, %54 : vector<16x32xi32>
    %58 = arith.cmpi eq, %55, %57 : vector<16x32xi32>
    %59 = arith.extui %58 : vector<16x32xi1> to vector<16x32xi32>
    %60 = arith.sitofp %59 : vector<16x32xi32> to vector<16x32xf32>
    %cst_29 = arith.constant dense<0.000000e+00> : vector<16x128xf32>
    %61 = tpu.matmul %60, %53, %cst_29 {dimension_numbers = #tpu.dot_dimension_numbers<[1], [0], [0], [1], [0, 0, 1, 1], [], []>} : vector<16x32xf32>, vector<32x128xf32>, vector<16x128xf32> -> vector<16x128xf32>
    %c124_i32 = arith.constant 124 : i32
    %62 = tpu.dynamic_rotate %61 by %c124_i32 dim 1 : vector<16x128xf32>, i32 -> vector<16x128xf32>
    %63 = arith.maximumf %61, %62 : vector<16x128xf32>
    %cst_30 = arith.constant 0.000000e+00 : f32
    %64 = vector.broadcast %cst_30 : f32 to vector<1x128xf32>
    %65 = vector.extract_strided_slice %63 {offsets = [0, 0], sizes = [15, 128], strides = [1, 1]} : vector<16x128xf32> to vector<15x128xf32>
    %66 = tpu.concatenate %64, %65 in 0 : vector<1x128xf32>, vector<15x128xf32> -> vector<16x128xf32>
    %67 = vector.extract_strided_slice %63 {offsets = [1, 0], sizes = [15, 128], strides = [1, 1]} : vector<16x128xf32> to vector<15x128xf32>
    %68 = tpu.concatenate %67, %64 in 0 : vector<15x128xf32>, vector<1x128xf32> -> vector<16x128xf32>
    %69 = arith.truncf %66 : vector<16x128xf32> to vector<16x128xbf16>
    %c6 = arith.constant 6 : index
    %c0_31 = arith.constant 0 : index
    %c0_32 = arith.constant 0 : index
    %70 = vector.load %arg2[%c6, %c0_31, %c0_32] : memref<39x128x128xbf16, #tpu.memory_space<vmem>>, vector<1x128x128xbf16>
    %71 = vector.shape_cast %70 : vector<1x128x128xbf16> to vector<128x128xbf16>
    %cst_33 = arith.constant dense<0.000000e+00> : vector<16x128xf32>
    %72 = tpu.matmul %69, %71, %cst_33 {dimension_numbers = #tpu.dot_dimension_numbers<[1], [0], [0], [1], [0, 0, 1, 1], [], []>} : vector<16x128xbf16>, vector<128x128xbf16>, vector<16x128xf32> -> vector<16x128xf32>
    %73 = arith.truncf %63 : vector<16x128xf32> to vector<16x128xbf16>
    %c7 = arith.constant 7 : index
    %c0_34 = arith.constant 0 : index
    %c0_35 = arith.constant 0 : index
    %74 = vector.load %arg2[%c7, %c0_34, %c0_35] : memref<39x128x128xbf16, #tpu.memory_space<vmem>>, vector<1x128x128xbf16>
    %75 = vector.shape_cast %74 : vector<1x128x128xbf16> to vector<128x128xbf16>
    %cst_36 = arith.constant dense<0.000000e+00> : vector<16x128xf32>
    %76 = tpu.matmul %73, %75, %cst_36 {dimension_numbers = #tpu.dot_dimension_numbers<[1], [0], [0], [1], [0, 0, 1, 1], [], []>} : vector<16x128xbf16>, vector<128x128xbf16>, vector<16x128xf32> -> vector<16x128xf32>
    %77 = arith.addf %72, %76 : vector<16x128xf32>
    %78 = arith.truncf %68 : vector<16x128xf32> to vector<16x128xbf16>
    %c8 = arith.constant 8 : index
    %c0_37 = arith.constant 0 : index
    %c0_38 = arith.constant 0 : index
    %79 = vector.load %arg2[%c8, %c0_37, %c0_38] : memref<39x128x128xbf16, #tpu.memory_space<vmem>>, vector<1x128x128xbf16>
    %80 = vector.shape_cast %79 : vector<1x128x128xbf16> to vector<128x128xbf16>
    %cst_39 = arith.constant dense<0.000000e+00> : vector<16x128xf32>
    %81 = tpu.matmul %78, %80, %cst_39 {dimension_numbers = #tpu.dot_dimension_numbers<[1], [0], [0], [1], [0, 0, 1, 1], [], []>} : vector<16x128xbf16>, vector<128x128xbf16>, vector<16x128xf32> -> vector<16x128xf32>
    %82 = arith.addf %77, %81 : vector<16x128xf32>
    %c2_40 = arith.constant 2 : index
    %c0_41 = arith.constant 0 : index
    %83 = vector.load %arg3[%c2_40, %c0_41] : memref<13x128xf32, #tpu.memory_space<vmem>>, vector<1x128xf32>
    %84 = vector.broadcast %83 : vector<1x128xf32> to vector<16x128xf32>
    %85 = arith.addf %82, %84 : vector<16x128xf32>
    %cst_42 = arith.constant 0.000000e+00 : f32
    %86 = vector.broadcast %cst_42 : f32 to vector<16x128xf32>
    %87 = arith.maximumf %85, %86 : vector<16x128xf32>
    %cst_43 = arith.constant 0.000000e+00 : f32
    %88 = vector.broadcast %cst_43 : f32 to vector<1x128xf32>
    %89 = vector.extract_strided_slice %87 {offsets = [0, 0], sizes = [15, 128], strides = [1, 1]} : vector<16x128xf32> to vector<15x128xf32>
    %90 = tpu.concatenate %88, %89 in 0 : vector<1x128xf32>, vector<15x128xf32> -> vector<16x128xf32>
    %91 = vector.extract_strided_slice %87 {offsets = [1, 0], sizes = [15, 128], strides = [1, 1]} : vector<16x128xf32> to vector<15x128xf32>
    %92 = tpu.concatenate %91, %88 in 0 : vector<15x128xf32>, vector<1x128xf32> -> vector<16x128xf32>
    %93 = arith.truncf %90 : vector<16x128xf32> to vector<16x128xbf16>
    %c9 = arith.constant 9 : index
    %c0_44 = arith.constant 0 : index
    %c0_45 = arith.constant 0 : index
    %94 = vector.load %arg2[%c9, %c0_44, %c0_45] : memref<39x128x128xbf16, #tpu.memory_space<vmem>>, vector<1x128x128xbf16>
    %95 = vector.shape_cast %94 : vector<1x128x128xbf16> to vector<128x128xbf16>
    %cst_46 = arith.constant dense<0.000000e+00> : vector<16x128xf32>
    %96 = tpu.matmul %93, %95, %cst_46 {dimension_numbers = #tpu.dot_dimension_numbers<[1], [0], [0], [1], [0, 0, 1, 1], [], []>} : vector<16x128xbf16>, vector<128x128xbf16>, vector<16x128xf32> -> vector<16x128xf32>
    %97 = arith.truncf %87 : vector<16x128xf32> to vector<16x128xbf16>
    %c10 = arith.constant 10 : index
    %c0_47 = arith.constant 0 : index
    %c0_48 = arith.constant 0 : index
    %98 = vector.load %arg2[%c10, %c0_47, %c0_48] : memref<39x128x128xbf16, #tpu.memory_space<vmem>>, vector<1x128x128xbf16>
    %99 = vector.shape_cast %98 : vector<1x128x128xbf16> to vector<128x128xbf16>
    %cst_49 = arith.constant dense<0.000000e+00> : vector<16x128xf32>
    %100 = tpu.matmul %97, %99, %cst_49 {dimension_numbers = #tpu.dot_dimension_numbers<[1], [0], [0], [1], [0, 0, 1, 1], [], []>} : vector<16x128xbf16>, vector<128x128xbf16>, vector<16x128xf32> -> vector<16x128xf32>
    %101 = arith.addf %96, %100 : vector<16x128xf32>
    %102 = arith.truncf %92 : vector<16x128xf32> to vector<16x128xbf16>
    %c11 = arith.constant 11 : index
    %c0_50 = arith.constant 0 : index
    %c0_51 = arith.constant 0 : index
    %103 = vector.load %arg2[%c11, %c0_50, %c0_51] : memref<39x128x128xbf16, #tpu.memory_space<vmem>>, vector<1x128x128xbf16>
    %104 = vector.shape_cast %103 : vector<1x128x128xbf16> to vector<128x128xbf16>
    %cst_52 = arith.constant dense<0.000000e+00> : vector<16x128xf32>
    %105 = tpu.matmul %102, %104, %cst_52 {dimension_numbers = #tpu.dot_dimension_numbers<[1], [0], [0], [1], [0, 0, 1, 1], [], []>} : vector<16x128xbf16>, vector<128x128xbf16>, vector<16x128xf32> -> vector<16x128xf32>
    %106 = arith.addf %101, %105 : vector<16x128xf32>
    %c3_53 = arith.constant 3 : index
    %c0_54 = arith.constant 0 : index
    %107 = vector.load %arg3[%c3_53, %c0_54] : memref<13x128xf32, #tpu.memory_space<vmem>>, vector<1x128xf32>
    %108 = vector.broadcast %107 : vector<1x128xf32> to vector<16x128xf32>
    %109 = arith.addf %106, %108 : vector<16x128xf32>
    %cst_55 = arith.constant 0.000000e+00 : f32
    %110 = vector.broadcast %cst_55 : f32 to vector<16x128xf32>
    %111 = arith.maximumf %109, %110 : vector<16x128xf32>
    %112 = vector.extract_strided_slice %111 {offsets = [1, 0], sizes = [15, 128], strides = [1, 1]} : vector<16x128xf32> to vector<15x128xf32>
    %113 = vector.extract_strided_slice %111 {offsets = [0, 0], sizes = [1, 128], strides = [1, 1]} : vector<16x128xf32> to vector<1x128xf32>
    %114 = tpu.concatenate %112, %113 in 0 : vector<15x128xf32>, vector<1x128xf32> -> vector<16x128xf32>
    %115 = arith.maximumf %111, %114 : vector<16x128xf32>
    %116 = tpu.iota {dimensions = array<i32: 0>} : vector<8x16xi32>
    %117 = tpu.iota {dimensions = array<i32: 1>} : vector<8x16xi32>
    %c2_i32_56 = arith.constant 2 : i32
    %118 = vector.broadcast %c2_i32_56 : i32 to vector<8x16xi32>
    %119 = arith.muli %118, %116 : vector<8x16xi32>
    %120 = arith.cmpi eq, %117, %119 : vector<8x16xi32>
    %121 = arith.extui %120 : vector<8x16xi1> to vector<8x16xi32>
    %122 = arith.sitofp %121 : vector<8x16xi32> to vector<8x16xf32>
    %cst_57 = arith.constant dense<0.000000e+00> : vector<8x128xf32>
    %123 = tpu.matmul %122, %115, %cst_57 {dimension_numbers = #tpu.dot_dimension_numbers<[1], [0], [0], [1], [0, 0, 1, 1], [], []>} : vector<8x16xf32>, vector<16x128xf32>, vector<8x128xf32> -> vector<8x128xf32>
    %c120_i32 = arith.constant 120 : i32
    %124 = tpu.dynamic_rotate %123 by %c120_i32 dim 1 : vector<8x128xf32>, i32 -> vector<8x128xf32>
    %125 = arith.maximumf %123, %124 : vector<8x128xf32>
    %cst_58 = arith.constant 0.000000e+00 : f32
    %126 = vector.broadcast %cst_58 : f32 to vector<1x128xf32>
    %127 = vector.extract_strided_slice %125 {offsets = [0, 0], sizes = [7, 128], strides = [1, 1]} : vector<8x128xf32> to vector<7x128xf32>
    %128 = tpu.concatenate %126, %127 in 0 : vector<1x128xf32>, vector<7x128xf32> -> vector<8x128xf32>
    %129 = vector.extract_strided_slice %125 {offsets = [1, 0], sizes = [7, 128], strides = [1, 1]} : vector<8x128xf32> to vector<7x128xf32>
    %130 = tpu.concatenate %129, %126 in 0 : vector<7x128xf32>, vector<1x128xf32> -> vector<8x128xf32>
    %131 = arith.truncf %128 : vector<8x128xf32> to vector<8x128xbf16>
    %c12 = arith.constant 12 : index
    %c0_59 = arith.constant 0 : index
    %c0_60 = arith.constant 0 : index
    %132 = vector.load %arg2[%c12, %c0_59, %c0_60] : memref<39x128x128xbf16, #tpu.memory_space<vmem>>, vector<1x128x128xbf16>
    %133 = vector.shape_cast %132 : vector<1x128x128xbf16> to vector<128x128xbf16>
    %cst_61 = arith.constant dense<0.000000e+00> : vector<8x128xf32>
    %134 = tpu.matmul %131, %133, %cst_61 {dimension_numbers = #tpu.dot_dimension_numbers<[1], [0], [0], [1], [0, 0, 1, 1], [], []>} : vector<8x128xbf16>, vector<128x128xbf16>, vector<8x128xf32> -> vector<8x128xf32>
    %135 = arith.truncf %125 : vector<8x128xf32> to vector<8x128xbf16>
    %c13 = arith.constant 13 : index
    %c0_62 = arith.constant 0 : index
    %c0_63 = arith.constant 0 : index
    %136 = vector.load %arg2[%c13, %c0_62, %c0_63] : memref<39x128x128xbf16, #tpu.memory_space<vmem>>, vector<1x128x128xbf16>
    %137 = vector.shape_cast %136 : vector<1x128x128xbf16> to vector<128x128xbf16>
    %cst_64 = arith.constant dense<0.000000e+00> : vector<8x128xf32>
    %138 = tpu.matmul %135, %137, %cst_64 {dimension_numbers = #tpu.dot_dimension_numbers<[1], [0], [0], [1], [0, 0, 1, 1], [], []>} : vector<8x128xbf16>, vector<128x128xbf16>, vector<8x128xf32> -> vector<8x128xf32>
    %139 = arith.addf %134, %138 : vector<8x128xf32>
    %140 = arith.truncf %130 : vector<8x128xf32> to vector<8x128xbf16>
    %c14 = arith.constant 14 : index
    %c0_65 = arith.constant 0 : index
    %c0_66 = arith.constant 0 : index
    %141 = vector.load %arg2[%c14, %c0_65, %c0_66] : memref<39x128x128xbf16, #tpu.memory_space<vmem>>, vector<1x128x128xbf16>
    %142 = vector.shape_cast %141 : vector<1x128x128xbf16> to vector<128x128xbf16>
    %cst_67 = arith.constant dense<0.000000e+00> : vector<8x128xf32>
    %143 = tpu.matmul %140, %142, %cst_67 {dimension_numbers = #tpu.dot_dimension_numbers<[1], [0], [0], [1], [0, 0, 1, 1], [], []>} : vector<8x128xbf16>, vector<128x128xbf16>, vector<8x128xf32> -> vector<8x128xf32>
    %144 = arith.addf %139, %143 : vector<8x128xf32>
    %c4_68 = arith.constant 4 : index
    %c0_69 = arith.constant 0 : index
    %145 = vector.load %arg3[%c4_68, %c0_69] : memref<13x128xf32, #tpu.memory_space<vmem>>, vector<1x128xf32>
    %146 = vector.broadcast %145 : vector<1x128xf32> to vector<8x128xf32>
    %147 = arith.addf %144, %146 : vector<8x128xf32>
    %cst_70 = arith.constant 0.000000e+00 : f32
    %148 = vector.broadcast %cst_70 : f32 to vector<8x128xf32>
    %149 = arith.maximumf %147, %148 : vector<8x128xf32>
    %cst_71 = arith.constant 0.000000e+00 : f32
    %150 = vector.broadcast %cst_71 : f32 to vector<1x128xf32>
    %151 = vector.extract_strided_slice %149 {offsets = [0, 0], sizes = [7, 128], strides = [1, 1]} : vector<8x128xf32> to vector<7x128xf32>
    %152 = tpu.concatenate %150, %151 in 0 : vector<1x128xf32>, vector<7x128xf32> -> vector<8x128xf32>
    %153 = vector.extract_strided_slice %149 {offsets = [1, 0], sizes = [7, 128], strides = [1, 1]} : vector<8x128xf32> to vector<7x128xf32>
    %154 = tpu.concatenate %153, %150 in 0 : vector<7x128xf32>, vector<1x128xf32> -> vector<8x128xf32>
    %155 = arith.truncf %152 : vector<8x128xf32> to vector<8x128xbf16>
    %c15 = arith.constant 15 : index
    %c0_72 = arith.constant 0 : index
    %c0_73 = arith.constant 0 : index
    %156 = vector.load %arg2[%c15, %c0_72, %c0_73] : memref<39x128x128xbf16, #tpu.memory_space<vmem>>, vector<1x128x128xbf16>
    %157 = vector.shape_cast %156 : vector<1x128x128xbf16> to vector<128x128xbf16>
    %cst_74 = arith.constant dense<0.000000e+00> : vector<8x128xf32>
    %158 = tpu.matmul %155, %157, %cst_74 {dimension_numbers = #tpu.dot_dimension_numbers<[1], [0], [0], [1], [0, 0, 1, 1], [], []>} : vector<8x128xbf16>, vector<128x128xbf16>, vector<8x128xf32> -> vector<8x128xf32>
    %159 = arith.truncf %149 : vector<8x128xf32> to vector<8x128xbf16>
    %c16 = arith.constant 16 : index
    %c0_75 = arith.constant 0 : index
    %c0_76 = arith.constant 0 : index
    %160 = vector.load %arg2[%c16, %c0_75, %c0_76] : memref<39x128x128xbf16, #tpu.memory_space<vmem>>, vector<1x128x128xbf16>
    %161 = vector.shape_cast %160 : vector<1x128x128xbf16> to vector<128x128xbf16>
    %cst_77 = arith.constant dense<0.000000e+00> : vector<8x128xf32>
    %162 = tpu.matmul %159, %161, %cst_77 {dimension_numbers = #tpu.dot_dimension_numbers<[1], [0], [0], [1], [0, 0, 1, 1], [], []>} : vector<8x128xbf16>, vector<128x128xbf16>, vector<8x128xf32> -> vector<8x128xf32>
    %163 = arith.addf %158, %162 : vector<8x128xf32>
    %164 = arith.truncf %154 : vector<8x128xf32> to vector<8x128xbf16>
    %c17 = arith.constant 17 : index
    %c0_78 = arith.constant 0 : index
    %c0_79 = arith.constant 0 : index
    %165 = vector.load %arg2[%c17, %c0_78, %c0_79] : memref<39x128x128xbf16, #tpu.memory_space<vmem>>, vector<1x128x128xbf16>
    %166 = vector.shape_cast %165 : vector<1x128x128xbf16> to vector<128x128xbf16>
    %cst_80 = arith.constant dense<0.000000e+00> : vector<8x128xf32>
    %167 = tpu.matmul %164, %166, %cst_80 {dimension_numbers = #tpu.dot_dimension_numbers<[1], [0], [0], [1], [0, 0, 1, 1], [], []>} : vector<8x128xbf16>, vector<128x128xbf16>, vector<8x128xf32> -> vector<8x128xf32>
    %168 = arith.addf %163, %167 : vector<8x128xf32>
    %c5_81 = arith.constant 5 : index
    %c0_82 = arith.constant 0 : index
    %169 = vector.load %arg3[%c5_81, %c0_82] : memref<13x128xf32, #tpu.memory_space<vmem>>, vector<1x128xf32>
    %170 = vector.broadcast %169 : vector<1x128xf32> to vector<8x128xf32>
    %171 = arith.addf %168, %170 : vector<8x128xf32>
    %cst_83 = arith.constant 0.000000e+00 : f32
    %172 = vector.broadcast %cst_83 : f32 to vector<8x128xf32>
    %173 = arith.maximumf %171, %172 : vector<8x128xf32>
    %cst_84 = arith.constant 0.000000e+00 : f32
    %174 = vector.broadcast %cst_84 : f32 to vector<1x128xf32>
    %175 = vector.extract_strided_slice %173 {offsets = [0, 0], sizes = [7, 128], strides = [1, 1]} : vector<8x128xf32> to vector<7x128xf32>
    %176 = tpu.concatenate %174, %175 in 0 : vector<1x128xf32>, vector<7x128xf32> -> vector<8x128xf32>
    %177 = vector.extract_strided_slice %173 {offsets = [1, 0], sizes = [7, 128], strides = [1, 1]} : vector<8x128xf32> to vector<7x128xf32>
    %178 = tpu.concatenate %177, %174 in 0 : vector<7x128xf32>, vector<1x128xf32> -> vector<8x128xf32>
    %179 = arith.truncf %176 : vector<8x128xf32> to vector<8x128xbf16>
    %c18 = arith.constant 18 : index
    %c0_85 = arith.constant 0 : index
    %c0_86 = arith.constant 0 : index
    %180 = vector.load %arg2[%c18, %c0_85, %c0_86] : memref<39x128x128xbf16, #tpu.memory_space<vmem>>, vector<1x128x128xbf16>
    %181 = vector.shape_cast %180 : vector<1x128x128xbf16> to vector<128x128xbf16>
    %cst_87 = arith.constant dense<0.000000e+00> : vector<8x128xf32>
    %182 = tpu.matmul %179, %181, %cst_87 {dimension_numbers = #tpu.dot_dimension_numbers<[1], [0], [0], [1], [0, 0, 1, 1], [], []>} : vector<8x128xbf16>, vector<128x128xbf16>, vector<8x128xf32> -> vector<8x128xf32>
    %183 = arith.truncf %173 : vector<8x128xf32> to vector<8x128xbf16>
    %c19 = arith.constant 19 : index
    %c0_88 = arith.constant 0 : index
    %c0_89 = arith.constant 0 : index
    %184 = vector.load %arg2[%c19, %c0_88, %c0_89] : memref<39x128x128xbf16, #tpu.memory_space<vmem>>, vector<1x128x128xbf16>
    %185 = vector.shape_cast %184 : vector<1x128x128xbf16> to vector<128x128xbf16>
    %cst_90 = arith.constant dense<0.000000e+00> : vector<8x128xf32>
    %186 = tpu.matmul %183, %185, %cst_90 {dimension_numbers = #tpu.dot_dimension_numbers<[1], [0], [0], [1], [0, 0, 1, 1], [], []>} : vector<8x128xbf16>, vector<128x128xbf16>, vector<8x128xf32> -> vector<8x128xf32>
    %187 = arith.addf %182, %186 : vector<8x128xf32>
    %188 = arith.truncf %178 : vector<8x128xf32> to vector<8x128xbf16>
    %c20 = arith.constant 20 : index
    %c0_91 = arith.constant 0 : index
    %c0_92 = arith.constant 0 : index
    %189 = vector.load %arg2[%c20, %c0_91, %c0_92] : memref<39x128x128xbf16, #tpu.memory_space<vmem>>, vector<1x128x128xbf16>
    %190 = vector.shape_cast %189 : vector<1x128x128xbf16> to vector<128x128xbf16>
    %cst_93 = arith.constant dense<0.000000e+00> : vector<8x128xf32>
    %191 = tpu.matmul %188, %190, %cst_93 {dimension_numbers = #tpu.dot_dimension_numbers<[1], [0], [0], [1], [0, 0, 1, 1], [], []>} : vector<8x128xbf16>, vector<128x128xbf16>, vector<8x128xf32> -> vector<8x128xf32>
    %192 = arith.addf %187, %191 : vector<8x128xf32>
    %c6_94 = arith.constant 6 : index
    %c0_95 = arith.constant 0 : index
    %193 = vector.load %arg3[%c6_94, %c0_95] : memref<13x128xf32, #tpu.memory_space<vmem>>, vector<1x128xf32>
    %194 = vector.broadcast %193 : vector<1x128xf32> to vector<8x128xf32>
    %195 = arith.addf %192, %194 : vector<8x128xf32>
    %cst_96 = arith.constant 0.000000e+00 : f32
    %196 = vector.broadcast %cst_96 : f32 to vector<8x128xf32>
    %197 = arith.maximumf %195, %196 : vector<8x128xf32>
    %198 = vector.extract_strided_slice %197 {offsets = [1, 0], sizes = [7, 128], strides = [1, 1]} : vector<8x128xf32> to vector<7x128xf32>
    %199 = vector.extract_strided_slice %197 {offsets = [0, 0], sizes = [1, 128], strides = [1, 1]} : vector<8x128xf32> to vector<1x128xf32>
    %200 = tpu.concatenate %198, %199 in 0 : vector<7x128xf32>, vector<1x128xf32> -> vector<8x128xf32>
    %201 = arith.maximumf %197, %200 : vector<8x128xf32>
    %202 = tpu.iota {dimensions = array<i32: 0>} : vector<4x8xi32>
    %203 = tpu.iota {dimensions = array<i32: 1>} : vector<4x8xi32>
    %c2_i32_97 = arith.constant 2 : i32
    %204 = vector.broadcast %c2_i32_97 : i32 to vector<4x8xi32>
    %205 = arith.muli %204, %202 : vector<4x8xi32>
    %206 = arith.cmpi eq, %203, %205 : vector<4x8xi32>
    %207 = arith.extui %206 : vector<4x8xi1> to vector<4x8xi32>
    %208 = arith.sitofp %207 : vector<4x8xi32> to vector<4x8xf32>
    %cst_98 = arith.constant dense<0.000000e+00> : vector<4x128xf32>
    %209 = tpu.matmul %208, %201, %cst_98 {dimension_numbers = #tpu.dot_dimension_numbers<[1], [0], [0], [1], [0, 0, 1, 1], [], []>} : vector<4x8xf32>, vector<8x128xf32>, vector<4x128xf32> -> vector<4x128xf32>
    %c112_i32 = arith.constant 112 : i32
    %210 = tpu.dynamic_rotate %209 by %c112_i32 dim 1 : vector<4x128xf32>, i32 -> vector<4x128xf32>
    %211 = arith.maximumf %209, %210 : vector<4x128xf32>
    %cst_99 = arith.constant 0.000000e+00 : f32
    %212 = vector.broadcast %cst_99 : f32 to vector<1x128xf32>
    %213 = vector.extract_strided_slice %211 {offsets = [0, 0], sizes = [3, 128], strides = [1, 1]} : vector<4x128xf32> to vector<3x128xf32>
    %214 = tpu.concatenate %212, %213 in 0 : vector<1x128xf32>, vector<3x128xf32> -> vector<4x128xf32>
    %215 = vector.extract_strided_slice %211 {offsets = [1, 0], sizes = [3, 128], strides = [1, 1]} : vector<4x128xf32> to vector<3x128xf32>
    %216 = tpu.concatenate %215, %212 in 0 : vector<3x128xf32>, vector<1x128xf32> -> vector<4x128xf32>
    %217 = arith.truncf %214 : vector<4x128xf32> to vector<4x128xbf16>
    %c21 = arith.constant 21 : index
    %c0_100 = arith.constant 0 : index
    %c0_101 = arith.constant 0 : index
    %218 = vector.load %arg2[%c21, %c0_100, %c0_101] : memref<39x128x128xbf16, #tpu.memory_space<vmem>>, vector<1x128x128xbf16>
    %219 = vector.shape_cast %218 : vector<1x128x128xbf16> to vector<128x128xbf16>
    %cst_102 = arith.constant dense<0.000000e+00> : vector<4x128xf32>
    %220 = tpu.matmul %217, %219, %cst_102 {dimension_numbers = #tpu.dot_dimension_numbers<[1], [0], [0], [1], [0, 0, 1, 1], [], []>} : vector<4x128xbf16>, vector<128x128xbf16>, vector<4x128xf32> -> vector<4x128xf32>
    %221 = arith.truncf %211 : vector<4x128xf32> to vector<4x128xbf16>
    %c22 = arith.constant 22 : index
    %c0_103 = arith.constant 0 : index
    %c0_104 = arith.constant 0 : index
    %222 = vector.load %arg2[%c22, %c0_103, %c0_104] : memref<39x128x128xbf16, #tpu.memory_space<vmem>>, vector<1x128x128xbf16>
    %223 = vector.shape_cast %222 : vector<1x128x128xbf16> to vector<128x128xbf16>
    %cst_105 = arith.constant dense<0.000000e+00> : vector<4x128xf32>
    %224 = tpu.matmul %221, %223, %cst_105 {dimension_numbers = #tpu.dot_dimension_numbers<[1], [0], [0], [1], [0, 0, 1, 1], [], []>} : vector<4x128xbf16>, vector<128x128xbf16>, vector<4x128xf32> -> vector<4x128xf32>
    %225 = arith.addf %220, %224 : vector<4x128xf32>
    %226 = arith.truncf %216 : vector<4x128xf32> to vector<4x128xbf16>
    %c23 = arith.constant 23 : index
    %c0_106 = arith.constant 0 : index
    %c0_107 = arith.constant 0 : index
    %227 = vector.load %arg2[%c23, %c0_106, %c0_107] : memref<39x128x128xbf16, #tpu.memory_space<vmem>>, vector<1x128x128xbf16>
    %228 = vector.shape_cast %227 : vector<1x128x128xbf16> to vector<128x128xbf16>
    %cst_108 = arith.constant dense<0.000000e+00> : vector<4x128xf32>
    %229 = tpu.matmul %226, %228, %cst_108 {dimension_numbers = #tpu.dot_dimension_numbers<[1], [0], [0], [1], [0, 0, 1, 1], [], []>} : vector<4x128xbf16>, vector<128x128xbf16>, vector<4x128xf32> -> vector<4x128xf32>
    %230 = arith.addf %225, %229 : vector<4x128xf32>
    %c7_109 = arith.constant 7 : index
    %c0_110 = arith.constant 0 : index
    %231 = vector.load %arg3[%c7_109, %c0_110] : memref<13x128xf32, #tpu.memory_space<vmem>>, vector<1x128xf32>
    %232 = vector.broadcast %231 : vector<1x128xf32> to vector<4x128xf32>
    %233 = arith.addf %230, %232 : vector<4x128xf32>
    %cst_111 = arith.constant 0.000000e+00 : f32
    %234 = vector.broadcast %cst_111 : f32 to vector<4x128xf32>
    %235 = arith.maximumf %233, %234 : vector<4x128xf32>
    %cst_112 = arith.constant 0.000000e+00 : f32
    %236 = vector.broadcast %cst_112 : f32 to vector<1x128xf32>
    %237 = vector.extract_strided_slice %235 {offsets = [0, 0], sizes = [3, 128], strides = [1, 1]} : vector<4x128xf32> to vector<3x128xf32>
    %238 = tpu.concatenate %236, %237 in 0 : vector<1x128xf32>, vector<3x128xf32> -> vector<4x128xf32>
    %239 = vector.extract_strided_slice %235 {offsets = [1, 0], sizes = [3, 128], strides = [1, 1]} : vector<4x128xf32> to vector<3x128xf32>
    %240 = tpu.concatenate %239, %236 in 0 : vector<3x128xf32>, vector<1x128xf32> -> vector<4x128xf32>
    %241 = arith.truncf %238 : vector<4x128xf32> to vector<4x128xbf16>
    %c24 = arith.constant 24 : index
    %c0_113 = arith.constant 0 : index
    %c0_114 = arith.constant 0 : index
    %242 = vector.load %arg2[%c24, %c0_113, %c0_114] : memref<39x128x128xbf16, #tpu.memory_space<vmem>>, vector<1x128x128xbf16>
    %243 = vector.shape_cast %242 : vector<1x128x128xbf16> to vector<128x128xbf16>
    %cst_115 = arith.constant dense<0.000000e+00> : vector<4x128xf32>
    %244 = tpu.matmul %241, %243, %cst_115 {dimension_numbers = #tpu.dot_dimension_numbers<[1], [0], [0], [1], [0, 0, 1, 1], [], []>} : vector<4x128xbf16>, vector<128x128xbf16>, vector<4x128xf32> -> vector<4x128xf32>
    %245 = arith.truncf %235 : vector<4x128xf32> to vector<4x128xbf16>
    %c25 = arith.constant 25 : index
    %c0_116 = arith.constant 0 : index
    %c0_117 = arith.constant 0 : index
    %246 = vector.load %arg2[%c25, %c0_116, %c0_117] : memref<39x128x128xbf16, #tpu.memory_space<vmem>>, vector<1x128x128xbf16>
    %247 = vector.shape_cast %246 : vector<1x128x128xbf16> to vector<128x128xbf16>
    %cst_118 = arith.constant dense<0.000000e+00> : vector<4x128xf32>
    %248 = tpu.matmul %245, %247, %cst_118 {dimension_numbers = #tpu.dot_dimension_numbers<[1], [0], [0], [1], [0, 0, 1, 1], [], []>} : vector<4x128xbf16>, vector<128x128xbf16>, vector<4x128xf32> -> vector<4x128xf32>
    %249 = arith.addf %244, %248 : vector<4x128xf32>
    %250 = arith.truncf %240 : vector<4x128xf32> to vector<4x128xbf16>
    %c26 = arith.constant 26 : index
    %c0_119 = arith.constant 0 : index
    %c0_120 = arith.constant 0 : index
    %251 = vector.load %arg2[%c26, %c0_119, %c0_120] : memref<39x128x128xbf16, #tpu.memory_space<vmem>>, vector<1x128x128xbf16>
    %252 = vector.shape_cast %251 : vector<1x128x128xbf16> to vector<128x128xbf16>
    %cst_121 = arith.constant dense<0.000000e+00> : vector<4x128xf32>
    %253 = tpu.matmul %250, %252, %cst_121 {dimension_numbers = #tpu.dot_dimension_numbers<[1], [0], [0], [1], [0, 0, 1, 1], [], []>} : vector<4x128xbf16>, vector<128x128xbf16>, vector<4x128xf32> -> vector<4x128xf32>
    %254 = arith.addf %249, %253 : vector<4x128xf32>
    %c8_122 = arith.constant 8 : index
    %c0_123 = arith.constant 0 : index
    %255 = vector.load %arg3[%c8_122, %c0_123] : memref<13x128xf32, #tpu.memory_space<vmem>>, vector<1x128xf32>
    %256 = vector.broadcast %255 : vector<1x128xf32> to vector<4x128xf32>
    %257 = arith.addf %254, %256 : vector<4x128xf32>
    %cst_124 = arith.constant 0.000000e+00 : f32
    %258 = vector.broadcast %cst_124 : f32 to vector<4x128xf32>
    %259 = arith.maximumf %257, %258 : vector<4x128xf32>
    %cst_125 = arith.constant 0.000000e+00 : f32
    %260 = vector.broadcast %cst_125 : f32 to vector<1x128xf32>
    %261 = vector.extract_strided_slice %259 {offsets = [0, 0], sizes = [3, 128], strides = [1, 1]} : vector<4x128xf32> to vector<3x128xf32>
    %262 = tpu.concatenate %260, %261 in 0 : vector<1x128xf32>, vector<3x128xf32> -> vector<4x128xf32>
    %263 = vector.extract_strided_slice %259 {offsets = [1, 0], sizes = [3, 128], strides = [1, 1]} : vector<4x128xf32> to vector<3x128xf32>
    %264 = tpu.concatenate %263, %260 in 0 : vector<3x128xf32>, vector<1x128xf32> -> vector<4x128xf32>
    %265 = arith.truncf %262 : vector<4x128xf32> to vector<4x128xbf16>
    %c27 = arith.constant 27 : index
    %c0_126 = arith.constant 0 : index
    %c0_127 = arith.constant 0 : index
    %266 = vector.load %arg2[%c27, %c0_126, %c0_127] : memref<39x128x128xbf16, #tpu.memory_space<vmem>>, vector<1x128x128xbf16>
    %267 = vector.shape_cast %266 : vector<1x128x128xbf16> to vector<128x128xbf16>
    %cst_128 = arith.constant dense<0.000000e+00> : vector<4x128xf32>
    %268 = tpu.matmul %265, %267, %cst_128 {dimension_numbers = #tpu.dot_dimension_numbers<[1], [0], [0], [1], [0, 0, 1, 1], [], []>} : vector<4x128xbf16>, vector<128x128xbf16>, vector<4x128xf32> -> vector<4x128xf32>
    %269 = arith.truncf %259 : vector<4x128xf32> to vector<4x128xbf16>
    %c28 = arith.constant 28 : index
    %c0_129 = arith.constant 0 : index
    %c0_130 = arith.constant 0 : index
    %270 = vector.load %arg2[%c28, %c0_129, %c0_130] : memref<39x128x128xbf16, #tpu.memory_space<vmem>>, vector<1x128x128xbf16>
    %271 = vector.shape_cast %270 : vector<1x128x128xbf16> to vector<128x128xbf16>
    %cst_131 = arith.constant dense<0.000000e+00> : vector<4x128xf32>
    %272 = tpu.matmul %269, %271, %cst_131 {dimension_numbers = #tpu.dot_dimension_numbers<[1], [0], [0], [1], [0, 0, 1, 1], [], []>} : vector<4x128xbf16>, vector<128x128xbf16>, vector<4x128xf32> -> vector<4x128xf32>
    %273 = arith.addf %268, %272 : vector<4x128xf32>
    %274 = arith.truncf %264 : vector<4x128xf32> to vector<4x128xbf16>
    %c29 = arith.constant 29 : index
    %c0_132 = arith.constant 0 : index
    %c0_133 = arith.constant 0 : index
    %275 = vector.load %arg2[%c29, %c0_132, %c0_133] : memref<39x128x128xbf16, #tpu.memory_space<vmem>>, vector<1x128x128xbf16>
    %276 = vector.shape_cast %275 : vector<1x128x128xbf16> to vector<128x128xbf16>
    %cst_134 = arith.constant dense<0.000000e+00> : vector<4x128xf32>
    %277 = tpu.matmul %274, %276, %cst_134 {dimension_numbers = #tpu.dot_dimension_numbers<[1], [0], [0], [1], [0, 0, 1, 1], [], []>} : vector<4x128xbf16>, vector<128x128xbf16>, vector<4x128xf32> -> vector<4x128xf32>
    %278 = arith.addf %273, %277 : vector<4x128xf32>
    %c9_135 = arith.constant 9 : index
    %c0_136 = arith.constant 0 : index
    %279 = vector.load %arg3[%c9_135, %c0_136] : memref<13x128xf32, #tpu.memory_space<vmem>>, vector<1x128xf32>
    %280 = vector.broadcast %279 : vector<1x128xf32> to vector<4x128xf32>
    %281 = arith.addf %278, %280 : vector<4x128xf32>
    %cst_137 = arith.constant 0.000000e+00 : f32
    %282 = vector.broadcast %cst_137 : f32 to vector<4x128xf32>
    %283 = arith.maximumf %281, %282 : vector<4x128xf32>
    %284 = vector.extract_strided_slice %283 {offsets = [1, 0], sizes = [3, 128], strides = [1, 1]} : vector<4x128xf32> to vector<3x128xf32>
    %285 = vector.extract_strided_slice %283 {offsets = [0, 0], sizes = [1, 128], strides = [1, 1]} : vector<4x128xf32> to vector<1x128xf32>
    %286 = tpu.concatenate %284, %285 in 0 : vector<3x128xf32>, vector<1x128xf32> -> vector<4x128xf32>
    %287 = arith.maximumf %283, %286 : vector<4x128xf32>
    %288 = tpu.iota {dimensions = array<i32: 0>} : vector<2x4xi32>
    %289 = tpu.iota {dimensions = array<i32: 1>} : vector<2x4xi32>
    %c2_i32_138 = arith.constant 2 : i32
    %290 = vector.broadcast %c2_i32_138 : i32 to vector<2x4xi32>
    %291 = arith.muli %290, %288 : vector<2x4xi32>
    %292 = arith.cmpi eq, %289, %291 : vector<2x4xi32>
    %293 = arith.extui %292 : vector<2x4xi1> to vector<2x4xi32>
    %294 = arith.sitofp %293 : vector<2x4xi32> to vector<2x4xf32>
    %cst_139 = arith.constant dense<0.000000e+00> : vector<2x128xf32>
    %295 = tpu.matmul %294, %287, %cst_139 {dimension_numbers = #tpu.dot_dimension_numbers<[1], [0], [0], [1], [0, 0, 1, 1], [], []>} : vector<2x4xf32>, vector<4x128xf32>, vector<2x128xf32> -> vector<2x128xf32>
    %c96_i32 = arith.constant 96 : i32
    %296 = tpu.dynamic_rotate %295 by %c96_i32 dim 1 : vector<2x128xf32>, i32 -> vector<2x128xf32>
    %297 = arith.maximumf %295, %296 : vector<2x128xf32>
    %cst_140 = arith.constant 0.000000e+00 : f32
    %298 = vector.broadcast %cst_140 : f32 to vector<1x128xf32>
    %299 = vector.extract_strided_slice %297 {offsets = [0, 0], sizes = [1, 128], strides = [1, 1]} : vector<2x128xf32> to vector<1x128xf32>
    %300 = tpu.concatenate %298, %299 in 0 : vector<1x128xf32>, vector<1x128xf32> -> vector<2x128xf32>
    %301 = vector.extract_strided_slice %297 {offsets = [1, 0], sizes = [1, 128], strides = [1, 1]} : vector<2x128xf32> to vector<1x128xf32>
    %302 = tpu.concatenate %301, %298 in 0 : vector<1x128xf32>, vector<1x128xf32> -> vector<2x128xf32>
    %303 = arith.truncf %300 : vector<2x128xf32> to vector<2x128xbf16>
    %c30 = arith.constant 30 : index
    %c0_141 = arith.constant 0 : index
    %c0_142 = arith.constant 0 : index
    %304 = vector.load %arg2[%c30, %c0_141, %c0_142] : memref<39x128x128xbf16, #tpu.memory_space<vmem>>, vector<1x128x64xbf16>
    %305 = vector.shape_cast %304 : vector<1x128x64xbf16> to vector<128x64xbf16>
    %cst_143 = arith.constant dense<0.000000e+00> : vector<2x64xf32>
    %306 = tpu.matmul %303, %305, %cst_143 {dimension_numbers = #tpu.dot_dimension_numbers<[1], [0], [0], [1], [0, 0, 1, 1], [], []>} : vector<2x128xbf16>, vector<128x64xbf16>, vector<2x64xf32> -> vector<2x64xf32>
    %307 = arith.truncf %297 : vector<2x128xf32> to vector<2x128xbf16>
    %c31 = arith.constant 31 : index
    %c0_144 = arith.constant 0 : index
    %c0_145 = arith.constant 0 : index
    %308 = vector.load %arg2[%c31, %c0_144, %c0_145] : memref<39x128x128xbf16, #tpu.memory_space<vmem>>, vector<1x128x64xbf16>
    %309 = vector.shape_cast %308 : vector<1x128x64xbf16> to vector<128x64xbf16>
    %cst_146 = arith.constant dense<0.000000e+00> : vector<2x64xf32>
    %310 = tpu.matmul %307, %309, %cst_146 {dimension_numbers = #tpu.dot_dimension_numbers<[1], [0], [0], [1], [0, 0, 1, 1], [], []>} : vector<2x128xbf16>, vector<128x64xbf16>, vector<2x64xf32> -> vector<2x64xf32>
    %311 = arith.addf %306, %310 : vector<2x64xf32>
    %312 = arith.truncf %302 : vector<2x128xf32> to vector<2x128xbf16>
    %c32 = arith.constant 32 : index
    %c0_147 = arith.constant 0 : index
    %c0_148 = arith.constant 0 : index
    %313 = vector.load %arg2[%c32, %c0_147, %c0_148] : memref<39x128x128xbf16, #tpu.memory_space<vmem>>, vector<1x128x64xbf16>
    %314 = vector.shape_cast %313 : vector<1x128x64xbf16> to vector<128x64xbf16>
    %cst_149 = arith.constant dense<0.000000e+00> : vector<2x64xf32>
    %315 = tpu.matmul %312, %314, %cst_149 {dimension_numbers = #tpu.dot_dimension_numbers<[1], [0], [0], [1], [0, 0, 1, 1], [], []>} : vector<2x128xbf16>, vector<128x64xbf16>, vector<2x64xf32> -> vector<2x64xf32>
    %316 = arith.addf %311, %315 : vector<2x64xf32>
    %c10_150 = arith.constant 10 : index
    %c0_151 = arith.constant 0 : index
    %317 = vector.load %arg3[%c10_150, %c0_151] : memref<13x128xf32, #tpu.memory_space<vmem>>, vector<1x64xf32>
    %318 = vector.broadcast %317 : vector<1x64xf32> to vector<2x64xf32>
    %319 = arith.addf %316, %318 : vector<2x64xf32>
    %cst_152 = arith.constant 0.000000e+00 : f32
    %320 = vector.broadcast %cst_152 : f32 to vector<2x64xf32>
    %321 = arith.maximumf %319, %320 : vector<2x64xf32>
    %cst_153 = arith.constant 0.000000e+00 : f32
    %322 = vector.broadcast %cst_153 : f32 to vector<1x64xf32>
    %323 = vector.extract_strided_slice %321 {offsets = [0, 0], sizes = [1, 64], strides = [1, 1]} : vector<2x64xf32> to vector<1x64xf32>
    %324 = tpu.concatenate %322, %323 in 0 : vector<1x64xf32>, vector<1x64xf32> -> vector<2x64xf32>
    %325 = vector.extract_strided_slice %321 {offsets = [1, 0], sizes = [1, 64], strides = [1, 1]} : vector<2x64xf32> to vector<1x64xf32>
    %326 = tpu.concatenate %325, %322 in 0 : vector<1x64xf32>, vector<1x64xf32> -> vector<2x64xf32>
    %327 = arith.truncf %324 : vector<2x64xf32> to vector<2x64xbf16>
    %c33 = arith.constant 33 : index
    %c0_154 = arith.constant 0 : index
    %c0_155 = arith.constant 0 : index
    %328 = vector.load %arg2[%c33, %c0_154, %c0_155] : memref<39x128x128xbf16, #tpu.memory_space<vmem>>, vector<1x64x64xbf16>
    %329 = vector.shape_cast %328 : vector<1x64x64xbf16> to vector<64x64xbf16>
    %cst_156 = arith.constant dense<0.000000e+00> : vector<2x64xf32>
    %330 = tpu.matmul %327, %329, %cst_156 {dimension_numbers = #tpu.dot_dimension_numbers<[1], [0], [0], [1], [0, 0, 1, 1], [], []>} : vector<2x64xbf16>, vector<64x64xbf16>, vector<2x64xf32> -> vector<2x64xf32>
    %331 = arith.truncf %321 : vector<2x64xf32> to vector<2x64xbf16>
    %c34 = arith.constant 34 : index
    %c0_157 = arith.constant 0 : index
    %c0_158 = arith.constant 0 : index
    %332 = vector.load %arg2[%c34, %c0_157, %c0_158] : memref<39x128x128xbf16, #tpu.memory_space<vmem>>, vector<1x64x64xbf16>
    %333 = vector.shape_cast %332 : vector<1x64x64xbf16> to vector<64x64xbf16>
    %cst_159 = arith.constant dense<0.000000e+00> : vector<2x64xf32>
    %334 = tpu.matmul %331, %333, %cst_159 {dimension_numbers = #tpu.dot_dimension_numbers<[1], [0], [0], [1], [0, 0, 1, 1], [], []>} : vector<2x64xbf16>, vector<64x64xbf16>, vector<2x64xf32> -> vector<2x64xf32>
    %335 = arith.addf %330, %334 : vector<2x64xf32>
    %336 = arith.truncf %326 : vector<2x64xf32> to vector<2x64xbf16>
    %c35 = arith.constant 35 : index
    %c0_160 = arith.constant 0 : index
    %c0_161 = arith.constant 0 : index
    %337 = vector.load %arg2[%c35, %c0_160, %c0_161] : memref<39x128x128xbf16, #tpu.memory_space<vmem>>, vector<1x64x64xbf16>
    %338 = vector.shape_cast %337 : vector<1x64x64xbf16> to vector<64x64xbf16>
    %cst_162 = arith.constant dense<0.000000e+00> : vector<2x64xf32>
    %339 = tpu.matmul %336, %338, %cst_162 {dimension_numbers = #tpu.dot_dimension_numbers<[1], [0], [0], [1], [0, 0, 1, 1], [], []>} : vector<2x64xbf16>, vector<64x64xbf16>, vector<2x64xf32> -> vector<2x64xf32>
    %340 = arith.addf %335, %339 : vector<2x64xf32>
    %c11_163 = arith.constant 11 : index
    %c0_164 = arith.constant 0 : index
    %341 = vector.load %arg3[%c11_163, %c0_164] : memref<13x128xf32, #tpu.memory_space<vmem>>, vector<1x64xf32>
    %342 = vector.broadcast %341 : vector<1x64xf32> to vector<2x64xf32>
    %343 = arith.addf %340, %342 : vector<2x64xf32>
    %cst_165 = arith.constant 0.000000e+00 : f32
    %344 = vector.broadcast %cst_165 : f32 to vector<2x64xf32>
    %345 = arith.maximumf %343, %344 : vector<2x64xf32>
    %cst_166 = arith.constant 0.000000e+00 : f32
    %346 = vector.broadcast %cst_166 : f32 to vector<1x64xf32>
    %347 = vector.extract_strided_slice %345 {offsets = [0, 0], sizes = [1, 64], strides = [1, 1]} : vector<2x64xf32> to vector<1x64xf32>
    %348 = tpu.concatenate %346, %347 in 0 : vector<1x64xf32>, vector<1x64xf32> -> vector<2x64xf32>
    %349 = vector.extract_strided_slice %345 {offsets = [1, 0], sizes = [1, 64], strides = [1, 1]} : vector<2x64xf32> to vector<1x64xf32>
    %350 = tpu.concatenate %349, %346 in 0 : vector<1x64xf32>, vector<1x64xf32> -> vector<2x64xf32>
    %351 = arith.truncf %348 : vector<2x64xf32> to vector<2x64xbf16>
    %c36 = arith.constant 36 : index
    %c0_167 = arith.constant 0 : index
    %c0_168 = arith.constant 0 : index
    %352 = vector.load %arg2[%c36, %c0_167, %c0_168] : memref<39x128x128xbf16, #tpu.memory_space<vmem>>, vector<1x64x64xbf16>
    %353 = vector.shape_cast %352 : vector<1x64x64xbf16> to vector<64x64xbf16>
    %cst_169 = arith.constant dense<0.000000e+00> : vector<2x64xf32>
    %354 = tpu.matmul %351, %353, %cst_169 {dimension_numbers = #tpu.dot_dimension_numbers<[1], [0], [0], [1], [0, 0, 1, 1], [], []>} : vector<2x64xbf16>, vector<64x64xbf16>, vector<2x64xf32> -> vector<2x64xf32>
    %355 = arith.truncf %345 : vector<2x64xf32> to vector<2x64xbf16>
    %c37 = arith.constant 37 : index
    %c0_170 = arith.constant 0 : index
    %c0_171 = arith.constant 0 : index
    %356 = vector.load %arg2[%c37, %c0_170, %c0_171] : memref<39x128x128xbf16, #tpu.memory_space<vmem>>, vector<1x64x64xbf16>
    %357 = vector.shape_cast %356 : vector<1x64x64xbf16> to vector<64x64xbf16>
    %cst_172 = arith.constant dense<0.000000e+00> : vector<2x64xf32>
    %358 = tpu.matmul %355, %357, %cst_172 {dimension_numbers = #tpu.dot_dimension_numbers<[1], [0], [0], [1], [0, 0, 1, 1], [], []>} : vector<2x64xbf16>, vector<64x64xbf16>, vector<2x64xf32> -> vector<2x64xf32>
    %359 = arith.addf %354, %358 : vector<2x64xf32>
    %360 = arith.truncf %350 : vector<2x64xf32> to vector<2x64xbf16>
    %c38 = arith.constant 38 : index
    %c0_173 = arith.constant 0 : index
    %c0_174 = arith.constant 0 : index
    %361 = vector.load %arg2[%c38, %c0_173, %c0_174] : memref<39x128x128xbf16, #tpu.memory_space<vmem>>, vector<1x64x64xbf16>
    %362 = vector.shape_cast %361 : vector<1x64x64xbf16> to vector<64x64xbf16>
    %cst_175 = arith.constant dense<0.000000e+00> : vector<2x64xf32>
    %363 = tpu.matmul %360, %362, %cst_175 {dimension_numbers = #tpu.dot_dimension_numbers<[1], [0], [0], [1], [0, 0, 1, 1], [], []>} : vector<2x64xbf16>, vector<64x64xbf16>, vector<2x64xf32> -> vector<2x64xf32>
    %364 = arith.addf %359, %363 : vector<2x64xf32>
    %c12_176 = arith.constant 12 : index
    %c0_177 = arith.constant 0 : index
    %365 = vector.load %arg3[%c12_176, %c0_177] : memref<13x128xf32, #tpu.memory_space<vmem>>, vector<1x64xf32>
    %366 = vector.broadcast %365 : vector<1x64xf32> to vector<2x64xf32>
    %367 = arith.addf %364, %366 : vector<2x64xf32>
    %cst_178 = arith.constant 0.000000e+00 : f32
    %368 = vector.broadcast %cst_178 : f32 to vector<2x64xf32>
    %369 = arith.maximumf %367, %368 : vector<2x64xf32>
    %370 = vector.extract_strided_slice %369 {offsets = [1, 0], sizes = [1, 64], strides = [1, 1]} : vector<2x64xf32> to vector<1x64xf32>
    %371 = vector.extract_strided_slice %369 {offsets = [0, 0], sizes = [1, 64], strides = [1, 1]} : vector<2x64xf32> to vector<1x64xf32>
    %372 = tpu.concatenate %370, %371 in 0 : vector<1x64xf32>, vector<1x64xf32> -> vector<2x64xf32>
    %373 = arith.maximumf %369, %372 : vector<2x64xf32>
    %374 = vector.extract_strided_slice %373 {offsets = [0, 0], sizes = [1, 64], strides = [1, 1]} : vector<2x64xf32> to vector<1x64xf32>
    %c32_i32 = arith.constant 32 : i32
    %375 = tpu.dynamic_rotate %374 by %c32_i32 dim 1 : vector<1x64xf32>, i32 -> vector<1x64xf32>
    %376 = arith.maximumf %374, %375 : vector<1x64xf32>
    %377 = arith.truncf %376 : vector<1x64xf32> to vector<1x64xbf16>
    %c0_179 = arith.constant 0 : index
    %c0_180 = arith.constant 0 : index
    %378 = vector.load %arg4[%c0_179, %c0_180] : memref<64x128xbf16, #tpu.memory_space<vmem>>, vector<64x128xbf16>
    %cst_181 = arith.constant dense<0.000000e+00> : vector<1x128xf32>
    %379 = tpu.matmul %377, %378, %cst_181 {dimension_numbers = #tpu.dot_dimension_numbers<[1], [0], [0], [1], [0, 0, 1, 1], [], []>} : vector<1x64xbf16>, vector<64x128xbf16>, vector<1x128xf32> -> vector<1x128xf32>
    %c0_182 = arith.constant 0 : index
    %c0_183 = arith.constant 0 : index
    %380 = vector.load %arg5[%c0_182, %c0_183] : memref<1x128xf32, #tpu.memory_space<vmem>>, vector<1x128xf32>
    %381 = arith.addf %379, %380 : vector<1x128xf32>
    %cst_184 = arith.constant 0.000000e+00 : f32
    %382 = vector.broadcast %cst_184 : f32 to vector<1x128xf32>
    %383 = arith.maximumf %381, %382 : vector<1x128xf32>
    %384 = arith.truncf %383 : vector<1x128xf32> to vector<1x128xbf16>
    %c0_185 = arith.constant 0 : index
    %c0_186 = arith.constant 0 : index
    %385 = vector.load %arg6[%c0_185, %c0_186] : memref<128x128xbf16, #tpu.memory_space<vmem>>, vector<128x128xbf16>
    %cst_187 = arith.constant dense<0.000000e+00> : vector<1x128xf32>
    %386 = tpu.matmul %384, %385, %cst_187 {dimension_numbers = #tpu.dot_dimension_numbers<[1], [0], [0], [1], [0, 0, 1, 1], [], []>} : vector<1x128xbf16>, vector<128x128xbf16>, vector<1x128xf32> -> vector<1x128xf32>
    %c0_188 = arith.constant 0 : index
    %c0_189 = arith.constant 0 : index
    %387 = vector.load %arg7[%c0_188, %c0_189] : memref<1x128xf32, #tpu.memory_space<vmem>>, vector<1x128xf32>
    %388 = arith.addf %386, %387 : vector<1x128xf32>
    %cst_190 = arith.constant 0.000000e+00 : f32
    %389 = vector.broadcast %cst_190 : f32 to vector<1x128xf32>
    %390 = arith.maximumf %388, %389 : vector<1x128xf32>
    %c0_191 = arith.constant 0 : index
    %c1_192 = arith.constant 1 : index
    %c0_193 = arith.constant 0 : index
    %c0_194 = arith.constant 0 : index
    %391 = vector.load %arg1[%c0_191, %c1_192, %c0_193, %c0_194] : memref<1x2x32x96xf32, #tpu.memory_space<vmem>>, vector<1x1x32x96xf32>
    %392 = vector.shape_cast %391 : vector<1x1x32x96xf32> to vector<32x96xf32>
    %cst_195 = arith.constant 0.000000e+00 : f32
    %393 = vector.broadcast %cst_195 : f32 to vector<1x96xf32>
    %394 = vector.extract_strided_slice %392 {offsets = [0, 0], sizes = [31, 96], strides = [1, 1]} : vector<32x96xf32> to vector<31x96xf32>
    %395 = tpu.concatenate %393, %394 in 0 : vector<1x96xf32>, vector<31x96xf32> -> vector<32x96xf32>
    %396 = vector.extract_strided_slice %392 {offsets = [1, 0], sizes = [31, 96], strides = [1, 1]} : vector<32x96xf32> to vector<31x96xf32>
    %397 = tpu.concatenate %396, %393 in 0 : vector<31x96xf32>, vector<1x96xf32> -> vector<32x96xf32>
    %398 = arith.truncf %395 : vector<32x96xf32> to vector<32x96xbf16>
    %c0_196 = arith.constant 0 : index
    %c0_197 = arith.constant 0 : index
    %c0_198 = arith.constant 0 : index
    %399 = vector.load %arg2[%c0_196, %c0_197, %c0_198] : memref<39x128x128xbf16, #tpu.memory_space<vmem>>, vector<1x96x128xbf16>
    %400 = vector.shape_cast %399 : vector<1x96x128xbf16> to vector<96x128xbf16>
    %cst_199 = arith.constant dense<0.000000e+00> : vector<32x128xf32>
    %401 = tpu.matmul %398, %400, %cst_199 {dimension_numbers = #tpu.dot_dimension_numbers<[1], [0], [0], [1], [0, 0, 1, 1], [], []>} : vector<32x96xbf16>, vector<96x128xbf16>, vector<32x128xf32> -> vector<32x128xf32>
    %402 = arith.truncf %392 : vector<32x96xf32> to vector<32x96xbf16>
    %c1_200 = arith.constant 1 : index
    %c0_201 = arith.constant 0 : index
    %c0_202 = arith.constant 0 : index
    %403 = vector.load %arg2[%c1_200, %c0_201, %c0_202] : memref<39x128x128xbf16, #tpu.memory_space<vmem>>, vector<1x96x128xbf16>
    %404 = vector.shape_cast %403 : vector<1x96x128xbf16> to vector<96x128xbf16>
    %cst_203 = arith.constant dense<0.000000e+00> : vector<32x128xf32>
    %405 = tpu.matmul %402, %404, %cst_203 {dimension_numbers = #tpu.dot_dimension_numbers<[1], [0], [0], [1], [0, 0, 1, 1], [], []>} : vector<32x96xbf16>, vector<96x128xbf16>, vector<32x128xf32> -> vector<32x128xf32>
    %406 = arith.addf %401, %405 : vector<32x128xf32>
    %407 = arith.truncf %397 : vector<32x96xf32> to vector<32x96xbf16>
    %c2_204 = arith.constant 2 : index
    %c0_205 = arith.constant 0 : index
    %c0_206 = arith.constant 0 : index
    %408 = vector.load %arg2[%c2_204, %c0_205, %c0_206] : memref<39x128x128xbf16, #tpu.memory_space<vmem>>, vector<1x96x128xbf16>
    %409 = vector.shape_cast %408 : vector<1x96x128xbf16> to vector<96x128xbf16>
    %cst_207 = arith.constant dense<0.000000e+00> : vector<32x128xf32>
    %410 = tpu.matmul %407, %409, %cst_207 {dimension_numbers = #tpu.dot_dimension_numbers<[1], [0], [0], [1], [0, 0, 1, 1], [], []>} : vector<32x96xbf16>, vector<96x128xbf16>, vector<32x128xf32> -> vector<32x128xf32>
    %411 = arith.addf %406, %410 : vector<32x128xf32>
    %c0_208 = arith.constant 0 : index
    %c0_209 = arith.constant 0 : index
    %412 = vector.load %arg3[%c0_208, %c0_209] : memref<13x128xf32, #tpu.memory_space<vmem>>, vector<1x128xf32>
    %413 = vector.broadcast %412 : vector<1x128xf32> to vector<32x128xf32>
    %414 = arith.addf %411, %413 : vector<32x128xf32>
    %cst_210 = arith.constant 0.000000e+00 : f32
    %415 = vector.broadcast %cst_210 : f32 to vector<32x128xf32>
    %416 = arith.maximumf %414, %415 : vector<32x128xf32>
    %cst_211 = arith.constant 0.000000e+00 : f32
    %417 = vector.broadcast %cst_211 : f32 to vector<1x128xf32>
    %418 = vector.extract_strided_slice %416 {offsets = [0, 0], sizes = [31, 128], strides = [1, 1]} : vector<32x128xf32> to vector<31x128xf32>
    %419 = tpu.concatenate %417, %418 in 0 : vector<1x128xf32>, vector<31x128xf32> -> vector<32x128xf32>
    %420 = vector.extract_strided_slice %416 {offsets = [1, 0], sizes = [31, 128], strides = [1, 1]} : vector<32x128xf32> to vector<31x128xf32>
    %421 = tpu.concatenate %420, %417 in 0 : vector<31x128xf32>, vector<1x128xf32> -> vector<32x128xf32>
    %422 = arith.truncf %419 : vector<32x128xf32> to vector<32x128xbf16>
    %c3_212 = arith.constant 3 : index
    %c0_213 = arith.constant 0 : index
    %c0_214 = arith.constant 0 : index
    %423 = vector.load %arg2[%c3_212, %c0_213, %c0_214] : memref<39x128x128xbf16, #tpu.memory_space<vmem>>, vector<1x128x128xbf16>
    %424 = vector.shape_cast %423 : vector<1x128x128xbf16> to vector<128x128xbf16>
    %cst_215 = arith.constant dense<0.000000e+00> : vector<32x128xf32>
    %425 = tpu.matmul %422, %424, %cst_215 {dimension_numbers = #tpu.dot_dimension_numbers<[1], [0], [0], [1], [0, 0, 1, 1], [], []>} : vector<32x128xbf16>, vector<128x128xbf16>, vector<32x128xf32> -> vector<32x128xf32>
    %426 = arith.truncf %416 : vector<32x128xf32> to vector<32x128xbf16>
    %c4_216 = arith.constant 4 : index
    %c0_217 = arith.constant 0 : index
    %c0_218 = arith.constant 0 : index
    %427 = vector.load %arg2[%c4_216, %c0_217, %c0_218] : memref<39x128x128xbf16, #tpu.memory_space<vmem>>, vector<1x128x128xbf16>
    %428 = vector.shape_cast %427 : vector<1x128x128xbf16> to vector<128x128xbf16>
    %cst_219 = arith.constant dense<0.000000e+00> : vector<32x128xf32>
    %429 = tpu.matmul %426, %428, %cst_219 {dimension_numbers = #tpu.dot_dimension_numbers<[1], [0], [0], [1], [0, 0, 1, 1], [], []>} : vector<32x128xbf16>, vector<128x128xbf16>, vector<32x128xf32> -> vector<32x128xf32>
    %430 = arith.addf %425, %429 : vector<32x128xf32>
    %431 = arith.truncf %421 : vector<32x128xf32> to vector<32x128xbf16>
    %c5_220 = arith.constant 5 : index
    %c0_221 = arith.constant 0 : index
    %c0_222 = arith.constant 0 : index
    %432 = vector.load %arg2[%c5_220, %c0_221, %c0_222] : memref<39x128x128xbf16, #tpu.memory_space<vmem>>, vector<1x128x128xbf16>
    %433 = vector.shape_cast %432 : vector<1x128x128xbf16> to vector<128x128xbf16>
    %cst_223 = arith.constant dense<0.000000e+00> : vector<32x128xf32>
    %434 = tpu.matmul %431, %433, %cst_223 {dimension_numbers = #tpu.dot_dimension_numbers<[1], [0], [0], [1], [0, 0, 1, 1], [], []>} : vector<32x128xbf16>, vector<128x128xbf16>, vector<32x128xf32> -> vector<32x128xf32>
    %435 = arith.addf %430, %434 : vector<32x128xf32>
    %c1_224 = arith.constant 1 : index
    %c0_225 = arith.constant 0 : index
    %436 = vector.load %arg3[%c1_224, %c0_225] : memref<13x128xf32, #tpu.memory_space<vmem>>, vector<1x128xf32>
    %437 = vector.broadcast %436 : vector<1x128xf32> to vector<32x128xf32>
    %438 = arith.addf %435, %437 : vector<32x128xf32>
    %cst_226 = arith.constant 0.000000e+00 : f32
    %439 = vector.broadcast %cst_226 : f32 to vector<32x128xf32>
    %440 = arith.maximumf %438, %439 : vector<32x128xf32>
    %441 = vector.extract_strided_slice %440 {offsets = [1, 0], sizes = [31, 128], strides = [1, 1]} : vector<32x128xf32> to vector<31x128xf32>
    %442 = vector.extract_strided_slice %440 {offsets = [0, 0], sizes = [1, 128], strides = [1, 1]} : vector<32x128xf32> to vector<1x128xf32>
    %443 = tpu.concatenate %441, %442 in 0 : vector<31x128xf32>, vector<1x128xf32> -> vector<32x128xf32>
    %444 = arith.maximumf %440, %443 : vector<32x128xf32>
    %445 = tpu.iota {dimensions = array<i32: 0>} : vector<16x32xi32>
    %446 = tpu.iota {dimensions = array<i32: 1>} : vector<16x32xi32>
    %c2_i32_227 = arith.constant 2 : i32
    %447 = vector.broadcast %c2_i32_227 : i32 to vector<16x32xi32>
    %448 = arith.muli %447, %445 : vector<16x32xi32>
    %449 = arith.cmpi eq, %446, %448 : vector<16x32xi32>
    %450 = arith.extui %449 : vector<16x32xi1> to vector<16x32xi32>
    %451 = arith.sitofp %450 : vector<16x32xi32> to vector<16x32xf32>
    %cst_228 = arith.constant dense<0.000000e+00> : vector<16x128xf32>
    %452 = tpu.matmul %451, %444, %cst_228 {dimension_numbers = #tpu.dot_dimension_numbers<[1], [0], [0], [1], [0, 0, 1, 1], [], []>} : vector<16x32xf32>, vector<32x128xf32>, vector<16x128xf32> -> vector<16x128xf32>
    %c124_i32_229 = arith.constant 124 : i32
    %453 = tpu.dynamic_rotate %452 by %c124_i32_229 dim 1 : vector<16x128xf32>, i32 -> vector<16x128xf32>
    %454 = arith.maximumf %452, %453 : vector<16x128xf32>
    %cst_230 = arith.constant 0.000000e+00 : f32
    %455 = vector.broadcast %cst_230 : f32 to vector<1x128xf32>
    %456 = vector.extract_strided_slice %454 {offsets = [0, 0], sizes = [15, 128], strides = [1, 1]} : vector<16x128xf32> to vector<15x128xf32>
    %457 = tpu.concatenate %455, %456 in 0 : vector<1x128xf32>, vector<15x128xf32> -> vector<16x128xf32>
    %458 = vector.extract_strided_slice %454 {offsets = [1, 0], sizes = [15, 128], strides = [1, 1]} : vector<16x128xf32> to vector<15x128xf32>
    %459 = tpu.concatenate %458, %455 in 0 : vector<15x128xf32>, vector<1x128xf32> -> vector<16x128xf32>
    %460 = arith.truncf %457 : vector<16x128xf32> to vector<16x128xbf16>
    %c6_231 = arith.constant 6 : index
    %c0_232 = arith.constant 0 : index
    %c0_233 = arith.constant 0 : index
    %461 = vector.load %arg2[%c6_231, %c0_232, %c0_233] : memref<39x128x128xbf16, #tpu.memory_space<vmem>>, vector<1x128x128xbf16>
    %462 = vector.shape_cast %461 : vector<1x128x128xbf16> to vector<128x128xbf16>
    %cst_234 = arith.constant dense<0.000000e+00> : vector<16x128xf32>
    %463 = tpu.matmul %460, %462, %cst_234 {dimension_numbers = #tpu.dot_dimension_numbers<[1], [0], [0], [1], [0, 0, 1, 1], [], []>} : vector<16x128xbf16>, vector<128x128xbf16>, vector<16x128xf32> -> vector<16x128xf32>
    %464 = arith.truncf %454 : vector<16x128xf32> to vector<16x128xbf16>
    %c7_235 = arith.constant 7 : index
    %c0_236 = arith.constant 0 : index
    %c0_237 = arith.constant 0 : index
    %465 = vector.load %arg2[%c7_235, %c0_236, %c0_237] : memref<39x128x128xbf16, #tpu.memory_space<vmem>>, vector<1x128x128xbf16>
    %466 = vector.shape_cast %465 : vector<1x128x128xbf16> to vector<128x128xbf16>
    %cst_238 = arith.constant dense<0.000000e+00> : vector<16x128xf32>
    %467 = tpu.matmul %464, %466, %cst_238 {dimension_numbers = #tpu.dot_dimension_numbers<[1], [0], [0], [1], [0, 0, 1, 1], [], []>} : vector<16x128xbf16>, vector<128x128xbf16>, vector<16x128xf32> -> vector<16x128xf32>
    %468 = arith.addf %463, %467 : vector<16x128xf32>
    %469 = arith.truncf %459 : vector<16x128xf32> to vector<16x128xbf16>
    %c8_239 = arith.constant 8 : index
    %c0_240 = arith.constant 0 : index
    %c0_241 = arith.constant 0 : index
    %470 = vector.load %arg2[%c8_239, %c0_240, %c0_241] : memref<39x128x128xbf16, #tpu.memory_space<vmem>>, vector<1x128x128xbf16>
    %471 = vector.shape_cast %470 : vector<1x128x128xbf16> to vector<128x128xbf16>
    %cst_242 = arith.constant dense<0.000000e+00> : vector<16x128xf32>
    %472 = tpu.matmul %469, %471, %cst_242 {dimension_numbers = #tpu.dot_dimension_numbers<[1], [0], [0], [1], [0, 0, 1, 1], [], []>} : vector<16x128xbf16>, vector<128x128xbf16>, vector<16x128xf32> -> vector<16x128xf32>
    %473 = arith.addf %468, %472 : vector<16x128xf32>
    %c2_243 = arith.constant 2 : index
    %c0_244 = arith.constant 0 : index
    %474 = vector.load %arg3[%c2_243, %c0_244] : memref<13x128xf32, #tpu.memory_space<vmem>>, vector<1x128xf32>
    %475 = vector.broadcast %474 : vector<1x128xf32> to vector<16x128xf32>
    %476 = arith.addf %473, %475 : vector<16x128xf32>
    %cst_245 = arith.constant 0.000000e+00 : f32
    %477 = vector.broadcast %cst_245 : f32 to vector<16x128xf32>
    %478 = arith.maximumf %476, %477 : vector<16x128xf32>
    %cst_246 = arith.constant 0.000000e+00 : f32
    %479 = vector.broadcast %cst_246 : f32 to vector<1x128xf32>
    %480 = vector.extract_strided_slice %478 {offsets = [0, 0], sizes = [15, 128], strides = [1, 1]} : vector<16x128xf32> to vector<15x128xf32>
    %481 = tpu.concatenate %479, %480 in 0 : vector<1x128xf32>, vector<15x128xf32> -> vector<16x128xf32>
    %482 = vector.extract_strided_slice %478 {offsets = [1, 0], sizes = [15, 128], strides = [1, 1]} : vector<16x128xf32> to vector<15x128xf32>
    %483 = tpu.concatenate %482, %479 in 0 : vector<15x128xf32>, vector<1x128xf32> -> vector<16x128xf32>
    %484 = arith.truncf %481 : vector<16x128xf32> to vector<16x128xbf16>
    %c9_247 = arith.constant 9 : index
    %c0_248 = arith.constant 0 : index
    %c0_249 = arith.constant 0 : index
    %485 = vector.load %arg2[%c9_247, %c0_248, %c0_249] : memref<39x128x128xbf16, #tpu.memory_space<vmem>>, vector<1x128x128xbf16>
    %486 = vector.shape_cast %485 : vector<1x128x128xbf16> to vector<128x128xbf16>
    %cst_250 = arith.constant dense<0.000000e+00> : vector<16x128xf32>
    %487 = tpu.matmul %484, %486, %cst_250 {dimension_numbers = #tpu.dot_dimension_numbers<[1], [0], [0], [1], [0, 0, 1, 1], [], []>} : vector<16x128xbf16>, vector<128x128xbf16>, vector<16x128xf32> -> vector<16x128xf32>
    %488 = arith.truncf %478 : vector<16x128xf32> to vector<16x128xbf16>
    %c10_251 = arith.constant 10 : index
    %c0_252 = arith.constant 0 : index
    %c0_253 = arith.constant 0 : index
    %489 = vector.load %arg2[%c10_251, %c0_252, %c0_253] : memref<39x128x128xbf16, #tpu.memory_space<vmem>>, vector<1x128x128xbf16>
    %490 = vector.shape_cast %489 : vector<1x128x128xbf16> to vector<128x128xbf16>
    %cst_254 = arith.constant dense<0.000000e+00> : vector<16x128xf32>
    %491 = tpu.matmul %488, %490, %cst_254 {dimension_numbers = #tpu.dot_dimension_numbers<[1], [0], [0], [1], [0, 0, 1, 1], [], []>} : vector<16x128xbf16>, vector<128x128xbf16>, vector<16x128xf32> -> vector<16x128xf32>
    %492 = arith.addf %487, %491 : vector<16x128xf32>
    %493 = arith.truncf %483 : vector<16x128xf32> to vector<16x128xbf16>
    %c11_255 = arith.constant 11 : index
    %c0_256 = arith.constant 0 : index
    %c0_257 = arith.constant 0 : index
    %494 = vector.load %arg2[%c11_255, %c0_256, %c0_257] : memref<39x128x128xbf16, #tpu.memory_space<vmem>>, vector<1x128x128xbf16>
    %495 = vector.shape_cast %494 : vector<1x128x128xbf16> to vector<128x128xbf16>
    %cst_258 = arith.constant dense<0.000000e+00> : vector<16x128xf32>
    %496 = tpu.matmul %493, %495, %cst_258 {dimension_numbers = #tpu.dot_dimension_numbers<[1], [0], [0], [1], [0, 0, 1, 1], [], []>} : vector<16x128xbf16>, vector<128x128xbf16>, vector<16x128xf32> -> vector<16x128xf32>
    %497 = arith.addf %492, %496 : vector<16x128xf32>
    %c3_259 = arith.constant 3 : index
    %c0_260 = arith.constant 0 : index
    %498 = vector.load %arg3[%c3_259, %c0_260] : memref<13x128xf32, #tpu.memory_space<vmem>>, vector<1x128xf32>
    %499 = vector.broadcast %498 : vector<1x128xf32> to vector<16x128xf32>
    %500 = arith.addf %497, %499 : vector<16x128xf32>
    %cst_261 = arith.constant 0.000000e+00 : f32
    %501 = vector.broadcast %cst_261 : f32 to vector<16x128xf32>
    %502 = arith.maximumf %500, %501 : vector<16x128xf32>
    %503 = vector.extract_strided_slice %502 {offsets = [1, 0], sizes = [15, 128], strides = [1, 1]} : vector<16x128xf32> to vector<15x128xf32>
    %504 = vector.extract_strided_slice %502 {offsets = [0, 0], sizes = [1, 128], strides = [1, 1]} : vector<16x128xf32> to vector<1x128xf32>
    %505 = tpu.concatenate %503, %504 in 0 : vector<15x128xf32>, vector<1x128xf32> -> vector<16x128xf32>
    %506 = arith.maximumf %502, %505 : vector<16x128xf32>
    %507 = tpu.iota {dimensions = array<i32: 0>} : vector<8x16xi32>
    %508 = tpu.iota {dimensions = array<i32: 1>} : vector<8x16xi32>
    %c2_i32_262 = arith.constant 2 : i32
    %509 = vector.broadcast %c2_i32_262 : i32 to vector<8x16xi32>
    %510 = arith.muli %509, %507 : vector<8x16xi32>
    %511 = arith.cmpi eq, %508, %510 : vector<8x16xi32>
    %512 = arith.extui %511 : vector<8x16xi1> to vector<8x16xi32>
    %513 = arith.sitofp %512 : vector<8x16xi32> to vector<8x16xf32>
    %cst_263 = arith.constant dense<0.000000e+00> : vector<8x128xf32>
    %514 = tpu.matmul %513, %506, %cst_263 {dimension_numbers = #tpu.dot_dimension_numbers<[1], [0], [0], [1], [0, 0, 1, 1], [], []>} : vector<8x16xf32>, vector<16x128xf32>, vector<8x128xf32> -> vector<8x128xf32>
    %c120_i32_264 = arith.constant 120 : i32
    %515 = tpu.dynamic_rotate %514 by %c120_i32_264 dim 1 : vector<8x128xf32>, i32 -> vector<8x128xf32>
    %516 = arith.maximumf %514, %515 : vector<8x128xf32>
    %cst_265 = arith.constant 0.000000e+00 : f32
    %517 = vector.broadcast %cst_265 : f32 to vector<1x128xf32>
    %518 = vector.extract_strided_slice %516 {offsets = [0, 0], sizes = [7, 128], strides = [1, 1]} : vector<8x128xf32> to vector<7x128xf32>
    %519 = tpu.concatenate %517, %518 in 0 : vector<1x128xf32>, vector<7x128xf32> -> vector<8x128xf32>
    %520 = vector.extract_strided_slice %516 {offsets = [1, 0], sizes = [7, 128], strides = [1, 1]} : vector<8x128xf32> to vector<7x128xf32>
    %521 = tpu.concatenate %520, %517 in 0 : vector<7x128xf32>, vector<1x128xf32> -> vector<8x128xf32>
    %522 = arith.truncf %519 : vector<8x128xf32> to vector<8x128xbf16>
    %c12_266 = arith.constant 12 : index
    %c0_267 = arith.constant 0 : index
    %c0_268 = arith.constant 0 : index
    %523 = vector.load %arg2[%c12_266, %c0_267, %c0_268] : memref<39x128x128xbf16, #tpu.memory_space<vmem>>, vector<1x128x128xbf16>
    %524 = vector.shape_cast %523 : vector<1x128x128xbf16> to vector<128x128xbf16>
    %cst_269 = arith.constant dense<0.000000e+00> : vector<8x128xf32>
    %525 = tpu.matmul %522, %524, %cst_269 {dimension_numbers = #tpu.dot_dimension_numbers<[1], [0], [0], [1], [0, 0, 1, 1], [], []>} : vector<8x128xbf16>, vector<128x128xbf16>, vector<8x128xf32> -> vector<8x128xf32>
    %526 = arith.truncf %516 : vector<8x128xf32> to vector<8x128xbf16>
    %c13_270 = arith.constant 13 : index
    %c0_271 = arith.constant 0 : index
    %c0_272 = arith.constant 0 : index
    %527 = vector.load %arg2[%c13_270, %c0_271, %c0_272] : memref<39x128x128xbf16, #tpu.memory_space<vmem>>, vector<1x128x128xbf16>
    %528 = vector.shape_cast %527 : vector<1x128x128xbf16> to vector<128x128xbf16>
    %cst_273 = arith.constant dense<0.000000e+00> : vector<8x128xf32>
    %529 = tpu.matmul %526, %528, %cst_273 {dimension_numbers = #tpu.dot_dimension_numbers<[1], [0], [0], [1], [0, 0, 1, 1], [], []>} : vector<8x128xbf16>, vector<128x128xbf16>, vector<8x128xf32> -> vector<8x128xf32>
    %530 = arith.addf %525, %529 : vector<8x128xf32>
    %531 = arith.truncf %521 : vector<8x128xf32> to vector<8x128xbf16>
    %c14_274 = arith.constant 14 : index
    %c0_275 = arith.constant 0 : index
    %c0_276 = arith.constant 0 : index
    %532 = vector.load %arg2[%c14_274, %c0_275, %c0_276] : memref<39x128x128xbf16, #tpu.memory_space<vmem>>, vector<1x128x128xbf16>
    %533 = vector.shape_cast %532 : vector<1x128x128xbf16> to vector<128x128xbf16>
    %cst_277 = arith.constant dense<0.000000e+00> : vector<8x128xf32>
    %534 = tpu.matmul %531, %533, %cst_277 {dimension_numbers = #tpu.dot_dimension_numbers<[1], [0], [0], [1], [0, 0, 1, 1], [], []>} : vector<8x128xbf16>, vector<128x128xbf16>, vector<8x128xf32> -> vector<8x128xf32>
    %535 = arith.addf %530, %534 : vector<8x128xf32>
    %c4_278 = arith.constant 4 : index
    %c0_279 = arith.constant 0 : index
    %536 = vector.load %arg3[%c4_278, %c0_279] : memref<13x128xf32, #tpu.memory_space<vmem>>, vector<1x128xf32>
    %537 = vector.broadcast %536 : vector<1x128xf32> to vector<8x128xf32>
    %538 = arith.addf %535, %537 : vector<8x128xf32>
    %cst_280 = arith.constant 0.000000e+00 : f32
    %539 = vector.broadcast %cst_280 : f32 to vector<8x128xf32>
    %540 = arith.maximumf %538, %539 : vector<8x128xf32>
    %cst_281 = arith.constant 0.000000e+00 : f32
    %541 = vector.broadcast %cst_281 : f32 to vector<1x128xf32>
    %542 = vector.extract_strided_slice %540 {offsets = [0, 0], sizes = [7, 128], strides = [1, 1]} : vector<8x128xf32> to vector<7x128xf32>
    %543 = tpu.concatenate %541, %542 in 0 : vector<1x128xf32>, vector<7x128xf32> -> vector<8x128xf32>
    %544 = vector.extract_strided_slice %540 {offsets = [1, 0], sizes = [7, 128], strides = [1, 1]} : vector<8x128xf32> to vector<7x128xf32>
    %545 = tpu.concatenate %544, %541 in 0 : vector<7x128xf32>, vector<1x128xf32> -> vector<8x128xf32>
    %546 = arith.truncf %543 : vector<8x128xf32> to vector<8x128xbf16>
    %c15_282 = arith.constant 15 : index
    %c0_283 = arith.constant 0 : index
    %c0_284 = arith.constant 0 : index
    %547 = vector.load %arg2[%c15_282, %c0_283, %c0_284] : memref<39x128x128xbf16, #tpu.memory_space<vmem>>, vector<1x128x128xbf16>
    %548 = vector.shape_cast %547 : vector<1x128x128xbf16> to vector<128x128xbf16>
    %cst_285 = arith.constant dense<0.000000e+00> : vector<8x128xf32>
    %549 = tpu.matmul %546, %548, %cst_285 {dimension_numbers = #tpu.dot_dimension_numbers<[1], [0], [0], [1], [0, 0, 1, 1], [], []>} : vector<8x128xbf16>, vector<128x128xbf16>, vector<8x128xf32> -> vector<8x128xf32>
    %550 = arith.truncf %540 : vector<8x128xf32> to vector<8x128xbf16>
    %c16_286 = arith.constant 16 : index
    %c0_287 = arith.constant 0 : index
    %c0_288 = arith.constant 0 : index
    %551 = vector.load %arg2[%c16_286, %c0_287, %c0_288] : memref<39x128x128xbf16, #tpu.memory_space<vmem>>, vector<1x128x128xbf16>
    %552 = vector.shape_cast %551 : vector<1x128x128xbf16> to vector<128x128xbf16>
    %cst_289 = arith.constant dense<0.000000e+00> : vector<8x128xf32>
    %553 = tpu.matmul %550, %552, %cst_289 {dimension_numbers = #tpu.dot_dimension_numbers<[1], [0], [0], [1], [0, 0, 1, 1], [], []>} : vector<8x128xbf16>, vector<128x128xbf16>, vector<8x128xf32> -> vector<8x128xf32>
    %554 = arith.addf %549, %553 : vector<8x128xf32>
    %555 = arith.truncf %545 : vector<8x128xf32> to vector<8x128xbf16>
    %c17_290 = arith.constant 17 : index
    %c0_291 = arith.constant 0 : index
    %c0_292 = arith.constant 0 : index
    %556 = vector.load %arg2[%c17_290, %c0_291, %c0_292] : memref<39x128x128xbf16, #tpu.memory_space<vmem>>, vector<1x128x128xbf16>
    %557 = vector.shape_cast %556 : vector<1x128x128xbf16> to vector<128x128xbf16>
    %cst_293 = arith.constant dense<0.000000e+00> : vector<8x128xf32>
    %558 = tpu.matmul %555, %557, %cst_293 {dimension_numbers = #tpu.dot_dimension_numbers<[1], [0], [0], [1], [0, 0, 1, 1], [], []>} : vector<8x128xbf16>, vector<128x128xbf16>, vector<8x128xf32> -> vector<8x128xf32>
    %559 = arith.addf %554, %558 : vector<8x128xf32>
    %c5_294 = arith.constant 5 : index
    %c0_295 = arith.constant 0 : index
    %560 = vector.load %arg3[%c5_294, %c0_295] : memref<13x128xf32, #tpu.memory_space<vmem>>, vector<1x128xf32>
    %561 = vector.broadcast %560 : vector<1x128xf32> to vector<8x128xf32>
    %562 = arith.addf %559, %561 : vector<8x128xf32>
    %cst_296 = arith.constant 0.000000e+00 : f32
    %563 = vector.broadcast %cst_296 : f32 to vector<8x128xf32>
    %564 = arith.maximumf %562, %563 : vector<8x128xf32>
    %cst_297 = arith.constant 0.000000e+00 : f32
    %565 = vector.broadcast %cst_297 : f32 to vector<1x128xf32>
    %566 = vector.extract_strided_slice %564 {offsets = [0, 0], sizes = [7, 128], strides = [1, 1]} : vector<8x128xf32> to vector<7x128xf32>
    %567 = tpu.concatenate %565, %566 in 0 : vector<1x128xf32>, vector<7x128xf32> -> vector<8x128xf32>
    %568 = vector.extract_strided_slice %564 {offsets = [1, 0], sizes = [7, 128], strides = [1, 1]} : vector<8x128xf32> to vector<7x128xf32>
    %569 = tpu.concatenate %568, %565 in 0 : vector<7x128xf32>, vector<1x128xf32> -> vector<8x128xf32>
    %570 = arith.truncf %567 : vector<8x128xf32> to vector<8x128xbf16>
    %c18_298 = arith.constant 18 : index
    %c0_299 = arith.constant 0 : index
    %c0_300 = arith.constant 0 : index
    %571 = vector.load %arg2[%c18_298, %c0_299, %c0_300] : memref<39x128x128xbf16, #tpu.memory_space<vmem>>, vector<1x128x128xbf16>
    %572 = vector.shape_cast %571 : vector<1x128x128xbf16> to vector<128x128xbf16>
    %cst_301 = arith.constant dense<0.000000e+00> : vector<8x128xf32>
    %573 = tpu.matmul %570, %572, %cst_301 {dimension_numbers = #tpu.dot_dimension_numbers<[1], [0], [0], [1], [0, 0, 1, 1], [], []>} : vector<8x128xbf16>, vector<128x128xbf16>, vector<8x128xf32> -> vector<8x128xf32>
    %574 = arith.truncf %564 : vector<8x128xf32> to vector<8x128xbf16>
    %c19_302 = arith.constant 19 : index
    %c0_303 = arith.constant 0 : index
    %c0_304 = arith.constant 0 : index
    %575 = vector.load %arg2[%c19_302, %c0_303, %c0_304] : memref<39x128x128xbf16, #tpu.memory_space<vmem>>, vector<1x128x128xbf16>
    %576 = vector.shape_cast %575 : vector<1x128x128xbf16> to vector<128x128xbf16>
    %cst_305 = arith.constant dense<0.000000e+00> : vector<8x128xf32>
    %577 = tpu.matmul %574, %576, %cst_305 {dimension_numbers = #tpu.dot_dimension_numbers<[1], [0], [0], [1], [0, 0, 1, 1], [], []>} : vector<8x128xbf16>, vector<128x128xbf16>, vector<8x128xf32> -> vector<8x128xf32>
    %578 = arith.addf %573, %577 : vector<8x128xf32>
    %579 = arith.truncf %569 : vector<8x128xf32> to vector<8x128xbf16>
    %c20_306 = arith.constant 20 : index
    %c0_307 = arith.constant 0 : index
    %c0_308 = arith.constant 0 : index
    %580 = vector.load %arg2[%c20_306, %c0_307, %c0_308] : memref<39x128x128xbf16, #tpu.memory_space<vmem>>, vector<1x128x128xbf16>
    %581 = vector.shape_cast %580 : vector<1x128x128xbf16> to vector<128x128xbf16>
    %cst_309 = arith.constant dense<0.000000e+00> : vector<8x128xf32>
    %582 = tpu.matmul %579, %581, %cst_309 {dimension_numbers = #tpu.dot_dimension_numbers<[1], [0], [0], [1], [0, 0, 1, 1], [], []>} : vector<8x128xbf16>, vector<128x128xbf16>, vector<8x128xf32> -> vector<8x128xf32>
    %583 = arith.addf %578, %582 : vector<8x128xf32>
    %c6_310 = arith.constant 6 : index
    %c0_311 = arith.constant 0 : index
    %584 = vector.load %arg3[%c6_310, %c0_311] : memref<13x128xf32, #tpu.memory_space<vmem>>, vector<1x128xf32>
    %585 = vector.broadcast %584 : vector<1x128xf32> to vector<8x128xf32>
    %586 = arith.addf %583, %585 : vector<8x128xf32>
    %cst_312 = arith.constant 0.000000e+00 : f32
    %587 = vector.broadcast %cst_312 : f32 to vector<8x128xf32>
    %588 = arith.maximumf %586, %587 : vector<8x128xf32>
    %589 = vector.extract_strided_slice %588 {offsets = [1, 0], sizes = [7, 128], strides = [1, 1]} : vector<8x128xf32> to vector<7x128xf32>
    %590 = vector.extract_strided_slice %588 {offsets = [0, 0], sizes = [1, 128], strides = [1, 1]} : vector<8x128xf32> to vector<1x128xf32>
    %591 = tpu.concatenate %589, %590 in 0 : vector<7x128xf32>, vector<1x128xf32> -> vector<8x128xf32>
    %592 = arith.maximumf %588, %591 : vector<8x128xf32>
    %593 = tpu.iota {dimensions = array<i32: 0>} : vector<4x8xi32>
    %594 = tpu.iota {dimensions = array<i32: 1>} : vector<4x8xi32>
    %c2_i32_313 = arith.constant 2 : i32
    %595 = vector.broadcast %c2_i32_313 : i32 to vector<4x8xi32>
    %596 = arith.muli %595, %593 : vector<4x8xi32>
    %597 = arith.cmpi eq, %594, %596 : vector<4x8xi32>
    %598 = arith.extui %597 : vector<4x8xi1> to vector<4x8xi32>
    %599 = arith.sitofp %598 : vector<4x8xi32> to vector<4x8xf32>
    %cst_314 = arith.constant dense<0.000000e+00> : vector<4x128xf32>
    %600 = tpu.matmul %599, %592, %cst_314 {dimension_numbers = #tpu.dot_dimension_numbers<[1], [0], [0], [1], [0, 0, 1, 1], [], []>} : vector<4x8xf32>, vector<8x128xf32>, vector<4x128xf32> -> vector<4x128xf32>
    %c112_i32_315 = arith.constant 112 : i32
    %601 = tpu.dynamic_rotate %600 by %c112_i32_315 dim 1 : vector<4x128xf32>, i32 -> vector<4x128xf32>
    %602 = arith.maximumf %600, %601 : vector<4x128xf32>
    %cst_316 = arith.constant 0.000000e+00 : f32
    %603 = vector.broadcast %cst_316 : f32 to vector<1x128xf32>
    %604 = vector.extract_strided_slice %602 {offsets = [0, 0], sizes = [3, 128], strides = [1, 1]} : vector<4x128xf32> to vector<3x128xf32>
    %605 = tpu.concatenate %603, %604 in 0 : vector<1x128xf32>, vector<3x128xf32> -> vector<4x128xf32>
    %606 = vector.extract_strided_slice %602 {offsets = [1, 0], sizes = [3, 128], strides = [1, 1]} : vector<4x128xf32> to vector<3x128xf32>
    %607 = tpu.concatenate %606, %603 in 0 : vector<3x128xf32>, vector<1x128xf32> -> vector<4x128xf32>
    %608 = arith.truncf %605 : vector<4x128xf32> to vector<4x128xbf16>
    %c21_317 = arith.constant 21 : index
    %c0_318 = arith.constant 0 : index
    %c0_319 = arith.constant 0 : index
    %609 = vector.load %arg2[%c21_317, %c0_318, %c0_319] : memref<39x128x128xbf16, #tpu.memory_space<vmem>>, vector<1x128x128xbf16>
    %610 = vector.shape_cast %609 : vector<1x128x128xbf16> to vector<128x128xbf16>
    %cst_320 = arith.constant dense<0.000000e+00> : vector<4x128xf32>
    %611 = tpu.matmul %608, %610, %cst_320 {dimension_numbers = #tpu.dot_dimension_numbers<[1], [0], [0], [1], [0, 0, 1, 1], [], []>} : vector<4x128xbf16>, vector<128x128xbf16>, vector<4x128xf32> -> vector<4x128xf32>
    %612 = arith.truncf %602 : vector<4x128xf32> to vector<4x128xbf16>
    %c22_321 = arith.constant 22 : index
    %c0_322 = arith.constant 0 : index
    %c0_323 = arith.constant 0 : index
    %613 = vector.load %arg2[%c22_321, %c0_322, %c0_323] : memref<39x128x128xbf16, #tpu.memory_space<vmem>>, vector<1x128x128xbf16>
    %614 = vector.shape_cast %613 : vector<1x128x128xbf16> to vector<128x128xbf16>
    %cst_324 = arith.constant dense<0.000000e+00> : vector<4x128xf32>
    %615 = tpu.matmul %612, %614, %cst_324 {dimension_numbers = #tpu.dot_dimension_numbers<[1], [0], [0], [1], [0, 0, 1, 1], [], []>} : vector<4x128xbf16>, vector<128x128xbf16>, vector<4x128xf32> -> vector<4x128xf32>
    %616 = arith.addf %611, %615 : vector<4x128xf32>
    %617 = arith.truncf %607 : vector<4x128xf32> to vector<4x128xbf16>
    %c23_325 = arith.constant 23 : index
    %c0_326 = arith.constant 0 : index
    %c0_327 = arith.constant 0 : index
    %618 = vector.load %arg2[%c23_325, %c0_326, %c0_327] : memref<39x128x128xbf16, #tpu.memory_space<vmem>>, vector<1x128x128xbf16>
    %619 = vector.shape_cast %618 : vector<1x128x128xbf16> to vector<128x128xbf16>
    %cst_328 = arith.constant dense<0.000000e+00> : vector<4x128xf32>
    %620 = tpu.matmul %617, %619, %cst_328 {dimension_numbers = #tpu.dot_dimension_numbers<[1], [0], [0], [1], [0, 0, 1, 1], [], []>} : vector<4x128xbf16>, vector<128x128xbf16>, vector<4x128xf32> -> vector<4x128xf32>
    %621 = arith.addf %616, %620 : vector<4x128xf32>
    %c7_329 = arith.constant 7 : index
    %c0_330 = arith.constant 0 : index
    %622 = vector.load %arg3[%c7_329, %c0_330] : memref<13x128xf32, #tpu.memory_space<vmem>>, vector<1x128xf32>
    %623 = vector.broadcast %622 : vector<1x128xf32> to vector<4x128xf32>
    %624 = arith.addf %621, %623 : vector<4x128xf32>
    %cst_331 = arith.constant 0.000000e+00 : f32
    %625 = vector.broadcast %cst_331 : f32 to vector<4x128xf32>
    %626 = arith.maximumf %624, %625 : vector<4x128xf32>
    %cst_332 = arith.constant 0.000000e+00 : f32
    %627 = vector.broadcast %cst_332 : f32 to vector<1x128xf32>
    %628 = vector.extract_strided_slice %626 {offsets = [0, 0], sizes = [3, 128], strides = [1, 1]} : vector<4x128xf32> to vector<3x128xf32>
    %629 = tpu.concatenate %627, %628 in 0 : vector<1x128xf32>, vector<3x128xf32> -> vector<4x128xf32>
    %630 = vector.extract_strided_slice %626 {offsets = [1, 0], sizes = [3, 128], strides = [1, 1]} : vector<4x128xf32> to vector<3x128xf32>
    %631 = tpu.concatenate %630, %627 in 0 : vector<3x128xf32>, vector<1x128xf32> -> vector<4x128xf32>
    %632 = arith.truncf %629 : vector<4x128xf32> to vector<4x128xbf16>
    %c24_333 = arith.constant 24 : index
    %c0_334 = arith.constant 0 : index
    %c0_335 = arith.constant 0 : index
    %633 = vector.load %arg2[%c24_333, %c0_334, %c0_335] : memref<39x128x128xbf16, #tpu.memory_space<vmem>>, vector<1x128x128xbf16>
    %634 = vector.shape_cast %633 : vector<1x128x128xbf16> to vector<128x128xbf16>
    %cst_336 = arith.constant dense<0.000000e+00> : vector<4x128xf32>
    %635 = tpu.matmul %632, %634, %cst_336 {dimension_numbers = #tpu.dot_dimension_numbers<[1], [0], [0], [1], [0, 0, 1, 1], [], []>} : vector<4x128xbf16>, vector<128x128xbf16>, vector<4x128xf32> -> vector<4x128xf32>
    %636 = arith.truncf %626 : vector<4x128xf32> to vector<4x128xbf16>
    %c25_337 = arith.constant 25 : index
    %c0_338 = arith.constant 0 : index
    %c0_339 = arith.constant 0 : index
    %637 = vector.load %arg2[%c25_337, %c0_338, %c0_339] : memref<39x128x128xbf16, #tpu.memory_space<vmem>>, vector<1x128x128xbf16>
    %638 = vector.shape_cast %637 : vector<1x128x128xbf16> to vector<128x128xbf16>
    %cst_340 = arith.constant dense<0.000000e+00> : vector<4x128xf32>
    %639 = tpu.matmul %636, %638, %cst_340 {dimension_numbers = #tpu.dot_dimension_numbers<[1], [0], [0], [1], [0, 0, 1, 1], [], []>} : vector<4x128xbf16>, vector<128x128xbf16>, vector<4x128xf32> -> vector<4x128xf32>
    %640 = arith.addf %635, %639 : vector<4x128xf32>
    %641 = arith.truncf %631 : vector<4x128xf32> to vector<4x128xbf16>
    %c26_341 = arith.constant 26 : index
    %c0_342 = arith.constant 0 : index
    %c0_343 = arith.constant 0 : index
    %642 = vector.load %arg2[%c26_341, %c0_342, %c0_343] : memref<39x128x128xbf16, #tpu.memory_space<vmem>>, vector<1x128x128xbf16>
    %643 = vector.shape_cast %642 : vector<1x128x128xbf16> to vector<128x128xbf16>
    %cst_344 = arith.constant dense<0.000000e+00> : vector<4x128xf32>
    %644 = tpu.matmul %641, %643, %cst_344 {dimension_numbers = #tpu.dot_dimension_numbers<[1], [0], [0], [1], [0, 0, 1, 1], [], []>} : vector<4x128xbf16>, vector<128x128xbf16>, vector<4x128xf32> -> vector<4x128xf32>
    %645 = arith.addf %640, %644 : vector<4x128xf32>
    %c8_345 = arith.constant 8 : index
    %c0_346 = arith.constant 0 : index
    %646 = vector.load %arg3[%c8_345, %c0_346] : memref<13x128xf32, #tpu.memory_space<vmem>>, vector<1x128xf32>
    %647 = vector.broadcast %646 : vector<1x128xf32> to vector<4x128xf32>
    %648 = arith.addf %645, %647 : vector<4x128xf32>
    %cst_347 = arith.constant 0.000000e+00 : f32
    %649 = vector.broadcast %cst_347 : f32 to vector<4x128xf32>
    %650 = arith.maximumf %648, %649 : vector<4x128xf32>
    %cst_348 = arith.constant 0.000000e+00 : f32
    %651 = vector.broadcast %cst_348 : f32 to vector<1x128xf32>
    %652 = vector.extract_strided_slice %650 {offsets = [0, 0], sizes = [3, 128], strides = [1, 1]} : vector<4x128xf32> to vector<3x128xf32>
    %653 = tpu.concatenate %651, %652 in 0 : vector<1x128xf32>, vector<3x128xf32> -> vector<4x128xf32>
    %654 = vector.extract_strided_slice %650 {offsets = [1, 0], sizes = [3, 128], strides = [1, 1]} : vector<4x128xf32> to vector<3x128xf32>
    %655 = tpu.concatenate %654, %651 in 0 : vector<3x128xf32>, vector<1x128xf32> -> vector<4x128xf32>
    %656 = arith.truncf %653 : vector<4x128xf32> to vector<4x128xbf16>
    %c27_349 = arith.constant 27 : index
    %c0_350 = arith.constant 0 : index
    %c0_351 = arith.constant 0 : index
    %657 = vector.load %arg2[%c27_349, %c0_350, %c0_351] : memref<39x128x128xbf16, #tpu.memory_space<vmem>>, vector<1x128x128xbf16>
    %658 = vector.shape_cast %657 : vector<1x128x128xbf16> to vector<128x128xbf16>
    %cst_352 = arith.constant dense<0.000000e+00> : vector<4x128xf32>
    %659 = tpu.matmul %656, %658, %cst_352 {dimension_numbers = #tpu.dot_dimension_numbers<[1], [0], [0], [1], [0, 0, 1, 1], [], []>} : vector<4x128xbf16>, vector<128x128xbf16>, vector<4x128xf32> -> vector<4x128xf32>
    %660 = arith.truncf %650 : vector<4x128xf32> to vector<4x128xbf16>
    %c28_353 = arith.constant 28 : index
    %c0_354 = arith.constant 0 : index
    %c0_355 = arith.constant 0 : index
    %661 = vector.load %arg2[%c28_353, %c0_354, %c0_355] : memref<39x128x128xbf16, #tpu.memory_space<vmem>>, vector<1x128x128xbf16>
    %662 = vector.shape_cast %661 : vector<1x128x128xbf16> to vector<128x128xbf16>
    %cst_356 = arith.constant dense<0.000000e+00> : vector<4x128xf32>
    %663 = tpu.matmul %660, %662, %cst_356 {dimension_numbers = #tpu.dot_dimension_numbers<[1], [0], [0], [1], [0, 0, 1, 1], [], []>} : vector<4x128xbf16>, vector<128x128xbf16>, vector<4x128xf32> -> vector<4x128xf32>
    %664 = arith.addf %659, %663 : vector<4x128xf32>
    %665 = arith.truncf %655 : vector<4x128xf32> to vector<4x128xbf16>
    %c29_357 = arith.constant 29 : index
    %c0_358 = arith.constant 0 : index
    %c0_359 = arith.constant 0 : index
    %666 = vector.load %arg2[%c29_357, %c0_358, %c0_359] : memref<39x128x128xbf16, #tpu.memory_space<vmem>>, vector<1x128x128xbf16>
    %667 = vector.shape_cast %666 : vector<1x128x128xbf16> to vector<128x128xbf16>
    %cst_360 = arith.constant dense<0.000000e+00> : vector<4x128xf32>
    %668 = tpu.matmul %665, %667, %cst_360 {dimension_numbers = #tpu.dot_dimension_numbers<[1], [0], [0], [1], [0, 0, 1, 1], [], []>} : vector<4x128xbf16>, vector<128x128xbf16>, vector<4x128xf32> -> vector<4x128xf32>
    %669 = arith.addf %664, %668 : vector<4x128xf32>
    %c9_361 = arith.constant 9 : index
    %c0_362 = arith.constant 0 : index
    %670 = vector.load %arg3[%c9_361, %c0_362] : memref<13x128xf32, #tpu.memory_space<vmem>>, vector<1x128xf32>
    %671 = vector.broadcast %670 : vector<1x128xf32> to vector<4x128xf32>
    %672 = arith.addf %669, %671 : vector<4x128xf32>
    %cst_363 = arith.constant 0.000000e+00 : f32
    %673 = vector.broadcast %cst_363 : f32 to vector<4x128xf32>
    %674 = arith.maximumf %672, %673 : vector<4x128xf32>
    %675 = vector.extract_strided_slice %674 {offsets = [1, 0], sizes = [3, 128], strides = [1, 1]} : vector<4x128xf32> to vector<3x128xf32>
    %676 = vector.extract_strided_slice %674 {offsets = [0, 0], sizes = [1, 128], strides = [1, 1]} : vector<4x128xf32> to vector<1x128xf32>
    %677 = tpu.concatenate %675, %676 in 0 : vector<3x128xf32>, vector<1x128xf32> -> vector<4x128xf32>
    %678 = arith.maximumf %674, %677 : vector<4x128xf32>
    %679 = tpu.iota {dimensions = array<i32: 0>} : vector<2x4xi32>
    %680 = tpu.iota {dimensions = array<i32: 1>} : vector<2x4xi32>
    %c2_i32_364 = arith.constant 2 : i32
    %681 = vector.broadcast %c2_i32_364 : i32 to vector<2x4xi32>
    %682 = arith.muli %681, %679 : vector<2x4xi32>
    %683 = arith.cmpi eq, %680, %682 : vector<2x4xi32>
    %684 = arith.extui %683 : vector<2x4xi1> to vector<2x4xi32>
    %685 = arith.sitofp %684 : vector<2x4xi32> to vector<2x4xf32>
    %cst_365 = arith.constant dense<0.000000e+00> : vector<2x128xf32>
    %686 = tpu.matmul %685, %678, %cst_365 {dimension_numbers = #tpu.dot_dimension_numbers<[1], [0], [0], [1], [0, 0, 1, 1], [], []>} : vector<2x4xf32>, vector<4x128xf32>, vector<2x128xf32> -> vector<2x128xf32>
    %c96_i32_366 = arith.constant 96 : i32
    %687 = tpu.dynamic_rotate %686 by %c96_i32_366 dim 1 : vector<2x128xf32>, i32 -> vector<2x128xf32>
    %688 = arith.maximumf %686, %687 : vector<2x128xf32>
    %cst_367 = arith.constant 0.000000e+00 : f32
    %689 = vector.broadcast %cst_367 : f32 to vector<1x128xf32>
    %690 = vector.extract_strided_slice %688 {offsets = [0, 0], sizes = [1, 128], strides = [1, 1]} : vector<2x128xf32> to vector<1x128xf32>
    %691 = tpu.concatenate %689, %690 in 0 : vector<1x128xf32>, vector<1x128xf32> -> vector<2x128xf32>
    %692 = vector.extract_strided_slice %688 {offsets = [1, 0], sizes = [1, 128], strides = [1, 1]} : vector<2x128xf32> to vector<1x128xf32>
    %693 = tpu.concatenate %692, %689 in 0 : vector<1x128xf32>, vector<1x128xf32> -> vector<2x128xf32>
    %694 = arith.truncf %691 : vector<2x128xf32> to vector<2x128xbf16>
    %c30_368 = arith.constant 30 : index
    %c0_369 = arith.constant 0 : index
    %c0_370 = arith.constant 0 : index
    %695 = vector.load %arg2[%c30_368, %c0_369, %c0_370] : memref<39x128x128xbf16, #tpu.memory_space<vmem>>, vector<1x128x64xbf16>
    %696 = vector.shape_cast %695 : vector<1x128x64xbf16> to vector<128x64xbf16>
    %cst_371 = arith.constant dense<0.000000e+00> : vector<2x64xf32>
    %697 = tpu.matmul %694, %696, %cst_371 {dimension_numbers = #tpu.dot_dimension_numbers<[1], [0], [0], [1], [0, 0, 1, 1], [], []>} : vector<2x128xbf16>, vector<128x64xbf16>, vector<2x64xf32> -> vector<2x64xf32>
    %698 = arith.truncf %688 : vector<2x128xf32> to vector<2x128xbf16>
    %c31_372 = arith.constant 31 : index
    %c0_373 = arith.constant 0 : index
    %c0_374 = arith.constant 0 : index
    %699 = vector.load %arg2[%c31_372, %c0_373, %c0_374] : memref<39x128x128xbf16, #tpu.memory_space<vmem>>, vector<1x128x64xbf16>
    %700 = vector.shape_cast %699 : vector<1x128x64xbf16> to vector<128x64xbf16>
    %cst_375 = arith.constant dense<0.000000e+00> : vector<2x64xf32>
    %701 = tpu.matmul %698, %700, %cst_375 {dimension_numbers = #tpu.dot_dimension_numbers<[1], [0], [0], [1], [0, 0, 1, 1], [], []>} : vector<2x128xbf16>, vector<128x64xbf16>, vector<2x64xf32> -> vector<2x64xf32>
    %702 = arith.addf %697, %701 : vector<2x64xf32>
    %703 = arith.truncf %693 : vector<2x128xf32> to vector<2x128xbf16>
    %c32_376 = arith.constant 32 : index
    %c0_377 = arith.constant 0 : index
    %c0_378 = arith.constant 0 : index
    %704 = vector.load %arg2[%c32_376, %c0_377, %c0_378] : memref<39x128x128xbf16, #tpu.memory_space<vmem>>, vector<1x128x64xbf16>
    %705 = vector.shape_cast %704 : vector<1x128x64xbf16> to vector<128x64xbf16>
    %cst_379 = arith.constant dense<0.000000e+00> : vector<2x64xf32>
    %706 = tpu.matmul %703, %705, %cst_379 {dimension_numbers = #tpu.dot_dimension_numbers<[1], [0], [0], [1], [0, 0, 1, 1], [], []>} : vector<2x128xbf16>, vector<128x64xbf16>, vector<2x64xf32> -> vector<2x64xf32>
    %707 = arith.addf %702, %706 : vector<2x64xf32>
    %c10_380 = arith.constant 10 : index
    %c0_381 = arith.constant 0 : index
    %708 = vector.load %arg3[%c10_380, %c0_381] : memref<13x128xf32, #tpu.memory_space<vmem>>, vector<1x64xf32>
    %709 = vector.broadcast %708 : vector<1x64xf32> to vector<2x64xf32>
    %710 = arith.addf %707, %709 : vector<2x64xf32>
    %cst_382 = arith.constant 0.000000e+00 : f32
    %711 = vector.broadcast %cst_382 : f32 to vector<2x64xf32>
    %712 = arith.maximumf %710, %711 : vector<2x64xf32>
    %cst_383 = arith.constant 0.000000e+00 : f32
    %713 = vector.broadcast %cst_383 : f32 to vector<1x64xf32>
    %714 = vector.extract_strided_slice %712 {offsets = [0, 0], sizes = [1, 64], strides = [1, 1]} : vector<2x64xf32> to vector<1x64xf32>
    %715 = tpu.concatenate %713, %714 in 0 : vector<1x64xf32>, vector<1x64xf32> -> vector<2x64xf32>
    %716 = vector.extract_strided_slice %712 {offsets = [1, 0], sizes = [1, 64], strides = [1, 1]} : vector<2x64xf32> to vector<1x64xf32>
    %717 = tpu.concatenate %716, %713 in 0 : vector<1x64xf32>, vector<1x64xf32> -> vector<2x64xf32>
    %718 = arith.truncf %715 : vector<2x64xf32> to vector<2x64xbf16>
    %c33_384 = arith.constant 33 : index
    %c0_385 = arith.constant 0 : index
    %c0_386 = arith.constant 0 : index
    %719 = vector.load %arg2[%c33_384, %c0_385, %c0_386] : memref<39x128x128xbf16, #tpu.memory_space<vmem>>, vector<1x64x64xbf16>
    %720 = vector.shape_cast %719 : vector<1x64x64xbf16> to vector<64x64xbf16>
    %cst_387 = arith.constant dense<0.000000e+00> : vector<2x64xf32>
    %721 = tpu.matmul %718, %720, %cst_387 {dimension_numbers = #tpu.dot_dimension_numbers<[1], [0], [0], [1], [0, 0, 1, 1], [], []>} : vector<2x64xbf16>, vector<64x64xbf16>, vector<2x64xf32> -> vector<2x64xf32>
    %722 = arith.truncf %712 : vector<2x64xf32> to vector<2x64xbf16>
    %c34_388 = arith.constant 34 : index
    %c0_389 = arith.constant 0 : index
    %c0_390 = arith.constant 0 : index
    %723 = vector.load %arg2[%c34_388, %c0_389, %c0_390] : memref<39x128x128xbf16, #tpu.memory_space<vmem>>, vector<1x64x64xbf16>
    %724 = vector.shape_cast %723 : vector<1x64x64xbf16> to vector<64x64xbf16>
    %cst_391 = arith.constant dense<0.000000e+00> : vector<2x64xf32>
    %725 = tpu.matmul %722, %724, %cst_391 {dimension_numbers = #tpu.dot_dimension_numbers<[1], [0], [0], [1], [0, 0, 1, 1], [], []>} : vector<2x64xbf16>, vector<64x64xbf16>, vector<2x64xf32> -> vector<2x64xf32>
    %726 = arith.addf %721, %725 : vector<2x64xf32>
    %727 = arith.truncf %717 : vector<2x64xf32> to vector<2x64xbf16>
    %c35_392 = arith.constant 35 : index
    %c0_393 = arith.constant 0 : index
    %c0_394 = arith.constant 0 : index
    %728 = vector.load %arg2[%c35_392, %c0_393, %c0_394] : memref<39x128x128xbf16, #tpu.memory_space<vmem>>, vector<1x64x64xbf16>
    %729 = vector.shape_cast %728 : vector<1x64x64xbf16> to vector<64x64xbf16>
    %cst_395 = arith.constant dense<0.000000e+00> : vector<2x64xf32>
    %730 = tpu.matmul %727, %729, %cst_395 {dimension_numbers = #tpu.dot_dimension_numbers<[1], [0], [0], [1], [0, 0, 1, 1], [], []>} : vector<2x64xbf16>, vector<64x64xbf16>, vector<2x64xf32> -> vector<2x64xf32>
    %731 = arith.addf %726, %730 : vector<2x64xf32>
    %c11_396 = arith.constant 11 : index
    %c0_397 = arith.constant 0 : index
    %732 = vector.load %arg3[%c11_396, %c0_397] : memref<13x128xf32, #tpu.memory_space<vmem>>, vector<1x64xf32>
    %733 = vector.broadcast %732 : vector<1x64xf32> to vector<2x64xf32>
    %734 = arith.addf %731, %733 : vector<2x64xf32>
    %cst_398 = arith.constant 0.000000e+00 : f32
    %735 = vector.broadcast %cst_398 : f32 to vector<2x64xf32>
    %736 = arith.maximumf %734, %735 : vector<2x64xf32>
    %cst_399 = arith.constant 0.000000e+00 : f32
    %737 = vector.broadcast %cst_399 : f32 to vector<1x64xf32>
    %738 = vector.extract_strided_slice %736 {offsets = [0, 0], sizes = [1, 64], strides = [1, 1]} : vector<2x64xf32> to vector<1x64xf32>
    %739 = tpu.concatenate %737, %738 in 0 : vector<1x64xf32>, vector<1x64xf32> -> vector<2x64xf32>
    %740 = vector.extract_strided_slice %736 {offsets = [1, 0], sizes = [1, 64], strides = [1, 1]} : vector<2x64xf32> to vector<1x64xf32>
    %741 = tpu.concatenate %740, %737 in 0 : vector<1x64xf32>, vector<1x64xf32> -> vector<2x64xf32>
    %742 = arith.truncf %739 : vector<2x64xf32> to vector<2x64xbf16>
    %c36_400 = arith.constant 36 : index
    %c0_401 = arith.constant 0 : index
    %c0_402 = arith.constant 0 : index
    %743 = vector.load %arg2[%c36_400, %c0_401, %c0_402] : memref<39x128x128xbf16, #tpu.memory_space<vmem>>, vector<1x64x64xbf16>
    %744 = vector.shape_cast %743 : vector<1x64x64xbf16> to vector<64x64xbf16>
    %cst_403 = arith.constant dense<0.000000e+00> : vector<2x64xf32>
    %745 = tpu.matmul %742, %744, %cst_403 {dimension_numbers = #tpu.dot_dimension_numbers<[1], [0], [0], [1], [0, 0, 1, 1], [], []>} : vector<2x64xbf16>, vector<64x64xbf16>, vector<2x64xf32> -> vector<2x64xf32>
    %746 = arith.truncf %736 : vector<2x64xf32> to vector<2x64xbf16>
    %c37_404 = arith.constant 37 : index
    %c0_405 = arith.constant 0 : index
    %c0_406 = arith.constant 0 : index
    %747 = vector.load %arg2[%c37_404, %c0_405, %c0_406] : memref<39x128x128xbf16, #tpu.memory_space<vmem>>, vector<1x64x64xbf16>
    %748 = vector.shape_cast %747 : vector<1x64x64xbf16> to vector<64x64xbf16>
    %cst_407 = arith.constant dense<0.000000e+00> : vector<2x64xf32>
    %749 = tpu.matmul %746, %748, %cst_407 {dimension_numbers = #tpu.dot_dimension_numbers<[1], [0], [0], [1], [0, 0, 1, 1], [], []>} : vector<2x64xbf16>, vector<64x64xbf16>, vector<2x64xf32> -> vector<2x64xf32>
    %750 = arith.addf %745, %749 : vector<2x64xf32>
    %751 = arith.truncf %741 : vector<2x64xf32> to vector<2x64xbf16>
    %c38_408 = arith.constant 38 : index
    %c0_409 = arith.constant 0 : index
    %c0_410 = arith.constant 0 : index
    %752 = vector.load %arg2[%c38_408, %c0_409, %c0_410] : memref<39x128x128xbf16, #tpu.memory_space<vmem>>, vector<1x64x64xbf16>
    %753 = vector.shape_cast %752 : vector<1x64x64xbf16> to vector<64x64xbf16>
    %cst_411 = arith.constant dense<0.000000e+00> : vector<2x64xf32>
    %754 = tpu.matmul %751, %753, %cst_411 {dimension_numbers = #tpu.dot_dimension_numbers<[1], [0], [0], [1], [0, 0, 1, 1], [], []>} : vector<2x64xbf16>, vector<64x64xbf16>, vector<2x64xf32> -> vector<2x64xf32>
    %755 = arith.addf %750, %754 : vector<2x64xf32>
    %c12_412 = arith.constant 12 : index
    %c0_413 = arith.constant 0 : index
    %756 = vector.load %arg3[%c12_412, %c0_413] : memref<13x128xf32, #tpu.memory_space<vmem>>, vector<1x64xf32>
    %757 = vector.broadcast %756 : vector<1x64xf32> to vector<2x64xf32>
    %758 = arith.addf %755, %757 : vector<2x64xf32>
    %cst_414 = arith.constant 0.000000e+00 : f32
    %759 = vector.broadcast %cst_414 : f32 to vector<2x64xf32>
    %760 = arith.maximumf %758, %759 : vector<2x64xf32>
    %761 = vector.extract_strided_slice %760 {offsets = [1, 0], sizes = [1, 64], strides = [1, 1]} : vector<2x64xf32> to vector<1x64xf32>
    %762 = vector.extract_strided_slice %760 {offsets = [0, 0], sizes = [1, 64], strides = [1, 1]} : vector<2x64xf32> to vector<1x64xf32>
    %763 = tpu.concatenate %761, %762 in 0 : vector<1x64xf32>, vector<1x64xf32> -> vector<2x64xf32>
    %764 = arith.maximumf %760, %763 : vector<2x64xf32>
    %765 = vector.extract_strided_slice %764 {offsets = [0, 0], sizes = [1, 64], strides = [1, 1]} : vector<2x64xf32> to vector<1x64xf32>
    %c32_i32_415 = arith.constant 32 : i32
    %766 = tpu.dynamic_rotate %765 by %c32_i32_415 dim 1 : vector<1x64xf32>, i32 -> vector<1x64xf32>
    %767 = arith.maximumf %765, %766 : vector<1x64xf32>
    %768 = arith.truncf %767 : vector<1x64xf32> to vector<1x64xbf16>
    %c0_416 = arith.constant 0 : index
    %c0_417 = arith.constant 0 : index
    %769 = vector.load %arg4[%c0_416, %c0_417] : memref<64x128xbf16, #tpu.memory_space<vmem>>, vector<64x128xbf16>
    %cst_418 = arith.constant dense<0.000000e+00> : vector<1x128xf32>
    %770 = tpu.matmul %768, %769, %cst_418 {dimension_numbers = #tpu.dot_dimension_numbers<[1], [0], [0], [1], [0, 0, 1, 1], [], []>} : vector<1x64xbf16>, vector<64x128xbf16>, vector<1x128xf32> -> vector<1x128xf32>
    %c0_419 = arith.constant 0 : index
    %c0_420 = arith.constant 0 : index
    %771 = vector.load %arg5[%c0_419, %c0_420] : memref<1x128xf32, #tpu.memory_space<vmem>>, vector<1x128xf32>
    %772 = arith.addf %770, %771 : vector<1x128xf32>
    %cst_421 = arith.constant 0.000000e+00 : f32
    %773 = vector.broadcast %cst_421 : f32 to vector<1x128xf32>
    %774 = arith.maximumf %772, %773 : vector<1x128xf32>
    %775 = arith.truncf %774 : vector<1x128xf32> to vector<1x128xbf16>
    %c0_422 = arith.constant 0 : index
    %c0_423 = arith.constant 0 : index
    %776 = vector.load %arg6[%c0_422, %c0_423] : memref<128x128xbf16, #tpu.memory_space<vmem>>, vector<128x128xbf16>
    %cst_424 = arith.constant dense<0.000000e+00> : vector<1x128xf32>
    %777 = tpu.matmul %775, %776, %cst_424 {dimension_numbers = #tpu.dot_dimension_numbers<[1], [0], [0], [1], [0, 0, 1, 1], [], []>} : vector<1x128xbf16>, vector<128x128xbf16>, vector<1x128xf32> -> vector<1x128xf32>
    %c0_425 = arith.constant 0 : index
    %c0_426 = arith.constant 0 : index
    %778 = vector.load %arg7[%c0_425, %c0_426] : memref<1x128xf32, #tpu.memory_space<vmem>>, vector<1x128xf32>
    %779 = arith.addf %777, %778 : vector<1x128xf32>
    %cst_427 = arith.constant 0.000000e+00 : f32
    %780 = vector.broadcast %cst_427 : f32 to vector<1x128xf32>
    %781 = arith.maximumf %779, %780 : vector<1x128xf32>
    %782 = arith.truncf %390 : vector<1x128xf32> to vector<1x128xbf16>
    %c0_428 = arith.constant 0 : index
    %c0_429 = arith.constant 0 : index
    %783 = vector.load %arg8[%c0_428, %c0_429] : memref<128x64xbf16, #tpu.memory_space<vmem>>, vector<128x64xbf16>
    %cst_430 = arith.constant dense<0.000000e+00> : vector<1x64xf32>
    %784 = tpu.matmul %782, %783, %cst_430 {dimension_numbers = #tpu.dot_dimension_numbers<[1], [0], [0], [1], [0, 0, 1, 1], [], []>} : vector<1x128xbf16>, vector<128x64xbf16>, vector<1x64xf32> -> vector<1x64xf32>
    %785 = arith.truncf %781 : vector<1x128xf32> to vector<1x128xbf16>
    %c0_431 = arith.constant 0 : index
    %c0_432 = arith.constant 0 : index
    %786 = vector.load %arg9[%c0_431, %c0_432] : memref<128x64xbf16, #tpu.memory_space<vmem>>, vector<128x64xbf16>
    %cst_433 = arith.constant dense<0.000000e+00> : vector<1x64xf32>
    %787 = tpu.matmul %785, %786, %cst_433 {dimension_numbers = #tpu.dot_dimension_numbers<[1], [0], [0], [1], [0, 0, 1, 1], [], []>} : vector<1x128xbf16>, vector<128x64xbf16>, vector<1x64xf32> -> vector<1x64xf32>
    %788 = arith.addf %784, %787 : vector<1x64xf32>
    %c0_434 = arith.constant 0 : index
    %c0_435 = arith.constant 0 : index
    %789 = vector.load %arg10[%c0_434, %c0_435] : memref<1x64xf32, #tpu.memory_space<vmem>>, vector<1x64xf32>
    %790 = arith.addf %788, %789 : vector<1x64xf32>
    %cst_436 = arith.constant 0.000000e+00 : f32
    %791 = vector.broadcast %cst_436 : f32 to vector<1x64xf32>
    %792 = arith.maximumf %790, %791 : vector<1x64xf32>
    %c0_437 = arith.constant 0 : index
    %c0_438 = arith.constant 0 : index
    %793 = vector.load %arg11[%c0_437, %c0_438] : memref<1x64xf32, #tpu.memory_space<vmem>>, vector<1x64xf32>
    %794 = arith.mulf %792, %793 : vector<1x64xf32>
    %cst_439 = arith.constant dense<0.000000e+00> : vector<1xf32>
    %795 = vector.multi_reduction <add>, %794, %cst_439 [1] : vector<1x64xf32> to vector<1xf32>
    %796 = vector.shape_cast %795 : vector<1xf32> to vector<1x1xf32>
    %c0_440 = arith.constant 0 : index
    %c0_441 = arith.constant 0 : index
    %797 = vector.load %arg12[%c0_440, %c0_441] : memref<1x1xf32, #tpu.memory_space<vmem>>, vector<1x1xf32>
    %798 = arith.addf %796, %797 : vector<1x1xf32>
    %799 = arith.negf %798 : vector<1x1xf32>
    %800 = math.exp %799 : vector<1x1xf32>
    %cst_442 = arith.constant 1.000000e+00 : f32
    %801 = vector.broadcast %cst_442 : f32 to vector<1x1xf32>
    %802 = arith.addf %801, %800 : vector<1x1xf32>
    %803 = arith.divf %801, %802 : vector<1x1xf32>
    %c0_443 = arith.constant 0 : index
    %c0_444 = arith.constant 0 : index
    %c0_445 = arith.constant 0 : index
    %804 = vector.load %arg13[%c0_443, %c0_444, %c0_445] : memref<1x1x1xf32, #tpu.memory_space<vmem>>, vector<1x1x1xf32>
    %805 = vector.shape_cast %804 : vector<1x1x1xf32> to vector<1x1xf32>
    %806 = vector.shape_cast %803 : vector<1x1xf32> to vector<1x1x1xf32>
    tpu.vector_store %arg13[%c0_443, %c0_444, %c0_445], %806 {strides = array<i32>} : memref<1x1x1xf32, #tpu.memory_space<vmem>>, vector<1x1x1xf32>,
    return
  }
  func.func @transform_0(%arg0: i32) -> (i32, i32, i32, i32) {
    %c0_i32 = arith.constant 0 : i32
    %c0_i32_0 = arith.constant 0 : i32
    %c0_i32_1 = arith.constant 0 : i32
    %c0_i32_2 = arith.constant 0 : i32
    return %arg0, %c0_i32, %c0_i32_0, %c0_i32_1 : i32, i32, i32, i32
  }
  func.func @transform_1(%arg0: i32) -> (i32, i32, i32) {
    %c0_i32 = arith.constant 0 : i32
    %c0_i32_0 = arith.constant 0 : i32
    %c0_i32_1 = arith.constant 0 : i32
    %c0_i32_2 = arith.constant 0 : i32
    return %c0_i32, %c0_i32_0, %c0_i32_1 : i32, i32, i32
  }
  func.func @transform_2(%arg0: i32) -> (i32, i32) {
    %c0_i32 = arith.constant 0 : i32
    %c0_i32_0 = arith.constant 0 : i32
    %c0_i32_1 = arith.constant 0 : i32
    return %c0_i32, %c0_i32_0 : i32, i32
  }
  func.func @transform_3(%arg0: i32) -> (i32, i32) {
    %c0_i32 = arith.constant 0 : i32
    %c0_i32_0 = arith.constant 0 : i32
    %c0_i32_1 = arith.constant 0 : i32
    return %c0_i32, %c0_i32_0 : i32, i32
  }
  func.func @transform_4(%arg0: i32) -> (i32, i32) {
    %c0_i32 = arith.constant 0 : i32
    %c0_i32_0 = arith.constant 0 : i32
    %c0_i32_1 = arith.constant 0 : i32
    return %c0_i32, %c0_i32_0 : i32, i32
  }
  func.func @transform_5(%arg0: i32) -> (i32, i32) {
    %c0_i32 = arith.constant 0 : i32
    %c0_i32_0 = arith.constant 0 : i32
    %c0_i32_1 = arith.constant 0 : i32
    return %c0_i32, %c0_i32_0 : i32, i32
  }
  func.func @transform_6(%arg0: i32) -> (i32, i32) {
    %c0_i32 = arith.constant 0 : i32
    %c0_i32_0 = arith.constant 0 : i32
    %c0_i32_1 = arith.constant 0 : i32
    return %c0_i32, %c0_i32_0 : i32, i32
  }
  func.func @transform_7(%arg0: i32) -> (i32, i32) {
    %c0_i32 = arith.constant 0 : i32
    %c0_i32_0 = arith.constant 0 : i32
    %c0_i32_1 = arith.constant 0 : i32
    return %c0_i32, %c0_i32_0 : i32, i32
  }
  func.func @transform_8(%arg0: i32) -> (i32, i32) {
    %c0_i32 = arith.constant 0 : i32
    %c0_i32_0 = arith.constant 0 : i32
    %c0_i32_1 = arith.constant 0 : i32
    return %c0_i32, %c0_i32_0 : i32, i32
  }
  func.func @transform_9(%arg0: i32) -> (i32, i32) {
    %c0_i32 = arith.constant 0 : i32
    %c0_i32_0 = arith.constant 0 : i32
    %c0_i32_1 = arith.constant 0 : i32
    return %c0_i32, %c0_i32_0 : i32, i32
  }
  func.func @transform_10(%arg0: i32) -> (i32, i32) {
    %c0_i32 = arith.constant 0 : i32
    %c0_i32_0 = arith.constant 0 : i32
    %c0_i32_1 = arith.constant 0 : i32
    return %c0_i32, %c0_i32_0 : i32, i32
  }
  func.func @transform_11(%arg0: i32) -> (i32, i32) {
    %c0_i32 = arith.constant 0 : i32
    %c0_i32_0 = arith.constant 0 : i32
    %c0_i32_1 = arith.constant 0 : i32
    return %c0_i32, %c0_i32_0 : i32, i32
  }
  func.func @transform_12(%arg0: i32) -> (i32, i32, i32) {
    %c0_i32 = arith.constant 0 : i32
    %c0_i32_0 = arith.constant 0 : i32
    %c0_i32_1 = arith.constant 0 : i32
    return %arg0, %c0_i32, %c0_i32_0 : i32, i32, i32
  }
}

</mosaic_0001>

<bundles_post_ra>
// kernel: grasp_inf_forward.1
= control target key start
LH: loop header
LB: loop body
LE: loop exit
PB: predicated region body
PF: predicated region fallthrough
CT: control target
= control target key end

     0   :  { %s13381_s0 = inlined_call_operand.vmem [shape: f32[2,2,32,96], index: 0, kind: input, shape index: {}]   ;;  %s13382_s1 = inlined_call_operand.hbm [shape: bf16[39,128,128], index: 1, kind: input, shape index: {}]   ;;  %s13383_s2 = inlined_call_operand.hbm [shape: f32[13,128], index: 2, kind: input, shape index: {}]   ;;  %s13384_s3 = inlined_call_operand.hbm [shape: bf16[64,128], index: 3, kind: input, shape index: {}]   ;;  %s13385_s4 = inlined_call_operand.hbm [shape: f32[1,128], index: 4, kind: input, shape index: {}]   ;;  %s13386_s5 = inlined_call_operand.hbm [shape: bf16[128,128], index: 5, kind: input, shape index: {}]   ;;  %s13387_s6 = inlined_call_operand.hbm [shape: f32[1,128], index: 6, kind: input, shape index: {}]   ;;  %s13388_s7 = inlined_call_operand.vmem [shape: bf16[128,64], index: 7, kind: input, shape index: {}]   ;;  %s13389_s8 = inlined_call_operand.vmem [shape: bf16[128,64], index: 8, kind: input, shape index: {}]   ;;  %s13390_s9 = inlined_call_operand.hbm [shape: f32[1,64], index: 9, kind: input, shape index: {}]   ;;  %s13391_s10 = inlined_call_operand.hbm [shape: f32[1,64], index: 10, kind: input, shape index: {}]   ;;  %s13392_s11 = inlined_call_operand.<no memory space> [shape: f32[1,1], index: 11, kind: input, shape index: {}]   ;;  %s13393_s12 = inlined_call_operand.vmem [shape: f32[2,1,1], index: 12, kind: output, shape index: {}]  }
   0x1   :  { %13399 = sst [smem:[#allocation22_spill]] %s13383_s2  ;;  %v17_v0 = vstv %s13392_s11 }
   0x2   :  { %18 = vst [vmem:[#allocation2] sm:$0x1] %v17_v0 }
   0x3   :  { %19 = vsyncpa [#allocation4], 0 }
   0x4   :  { %20 = vsyncpa [#allocation6], 0 }
   0x5   :  { %21 = vsyncpa [#allocation9], 0 }
   0x6   :  { %22 = vsyncpa [#allocation12], 0 }
   0x7   :  { %23 = vsyncpa [#allocation15], 0  ;;  %s12108_s23 = smov 0  }
   0x8 LB: > { %13400 = sst [smem:[#allocation21_spill]] %s12017_s23  ;;  %s12019_s24 = smov [#allocation5]   ;;  %s12017_s23 = sphi %s12108_s23, %s29_s23  }
   0x9   : > { %s342_s25 = sshll.u32 %s12019_s24, 4  ;;  %s12114_s26 = sadd.s32 4294967295, %s12017_s23   ;;  %s12119_s25 = int_to_ptr.vmem [resolvable:$true] %s342_s25 }
   0xa   : > { %p8107_p0 = scmp.ge.s32.totalorder %s12017_s23, 1  ;;  %p317_p1 = scmp.lt.s32.totalorder %s12017_s23, 3 }
   0xb   : > { %p13395_p2 = scmp.eq.s32.totalorder %s12114_s26, 0  ;;  %s12020_s27 = smov [#allocation8]  }
   0xc   : > { %p12121_p3 = pnand %p8107_p0, %p317_p1  ;;  %s369_s28 = sshll.u32 %s12020_s27, 4  ;;  %s12127_s28 = int_to_ptr.vmem [resolvable:$true] %s369_s28 }
   0xd   : > { %s12021_s30 = smov [#allocation11]   ;;  %s12022_s14 = smov [#allocation3]  }
   0xe   : > { %s13401_s11 = scalar_select %p12121_p3, 1, 0 }
   0xf   : > { %p11065_p4 = pneg %p12121_p3  ;;  %s393_s13 = sshll.u32 %s12021_s30, 4  ;;  %s12135_s13 = int_to_ptr.vmem [resolvable:$true] %s393_s13 }
  0x10   : > { %s12137_s15 = sshll.u32 %s12022_s14, 4  ;;  %s13403_s2 = sld [smem:[#allocation22_spill]]  ;;  %s330_s15 = int_to_ptr.vmem [resolvable:$true] %s12137_s15 }
  0x11   : > { %p12131_p5 = pnand %p13395_p2, %p11065_p4 }
  0x13   : > { %p12147_p7 = pneg %p12131_p5 }
  0x16   : > { %s11767_s18 = scalar_lea.hbm %s13403_s2, 256 }
  0x17   : > { %p11768_p6 = scmp.ne.s32.totalorder %s13403_s2, %s11767_s18  ;;  %p11774_p10 = scmp.lt.u32.totalorder %s11767_s18, %s13403_s2 }
  0x19   : > { %p11770_p8 = pnand %p12147_p7, %p11768_p6 }
  0x1b   : > { %p11771_p9 = pneg %p11770_p8 }
  0x1d   : > { %p11776_p11 = pnand %p11774_p10, %p11771_p9 }
  0x1f   : > { %11779 = shalt.err (!%p11776_p11)
}
  0x20   : > { %s11780_s27 = scalar_lea.vmem %s12119_s25, 256  ;;  %p11788_p1 = scmp.lt.s32.totalorder %s12119_s25, %s12119_s25 }
  0x21   : > { %p11781_p12 = scmp.ne.s32.totalorder %s12119_s25, %s11780_s27  ;;  %p11789_p4 = scmp.lt.s32.totalorder %s11780_s27, %s11780_s27 }
  0x23   : > { %p11783_p13 = pnand %p11781_p12, %p12147_p7  ;;  %p11790_p6 = por %p11789_p4, %p11788_p1 }
  0x25   : > { %p11784_p0 = pneg %p11783_p13 }
  0x27   : > { %p11791_p8 = pnand %p11790_p6, %p11784_p0 }
  0x29   : > { %11794 = shalt.err (!%p11791_p8)
}
  0x2a   : > { %s12023_s30 = smov 128   ;;  %s12024_s14 = smov 8  }
  0x2b   : > { %11071 = dma.hbm_to_vmem [thread:$0]  (!%p12131_p5), %s13403_s2, 256, %s12119_s25, [#allocation6], %s12023_s30, %s12023_s30, %s12024_s14  }
  0x2c   : > { %s11795_s20 = scalar_lea.hbm %s13385_s4, 16 }
  0x2d   : > { %p11796_p9 = scmp.ne.s32.totalorder %s13385_s4, %s11795_s20  ;;  %p11802_p12 = scmp.lt.u32.totalorder %s11795_s20, %s13385_s4 }
  0x2f   : > { %p11798_p10 = pnand %p11796_p9, %p12147_p7 }
  0x31   : > { %p11799_p11 = pneg %p11798_p10 }
  0x33   : > { %p11804_p13 = pnand %p11802_p12, %p11799_p11 }
  0x35   : > { %11807 = shalt.err (!%p11804_p13)
}
  0x36   : > { %s11808_s25 = scalar_lea.vmem %s12127_s28, 16  ;;  %s11815_s30 = scalar_lea.vmem %s12127_s28, 32 }
  0x37   : > { %p11809_p0 = scmp.ne.s32.totalorder %s12127_s28, %s11808_s25  ;;  %p11816_p6 = scmp.lt.s32.totalorder %s12127_s28, %s12127_s28 }
  0x38   : > { %p11817_p8 = scmp.lt.s32.totalorder %s11815_s30, %s11808_s25 }
  0x39   : > { %p11811_p1 = pnand %p11809_p0, %p12147_p7 }
  0x3a   : > { %p11818_p9 = por %p11817_p8, %p11816_p6 }
  0x3b   : > { %p11812_p4 = pneg %p11811_p1 }
  0x3d   : > { %p11819_p10 = pnand %p11818_p9, %p11812_p4 }
  0x3f   : > { %11822 = shalt.err (!%p11819_p10)
}
  0x40   : > { %11077 = dma.hbm_to_vmem [thread:$0]  (!%p12131_p5), %s13385_s4, 16, %s12127_s28, [#allocation9]  }
  0x41   : > { %s11823_s18 = scalar_lea.hbm %s13387_s6, 16 }
  0x42   : > { %p11824_p11 = scmp.ne.s32.totalorder %s13387_s6, %s11823_s18  ;;  %p11830_p0 = scmp.lt.u32.totalorder %s11823_s18, %s13387_s6 }
  0x44   : > { %p11826_p12 = pnand %p11824_p11, %p12147_p7 }
  0x46   : > { %p11827_p13 = pneg %p11826_p12 }
  0x48   : > { %p11832_p1 = pnand %p11830_p0, %p11827_p13 }
  0x4a   : > { %11835 = shalt.err (!%p11832_p1)
}
  0x4b   : > { %s11836_s28 = scalar_lea.vmem %s12135_s13, 16  ;;  %s11843_s27 = scalar_lea.vmem %s12135_s13, 32 }
  0x4c   : > { %p11837_p4 = scmp.ne.s32.totalorder %s12135_s13, %s11836_s28  ;;  %p11844_p9 = scmp.lt.s32.totalorder %s12135_s13, %s12135_s13 }
  0x4d   : > { %p11845_p10 = scmp.lt.s32.totalorder %s11843_s27, %s11836_s28 }
  0x4e   : > { %p11839_p6 = pnand %p11837_p4, %p12147_p7 }
  0x4f   : > { %p11846_p11 = por %p11845_p10, %p11844_p9 }
  0x50   : > { %p11840_p8 = pneg %p11839_p6 }
  0x52   : > { %p11847_p12 = pnand %p11846_p11, %p11840_p8 }
  0x54   : > { %11850 = shalt.err (!%p11847_p12)
}
  0x55   : > { %11083 = dma.hbm_to_vmem [thread:$0]  (!%p12131_p5), %s13387_s6, 16, %s12135_s13, [#allocation12]  }
  0x56   : > { %s11851_s16 = scalar_lea.hbm %s13382_s1, 39936 }
  0x57   : > { %p11852_p13 = scmp.ne.s32.totalorder %s13382_s1, %s11851_s16  ;;  %p11858_p4 = scmp.lt.u32.totalorder %s11851_s16, %s13382_s1 }
  0x59   : > { %p11854_p0 = pnand %p11852_p13, %p12147_p7 }
  0x5b   : > { %p11855_p1 = pneg %p11854_p0 }
  0x5d   : > { %p11860_p6 = pnand %p11858_p4, %p11855_p1 }
  0x5f   : > { %11863 = shalt.err (!%p11860_p6)
}
  0x60   : > { %s11864_s22 = scalar_lea.vmem %s330_s15, 39936  ;;  %p11872_p11 = scmp.lt.s32.totalorder %s330_s15, %s330_s15 }
  0x61   : > { %p11865_p8 = scmp.ne.s32.totalorder %s330_s15, %s11864_s22  ;;  %p11873_p12 = scmp.lt.s32.totalorder %s11864_s22, %s11864_s22 }
  0x63   : > { %p11867_p9 = pnand %p11865_p8, %p12147_p7  ;;  %p11874_p2 = por %p11873_p12, %p11872_p11 }
  0x65   : > { %p11868_p10 = pneg %p11867_p9 }
  0x67   : > { %p11875_p3 = pnand %p11874_p2, %p11868_p10 }
  0x69   : > { %11878 = shalt.err (!%p11875_p3)
}
  0x6a   : > { %s12025_s13 = smov 64   ;;  %s12026_s24 = smov 4  }
  0x6b   : > { %11068 = dma.hbm_to_vmem [thread:$0]  (!%p12131_p5), %s13382_s1, 39936, %s330_s15, [#allocation4], %s12025_s13, %s12025_s13, %s12026_s24  }
  0x6c   : > { %s12027_s25 = smov [#allocation7]   ;;  %s12028_s23 = smov [#allocation10]  }
  0x6d   : > { %s355_s30 = sshll.u32 %s12027_s25, 4  ;;  %s379_s14 = sshll.u32 %s12028_s23, 4  ;;  %s356_s30 = int_to_ptr.vmem [resolvable:$true] %s355_s30  ;;  %s380_s14 = int_to_ptr.vmem [resolvable:$true] %s379_s14 }
  0x6e   : > { %s11879_s18 = scalar_lea.hbm %s13384_s3, 512 }
  0x6f   : > { %p11880_p2 = scmp.ne.s32.totalorder %s13384_s3, %s11879_s18  ;;  %p11886_p0 = scmp.lt.u32.totalorder %s11879_s18, %s13384_s3 }
  0x71   : > { %p11882_p3 = pnand %p11880_p2, %p12147_p7 }
  0x73   : > { %p11883_p13 = pneg %p11882_p3 }
  0x75   : > { %p11888_p1 = pnand %p11886_p0, %p11883_p13 }
  0x77   : > { %11891 = shalt.err (!%p11888_p1)
}
  0x78   : > { %s11892_s15 = scalar_lea.vmem %s356_s30, 512  ;;  %p11900_p9 = scmp.lt.s32.totalorder %s356_s30, %s356_s30 }
  0x79   : > { %p11893_p4 = scmp.ne.s32.totalorder %s356_s30, %s11892_s15  ;;  %p11901_p10 = scmp.lt.s32.totalorder %s11892_s15, %s11892_s15 }
  0x7b   : > { %p11895_p6 = pnand %p11893_p4, %p12147_p7  ;;  %p11902_p11 = por %p11901_p10, %p11900_p9 }
  0x7d   : > { %p11896_p8 = pneg %p11895_p6 }
  0x7f   : > { %p11903_p12 = pnand %p11902_p11, %p11896_p8 }
  0x81   : > { %11906 = shalt.err (!%p11903_p12)
}
  0x82   : > { %11074 = dma.hbm_to_vmem [thread:$0]  (!%p12131_p5), %s13384_s3, 512, %s356_s30, [#allocation6], %s12025_s13, %s12025_s13, %s12026_s24  }
  0x83   : > { %s11907_s23 = scalar_lea.hbm %s13386_s5, 1024 }
  0x84   : > { %p11908_p2 = scmp.ne.s32.totalorder %s13386_s5, %s11907_s23  ;;  %p11914_p0 = scmp.lt.u32.totalorder %s11907_s23, %s13386_s5 }
  0x86   : > { %p11910_p3 = pnand %p11908_p2, %p12147_p7 }
  0x88   : > { %p11911_p13 = pneg %p11910_p3 }
  0x8a   : > { %p11916_p1 = pnand %p11914_p0, %p11911_p13 }
  0x8c   : > { %11919 = shalt.err (!%p11916_p1)
}
  0x8d   : > { %s11920_s20 = scalar_lea.vmem %s380_s14, 1024  ;;  %p11928_p9 = scmp.lt.s32.totalorder %s380_s14, %s380_s14 }
  0x8e   : > { %p11921_p4 = scmp.ne.s32.totalorder %s380_s14, %s11920_s20  ;;  %p11929_p10 = scmp.lt.s32.totalorder %s11920_s20, %s11920_s20 }
  0x90   : > { %p11923_p6 = pnand %p11921_p4, %p12147_p7  ;;  %p11930_p11 = por %p11929_p10, %p11928_p9 }
  0x92   : > { %p11924_p8 = pneg %p11923_p6 }
  0x94   : > { %p11931_p12 = pnand %p11930_p11, %p11924_p8 }
  0x96   : > { %11934 = shalt.err (!%p11931_p12)
}
  0x97   : > { %11080 = dma.hbm_to_vmem [thread:$0]  (!%p12131_p5), %s13386_s5, 1024, %s380_s14, [#allocation9], %s12025_s13, %s12025_s13, %s12026_s24  }
  0x98   : > { %s12029_s15 = smov [#allocation13]   ;;  %s12030_s28 = smov [#allocation14]  }
  0x99   : > { %s410_s2 = sshll.u32 %s12029_s15, 4  ;;  %s421_s27 = sshll.u32 %s12030_s28, 4  ;;  %s411_s2 = int_to_ptr.vmem [resolvable:$true] %s410_s2  ;;  %s422_s27 = int_to_ptr.vmem [resolvable:$true] %s421_s27 }
  0x9a   : > { %s11935_s16 = scalar_lea.hbm %s13390_s9, 16 }
  0x9b   : > { %p11936_p2 = scmp.ne.s32.totalorder %s13390_s9, %s11935_s16  ;;  %p11942_p0 = scmp.lt.u32.totalorder %s11935_s16, %s13390_s9 }
  0x9d   : > { %p11938_p3 = pnand %p11936_p2, %p12147_p7 }
  0x9f   : > { %p11939_p13 = pneg %p11938_p3 }
  0xa1   : > { %p11944_p1 = pnand %p11942_p0, %p11939_p13 }
  0xa3   : > { %11947 = shalt.err (!%p11944_p1)
}
  0xa4   : > { %s11948_s13 = scalar_lea.vmem %s411_s2, 16  ;;  %s11955_s24 = scalar_lea.vmem %s411_s2, 32 }
  0xa5   : > { %p11949_p4 = scmp.ne.s32.totalorder %s411_s2, %s11948_s13  ;;  %p11956_p9 = scmp.lt.s32.totalorder %s411_s2, %s411_s2 }
  0xa6   : > { %p11957_p10 = scmp.lt.s32.totalorder %s11955_s24, %s11948_s13 }
  0xa7   : > { %p11951_p6 = pnand %p11949_p4, %p12147_p7 }
  0xa8   : > { %p11958_p11 = por %p11957_p10, %p11956_p9 }
  0xa9   : > { %p11952_p8 = pneg %p11951_p6 }
  0xab   : > { %p11959_p12 = pnand %p11958_p11, %p11952_p8 }
  0xad   : > { %11962 = shalt.err (!%p11959_p12)
}
  0xae   : > { %11086 = dma.hbm_to_vmem [thread:$0]  (!%p12131_p5), %s13390_s9, 16, %s411_s2, [#allocation12]  }
  0xaf   : > { %s11963_s28 = scalar_lea.hbm %s13391_s10, 16 }
  0xb0   : > { %p11964_p2 = scmp.ne.s32.totalorder %s13391_s10, %s11963_s28  ;;  %p11970_p0 = scmp.lt.u32.totalorder %s11963_s28, %s13391_s10 }
  0xb2   : > { %p11966_p3 = pnand %p11964_p2, %p12147_p7 }
  0xb4   : > { %p11967_p13 = pneg %p11966_p3 }
  0xb6   : > { %p11972_p1 = pnand %p11970_p0, %p11967_p13 }
  0xb8   : > { %11975 = shalt.err (!%p11972_p1)
}
  0xb9   : > { %s11976_s18 = scalar_lea.vmem %s422_s27, 16  ;;  %s11983_s2 = scalar_lea.vmem %s422_s27, 32 }
  0xba   : > { %p11977_p4 = scmp.ne.s32.totalorder %s422_s27, %s11976_s18  ;;  %p11984_p9 = scmp.lt.s32.totalorder %s422_s27, %s422_s27 }
  0xbb   : > { %p11985_p10 = scmp.lt.s32.totalorder %s11983_s2, %s11976_s18 }
  0xbc   : > { %p11979_p6 = pnand %p11977_p4, %p12147_p7 }
  0xbd   : > { %p11986_p11 = por %p11985_p10, %p11984_p9 }
  0xbe   : > { %p11980_p8 = pneg %p11979_p6 }
  0xc0   : > { %p11987_p12 = pnand %p11986_p11, %p11980_p8 }
  0xc2   : > { %11990 = shalt.err (!%p11987_p12)
}
  0xc3   : > { %11089 = dma.hbm_to_vmem [thread:$0]  (!%p12131_p5), %s13391_s10, 16, %s422_s27, [#allocation15]  }
  0xc4   : > { %p13405_p2 = scmp.ne.s32.totalorder %s13401_s11, 0 }
  0xc5   : > { %p13406_p3 = scmp.eq.s32.totalorder (!%p13405_p2), %s12114_s26, 0 }
  0xc6   : > { %445 = sbr.rel (%p13405_p2) target bundleno = 11138 (0x2b82), region = 68 }
  0xcd   : > { %11996 = dma.done.wait (%p13406_p3), [#allocation4], 39936   ;;  %p13407_p7 = pmov %p13406_p3 }
  0xce   : > { %p13408_p13 = pmov %p13406_p3 }
  0xcf   : > { %11998 = vsyncadd (%p13407_p7), [#allocation4], 4294927360 }
  0xd0   : > { %12000 = dma.done.wait (%p13408_p13), [#allocation6], 768   ;;  %p13409_p0 = pmov %p13406_p3 }
  0xd2   : > { %12002 = vsyncadd (%p13409_p0), [#allocation6], 4294966528  ;;  %p13410_p1 = pmov %p13409_p0 }
  0xd3   : > { %p13411_p5 = pmov %p13409_p0 }
  0xd4   : > { %12004 = dma.done.wait (%p13410_p1), [#allocation9], 1040  }
  0xd5   : > { %12006 = vsyncadd (%p13411_p5), [#allocation9], 4294966256  ;;  %p13412_p4 = pmov %p13409_p0 }
  0xd6   : > { %p13413_p6 = pmov %p13409_p0 }
  0xd7   : > { %12008 = dma.done.wait (%p13412_p4), [#allocation12], 32  }
  0xd8   : > { %12010 = vsyncadd (%p13413_p6), [#allocation12], 4294967264  ;;  %p13414_p8 = pmov %p13409_p0 }
  0xd9   : > { %p13415_p9 = pmov %p13409_p0 }
  0xda   : > { %12012 = dma.done.wait (%p13414_p8), [#allocation15], 16  }
  0xdb   : > { %12014 = vsyncadd (%p13415_p9), [#allocation15], 4294967280  ;;  %p513_p10 = scmp.lt.s32.totalorder %s12114_s26, 1  ;;  %v11145_v1 = vld [vmem:[#allocation3 + $0x40] sm:$0xff]   ;;  %v11146_v2 = vld [vmem:[#allocation3 + $0x48] sm:$0xff]   ;;  %vm621_vm0 = vcmask 785408  }
  0xdc   : > { %9379 = vmatprep.subr.bf16.mxu0 %v11145_v1  ;;  %v11147_v3 = vld [vmem:[#allocation3 + $0x50] sm:$0xff]   ;;  %v11148_v6 = vld [vmem:[#allocation3 + $0x58] sm:$0xff]   ;;  %v11149_v8 = vld [vmem:[#allocation3 + $0x60] sm:$0xff]   ;;  %vm530_vm1 = vcmask 1040384   ;;  %vm543_vm2 = vcmask 1046528   ;;  %vm12031_vm4 = vmmov 1  }
  0xdd   : > { %s13436_s26 = smov (!%p513_p10, %s12114_s26), 1  ;;  %9380 = vmatpush3.bf16.msra.mxu0 %v11145_v1  ;;  %v11150_v9 = vld [vmem:[#allocation3 + $0x68] sm:$0xff]   ;;  %v11151_v15 = vld [vmem:[#allocation3] sm:$0xff]   ;;  %v11165_v28 = vld [vmem:[#allocation3 + $0x110] sm:$0xff]   ;;  %vm1318_vm8 = vcmask 261120   ;;  %vm12033_vm10 = vmmov 0  }
  0xde   : > { %s8652_s11 = sshll.u32 %s13436_s26, 6  ;;  %9381 = vmatprep.subr.bf16.mxu0 %v11146_v2  ;;  %v11163_v18 = vld [vmem:[#allocation3 + $0x100] sm:$0xff]   ;;  %v11164_v21 = vld [vmem:[#allocation3 + $0x108] sm:$0xff]   ;;  %v11153_v29 = vld [vmem:[#allocation3 + $0x10] sm:$0xff]   ;;  %s12034_s13 = smov 124   ;;  %vm2109_vm11 = vcmask 130048  }
  0xdf   : > { %s12346_s27 = scalar_lea.vmem %s13381_s0, %s8652_s11  ;;  %9427 = vmatprep.subr.bf16.mxu1 %v11163_v18  ;;  %v11152_v26 = vld [vmem:[#allocation3 + $0x8] sm:$0xff]   ;;  %v11166_v31 = vld [vmem:[#allocation3 + $0x118] sm:$0xff]   ;;  %v11167_v33 = vld [vmem:[#allocation3 + $0x120] sm:$0xff]   ;;  %s12036_s24 = smov 120   ;;  %vm3189_vm14 = vcmask 64512   ;;  %vm3271_vm15 = vcmask 1042432  }
  0xe0   : > { %v12349_v4 = vld [vmem:[%s12346_s27] sm:$0xff]  ;;  %v12352_v5 = vld [vmem:[%s12346_s27 + $0x8] sm:$0xff]  ;;  %v12360_v12 = vld [vmem:[%s12346_s27 + $0x10] sm:$0xff]  ;;  %9428 = vmatpush3.bf16.msra.mxu1 %v11163_v18  ;;  %s12037_s14 = smov 112   ;;  %s12038_s30 = smov 96  }
  0xe1   : > { %9382 = vmatpush3.bf16.msra.mxu0 %v11146_v2  ;;  %v570_v7 = vpack.c.bf16 %v12352_v5, %v12349_v4  ;;  %v531_v10 = vrot.slane %v12349_v4, 7  ;;  %v532_v11 = vrot.slane %v12352_v5, 7  ;;  %v12363_v13 = vld [vmem:[%s12346_s27 + $0x18] sm:$0xff]  ;;  %v544_v17 = vrot.slane %v12349_v4, 1  ;;  %9429 = vmatprep.subr.bf16.mxu1 %v11164_v21  ;;  %v11155_v34 = vld [vmem:[#allocation3 + $0x20] sm:$0xff]   ;;  %v11168_v35 = vld [vmem:[#allocation3 + $0x128] sm:$0xff]  }
  0xe2   : > { %9383 = vmatprep.subr.bf16.mxu0 %v11147_v3  ;;  %v549_v19 = vrot.slane %v12363_v13, 1  ;;  %v571_v20 = vpack.c.bf16 %v12363_v13, %v12360_v12  ;;  %v545_v22 = vrot.slane %v12352_v5, 1  ;;  %v534_v23 = vrot.slane %v12360_v12, 7  ;;  %v11154_v32 = vld [vmem:[#allocation3 + $0x18] sm:$0xff]   ;;  %v11156_v36 = vld [vmem:[#allocation3 + $0x28] sm:$0xff]   ;;  %v11157_v37 = vld [vmem:[#allocation3 + $0x80] sm:$0xff]  }
  0xe3   : > { %9391 = vmatprep.mubr.msk.bf16.mxu0 %vm621_vm0, %v570_v7  ;;  %v542_v14 = vsel %vm530_vm1, 0.0, %v531_v10  ;;  %v533_v16 = vsel %vm530_vm1, %v531_v10, %v532_v11  ;;  %v536_v25 = vrot.slane %v12363_v13, 7  ;;  %v547_v27 = vrot.slane %v12360_v12, 1  ;;  %v11158_v43 = vld [vmem:[#allocation3 + $0x88] sm:$0xff]   ;;  %v11159_v45 = vld [vmem:[#allocation3 + $0x90] sm:$0xff]   ;;  %v11160_v46 = vld [vmem:[#allocation3 + $0x98] sm:$0xff]  }
  0xe4   : > { %v556_v24 = vpack.c.bf16 %v533_v16, %v542_v14  ;;  %v555_v30 = vsel %vm543_vm2, %v549_v19, 0.0  ;;  %9430 = vmatpush3.bf16.msra.mxu1 %v11164_v21  ;;  %v535_v38 = vsel %vm530_vm1, %v532_v11, %v534_v23  ;;  %v546_v40 = vsel %vm543_vm2, %v544_v17, %v545_v22  ;;  %v11161_v47 = vld [vmem:[#allocation3 + $0xa0] sm:$0xff]   ;;  %v11162_v48 = vld [vmem:[#allocation3 + $0xa8] sm:$0xff]   ;;  %v11169_v51 = vld [vmem:[#allocation3 + $0x130] sm:$0xff]   ;;  %s12039_s22 = smov 64  }
  0xe5   : > { %9384 = vmatpush3.bf16.msra.mxu0 %v11147_v3  ;;  %9431 = vmatprep.subr.bf16.mxu1 %v11165_v28  ;;  %v537_v39 = vsel %vm530_vm1, %v534_v23, %v536_v25  ;;  %v548_v41 = vsel %vm543_vm2, %v545_v22, %v547_v27  ;;  %v550_v49 = vsel %vm543_vm2, %v547_v27, %v549_v19  ;;  %v11170_v52 = vld [vmem:[#allocation3 + $0x138] sm:$0xff]   ;;  %v11171_v53 = vld [vmem:[#allocation3 + $0xc0] sm:$0xff]   ;;  %vm12391_vm3 = vmneg %vm530_vm1 }
  0xe6   : > { %9385 = vmatprep.subr.bf16.mxu0 %v11148_v6  ;;  %v557_v42 = vpack.c.bf16 %v537_v39, %v535_v38  ;;  %v768_v44 = vpack.c.bf16 %v548_v41, %v546_v40  ;;  %v769_v50 = vpack.c.bf16 %v555_v30, %v550_v49  ;;  %v8152_v54 = vld [vmem:[#allocation5] ss:$0 sm:$0xff]  ;;  %vm12401_vm5 = vmpackc.low %vm12031_vm4, %vm12391_vm3  ;;  %v11174_v27 = vld [vmem:[#allocation3 + $0xd8] sm:$0xff]   ;;  %v1305_v41 = vlaneseq }
  0xe7   : > { %v11177_v30 = vld [vmem:[#allocation3 + $0xf0] sm:$0xff]   ;;  %v11186_v39 = vld [vmem:[#allocation3 + $0x178] sm:$0xff]   ;;  %vm12412_vm6 = vmpackc.low %vm543_vm2, %vm12031_vm4  ;;  %vm13398_vm4 = vcmask 1043456  }
  0xe8   : > { %9432 = vmatpush3.bf16.msra.mxu1 %v11165_v28  ;;  %v11175_v28 = vld [vmem:[#allocation3 + $0xe0] sm:$0xff]   ;;  %v11185_v38 = vld [vmem:[#allocation3 + $0x170] sm:$0xff]   ;;  %vm12544_vm12 = vmpackc.low %vm12391_vm3, %vm12391_vm3 }
  0xe9   : > { %9386 = vmatpush3.bf16.msra.mxu0 %v11148_v6  ;;  %9433 = vmatprep.subr.bf16.mxu1 %v11166_v31  ;;  %vm12563_vm13 = vmpackc.low %vm543_vm2, %vm543_vm2  ;;  %v11549_v19 = vld [vmem:[#allocation3 + $0x2e8] sm:$0xff]   ;;  %v11556_v40 = vld [vmem:[#allocation3 + $0x320] sm:$0xff]  }
  0xea   : > { %9387 = vmatprep.subr.bf16.mxu0 %v11149_v8  ;;  %vm12677_vm3 = vmpackc.low %vm3271_vm15, %vm3271_vm15 }
  0xec   : > { %9434 = vmatpush3.bf16.msra.mxu1 %v11166_v31  ;;  %v11178_v31 = vld [vmem:[#allocation3 + $0xf8] sm:$0xff]  }
  0xed   : > { %9388 = vmatpush3.bf16.msra.mxu0 %v11149_v8  ;;  %9435 = vmatprep.subr.bf16.mxu1 %v11167_v33 }
  0xee   : > { %9389 = vmatprep.subr.bf16.mxu0 %v11150_v9 }
  0xf0   : > { %9436 = vmatpush3.bf16.msra.mxu1 %v11167_v33  ;;  %v11180_v33 = vld [vmem:[#allocation3 + $0x148] sm:$0xff]  }
  0xf1   : > { %9390 = vmatpush3.bf16.msra.mxu0 %v11150_v9  ;;  %9437 = vmatprep.subr.bf16.mxu1 %v11168_v35  ;;  %v11253_v9 = vld [vmem:[#allocation3 + $0x390] sm:$0xff]  }
  0xf2   : > { %9395 = vmatprep.subr.bf16.mxu0 %v11151_v15 }
  0xf4   : > { %9392 = vmatmul.mubr.msk.bf16.vlgmr.msra.gmra.mrb[0].mxu0 %vm621_vm0, %v571_v20  ;;  %9438 = vmatpush3.bf16.msra.mxu1 %v11168_v35  ;;  %v11182_v35 = vld [vmem:[#allocation3 + $0x158] sm:$0xff]  }
  0xf5   : > { %9396 = vmatpush3.bf16.msra.mxu0 %v11151_v15  ;;  %9407 = vmatprep.mubr.msk.bf16.mxu0 %vm621_vm0, %v556_v24  ;;  %v11172_v15 = vld [vmem:[#allocation3 + $0xc8] sm:$0xff]  }
  0xf6   : > { %9397 = vmatprep.subr.bf16.mxu0 %v11152_v26  ;;  %9439 = vmatprep.subr.bf16.mxu1 %v11169_v51 }
  0xf8   : > { %9440 = vmatpush3.bf16.msra.mxu1 %v11169_v51 }
  0xf9   : > { %9398 = vmatpush3.bf16.msra.mxu0 %v11152_v26  ;;  %9441 = vmatprep.subr.bf16.mxu1 %v11170_v52  ;;  %v11173_v26 = vld [vmem:[#allocation3 + $0xd0] sm:$0xff]  }
  0xfa   : > { %9399 = vmatprep.subr.bf16.mxu0 %v11153_v29 }
  0xfc   : > { %9442 = vmatpush3.bf16.msra.mxu1 %v11170_v52 }
  0xfd   : > { %9400 = vmatpush3.bf16.msra.mxu0 %v11153_v29  ;;  %9447 = vmatprep.subr.bf16.mxu1 %v11171_v53  ;;  %v11176_v29 = vld [vmem:[#allocation3 + $0xe8] sm:$0xff]  }
  0xfe   : > { %9401 = vmatprep.subr.bf16.mxu0 %v11154_v32 }
 0x101   : > { %9402 = vmatpush3.bf16.msra.mxu0 %v11154_v32  ;;  %v11179_v32 = vld [vmem:[#allocation3 + $0x140] sm:$0xff]  }
 0x102   : > { %9403 = vmatprep.subr.bf16.mxu0 %v11155_v34 }
 0x105   : > { %9404 = vmatpush3.bf16.msra.mxu0 %v11155_v34  ;;  %v11181_v34 = vld [vmem:[#allocation3 + $0x150] sm:$0xff]  }
 0x106   : > { %9405 = vmatprep.subr.bf16.mxu0 %v11156_v36 }
 0x109   : > { %9406 = vmatpush3.bf16.msra.mxu0 %v11156_v36  ;;  %v11183_v36 = vld [vmem:[#allocation3 + $0x160] sm:$0xff]  }
 0x10a   : > { %9411 = vmatprep.subr.bf16.mxu0 %v11157_v37 }
 0x10c   : > { %9408 = vmatmul.mubr.msk.bf16.vlgmr.msra.gmra.mrb[0].mxu0 %vm621_vm0, %v557_v42  ;;  %v1306_v42 = vshrl.u32 %v1305_v41, 7 }
 0x10d   : > { %9412 = vmatpush3.bf16.msra.mxu0 %v11157_v37  ;;  %9423 = vmatprep.mubr.msk.bf16.mxu0 %vm621_vm0, %v768_v44  ;;  %v11184_v37 = vld [vmem:[#allocation3 + $0x168] sm:$0xff]   ;;  %v1309_v44 = vand.u32 127, %v1305_v41 }
 0x10e   : > { %9413 = vmatprep.subr.bf16.mxu0 %v11158_v43 }
 0x111   : > { %9414 = vmatpush3.bf16.msra.mxu0 %v11158_v43  ;;  %v1307_v43 = vadd.s32 8, %v1306_v42 }
 0x112   : > { %9415 = vmatprep.subr.bf16.mxu0 %v11159_v45 }
 0x115   : > { %9416 = vmatpush3.bf16.msra.mxu0 %v11159_v45  ;;  %v1310_v45 = vmul.u32 2, %v1306_v42 }
 0x116   : > { %9417 = vmatprep.subr.bf16.mxu0 %v11160_v46 }
 0x117   : > { %vm1312_vm7 = vcmp.eq.s32.totalorder %v1309_v44, %v1310_v45  ;;  %v11203_v45 = vld [vmem:[#allocation3 + $0x200] sm:$0xff]  }
 0x119   : > { %9418 = vmatpush3.bf16.msra.mxu0 %v11160_v46  ;;  %v1311_v46 = vmul.u32 2, %v1307_v43 }
 0x11a   : > { %9419 = vmatprep.subr.bf16.mxu0 %v11161_v47 }
 0x11b   : > { %vm12421_vm9 = vcmp.eq.s32.totalorder %v1309_v44, %v1311_v46 }
 0x11d   : > { %9420 = vmatpush3.bf16.msra.mxu0 %v11161_v47  ;;  %v12032_v47 = vmov 0.0  }
 0x11e   : > { %9421 = vmatprep.subr.bf16.mxu0 %v11162_v48 }
 0x121   : > { %9422 = vmatpush3.bf16.msra.mxu0 %v11162_v48  ;;  %v12419_v48 = vsel %vm1312_vm7, 1.0, %v12032_v47  ;;  %vm13397_vm7 = vcmask 31744  }
 0x124   : > { %9424 = vmatmul.mubr.msk.bf16.vlgmr.msra.gmra.mrb[0].mxu0 %vm621_vm0, %v769_v50  ;;  %v8184_v50 = vld [vmem:[#allocation5 + $0x1] ss:$0 sm:$0xff] }
 0x125   : > { %9495 = vmatprep.mubr.msk.f32.mxu0 %vm1318_vm8, %v12419_v48 }
 0x1f7   : > { %v9425_v55 = vpop.f32.mrb[0].mxu0 }
 0x1f8   : > { %v885_v56 = vadd.f32 %v9425_v55, %v8152_v54  ;;  %v859_v57 = vpop.f32.mrb[1].mxu0 }
 0x1f9   : > { %v883_v58 = vadd.f32 %v8152_v54, %v859_v57  ;;  %v9426_v59 = vpop.f32.mrb[2].mxu0 }
 0x1fa   : > { %v889_v60 = vmax.f32 %v885_v56, 0.0  ;;  %v886_v61 = vadd.f32 %v9426_v59, %v8152_v54  ;;  %v862_v62 = vpop.f32.mrb[3].mxu0 }
 0x1fb   : > { %v887_v63 = vmax.f32 %v883_v58, 0.0  ;;  %v884_v0 = vadd.f32 %v8152_v54, %v862_v62 }
 0x1fc   : > { %v890_v1 = vmax.f32 %v886_v61, 0.0  ;;  %v898_v2 = vrot.slane %v889_v60, 7  ;;  %v910_v3 = vrot.slane %v889_v60, 1 }
 0x1fd   : > { %v888_v4 = vmax.f32 %v884_v0, 0.0  ;;  %v895_v5 = vrot.slane %v887_v63, 7  ;;  %v907_v10 = vrot.slane %v887_v63, 1 }
 0x1fe   : > { %v900_v6 = vrot.slane %v890_v1, 7  ;;  %v912_v7 = vrot.slane %v890_v1, 1  ;;  %v939_v8 = vpack.c.bf16 %v890_v1, %v889_v60 }
 0x1ff   : > { %v896_v11 = vrot.slane %v888_v4, 7  ;;  %v908_v12 = vrot.slane %v888_v4, 1  ;;  %v938_v13 = vpack.c.bf16 %v888_v4, %v887_v63 }
 0x200   : > { %v913_v14 = vsel %vm543_vm2, %v910_v3, %v912_v7  ;;  %v901_v16 = vsel %vm530_vm1, %v898_v2, %v900_v6 }
 0x201   : > { %v8182_v17 = vpack.c.bf16 %v912_v7, %v913_v14  ;;  %9443 = vmatprep.mubr.bf16.mxu1 %v938_v13  ;;  %v897_v18 = vsel %vm530_vm1, %v895_v5, %v896_v11  ;;  %v899_v20 = vsel %vm530_vm1, %v896_v11, %v898_v2  ;;  %v909_v21 = vsel %vm543_vm2, %v907_v10, %v908_v12 }
 0x202   : > { %9444 = vmatmul.mubr.bf16.vlgmr.msra.gmra.mrb[0].mxu1 %v939_v8  ;;  %v8171_v22 = vpack.c.bf16 %v897_v18, %v895_v5  ;;  %v920_v23 = vpack.c.bf16 %v901_v16, %v899_v20  ;;  %v911_v24 = vsel %vm543_vm2, %v908_v12, %v910_v3  ;;  %v12435_v14 = vsel %vm12421_vm9, 1.0, %v12032_v47  ;;  %v11189_v16 = vld [vmem:[#allocation3 + $0x180] sm:$0xff]   ;;  %v11191_v18 = vld [vmem:[#allocation3 + $0x188] sm:$0xff]   ;;  %v11190_v20 = vld [vmem:[#allocation3 + $0x1d0] sm:$0xff]  }
 0x203   : > { %9448 = vmatpush3.bf16.msra.mxu1 %v11171_v53  ;;  %v1151_v25 = vpack.c.bf16 %v911_v24, %v909_v21  ;;  %v11193_v21 = vld [vmem:[#allocation3 + $0x190] sm:$0xff]   ;;  %v11194_v24 = vld [vmem:[#allocation3 + $0x1e0] sm:$0xff]   ;;  %vm12793_vm9 = vmpackc.low %vm530_vm1, %vm530_vm1 }
 0x204   : > { %9463 = vmatprep.mubr.msk.bf16.mxu1 %vm12401_vm5, %v8171_v22  ;;  %9449 = vmatprep.subr.bf16.mxu1 %v11172_v15  ;;  %v11192_v22 = vld [vmem:[#allocation3 + $0x1d8] sm:$0xff]  }
 0x207   : > { %9450 = vmatpush3.bf16.msra.mxu1 %v11172_v15  ;;  %v11187_v15 = vld [vmem:[#allocation3 + $0x1c0] sm:$0xff]  }
 0x208   : > { %9451 = vmatprep.subr.bf16.mxu1 %v11173_v26 }
 0x20b   : > { %9452 = vmatpush3.bf16.msra.mxu1 %v11173_v26  ;;  %v11196_v26 = vld [vmem:[#allocation3 + $0x1e8] sm:$0xff]  }
 0x20c   : > { %9453 = vmatprep.subr.bf16.mxu1 %v11174_v27 }
 0x20f   : > { %9454 = vmatpush3.bf16.msra.mxu1 %v11174_v27  ;;  %v11199_v27 = vld [vmem:[#allocation3 + $0x1a8] sm:$0xff]  }
 0x210   : > { %9455 = vmatprep.subr.bf16.mxu1 %v11175_v28 }
 0x213   : > { %9456 = vmatpush3.bf16.msra.mxu1 %v11175_v28  ;;  %v11198_v28 = vld [vmem:[#allocation3 + $0x1f0] sm:$0xff]  }
 0x214   : > { %9457 = vmatprep.subr.bf16.mxu1 %v11176_v29 }
 0x217   : > { %9458 = vmatpush3.bf16.msra.mxu1 %v11176_v29  ;;  %v11200_v29 = vld [vmem:[#allocation3 + $0x1f8] sm:$0xff]  }
 0x218   : > { %9459 = vmatprep.subr.bf16.mxu1 %v11177_v30 }
 0x21b   : > { %9460 = vmatpush3.bf16.msra.mxu1 %v11177_v30  ;;  %v11201_v30 = vld [vmem:[#allocation3 + $0x1b0] sm:$0xff]  }
 0x21c   : > { %9461 = vmatprep.subr.bf16.mxu1 %v11178_v31 }
 0x21f   : > { %9462 = vmatpush3.bf16.msra.mxu1 %v11178_v31  ;;  %v11202_v31 = vld [vmem:[#allocation3 + $0x1b8] sm:$0xff]  }
 0x220   : > { %9467 = vmatprep.subr.bf16.mxu1 %v11179_v32 }
 0x222   : > { %9464 = vmatmul.mubr.bf16.vlgmr.msra.gmra.mrb[0].mxu1 %v920_v23  ;;  %v11195_v23 = vld [vmem:[#allocation3 + $0x198] sm:$0xff]  }
 0x223   : > { %9468 = vmatpush3.bf16.msra.mxu1 %v11179_v32  ;;  %9483 = vmatprep.mubr.bf16.mxu1 %v1151_v25  ;;  %v11197_v25 = vld [vmem:[#allocation3 + $0x1a0] sm:$0xff]  }
 0x224   : > { %9469 = vmatprep.subr.bf16.mxu1 %v11180_v33 }
 0x227   : > { %9470 = vmatpush3.bf16.msra.mxu1 %v11180_v33 }
 0x228   : > { %9471 = vmatprep.subr.bf16.mxu1 %v11181_v34 }
 0x22b   : > { %9472 = vmatpush3.bf16.msra.mxu1 %v11181_v34 }
 0x22c   : > { %9473 = vmatprep.subr.bf16.mxu1 %v11182_v35 }
 0x22f   : > { %9474 = vmatpush3.bf16.msra.mxu1 %v11182_v35 }
 0x230   : > { %9475 = vmatprep.subr.bf16.mxu1 %v11183_v36 }
 0x233   : > { %9476 = vmatpush3.bf16.msra.mxu1 %v11183_v36 }
 0x234   : > { %9477 = vmatprep.subr.bf16.mxu1 %v11184_v37 }
 0x237   : > { %9478 = vmatpush3.bf16.msra.mxu1 %v11184_v37 }
 0x238   : > { %9479 = vmatprep.subr.bf16.mxu1 %v11185_v38 }
 0x23b   : > { %9480 = vmatpush3.bf16.msra.mxu1 %v11185_v38 }
 0x23c   : > { %9481 = vmatprep.subr.bf16.mxu1 %v11186_v39 }
 0x23f   : > { %9482 = vmatpush3.bf16.msra.mxu1 %v11186_v39 }
 0x240   : > { %9518 = vmatprep.subr.bf16.mxu1 %v12032_v47 }
 0x242   : > { %9484 = vmatmul.mubr.msk.bf16.vlgmr.msra.gmra.mrb[0].mxu1 %vm12412_vm6, %v8182_v17  ;;  %v11188_v17 = vld [vmem:[#allocation3 + $0x1c8] sm:$0xff]  }
 0x243   : > { %9519 = vmatpush3.bf16.msra.mxu1 %v11189_v16  ;;  %9534 = vmatprep.mubr.msk.bf16.mxu1 %vm12033_vm10, %v12032_v47 }
 0x244   : > { %9520 = vmatprep.subr.bf16.mxu1 %v12032_v47 }
 0x247   : > { %9521 = vmatpush3.bf16.msra.mxu1 %v11191_v18 }
 0x248   : > { %9522 = vmatprep.subr.bf16.mxu1 %v12032_v47 }
 0x24b   : > { %9523 = vmatpush3.bf16.msra.mxu1 %v11193_v21 }
 0x24c   : > { %9524 = vmatprep.subr.bf16.mxu1 %v12032_v47 }
 0x24f   : > { %9525 = vmatpush3.bf16.msra.mxu1 %v11195_v23 }
 0x250   : > { %9526 = vmatprep.subr.bf16.mxu1 %v12032_v47 }
 0x253   : > { %9527 = vmatpush3.bf16.msra.mxu1 %v11197_v25 }
 0x254   : > { %9528 = vmatprep.subr.bf16.mxu1 %v12032_v47 }
 0x257   : > { %9529 = vmatpush3.bf16.msra.mxu1 %v11199_v27 }
 0x258   : > { %9530 = vmatprep.subr.bf16.mxu1 %v12032_v47 }
 0x25b   : > { %9531 = vmatpush3.bf16.msra.mxu1 %v11201_v30 }
 0x25c   : > { %9532 = vmatprep.subr.bf16.mxu1 %v12032_v47 }
 0x25f   : > { %9533 = vmatpush3.bf16.msra.mxu1 %v11202_v31 }
 0x260   : > { %9558 = vmatprep.subr.bf16.mxu1 %v12032_v47 }
 0x315   : > { %v9485_v51 = vpop.f32.mrb[0].mxu1 }
 0x316   : > { %v1278_v52 = vadd.f32 %v9485_v51, %v8184_v50  ;;  %v1252_v53 = vpop.f32.mrb[1].mxu1 }
 0x317   : > { %v1276_v54 = vadd.f32 %v8184_v50, %v1252_v53  ;;  %v9486_v55 = vpop.f32.mrb[2].mxu1  ;;  %v11204_v53 = vld [vmem:[#allocation3 + $0x208] sm:$0xff]  }
 0x318   : > { %v1282_v56 = vmax.f32 %v1278_v52, 0.0  ;;  %v1279_v57 = vadd.f32 %v9486_v55, %v8184_v50  ;;  %v1255_v58 = vpop.f32.mrb[3].mxu1  ;;  %v11206_v55 = vld [vmem:[#allocation3 + $0x218] sm:$0xff]  }
 0x319   : > { %v1280_v59 = vmax.f32 %v1276_v54, 0.0  ;;  %v1277_v60 = vadd.f32 %v8184_v50, %v1255_v58  ;;  %v11205_v54 = vld [vmem:[#allocation3 + $0x210] sm:$0xff]  }
 0x31a   : > { %v1283_v61 = vmax.f32 %v1279_v57, 0.0  ;;  %v1291_v0 = vrot.slane %v1282_v56, 1  ;;  %v11208_v57 = vld [vmem:[#allocation3 + $0x228] sm:$0xff]   ;;  %v11209_v58 = vld [vmem:[#allocation3 + $0x230] sm:$0xff]  }
 0x31b   : > { %v1288_v62 = vrot.slane %v1280_v59, 1  ;;  %v1281_v63 = vmax.f32 %v1277_v60, 0.0  ;;  %v11211_v60 = vld [vmem:[#allocation3 + $0x280] sm:$0xff]  }
 0x31c   : > { %v1293_v1 = vrot.slane %v1283_v61, 1 }
 0x31d   : > { %v1289_v2 = vrot.slane %v1281_v63, 1 }
 0x31e   : > { %v1300_v3 = vsel %vm543_vm2, %v1293_v1, %v1288_v62  ;;  %v1294_v4 = vsel %vm543_vm2, %v1291_v0, %v1293_v1  ;;  %v11217_v1 = vld [vmem:[#allocation3 + $0x250] sm:$0xff]  }
 0x31f   : > { %v1304_v5 = vmax.f32 %v1283_v61, %v1300_v3  ;;  %v1292_v6 = vsel %vm543_vm2, %v1289_v2, %v1291_v0  ;;  %v1290_v7 = vsel %vm543_vm2, %v1288_v62, %v1289_v2  ;;  %v1303_v8 = vmax.f32 %v1282_v56, %v1294_v4  ;;  %v11207_v56 = vld [vmem:[#allocation3 + $0x220] sm:$0xff]   ;;  %v11212_v62 = vld [vmem:[#allocation3 + $0x288] sm:$0xff]   ;;  %v11214_v0 = vld [vmem:[#allocation3 + $0x290] sm:$0xff]  }
 0x320   : > { %v1302_v10 = vmax.f32 %v1281_v63, %v1292_v6  ;;  %v1301_v11 = vmax.f32 %v1280_v59, %v1290_v7  ;;  %v11210_v59 = vld [vmem:[#allocation3 + $0x238] sm:$0xff]   ;;  %v11213_v61 = vld [vmem:[#allocation3 + $0x240] sm:$0xff]   ;;  %v11215_v63 = vld [vmem:[#allocation3 + $0x248] sm:$0xff]  }
 0x321   : > { %v10983_v12 = vpack.c.bf16 %v1304_v5, %v1303_v8  ;;  %v11216_v2 = vld [vmem:[#allocation3 + $0x298] sm:$0xff]   ;;  %v11218_v4 = vld [vmem:[#allocation3 + $0x2a0] sm:$0xff]   ;;  %v11220_v6 = vld [vmem:[#allocation3 + $0x2a8] sm:$0xff]  }
 0x322   : > { %v10979_v13 = vpack.c.bf16 %v1302_v10, %v1301_v11  ;;  %v11219_v3 = vld [vmem:[#allocation3 + $0x258] sm:$0xff]   ;;  %v11221_v5 = vld [vmem:[#allocation3 + $0x260] sm:$0xff]   ;;  %v11222_v7 = vld [vmem:[#allocation3 + $0x2b0] sm:$0xff]  }
 0x323   : > { %v11223_v8 = vld [vmem:[#allocation3 + $0x268] sm:$0xff]   ;;  %v11224_v10 = vld [vmem:[#allocation3 + $0x2b8] sm:$0xff]   ;;  %v11225_v11 = vld [vmem:[#allocation3 + $0x270] sm:$0xff]  }
 0x324   : > { %10980 = vmatprep.subr.bf16.mxu0 %v10979_v13 }
 0x325   : > { %10982 = vmatpush3.bf16.msra.mxu0 %v10979_v13 }
 0x326   : > { %10984 = vmatprep.subr.bf16.mxu0 %v10983_v12 }
 0x329   : > { %10986 = vmatpush3.bf16.msra.mxu0 %v10983_v12  ;;  %v11226_v12 = vld [vmem:[#allocation3 + $0x278] sm:$0xff]  }
 0x32a   : > { %9498 = vmatprep.subr.bf16.mxu0 %v12032_v47 }
 0x32c   : > { %9496 = vmatmul.mubr.msk.f32.vlgmr.msra.gmra.mrb[4].mxu0 %vm1318_vm8, %v12435_v14 }
 0x32d   : > { %9499 = vmatpush3.bf16.msra.mxu0 %v11187_v15  ;;  %9514 = vmatprep.mubr.msk.bf16.mxu0 %vm12033_vm10, %v12032_v47 }
 0x32e   : > { %9500 = vmatprep.subr.bf16.mxu0 %v12032_v47 }
 0x331   : > { %9501 = vmatpush3.bf16.msra.mxu0 %v11188_v17 }
 0x332   : > { %9502 = vmatprep.subr.bf16.mxu0 %v12032_v47 }
 0x335   : > { %9503 = vmatpush3.bf16.msra.mxu0 %v11190_v20 }
 0x336   : > { %9504 = vmatprep.subr.bf16.mxu0 %v12032_v47 }
 0x339   : > { %9505 = vmatpush3.bf16.msra.mxu0 %v11192_v22 }
 0x33a   : > { %9506 = vmatprep.subr.bf16.mxu0 %v12032_v47 }
 0x33d   : > { %9507 = vmatpush3.bf16.msra.mxu0 %v11194_v24 }
 0x33e   : > { %9508 = vmatprep.subr.bf16.mxu0 %v12032_v47 }
 0x341   : > { %9509 = vmatpush3.bf16.msra.mxu0 %v11196_v26  ;;  %v8220_v26 = vld [vmem:[#allocation5 + $0x2] ss:$0 sm:$0xff] }
 0x342   : > { %9510 = vmatprep.subr.bf16.mxu0 %v12032_v47 }
 0x345   : > { %9511 = vmatpush3.bf16.msra.mxu0 %v11198_v28 }
 0x346   : > { %9512 = vmatprep.subr.bf16.mxu0 %v12032_v47 }
 0x349   : > { %9513 = vmatpush3.bf16.msra.mxu0 %v11200_v29 }
 0x34a   : > { %9538 = vmatprep.subr.bf16.mxu0 %v12032_v47 }
 0x3ff   : > { %v9497_v32 = vpop.f32.mrb[4].mxu0 }
 0x400   : > { %v1391_v33 = vpop.f32.mrb[5].mxu0 }
 0x401   : > { %v11135_v34 = vpack.i.bf16 %v9497_v32, %v1391_v33 }
 0x403   : > { %11136 = vrot.lane.b32.xlu0 %v11135_v34, %s12034_s13 }
 0x475   : > { %v11137_v35 = vpop.permute.xlu0 %11136 }
 0x476   : > { %v11139_v36 = vunpack.i.h.bf16 %v11137_v35  ;;  %v11138_v37 = vunpack.i.l.bf16 %v11137_v35 }
 0x478   : > { %v1405_v38 = vmax.f32 %v9497_v32, %v11139_v36  ;;  %v1404_v39 = vmax.f32 %v1391_v33, %v11138_v37  ;;  %v11227_v37 = vld [vmem:[#allocation3 + $0x2c0] sm:$0xff]  }
 0x47a   : > { %v1409_v41 = vrot.slane %v1405_v38, 7  ;;  %v1415_v42 = vrot.slane %v1405_v38, 1  ;;  %v1408_v43 = vrot.slane %v1404_v39, 7  ;;  %v1414_v44 = vrot.slane %v1404_v39, 1 }
 0x47b   : > { %v1438_v46 = vpack.c.bf16 %v1405_v38, %v1404_v39 }
 0x47c   : > { %v1410_v49 = vsel %vm530_vm1, %v1408_v43, %v1409_v41  ;;  %v1416_v50 = vsel %vm543_vm2, %v1414_v44, %v1415_v42 }
 0x47d   : > { %v8207_v51 = vpack.c.bf16 %v1410_v49, %v1408_v43  ;;  %v8218_v52 = vpack.c.bf16 %v1415_v42, %v1416_v50  ;;  %9515 = vmatmul.mubr.bf16.vlgmr.msra.gmra.mrb[8].mxu0 %v1438_v46  ;;  %v11228_v49 = vld [vmem:[#allocation3 + $0x2c8] sm:$0xff]   ;;  %v11229_v50 = vld [vmem:[#allocation3 + $0x2d0] sm:$0xff]  }
 0x47e   : > { %9539 = vmatpush3.bf16.msra.mxu0 %v11203_v45  ;;  %9554 = vmatprep.mubr.msk.bf16.mxu0 %vm12033_vm10, %v12032_v47 }
 0x47f   : > { %9535 = vmatmul.mubr.msk.bf16.vlgmr.msra.gmra.mrb[4].mxu1 %vm12401_vm5, %v8207_v51  ;;  %9540 = vmatprep.subr.bf16.mxu0 %v12032_v47  ;;  %v11230_v51 = vld [vmem:[#allocation3 + $0x2d8] sm:$0xff]  }
 0x480   : > { %9574 = vmatprep.mubr.msk.bf16.mxu1 %vm12033_vm10, %v12032_v47  ;;  %9559 = vmatpush3.bf16.msra.mxu1 %v11211_v60 }
 0x481   : > { %9560 = vmatprep.subr.bf16.mxu1 %v12032_v47 }
 0x482   : > { %9541 = vmatpush3.bf16.msra.mxu0 %v11204_v53  ;;  %v11232_v53 = vld [vmem:[#allocation3 + $0x2e8] sm:$0xff]  }
 0x483   : > { %9542 = vmatprep.subr.bf16.mxu0 %v12032_v47 }
 0x484   : > { %9561 = vmatpush3.bf16.msra.mxu1 %v11212_v62 }
 0x485   : > { %9562 = vmatprep.subr.bf16.mxu1 %v12032_v47 }
 0x486   : > { %9543 = vmatpush3.bf16.msra.mxu0 %v11205_v54  ;;  %v11233_v54 = vld [vmem:[#allocation3 + $0x2f0] sm:$0xff]  }
 0x487   : > { %9544 = vmatprep.subr.bf16.mxu0 %v12032_v47 }
 0x488   : > { %9563 = vmatpush3.bf16.msra.mxu1 %v11214_v0 }
 0x489   : > { %9564 = vmatprep.subr.bf16.mxu1 %v12032_v47 }
 0x48a   : > { %9545 = vmatpush3.bf16.msra.mxu0 %v11206_v55  ;;  %v11234_v55 = vld [vmem:[#allocation3 + $0x2f8] sm:$0xff]  }
 0x48b   : > { %9546 = vmatprep.subr.bf16.mxu0 %v12032_v47 }
 0x48c   : > { %9565 = vmatpush3.bf16.msra.mxu1 %v11216_v2 }
 0x48d   : > { %9566 = vmatprep.subr.bf16.mxu1 %v12032_v47 }
 0x48e   : > { %9547 = vmatpush3.bf16.msra.mxu0 %v11207_v56  ;;  %v12035_v56 = vmov 0.0|0.0  }
 0x48f   : > { %9548 = vmatprep.subr.bf16.mxu0 %v12032_v47 }
 0x490   : > { %9567 = vmatpush3.bf16.msra.mxu1 %v11218_v4  ;;  %v8252_v4 = vld [vmem:[#allocation5 + $0x3] ss:$0 sm:$0xff] }
 0x491   : > { %9568 = vmatprep.subr.bf16.mxu1 %v12032_v47 }
 0x492   : > { %9549 = vmatpush3.bf16.msra.mxu0 %v11208_v57 }
 0x493   : > { %9550 = vmatprep.subr.bf16.mxu0 %v12032_v47 }
 0x494   : > { %9569 = vmatpush3.bf16.msra.mxu1 %v11220_v6 }
 0x495   : > { %9570 = vmatprep.subr.bf16.mxu1 %v12032_v47 }
 0x496   : > { %9551 = vmatpush3.bf16.msra.mxu0 %v11209_v58 }
 0x497   : > { %9552 = vmatprep.subr.bf16.mxu0 %v12032_v47 }
 0x498   : > { %9571 = vmatpush3.bf16.msra.mxu1 %v11222_v7 }
 0x499   : > { %9572 = vmatprep.subr.bf16.mxu1 %v12032_v47 }
 0x49a   : > { %9553 = vmatpush3.bf16.msra.mxu0 %v11210_v59 }
 0x49b   : > { %9578 = vmatprep.subr.bf16.mxu0 %v12032_v47 }
 0x49c   : > { %9573 = vmatpush3.bf16.msra.mxu1 %v11224_v10 }
 0x49d   : > { %9555 = vmatmul.mubr.msk.bf16.vlgmr.msra.gmra.mrb[12].mxu0 %vm12412_vm6, %v8218_v52  ;;  %9598 = vmatprep.subr.bf16.mxu1 %v12032_v47  ;;  %v11231_v52 = vld [vmem:[#allocation3 + $0x2e0] sm:$0xff]  }
 0x49e   : > { %9594 = vmatprep.mubr.msk.bf16.mxu0 %vm12033_vm10, %v12032_v47  ;;  %9579 = vmatpush3.bf16.msra.mxu0 %v11213_v61 }
 0x49f   : > { %9580 = vmatprep.subr.bf16.mxu0 %v12032_v47 }
 0x4a2   : > { %9581 = vmatpush3.bf16.msra.mxu0 %v11215_v63 }
 0x4a3   : > { %9582 = vmatprep.subr.bf16.mxu0 %v12032_v47 }
 0x4a6   : > { %9583 = vmatpush3.bf16.msra.mxu0 %v11217_v1 }
 0x4a7   : > { %9584 = vmatprep.subr.bf16.mxu0 %v12032_v47 }
 0x4aa   : > { %9585 = vmatpush3.bf16.msra.mxu0 %v11219_v3 }
 0x4ab   : > { %9586 = vmatprep.subr.bf16.mxu0 %v12032_v47 }
 0x4ae   : > { %9587 = vmatpush3.bf16.msra.mxu0 %v11221_v5 }
 0x4af   : > { %9588 = vmatprep.subr.bf16.mxu0 %v12032_v47 }
 0x4b2   : > { %9589 = vmatpush3.bf16.msra.mxu0 %v11223_v8 }
 0x4b3   : > { %9590 = vmatprep.subr.bf16.mxu0 %v12032_v47 }
 0x4b6   : > { %9591 = vmatpush3.bf16.msra.mxu0 %v11225_v11 }
 0x4b7   : > { %9592 = vmatprep.subr.bf16.mxu0 %v12032_v47 }
 0x4ba   : > { %9593 = vmatpush3.bf16.msra.mxu0 %v11226_v12 }
 0x4bb   : > { %10987 = vmatprep.subr.bf16.mxu0 %v12035_v56 }
 0x550   : > { %v1538_v13 = vpop.f32.mrb[8].mxu0 }
 0x551   : > { %v9516_v15 = vpop.f32.mrb[9].mxu0 }
 0x552   : > { %v1541_v16 = vpop.f32.mrb[10].mxu0  ;;  %v1627_v17 = vpop.f32.mrb[4].mxu1 }
 0x553   : > { %v9517_v18 = vpop.f32.mrb[11].mxu0  ;;  %v1628_v20 = vadd.f32 %v1627_v17, %v1538_v13  ;;  %v9536_v21 = vpop.f32.mrb[5].mxu1 }
 0x554   : > { %v1630_v22 = vpop.f32.mrb[6].mxu1 }
 0x555   : > { %v1631_v23 = vadd.f32 %v1630_v22, %v1541_v16  ;;  %v9537_v24 = vpop.f32.mrb[7].mxu1 }
 0x556   : > { %v11235_v24 = vld [vmem:[#allocation3 + $0x340] sm:$0xff]  }
 0x570   : > { %v1734_v25 = vpop.f32.mrb[12].mxu0 }
 0x571   : > { %v1741_v27 = vadd.f32 %v1734_v25, %v1628_v20  ;;  %v9556_v28 = vpop.f32.mrb[13].mxu0  ;;  %v11236_v25 = vld [vmem:[#allocation3 + $0x300] sm:$0xff]  }
 0x572   : > { %v1737_v29 = vpop.f32.mrb[14].mxu0  ;;  %v11239_v28 = vld [vmem:[#allocation3 + $0x350] sm:$0xff]  }
 0x573   : > { %v1748_v30 = vadd.f32 %v8220_v26, %v1741_v27  ;;  %v1742_v31 = vadd.f32 %v1737_v29, %v1631_v23  ;;  %v9557_v32 = vpop.f32.mrb[15].mxu0  ;;  %v11238_v27 = vld [vmem:[#allocation3 + $0x308] sm:$0xff]   ;;  %v11240_v29 = vld [vmem:[#allocation3 + $0x310] sm:$0xff]  }
 0x574   : > { %v11243_v32 = vld [vmem:[#allocation3 + $0x360] sm:$0xff]  }
 0x575   : > { %v1750_v33 = vmax.f32 %v1748_v30, 0.0  ;;  %v1749_v34 = vadd.f32 %v8220_v26, %v1742_v31  ;;  %v11237_v26 = vld [vmem:[#allocation3 + $0x348] sm:$0xff]   ;;  %v11241_v30 = vld [vmem:[#allocation3 + $0x358] sm:$0xff]  }
 0x576   : > { %v11242_v31 = vld [vmem:[#allocation3 + $0x318] sm:$0xff]  }
 0x577   : > { %v1751_v35 = vmax.f32 %v1749_v34, 0.0  ;;  %v1754_v36 = vrot.slane %v1750_v33, 7  ;;  %v1760_v38 = vrot.slane %v1750_v33, 1  ;;  %v11245_v34 = vld [vmem:[#allocation3 + $0x368] sm:$0xff]  }
 0x579   : > { %v1755_v39 = vrot.slane %v1751_v35, 7  ;;  %v1761_v41 = vrot.slane %v1751_v35, 1  ;;  %v1784_v42 = vpack.c.bf16 %v1751_v35, %v1750_v33  ;;  %v11244_v33 = vld [vmem:[#allocation3 + $0x320] sm:$0xff]   ;;  %v11246_v35 = vld [vmem:[#allocation3 + $0x328] sm:$0xff]  }
 0x57b   : > { %v1756_v43 = vsel %vm530_vm1, %v1754_v36, %v1755_v39  ;;  %v1762_v44 = vsel %vm543_vm2, %v1760_v38, %v1761_v41  ;;  %9575 = vmatmul.mubr.bf16.vlgmr.msra.gmra.mrb[8].mxu1 %v1784_v42  ;;  %v11249_v38 = vld [vmem:[#allocation3 + $0x378] sm:$0xff]  }
 0x57c   : > { %v8250_v45 = vpack.c.bf16 %v1761_v41, %v1762_v44  ;;  %9599 = vmatpush3.bf16.msra.mxu1 %v11227_v37  ;;  %v8239_v46 = vpack.c.bf16 %v1756_v43, %v1754_v36  ;;  %9614 = vmatprep.mubr.msk.bf16.mxu1 %vm12033_vm10, %v12032_v47  ;;  %v11247_v36 = vld [vmem:[#allocation3 + $0x370] sm:$0xff]   ;;  %v11250_v39 = vld [vmem:[#allocation3 + $0x338] sm:$0xff]  }
 0x57d   : > { %9600 = vmatprep.subr.bf16.mxu1 %v12032_v47  ;;  %v11248_v37 = vld [vmem:[#allocation3 + $0x330] sm:$0xff]  }
 0x57e   : > { %9595 = vmatmul.mubr.msk.bf16.vlgmr.msra.gmra.mrb[16].mxu0 %vm12401_vm5, %v8239_v46 }
 0x57f   : > { %9622 = vmatprep.mubr.msk.f32.mxu0 %vm12033_vm10, %v12032_v47 }
 0x580   : > { %9601 = vmatpush3.bf16.msra.mxu1 %v11228_v49 }
 0x581   : > { %9602 = vmatprep.subr.bf16.mxu1 %v12032_v47 }
 0x584   : > { %9603 = vmatpush3.bf16.msra.mxu1 %v11229_v50  ;;  %v11724_v50 = vld [vmem:[#allocation3 + $0x890] sm:$0xff]  }
 0x585   : > { %9604 = vmatprep.subr.bf16.mxu1 %v12032_v47 }
 0x588   : > { %9605 = vmatpush3.bf16.msra.mxu1 %v11230_v51 }
 0x589   : > { %9606 = vmatprep.subr.bf16.mxu1 %v12032_v47 }
 0x58c   : > { %9607 = vmatpush3.bf16.msra.mxu1 %v11231_v52  ;;  %v11252_v52 = vld [vmem:[#allocation3 + $0x388] sm:$0xff]  }
 0x58d   : > { %9608 = vmatprep.subr.bf16.mxu1 %v12032_v47 }
 0x590   : > { %9609 = vmatpush3.bf16.msra.mxu1 %v11232_v53  ;;  %v11254_v53 = vld [vmem:[#allocation3 + $0x398] sm:$0xff]  }
 0x591   : > { %9610 = vmatprep.subr.bf16.mxu1 %v12032_v47 }
 0x594   : > { %9611 = vmatpush3.bf16.msra.mxu1 %v11233_v54  ;;  %v11255_v54 = vld [vmem:[#allocation3 + $0x3a0] sm:$0xff]  }
 0x595   : > { %9612 = vmatprep.subr.bf16.mxu1 %v12032_v47 }
 0x598   : > { %9613 = vmatpush3.bf16.msra.mxu1 %v11234_v55  ;;  %v11256_v55 = vld [vmem:[#allocation3 + $0x3a8] sm:$0xff]  }
 0x599   : > { %9645 = vmatprep.subr.bf16.mxu1 %v12032_v47 }
 0x59b   : > { %9615 = vmatmul.mubr.msk.bf16.vlgmr.msra.gmra.mrb[12].mxu1 %vm12412_vm6, %v8250_v45  ;;  %v11251_v45 = vld [vmem:[#allocation3 + $0x380] sm:$0xff]  }
 0x59c   : > { %9661 = vmatprep.mubr.msk.bf16.mxu1 %vm12033_vm10, %v12032_v47  ;;  %9646 = vmatpush3.bf16.msra.mxu1 %v11236_v25 }
 0x59d   : > { %9647 = vmatprep.subr.bf16.mxu1 %v12032_v47 }
 0x5a0   : > { %9648 = vmatpush3.bf16.msra.mxu1 %v11238_v27  ;;  %v8286_v27 = vld [vmem:[#allocation5 + $0x4] ss:$0 sm:$0xff] }
 0x5a1   : > { %9649 = vmatprep.subr.bf16.mxu1 %v12032_v47 }
 0x5a4   : > { %9650 = vmatpush3.bf16.msra.mxu1 %v11240_v29 }
 0x5a5   : > { %9651 = vmatprep.subr.bf16.mxu1 %v12032_v47 }
 0x5a8   : > { %9652 = vmatpush3.bf16.msra.mxu1 %v11242_v31 }
 0x5a9   : > { %9653 = vmatprep.subr.bf16.mxu1 %v12032_v47 }
 0x5ac   : > { %9654 = vmatpush3.bf16.msra.mxu1 %v11244_v33 }
 0x5ad   : > { %9655 = vmatprep.subr.bf16.mxu1 %v12032_v47 }
 0x5b0   : > { %9656 = vmatpush3.bf16.msra.mxu1 %v11246_v35 }
 0x5b1   : > { %9657 = vmatprep.subr.bf16.mxu1 %v12032_v47 }
 0x5b4   : > { %9658 = vmatpush3.bf16.msra.mxu1 %v11248_v37 }
 0x5b5   : > { %9659 = vmatprep.subr.bf16.mxu1 %v12032_v47 }
 0x5b8   : > { %9660 = vmatpush3.bf16.msra.mxu1 %v11250_v39  ;;  %v11277_v39 = vld [vmem:[#allocation3 + $0x450] sm:$0xff]  }
 0x5b9   : > { %9685 = vmatprep.subr.bf16.mxu1 %v12032_v47 }
 0x64e   : > { %v1884_v57 = vpop.f32.mrb[8].mxu1 }
 0x64f   : > { %v9576_v58 = vpop.f32.mrb[9].mxu1 }
 0x650   : > { %v1887_v59 = vpop.f32.mrb[10].mxu1  ;;  %v11258_v58 = vld [vmem:[#allocation3 + $0x3b8] sm:$0xff]  }
 0x651   : > { %v9577_v60 = vpop.f32.mrb[11].mxu1  ;;  %v1973_v61 = vpop.f32.mrb[16].mxu0 }
 0x652   : > { %v1974_v62 = vadd.f32 %v1973_v61, %v1884_v57  ;;  %v9596_v63 = vpop.f32.mrb[17].mxu0  ;;  %v11257_v57 = vld [vmem:[#allocation3 + $0x3b0] sm:$0xff]   ;;  %v11631_v60 = vld [vmem:[#allocation3 + $0x560] sm:$0xff]  }
 0x653   : > { %v1976_v0 = vpop.f32.mrb[18].mxu0  ;;  %v11260_v63 = vld [vmem:[#allocation3 + $0x3c0] sm:$0xff]  }
 0x654   : > { %v1977_v1 = vadd.f32 %v1976_v0, %v1887_v59  ;;  %v9597_v2 = vpop.f32.mrb[19].mxu0  ;;  %v11261_v0 = vld [vmem:[#allocation3 + $0x408] sm:$0xff]  }
 0x655   : > { %v11263_v2 = vld [vmem:[#allocation3 + $0x410] sm:$0xff]  }
 0x66e   : > { %v2080_v3 = vpop.f32.mrb[12].mxu1 }
 0x66f   : > { %v2087_v5 = vadd.f32 %v2080_v3, %v1974_v62  ;;  %v9616_v6 = vpop.f32.mrb[13].mxu1  ;;  %v11259_v62 = vld [vmem:[#allocation3 + $0x400] sm:$0xff]   ;;  %v11264_v3 = vld [vmem:[#allocation3 + $0x3d0] sm:$0xff]  }
 0x670   : > { %v2083_v7 = vpop.f32.mrb[14].mxu1  ;;  %v11267_v6 = vld [vmem:[#allocation3 + $0x420] sm:$0xff]  }
 0x671   : > { %v2094_v8 = vadd.f32 %v8252_v4, %v2087_v5  ;;  %v2088_v10 = vadd.f32 %v2083_v7, %v1977_v1  ;;  %v9617_v11 = vpop.f32.mrb[15].mxu1  ;;  %v11262_v1 = vld [vmem:[#allocation3 + $0x3c8] sm:$0xff]   ;;  %v11266_v5 = vld [vmem:[#allocation3 + $0x3d8] sm:$0xff]   ;;  %v11268_v7 = vld [vmem:[#allocation3 + $0x3e0] sm:$0xff]  }
 0x672   : > { %v11271_v11 = vld [vmem:[#allocation3 + $0x430] sm:$0xff]  }
 0x673   : > { %v2096_v12 = vmax.f32 %v2094_v8, 0.0  ;;  %v2095_v13 = vadd.f32 %v8252_v4, %v2088_v10  ;;  %v11265_v4 = vld [vmem:[#allocation3 + $0x418] sm:$0xff]   ;;  %v11269_v8 = vld [vmem:[#allocation3 + $0x428] sm:$0xff]  }
 0x674   : > { %v11270_v10 = vld [vmem:[#allocation3 + $0x3e8] sm:$0xff]  }
 0x675   : > { %v2097_v15 = vmax.f32 %v2095_v13, 0.0  ;;  %v2100_v16 = vrot.slane %v2096_v12, 1  ;;  %v11273_v13 = vld [vmem:[#allocation3 + $0x438] sm:$0xff]  }
 0x677   : > { %v2101_v17 = vrot.slane %v2097_v15, 1 }
 0x679   : > { %v2102_v18 = vsel %vm543_vm2, %v2100_v16, %v2101_v17  ;;  %v2106_v20 = vsel %vm543_vm2, %v2101_v17, %v2100_v16 }
 0x67a   : > { %v2107_v21 = vmax.f32 %v2096_v12, %v2102_v18  ;;  %v2108_v22 = vmax.f32 %v2097_v15, %v2106_v20  ;;  %v11272_v12 = vld [vmem:[#allocation3 + $0x3f0] sm:$0xff]   ;;  %v11274_v15 = vld [vmem:[#allocation3 + $0x3f8] sm:$0xff]  }
 0x67c   : > { %v10988_v23 = vpack.c.bf16 %v2108_v22, %v2107_v21 }
 0x67e   : > { %10989 = vmatpush3.bf16.msra.mxu0 %v10988_v23 }
 0x67f   : > { %9625 = vmatprep.subr.bf16.mxu0 %v12032_v47 }
 0x681   : > { %9623 = vmatmul.mubr.msk.f32.vlgmr.msra.gmra.mrb[6].mxu0 %vm2109_vm11, %v12419_v48 }
 0x682   : > { %9641 = vmatprep.mubr.msk.bf16.mxu0 %vm12033_vm10, %v12032_v47  ;;  %9626 = vmatpush3.bf16.msra.mxu0 %v11235_v24 }
 0x683   : > { %9627 = vmatprep.subr.bf16.mxu0 %v12032_v47 }
 0x686   : > { %9628 = vmatpush3.bf16.msra.mxu0 %v11237_v26 }
 0x687   : > { %9629 = vmatprep.subr.bf16.mxu0 %v12032_v47 }
 0x68a   : > { %9630 = vmatpush3.bf16.msra.mxu0 %v11239_v28 }
 0x68b   : > { %9631 = vmatprep.subr.bf16.mxu0 %v12032_v47 }
 0x68e   : > { %9632 = vmatpush3.bf16.msra.mxu0 %v11241_v30 }
 0x68f   : > { %9633 = vmatprep.subr.bf16.mxu0 %v12032_v47 }
 0x692   : > { %9634 = vmatpush3.bf16.msra.mxu0 %v11243_v32 }
 0x693   : > { %9635 = vmatprep.subr.bf16.mxu0 %v12032_v47 }
 0x696   : > { %9636 = vmatpush3.bf16.msra.mxu0 %v11245_v34  ;;  %v11275_v34 = vld [vmem:[#allocation3 + $0x440] sm:$0xff]  }
 0x697   : > { %9637 = vmatprep.subr.bf16.mxu0 %v12032_v47 }
 0x69a   : > { %9638 = vmatpush3.bf16.msra.mxu0 %v11247_v36 }
 0x69b   : > { %9639 = vmatprep.subr.bf16.mxu0 %v12032_v47 }
 0x69e   : > { %9640 = vmatpush3.bf16.msra.mxu0 %v11249_v38  ;;  %v11276_v38 = vld [vmem:[#allocation3 + $0x448] sm:$0xff]  }
 0x69f   : > { %9665 = vmatprep.subr.bf16.mxu0 %v12032_v47 }
 0x754   : > { %v2178_v41 = vpop.f32.mrb[6].mxu0 }
 0x755   : > { %2182 = vrot.lane.b32.xlu0 %v2178_v41, %s12036_s24  ;;  %v9624_v42 = vpop.f32.mrb[7].mxu0 }
 0x756   : > { %v11279_v42 = vld [vmem:[#allocation3 + $0x460] sm:$0xff]  }
 0x7c7   : > { %v2183_v43 = vpop.permute.xlu0 %2182 }
 0x7c8   : > { %v2184_v44 = vmax.f32 %v2178_v41, %v2183_v43  ;;  %v11278_v41 = vld [vmem:[#allocation3 + $0x458] sm:$0xff]   ;;  %v11280_v43 = vld [vmem:[#allocation3 + $0x468] sm:$0xff]  }
 0x7ca   : > { %v2186_v46 = vrot.slane %v2184_v44, 7  ;;  %v2210_v49 = vpack.c.bf16 %v2184_v44, %v2184_v44  ;;  %v2189_v59 = vrot.slane %v2184_v44, 1  ;;  %v11281_v44 = vld [vmem:[#allocation3 + $0x470] sm:$0xff]  }
 0x7cc   : > { %v8273_v51 = vpack.c.bf16 %v2186_v46, %v2186_v46  ;;  %9642 = vmatmul.mubr.bf16.vlgmr.msra.gmra.mrb[20].mxu0 %v2210_v49  ;;  %v8284_v61 = vpack.c.bf16 %v2189_v59, %v2189_v59  ;;  %v11291_v59 = vld [vmem:[#allocation3 + $0x4e0] sm:$0xff]  }
 0x7cd   : > { %9666 = vmatpush3.bf16.msra.mxu0 %v11251_v45  ;;  %9681 = vmatprep.mubr.msk.bf16.mxu0 %vm12033_vm10, %v12032_v47  ;;  %v11282_v45 = vld [vmem:[#allocation3 + $0x478] sm:$0xff]  }
 0x7ce   : > { %9662 = vmatmul.mubr.msk.bf16.vlgmr.msra.gmra.mrb[16].mxu1 %vm12544_vm12, %v8273_v51  ;;  %9667 = vmatprep.subr.bf16.mxu0 %v12032_v47  ;;  %v11283_v51 = vld [vmem:[#allocation3 + $0x4c0] sm:$0xff]  }
 0x7cf   : > { %9701 = vmatprep.mubr.msk.bf16.mxu1 %vm12033_vm10, %v12032_v47  ;;  %9686 = vmatpush3.bf16.msra.mxu1 %v11259_v62  ;;  %v11293_v62 = vld [vmem:[#allocation3 + $0x4e8] sm:$0xff]  }
 0x7d0   : > { %9687 = vmatprep.subr.bf16.mxu1 %v12032_v47 }
 0x7d1   : > { %9668 = vmatpush3.bf16.msra.mxu0 %v11252_v52  ;;  %v11284_v52 = vld [vmem:[#allocation3 + $0x480] sm:$0xff]  }
 0x7d2   : > { %9669 = vmatprep.subr.bf16.mxu0 %v12032_v47 }
 0x7d3   : > { %9688 = vmatpush3.bf16.msra.mxu1 %v11261_v0  ;;  %v11295_v0 = vld [vmem:[#allocation3 + $0x4f0] sm:$0xff]  }
 0x7d4   : > { %9689 = vmatprep.subr.bf16.mxu1 %v12032_v47 }
 0x7d5   : > { %9670 = vmatpush3.bf16.msra.mxu0 %v11253_v9  ;;  %v11285_v9 = vld [vmem:[#allocation3 + $0x4c8] sm:$0xff]  }
 0x7d6   : > { %9671 = vmatprep.subr.bf16.mxu0 %v12032_v47 }
 0x7d7   : > { %9690 = vmatpush3.bf16.msra.mxu1 %v11263_v2  ;;  %v11297_v2 = vld [vmem:[#allocation3 + $0x4f8] sm:$0xff]  }
 0x7d8   : > { %9691 = vmatprep.subr.bf16.mxu1 %v12032_v47 }
 0x7d9   : > { %9672 = vmatpush3.bf16.msra.mxu0 %v11254_v53  ;;  %v11286_v53 = vld [vmem:[#allocation3 + $0x488] sm:$0xff]  }
 0x7da   : > { %9673 = vmatprep.subr.bf16.mxu0 %v12032_v47 }
 0x7db   : > { %9692 = vmatpush3.bf16.msra.mxu1 %v11265_v4 }
 0x7dc   : > { %9693 = vmatprep.subr.bf16.mxu1 %v12032_v47 }
 0x7dd   : > { %9674 = vmatpush3.bf16.msra.mxu0 %v11255_v54  ;;  %v11287_v54 = vld [vmem:[#allocation3 + $0x4d0] sm:$0xff]  }
 0x7de   : > { %9675 = vmatprep.subr.bf16.mxu0 %v12032_v47 }
 0x7df   : > { %9694 = vmatpush3.bf16.msra.mxu1 %v11267_v6 }
 0x7e0   : > { %9695 = vmatprep.subr.bf16.mxu1 %v12032_v47 }
 0x7e1   : > { %9676 = vmatpush3.bf16.msra.mxu0 %v11256_v55  ;;  %v11288_v55 = vld [vmem:[#allocation3 + $0x490] sm:$0xff]  }
 0x7e2   : > { %9677 = vmatprep.subr.bf16.mxu0 %v12032_v47 }
 0x7e3   : > { %9696 = vmatpush3.bf16.msra.mxu1 %v11269_v8 }
 0x7e4   : > { %9697 = vmatprep.subr.bf16.mxu1 %v12032_v47 }
 0x7e5   : > { %9678 = vmatpush3.bf16.msra.mxu0 %v11257_v57  ;;  %v11289_v57 = vld [vmem:[#allocation3 + $0x4d8] sm:$0xff]  }
 0x7e6   : > { %9679 = vmatprep.subr.bf16.mxu0 %v12032_v47 }
 0x7e7   : > { %9698 = vmatpush3.bf16.msra.mxu1 %v11271_v11 }
 0x7e8   : > { %9699 = vmatprep.subr.bf16.mxu1 %v12032_v47 }
 0x7e9   : > { %9680 = vmatpush3.bf16.msra.mxu0 %v11258_v58  ;;  %v11290_v58 = vld [vmem:[#allocation3 + $0x498] sm:$0xff]  }
 0x7ea   : > { %9705 = vmatprep.subr.bf16.mxu0 %v12032_v47 }
 0x7eb   : > { %9700 = vmatpush3.bf16.msra.mxu1 %v11273_v13 }
 0x7ec   : > { %9682 = vmatmul.mubr.msk.bf16.vlgmr.msra.gmra.mrb[24].mxu0 %vm12563_vm13, %v8284_v61  ;;  %9725 = vmatprep.subr.bf16.mxu1 %v12032_v47  ;;  %v11292_v61 = vld [vmem:[#allocation3 + $0x4a0] sm:$0xff]  }
 0x7ed   : > { %9721 = vmatprep.mubr.msk.bf16.mxu0 %vm12033_vm10, %v12032_v47  ;;  %9706 = vmatpush3.bf16.msra.mxu0 %v11260_v63  ;;  %v11294_v63 = vld [vmem:[#allocation3 + $0x4a8] sm:$0xff]  }
 0x7ee   : > { %9707 = vmatprep.subr.bf16.mxu0 %v12032_v47 }
 0x7f1   : > { %9708 = vmatpush3.bf16.msra.mxu0 %v11262_v1  ;;  %v11296_v1 = vld [vmem:[#allocation3 + $0x4b0] sm:$0xff]  }
 0x7f2   : > { %9709 = vmatprep.subr.bf16.mxu0 %v12032_v47 }
 0x7f5   : > { %9710 = vmatpush3.bf16.msra.mxu0 %v11264_v3  ;;  %v11298_v3 = vld [vmem:[#allocation3 + $0x4b8] sm:$0xff]  }
 0x7f6   : > { %9711 = vmatprep.subr.bf16.mxu0 %v12032_v47 }
 0x7f9   : > { %9712 = vmatpush3.bf16.msra.mxu0 %v11266_v5 }
 0x7fa   : > { %9713 = vmatprep.subr.bf16.mxu0 %v12032_v47 }
 0x7fd   : > { %9714 = vmatpush3.bf16.msra.mxu0 %v11268_v7 }
 0x7fe   : > { %9715 = vmatprep.subr.bf16.mxu0 %v12032_v47 }
 0x801   : > { %9716 = vmatpush3.bf16.msra.mxu0 %v11270_v10 }
 0x802   : > { %9717 = vmatprep.subr.bf16.mxu0 %v12032_v47 }
 0x805   : > { %9718 = vmatpush3.bf16.msra.mxu0 %v11272_v12 }
 0x806   : > { %9719 = vmatprep.subr.bf16.mxu0 %v12032_v47 }
 0x809   : > { %9720 = vmatpush3.bf16.msra.mxu0 %v11274_v15 }
 0x80a   : > { %9745 = vmatprep.subr.bf16.mxu0 %v12032_v47 }
 0x89f   : > { %v2310_v16 = vpop.f32.mrb[20].mxu0 }
 0x8a0   : > { %v9643_v17 = vpop.f32.mrb[21].mxu0 }
 0x8a1   : > { %v2313_v18 = vpop.f32.mrb[22].mxu0  ;;  %v2398_v20 = vpop.f32.mrb[16].mxu1 }
 0x8a2   : > { %v2399_v21 = vadd.f32 %v2398_v20, %v2310_v16  ;;  %v9644_v22 = vpop.f32.mrb[23].mxu0  ;;  %v9663_v23 = vpop.f32.mrb[17].mxu1  ;;  %v8319_v16 = vld [vmem:[#allocation5 + $0x5] ss:$0 sm:$0xff] }
 0x8a3   : > { %v2401_v24 = vpop.f32.mrb[18].mxu1 }
 0x8a4   : > { %v9664_v25 = vpop.f32.mrb[19].mxu1  ;;  %v11299_v24 = vld [vmem:[#allocation3 + $0x500] sm:$0xff]  }
 0x8bf   : > { %v2504_v26 = vpop.f32.mrb[24].mxu0 }
 0x8c0   : > { %v2510_v28 = vadd.f32 %v2504_v26, %v2399_v21  ;;  %v9683_v29 = vpop.f32.mrb[25].mxu0 }
 0x8c1   : > { %v2507_v30 = vpop.f32.mrb[26].mxu0  ;;  %v11301_v29 = vld [vmem:[#allocation3 + $0x510] sm:$0xff]  }
 0x8c2   : > { %v2516_v31 = vadd.f32 %v8286_v27, %v2510_v28  ;;  %v9684_v32 = vpop.f32.mrb[27].mxu0  ;;  %v11300_v28 = vld [vmem:[#allocation3 + $0x508] sm:$0xff]   ;;  %v11302_v30 = vld [vmem:[#allocation3 + $0x518] sm:$0xff]  }
 0x8c3   : > { %v11304_v32 = vld [vmem:[#allocation3 + $0x528] sm:$0xff]  }
 0x8c4   : > { %v2517_v33 = vmax.f32 %v2516_v31, 0.0  ;;  %v11303_v31 = vld [vmem:[#allocation3 + $0x520] sm:$0xff]  }
 0x8c6   : > { %v2519_v35 = vrot.slane %v2517_v33, 7  ;;  %v2543_v36 = vpack.c.bf16 %v2517_v33, %v2517_v33  ;;  %v2522_v46 = vrot.slane %v2517_v33, 1  ;;  %v11305_v33 = vld [vmem:[#allocation3 + $0x530] sm:$0xff]  }
 0x8c8   : > { %v8306_v37 = vpack.c.bf16 %v2519_v35, %v2519_v35  ;;  %9702 = vmatmul.mubr.bf16.vlgmr.msra.gmra.mrb[20].mxu1 %v2543_v36  ;;  %v8317_v49 = vpack.c.bf16 %v2522_v46, %v2522_v46 }
 0x8c9   : > { %9726 = vmatpush3.bf16.msra.mxu1 %v11275_v34  ;;  %9741 = vmatprep.mubr.msk.bf16.mxu1 %vm12033_vm10, %v12032_v47  ;;  %v11306_v34 = vld [vmem:[#allocation3 + $0x538] sm:$0xff]  }
 0x8ca   : > { %9722 = vmatmul.mubr.msk.bf16.vlgmr.msra.gmra.mrb[28].mxu0 %vm12544_vm12, %v8306_v37  ;;  %9727 = vmatprep.subr.bf16.mxu1 %v12032_v47 }
 0x8cb   : > { %9761 = vmatprep.mubr.msk.bf16.mxu0 %vm12033_vm10, %v12032_v47  ;;  %9746 = vmatpush3.bf16.msra.mxu0 %v11283_v51  ;;  %v8352_v51 = vld [vmem:[#allocation5 + $0x6] ss:$0 sm:$0xff] }
 0x8cc   : > { %9747 = vmatprep.subr.bf16.mxu0 %v12032_v47 }
 0x8cd   : > { %9728 = vmatpush3.bf16.msra.mxu1 %v11276_v38 }
 0x8ce   : > { %9729 = vmatprep.subr.bf16.mxu1 %v12032_v47 }
 0x8cf   : > { %9748 = vmatpush3.bf16.msra.mxu0 %v11285_v9 }
 0x8d0   : > { %9749 = vmatprep.subr.bf16.mxu0 %v12032_v47 }
 0x8d1   : > { %9730 = vmatpush3.bf16.msra.mxu1 %v11277_v39 }
 0x8d2   : > { %9731 = vmatprep.subr.bf16.mxu1 %v12032_v47 }
 0x8d3   : > { %9750 = vmatpush3.bf16.msra.mxu0 %v11287_v54 }
 0x8d4   : > { %9751 = vmatprep.subr.bf16.mxu0 %v12032_v47 }
 0x8d5   : > { %9732 = vmatpush3.bf16.msra.mxu1 %v11278_v41 }
 0x8d6   : > { %9733 = vmatprep.subr.bf16.mxu1 %v12032_v47 }
 0x8d7   : > { %9752 = vmatpush3.bf16.msra.mxu0 %v11289_v57 }
 0x8d8   : > { %9753 = vmatprep.subr.bf16.mxu0 %v12032_v47 }
 0x8d9   : > { %9734 = vmatpush3.bf16.msra.mxu1 %v11279_v42 }
 0x8da   : > { %9735 = vmatprep.subr.bf16.mxu1 %v12032_v47 }
 0x8db   : > { %9754 = vmatpush3.bf16.msra.mxu0 %v11291_v59 }
 0x8dc   : > { %9755 = vmatprep.subr.bf16.mxu0 %v12032_v47 }
 0x8dd   : > { %9736 = vmatpush3.bf16.msra.mxu1 %v11280_v43 }
 0x8de   : > { %9737 = vmatprep.subr.bf16.mxu1 %v12032_v47 }
 0x8df   : > { %9756 = vmatpush3.bf16.msra.mxu0 %v11293_v62  ;;  %v11308_v62 = vld [vmem:[#allocation3 + $0x540] sm:$0xff]  }
 0x8e0   : > { %9757 = vmatprep.subr.bf16.mxu0 %v12032_v47 }
 0x8e1   : > { %9738 = vmatpush3.bf16.msra.mxu1 %v11281_v44 }
 0x8e2   : > { %9739 = vmatprep.subr.bf16.mxu1 %v12032_v47 }
 0x8e3   : > { %9758 = vmatpush3.bf16.msra.mxu0 %v11295_v0  ;;  %v11310_v0 = vld [vmem:[#allocation3 + $0x548] sm:$0xff]  }
 0x8e4   : > { %9759 = vmatprep.subr.bf16.mxu0 %v12032_v47 }
 0x8e5   : > { %9740 = vmatpush3.bf16.msra.mxu1 %v11282_v45 }
 0x8e6   : > { %9765 = vmatprep.subr.bf16.mxu1 %v12032_v47 }
 0x8e7   : > { %9760 = vmatpush3.bf16.msra.mxu0 %v11297_v2  ;;  %v11312_v2 = vld [vmem:[#allocation3 + $0x550] sm:$0xff]  }
 0x8e8   : > { %9742 = vmatmul.mubr.msk.bf16.vlgmr.msra.gmra.mrb[24].mxu1 %vm12563_vm13, %v8317_v49  ;;  %9785 = vmatprep.subr.bf16.mxu0 %v12032_v47 }
 0x8e9   : > { %9781 = vmatprep.mubr.msk.bf16.mxu1 %vm12033_vm10, %v12032_v47  ;;  %9766 = vmatpush3.bf16.msra.mxu1 %v11284_v52 }
 0x8ea   : > { %9767 = vmatprep.subr.bf16.mxu1 %v12032_v47 }
 0x8ed   : > { %9768 = vmatpush3.bf16.msra.mxu1 %v11286_v53 }
 0x8ee   : > { %9769 = vmatprep.subr.bf16.mxu1 %v12032_v47 }
 0x8f1   : > { %9770 = vmatpush3.bf16.msra.mxu1 %v11288_v55 }
 0x8f2   : > { %9771 = vmatprep.subr.bf16.mxu1 %v12032_v47 }
 0x8f5   : > { %9772 = vmatpush3.bf16.msra.mxu1 %v11290_v58 }
 0x8f6   : > { %9773 = vmatprep.subr.bf16.mxu1 %v12032_v47 }
 0x8f9   : > { %9774 = vmatpush3.bf16.msra.mxu1 %v11292_v61  ;;  %v11307_v61 = vld [vmem:[#allocation3 + $0x580] sm:$0xff]  }
 0x8fa   : > { %9775 = vmatprep.subr.bf16.mxu1 %v12032_v47 }
 0x8fd   : > { %9776 = vmatpush3.bf16.msra.mxu1 %v11294_v63  ;;  %v11309_v63 = vld [vmem:[#allocation3 + $0x588] sm:$0xff]  }
 0x8fe   : > { %9777 = vmatprep.subr.bf16.mxu1 %v12032_v47 }
 0x901   : > { %9778 = vmatpush3.bf16.msra.mxu1 %v11296_v1  ;;  %v11311_v1 = vld [vmem:[#allocation3 + $0x590] sm:$0xff]  }
 0x902   : > { %9779 = vmatprep.subr.bf16.mxu1 %v12032_v47 }
 0x905   : > { %9780 = vmatpush3.bf16.msra.mxu1 %v11298_v3  ;;  %v11313_v3 = vld [vmem:[#allocation3 + $0x598] sm:$0xff]  }
 0x906   : > { %9805 = vmatprep.subr.mxu1 %v12032_v47 }
 0x99b   : > { %v2643_v4 = vpop.f32.mrb[20].mxu1 }
 0x99c   : > { %v9703_v5 = vpop.f32.mrb[21].mxu1 }
 0x99d   : > { %v2646_v6 = vpop.f32.mrb[22].mxu1  ;;  %v2731_v7 = vpop.f32.mrb[28].mxu0  ;;  %v11315_v5 = vld [vmem:[#allocation3 + $0x5a0] sm:$0xff]  }
 0x99e   : > { %v2732_v8 = vadd.f32 %v2731_v7, %v2643_v4  ;;  %v9704_v10 = vpop.f32.mrb[23].mxu1  ;;  %v9723_v11 = vpop.f32.mrb[29].mxu0  ;;  %v11314_v4 = vld [vmem:[#allocation3 + $0x558] sm:$0xff]   ;;  %v11316_v6 = vld [vmem:[#allocation3 + $0x560] sm:$0xff]   ;;  %v11317_v7 = vld [vmem:[#allocation3 + $0x5a8] sm:$0xff]  }
 0x99f   : > { %v2734_v12 = vpop.f32.mrb[30].mxu0  ;;  %v11319_v10 = vld [vmem:[#allocation3 + $0x5b0] sm:$0xff]  }
 0x9a0   : > { %v9724_v13 = vpop.f32.mrb[31].mxu0  ;;  %v11320_v11 = vld [vmem:[#allocation3 + $0x570] sm:$0xff]   ;;  %v11321_v12 = vld [vmem:[#allocation3 + $0x5b8] sm:$0xff]  }
 0x9a1   : > { %v11322_v13 = vld [vmem:[#allocation3 + $0x578] sm:$0xff]  }
 0x9bb   : > { %v2837_v15 = vpop.f32.mrb[24].mxu1 }
 0x9bc   : > { %v2843_v17 = vadd.f32 %v2837_v15, %v2732_v8  ;;  %v9743_v18 = vpop.f32.mrb[25].mxu1  ;;  %v11318_v8 = vld [vmem:[#allocation3 + $0x568] sm:$0xff]  }
 0x9bd   : > { %v2840_v20 = vpop.f32.mrb[26].mxu1 }
 0x9be   : > { %v2849_v21 = vadd.f32 %v8319_v16, %v2843_v17  ;;  %v9744_v22 = vpop.f32.mrb[27].mxu1  ;;  %v11323_v20 = vld [vmem:[#allocation3 + $0x5c0] sm:$0xff]  }
 0x9c0   : > { %v2850_v23 = vmax.f32 %v2849_v21, 0.0 }
 0x9c2   : > { %v2852_v25 = vrot.slane %v2850_v23, 7  ;;  %v2876_v26 = vpack.c.bf16 %v2850_v23, %v2850_v23  ;;  %v2855_v35 = vrot.slane %v2850_v23, 1 }
 0x9c4   : > { %v8339_v27 = vpack.c.bf16 %v2852_v25, %v2852_v25  ;;  %9762 = vmatmul.mubr.bf16.vlgmr.msra.gmra.mrb[32].mxu0 %v2876_v26  ;;  %v8350_v36 = vpack.c.bf16 %v2855_v35, %v2855_v35  ;;  %v11325_v25 = vld [vmem:[#allocation3 + $0x5d0] sm:$0xff]   ;;  %v11326_v26 = vld [vmem:[#allocation3 + $0x5d8] sm:$0xff]   ;;  %v11332_v35 = vld [vmem:[#allocation3 + $0x600] sm:$0xff]  }
 0x9c5   : > { %9786 = vmatpush3.bf16.msra.mxu0 %v11299_v24  ;;  %9801 = vmatprep.mubr.msk.bf16.mxu0 %vm12033_vm10, %v12032_v47  ;;  %v11324_v24 = vld [vmem:[#allocation3 + $0x5c8] sm:$0xff]  }
 0x9c6   : > { %9782 = vmatmul.mubr.msk.bf16.vlgmr.msra.gmra.mrb[28].mxu1 %vm12544_vm12, %v8339_v27  ;;  %9787 = vmatprep.subr.bf16.mxu0 %v12032_v47  ;;  %v11327_v27 = vld [vmem:[#allocation3 + $0x5e0] sm:$0xff]  }
 0x9c7   : > { %9807 = vmatprep.mubr.msk.f32.mxu1 %vm12033_vm10, %v12032_v47 }
 0x9c9   : > { %9788 = vmatpush3.bf16.msra.mxu0 %v11300_v28  ;;  %v11328_v28 = vld [vmem:[#allocation3 + $0x5e8] sm:$0xff]  }
 0x9ca   : > { %9789 = vmatprep.subr.bf16.mxu0 %v12032_v47 }
 0x9cd   : > { %9790 = vmatpush3.bf16.msra.mxu0 %v11301_v29  ;;  %v11329_v29 = vld [vmem:[#allocation3 + $0x5f0] sm:$0xff]  }
 0x9ce   : > { %9791 = vmatprep.subr.bf16.mxu0 %v12032_v47 }
 0x9d1   : > { %9792 = vmatpush3.bf16.msra.mxu0 %v11302_v30  ;;  %v11330_v30 = vld [vmem:[#allocation3 + $0x5f8] sm:$0xff]  }
 0x9d2   : > { %9793 = vmatprep.subr.bf16.mxu0 %v12032_v47 }
 0x9d5   : > { %9794 = vmatpush3.bf16.msra.mxu0 %v11303_v31 }
 0x9d6   : > { %9795 = vmatprep.subr.bf16.mxu0 %v12032_v47 }
 0x9d9   : > { %9796 = vmatpush3.bf16.msra.mxu0 %v11304_v32  ;;  %v11706_v32 = vld [vmem:[#allocation3 + $0x7a0] sm:$0xff]  }
 0x9da   : > { %9797 = vmatprep.subr.bf16.mxu0 %v12032_v47 }
 0x9dd   : > { %9798 = vmatpush3.bf16.msra.mxu0 %v11305_v33 }
 0x9de   : > { %9799 = vmatprep.subr.bf16.mxu0 %v12032_v47 }
 0x9e1   : > { %9800 = vmatpush3.bf16.msra.mxu0 %v11306_v34  ;;  %v11331_v34 = vld [vmem:[#allocation3 + $0x640] sm:$0xff]  }
 0x9e2   : > { %9830 = vmatprep.subr.bf16.mxu0 %v12032_v47 }
 0x9e4   : > { %9802 = vmatmul.mubr.msk.bf16.vlgmr.msra.gmra.mrb[36].mxu0 %vm12563_vm13, %v8350_v36  ;;  %v11333_v36 = vld [vmem:[#allocation3 + $0x648] sm:$0xff]  }
 0x9e5   : > { %9846 = vmatprep.mubr.msk.bf16.mxu0 %vm12033_vm10, %v12032_v47  ;;  %9831 = vmatpush3.bf16.msra.mxu0 %v11308_v62 }
 0x9e6   : > { %9832 = vmatprep.subr.bf16.mxu0 %v12032_v47 }
 0x9e9   : > { %9833 = vmatpush3.bf16.msra.mxu0 %v11310_v0 }
 0x9ea   : > { %9834 = vmatprep.subr.bf16.mxu0 %v12032_v47 }
 0x9ed   : > { %9835 = vmatpush3.bf16.msra.mxu0 %v11312_v2 }
 0x9ee   : > { %9836 = vmatprep.subr.bf16.mxu0 %v12032_v47 }
 0x9f1   : > { %9837 = vmatpush3.bf16.msra.mxu0 %v11314_v4 }
 0x9f2   : > { %9838 = vmatprep.subr.bf16.mxu0 %v12032_v47 }
 0x9f5   : > { %9839 = vmatpush3.bf16.msra.mxu0 %v11316_v6 }
 0x9f6   : > { %9840 = vmatprep.subr.bf16.mxu0 %v12032_v47 }
 0x9f9   : > { %9841 = vmatpush3.bf16.msra.mxu0 %v11318_v8  ;;  %v11347_v8 = vld [vmem:[#allocation3 + $0x680] sm:$0xff]  }
 0x9fa   : > { %9842 = vmatprep.subr.bf16.mxu0 %v12032_v47 }
 0x9fd   : > { %9843 = vmatpush3.bf16.msra.mxu0 %v11320_v11 }
 0x9fe   : > { %9844 = vmatprep.subr.bf16.mxu0 %v12032_v47 }
 0xa01   : > { %9845 = vmatpush3.bf16.msra.mxu0 %v11322_v13  ;;  %v11348_v13 = vld [vmem:[#allocation3 + $0x688] sm:$0xff]  }
 0xa02   : > { %9870 = vmatprep.subr.bf16.mxu0 %v12032_v47 }
 0xa97   : > { %v2976_v37 = vpop.f32.mrb[32].mxu0 }
 0xa98   : > { %v9763_v38 = vpop.f32.mrb[33].mxu0 }
 0xa99   : > { %v2979_v39 = vpop.f32.mrb[34].mxu0  ;;  %v3064_v41 = vpop.f32.mrb[28].mxu1  ;;  %v11335_v38 = vld [vmem:[#allocation3 + $0x650] sm:$0xff]  }
 0xa9a   : > { %v3065_v42 = vadd.f32 %v3064_v41, %v2976_v37  ;;  %v9764_v43 = vpop.f32.mrb[35].mxu0  ;;  %v9783_v44 = vpop.f32.mrb[29].mxu1  ;;  %v11334_v37 = vld [vmem:[#allocation3 + $0x608] sm:$0xff]   ;;  %v11336_v39 = vld [vmem:[#allocation3 + $0x610] sm:$0xff]   ;;  %v11337_v41 = vld [vmem:[#allocation3 + $0x658] sm:$0xff]  }
 0xa9b   : > { %v3067_v45 = vpop.f32.mrb[30].mxu1  ;;  %v11339_v43 = vld [vmem:[#allocation3 + $0x660] sm:$0xff]  }
 0xa9c   : > { %v9784_v46 = vpop.f32.mrb[31].mxu1  ;;  %v11340_v44 = vld [vmem:[#allocation3 + $0x620] sm:$0xff]   ;;  %v11341_v45 = vld [vmem:[#allocation3 + $0x668] sm:$0xff]  }
 0xa9d   : > { %v11342_v46 = vld [vmem:[#allocation3 + $0x628] sm:$0xff]  }
 0xab7   : > { %v3170_v49 = vpop.f32.mrb[36].mxu0 }
 0xab8   : > { %v3176_v52 = vadd.f32 %v3170_v49, %v3065_v42  ;;  %v9803_v9 = vpop.f32.mrb[37].mxu0  ;;  %v11338_v42 = vld [vmem:[#allocation3 + $0x618] sm:$0xff]   ;;  %v11343_v49 = vld [vmem:[#allocation3 + $0x670] sm:$0xff]  }
 0xab9   : > { %v3173_v53 = vpop.f32.mrb[38].mxu0  ;;  %v11346_v9 = vld [vmem:[#allocation3 + $0x638] sm:$0xff]  }
 0xaba   : > { %v3182_v54 = vadd.f32 %v8352_v51, %v3176_v52  ;;  %v9804_v55 = vpop.f32.mrb[39].mxu0  ;;  %v11344_v51 = vld [vmem:[#allocation3 + $0x630] sm:$0xff]   ;;  %v11345_v52 = vld [vmem:[#allocation3 + $0x678] sm:$0xff]  }
 0xabc   : > { %v3183_v57 = vmax.f32 %v3182_v54, 0.0 }
 0xabe   : > { %v3185_v58 = vrot.slane %v3183_v57, 1 }
 0xac0   : > { %v3188_v59 = vmax.f32 %v3183_v57, %v3185_v58 }
 0xac2   : > { %9806 = vmatpush3.msra.mxu1 %v3188_v59 }
 0xac3   : > { %9808 = vmatmul.mubr.msk.f32.vlgmr.msra.gmra.mrb[32].mxu1 %vm3189_vm14, %v12419_v48  ;;  %9810 = vmatprep.subr.bf16.mxu1 %v12032_v47 }
 0xac4   : > { %9826 = vmatprep.mubr.msk.bf16.mxu1 %vm12033_vm10, %v12032_v47  ;;  %9811 = vmatpush3.bf16.msra.mxu1 %v11307_v61 }
 0xac5   : > { %9812 = vmatprep.subr.bf16.mxu1 %v12032_v47 }
 0xac8   : > { %9813 = vmatpush3.bf16.msra.mxu1 %v11309_v63 }
 0xac9   : > { %9814 = vmatprep.subr.bf16.mxu1 %v12032_v47 }
 0xacc   : > { %9815 = vmatpush3.bf16.msra.mxu1 %v11311_v1  ;;  %v8386_v1 = vld [vmem:[#allocation5 + $0x7] ss:$0 sm:$0xff] }
 0xacd   : > { %9816 = vmatprep.subr.bf16.mxu1 %v12032_v47 }
 0xad0   : > { %9817 = vmatpush3.bf16.msra.mxu1 %v11313_v3 }
 0xad1   : > { %9818 = vmatprep.subr.bf16.mxu1 %v12032_v47 }
 0xad4   : > { %9819 = vmatpush3.bf16.msra.mxu1 %v11315_v5 }
 0xad5   : > { %9820 = vmatprep.subr.bf16.mxu1 %v12032_v47 }
 0xad8   : > { %9821 = vmatpush3.bf16.msra.mxu1 %v11317_v7 }
 0xad9   : > { %9822 = vmatprep.subr.bf16.mxu1 %v12032_v47 }
 0xadc   : > { %9823 = vmatpush3.bf16.msra.mxu1 %v11319_v10 }
 0xadd   : > { %9824 = vmatprep.subr.bf16.mxu1 %v12032_v47 }
 0xae0   : > { %9825 = vmatpush3.bf16.msra.mxu1 %v11321_v12 }
 0xae1   : > { %9850 = vmatprep.subr.bf16.mxu1 %v12032_v47 }
 0xb96   : > { %v3258_v15 = vpop.f32.mrb[32].mxu1 }
 0xb97   : > { %3262 = vrot.lane.b32.xlu1 %v3258_v15, %s12037_s14  ;;  %v9809_v16 = vpop.f32.mrb[33].mxu1 }
 0xb98   : > { %v11350_v16 = vld [vmem:[#allocation3 + $0x698] sm:$0xff]  }
 0xc09   : > { %v3263_v17 = vpop.permute.xlu1 %3262 }
 0xc0a   : > { %v3264_v18 = vmax.f32 %v3258_v15, %v3263_v17  ;;  %v11349_v15 = vld [vmem:[#allocation3 + $0x690] sm:$0xff]   ;;  %v11351_v17 = vld [vmem:[#allocation3 + $0x6a0] sm:$0xff]  }
 0xc0c   : > { %v3266_v21 = vrot.slane %v3264_v18, 7  ;;  %v3291_v22 = vpack.c.bf16 %v3264_v18, %v3264_v18  ;;  %v3269_v31 = vrot.slane %v3264_v18, 1  ;;  %v11352_v18 = vld [vmem:[#allocation3 + $0x6a8] sm:$0xff]  }
 0xc0e   : > { %v8373_v23 = vpack.c.bf16 %v3266_v21, %v3266_v21  ;;  %9827 = vmatmul.mubr.bf16.vlgmr.msra.gmra.mrb[36].mxu1 %v3291_v22  ;;  %v8384_v33 = vpack.c.bf16 %v3269_v31, %v3269_v31  ;;  %v11354_v21 = vld [vmem:[#allocation3 + $0x6b8] sm:$0xff]  }
 0xc0f   : > { %9851 = vmatpush3.bf16.msra.mxu1 %v11323_v20  ;;  %9866 = vmatprep.mubr.msk.bf16.mxu1 %vm12033_vm10, %v12032_v47  ;;  %v11353_v20 = vld [vmem:[#allocation3 + $0x6b0] sm:$0xff]   ;;  %v11362_v31 = vld [vmem:[#allocation3 + $0x6d8] sm:$0xff]  }
 0xc10   : > { %9847 = vmatmul.mubr.msk.bf16.vlgmr.msra.gmra.mrb[40].mxu0 %vm12544_vm12, %v8373_v23  ;;  %9852 = vmatprep.subr.bf16.mxu1 %v12032_v47 }
 0xc11   : > { %9886 = vmatprep.mubr.msk.bf16.mxu0 %vm12033_vm10, %v12032_v47  ;;  %9871 = vmatpush3.bf16.msra.mxu0 %v11331_v34  ;;  %v11364_v34 = vld [vmem:[#allocation3 + $0x6e0] sm:$0xff]  }
 0xc12   : > { %9872 = vmatprep.subr.bf16.mxu0 %v12032_v47 }
 0xc13   : > { %9853 = vmatpush3.bf16.msra.mxu1 %v11324_v24  ;;  %v11355_v24 = vld [vmem:[#allocation3 + $0x700] sm:$0xff]  }
 0xc14   : > { %9854 = vmatprep.subr.bf16.mxu1 %v12032_v47 }
 0xc15   : > { %9873 = vmatpush3.bf16.msra.mxu0 %v11333_v36  ;;  %v11366_v36 = vld [vmem:[#allocation3 + $0x6e8] sm:$0xff]  }
 0xc16   : > { %9874 = vmatprep.subr.bf16.mxu0 %v12032_v47 }
 0xc17   : > { %9855 = vmatpush3.bf16.msra.mxu1 %v11325_v25  ;;  %v11356_v25 = vld [vmem:[#allocation3 + $0x6c0] sm:$0xff]  }
 0xc18   : > { %9856 = vmatprep.subr.bf16.mxu1 %v12032_v47 }
 0xc19   : > { %9875 = vmatpush3.bf16.msra.mxu0 %v11335_v38  ;;  %v11368_v38 = vld [vmem:[#allocation3 + $0x6f0] sm:$0xff]  }
 0xc1a   : > { %9876 = vmatprep.subr.bf16.mxu0 %v12032_v47 }
 0xc1b   : > { %9857 = vmatpush3.bf16.msra.mxu1 %v11326_v26  ;;  %v11357_v26 = vld [vmem:[#allocation3 + $0x708] sm:$0xff]  }
 0xc1c   : > { %9858 = vmatprep.subr.bf16.mxu1 %v12032_v47 }
 0xc1d   : > { %9877 = vmatpush3.bf16.msra.mxu0 %v11337_v41  ;;  %v11370_v41 = vld [vmem:[#allocation3 + $0x6f8] sm:$0xff]  }
 0xc1e   : > { %9878 = vmatprep.subr.bf16.mxu0 %v12032_v47 }
 0xc1f   : > { %9859 = vmatpush3.bf16.msra.mxu1 %v11327_v27  ;;  %v11358_v27 = vld [vmem:[#allocation3 + $0x6c8] sm:$0xff]  }
 0xc20   : > { %9860 = vmatprep.subr.bf16.mxu1 %v12032_v47 }
 0xc21   : > { %9879 = vmatpush3.bf16.msra.mxu0 %v11339_v43 }
 0xc22   : > { %9880 = vmatprep.subr.bf16.mxu0 %v12032_v47 }
 0xc23   : > { %9861 = vmatpush3.bf16.msra.mxu1 %v11328_v28  ;;  %v11359_v28 = vld [vmem:[#allocation3 + $0x710] sm:$0xff]  }
 0xc24   : > { %9862 = vmatprep.subr.bf16.mxu1 %v12032_v47 }
 0xc25   : > { %9881 = vmatpush3.bf16.msra.mxu0 %v11341_v45 }
 0xc26   : > { %9882 = vmatprep.subr.bf16.mxu0 %v12032_v47 }
 0xc27   : > { %9863 = vmatpush3.bf16.msra.mxu1 %v11329_v29  ;;  %v11360_v29 = vld [vmem:[#allocation3 + $0x6d0] sm:$0xff]  }
 0xc28   : > { %9864 = vmatprep.subr.bf16.mxu1 %v12032_v47 }
 0xc29   : > { %9883 = vmatpush3.bf16.msra.mxu0 %v11343_v49 }
 0xc2a   : > { %9884 = vmatprep.subr.bf16.mxu0 %v12032_v47 }
 0xc2b   : > { %9865 = vmatpush3.bf16.msra.mxu1 %v11330_v30  ;;  %v11361_v30 = vld [vmem:[#allocation3 + $0x718] sm:$0xff]  }
 0xc2c   : > { %9890 = vmatprep.subr.bf16.mxu1 %v12032_v47 }
 0xc2d   : > { %9885 = vmatpush3.bf16.msra.mxu0 %v11345_v52 }
 0xc2e   : > { %9867 = vmatmul.mubr.msk.bf16.vlgmr.msra.gmra.mrb[40].mxu1 %vm12677_vm3, %v8384_v33  ;;  %9910 = vmatprep.subr.bf16.mxu0 %v12032_v47  ;;  %v11363_v33 = vld [vmem:[#allocation3 + $0x720] sm:$0xff]  }
 0xc2f   : > { %9906 = vmatprep.mubr.msk.bf16.mxu1 %vm12033_vm10, %v12032_v47  ;;  %9891 = vmatpush3.bf16.msra.mxu1 %v11332_v35  ;;  %v11365_v35 = vld [vmem:[#allocation3 + $0x728] sm:$0xff]  }
 0xc30   : > { %9892 = vmatprep.subr.bf16.mxu1 %v12032_v47 }
 0xc33   : > { %9893 = vmatpush3.bf16.msra.mxu1 %v11334_v37  ;;  %v11367_v37 = vld [vmem:[#allocation3 + $0x730] sm:$0xff]  }
 0xc34   : > { %9894 = vmatprep.subr.bf16.mxu1 %v12032_v47 }
 0xc37   : > { %9895 = vmatpush3.bf16.msra.mxu1 %v11336_v39  ;;  %v11369_v39 = vld [vmem:[#allocation3 + $0x738] sm:$0xff]  }
 0xc38   : > { %9896 = vmatprep.subr.bf16.mxu1 %v12032_v47 }
 0xc3b   : > { %9897 = vmatpush3.bf16.msra.mxu1 %v11338_v42 }
 0xc3c   : > { %9898 = vmatprep.subr.bf16.mxu1 %v12032_v47 }
 0xc3f   : > { %9899 = vmatpush3.bf16.msra.mxu1 %v11340_v44 }
 0xc40   : > { %9900 = vmatprep.subr.bf16.mxu1 %v12032_v47 }
 0xc43   : > { %9901 = vmatpush3.bf16.msra.mxu1 %v11342_v46 }
 0xc44   : > { %9902 = vmatprep.subr.bf16.mxu1 %v12032_v47 }
 0xc47   : > { %9903 = vmatpush3.bf16.msra.mxu1 %v11344_v51 }
 0xc48   : > { %9904 = vmatprep.subr.bf16.mxu1 %v12032_v47 }
 0xc4b   : > { %9905 = vmatpush3.bf16.msra.mxu1 %v11346_v9 }
 0xc4c   : > { %9930 = vmatprep.subr.bf16.mxu1 %v12032_v47 }
 0xce1   : > { %v3391_v53 = vpop.f32.mrb[36].mxu1 }
 0xce2   : > { %v9828_v54 = vpop.f32.mrb[37].mxu1 }
 0xce3   : > { %v3394_v55 = vpop.f32.mrb[38].mxu1  ;;  %v3479_v57 = vpop.f32.mrb[40].mxu0  ;;  %v8419_v54 = vld [vmem:[#allocation5 + $0x8] ss:$0 sm:$0xff] }
 0xce4   : > { %v3480_v58 = vadd.f32 %v3479_v57, %v3391_v53  ;;  %v9829_v59 = vpop.f32.mrb[39].mxu1  ;;  %v9848_v61 = vpop.f32.mrb[41].mxu0 }
 0xce5   : > { %v3482_v62 = vpop.f32.mrb[42].mxu0 }
 0xce6   : > { %v9849_v63 = vpop.f32.mrb[43].mxu0 }
 0xce7   : > { %v11371_v63 = vld [vmem:[#allocation3 + $0x740] sm:$0xff]  }
 0xd01   : > { %v3585_v0 = vpop.f32.mrb[40].mxu1 }
 0xd02   : > { %v3591_v2 = vadd.f32 %v3585_v0, %v3480_v58  ;;  %v9868_v3 = vpop.f32.mrb[41].mxu1 }
 0xd03   : > { %v3588_v4 = vpop.f32.mrb[42].mxu1  ;;  %v11372_v3 = vld [vmem:[#allocation3 + $0x748] sm:$0xff]  }
 0xd04   : > { %v3597_v5 = vadd.f32 %v8386_v1, %v3591_v2  ;;  %v9869_v6 = vpop.f32.mrb[43].mxu1  ;;  %v11373_v4 = vld [vmem:[#allocation3 + $0x750] sm:$0xff]  }
 0xd05   : > { %v11375_v6 = vld [vmem:[#allocation3 + $0x760] sm:$0xff]  }
 0xd06   : > { %v3598_v7 = vmax.f32 %v3597_v5, 0.0  ;;  %v11374_v5 = vld [vmem:[#allocation3 + $0x758] sm:$0xff]  }
 0xd08   : > { %v3600_v10 = vrot.slane %v3598_v7, 7  ;;  %v3624_v11 = vpack.c.bf16 %v3598_v7, %v3598_v7  ;;  %v3603_v22 = vrot.slane %v3598_v7, 1  ;;  %v11376_v7 = vld [vmem:[#allocation3 + $0x768] sm:$0xff]  }
 0xd0a   : > { %v8406_v12 = vpack.c.bf16 %v3600_v10, %v3600_v10  ;;  %9887 = vmatmul.mubr.bf16.vlgmr.msra.gmra.mrb[44].mxu0 %v3624_v11  ;;  %v8417_v23 = vpack.c.bf16 %v3603_v22, %v3603_v22  ;;  %v11378_v10 = vld [vmem:[#allocation3 + $0x778] sm:$0xff]  }
 0xd0b   : > { %9911 = vmatpush3.bf16.msra.mxu0 %v11347_v8  ;;  %9926 = vmatprep.mubr.msk.bf16.mxu0 %vm12033_vm10, %v12032_v47  ;;  %v11377_v8 = vld [vmem:[#allocation3 + $0x770] sm:$0xff]  }
 0xd0c   : > { %9907 = vmatmul.mubr.msk.bf16.vlgmr.msra.gmra.mrb[44].mxu1 %vm12544_vm12, %v8406_v12  ;;  %9912 = vmatprep.subr.bf16.mxu0 %v12032_v47 }
 0xd0d   : > { %9946 = vmatprep.mubr.msk.bf16.mxu1 %vm12033_vm10, %v12032_v47  ;;  %9931 = vmatpush3.bf16.msra.mxu1 %v11355_v24 }
 0xd0e   : > { %9932 = vmatprep.subr.bf16.mxu1 %v12032_v47 }
 0xd0f   : > { %9913 = vmatpush3.bf16.msra.mxu0 %v11348_v13 }
 0xd10   : > { %9914 = vmatprep.subr.bf16.mxu0 %v12032_v47 }
 0xd11   : > { %9933 = vmatpush3.bf16.msra.mxu1 %v11357_v26 }
 0xd12   : > { %9934 = vmatprep.subr.bf16.mxu1 %v12032_v47 }
 0xd13   : > { %9915 = vmatpush3.bf16.msra.mxu0 %v11349_v15 }
 0xd14   : > { %9916 = vmatprep.subr.bf16.mxu0 %v12032_v47 }
 0xd15   : > { %9935 = vmatpush3.bf16.msra.mxu1 %v11359_v28 }
 0xd16   : > { %9936 = vmatprep.subr.bf16.mxu1 %v12032_v47 }
 0xd17   : > { %9917 = vmatpush3.bf16.msra.mxu0 %v11350_v16 }
 0xd18   : > { %9918 = vmatprep.subr.bf16.mxu0 %v12032_v47 }
 0xd19   : > { %9937 = vmatpush3.bf16.msra.mxu1 %v11361_v30 }
 0xd1a   : > { %9938 = vmatprep.subr.bf16.mxu1 %v12032_v47 }
 0xd1b   : > { %9919 = vmatpush3.bf16.msra.mxu0 %v11351_v17 }
 0xd1c   : > { %9920 = vmatprep.subr.bf16.mxu0 %v12032_v47 }
 0xd1d   : > { %9939 = vmatpush3.bf16.msra.mxu1 %v11363_v33 }
 0xd1e   : > { %9940 = vmatprep.subr.bf16.mxu1 %v12032_v47 }
 0xd1f   : > { %9921 = vmatpush3.bf16.msra.mxu0 %v11352_v18 }
 0xd20   : > { %9922 = vmatprep.subr.bf16.mxu0 %v12032_v47 }
 0xd21   : > { %9941 = vmatpush3.bf16.msra.mxu1 %v11365_v35 }
 0xd22   : > { %9942 = vmatprep.subr.bf16.mxu1 %v12032_v47 }
 0xd23   : > { %9923 = vmatpush3.bf16.msra.mxu0 %v11353_v20 }
 0xd24   : > { %9924 = vmatprep.subr.bf16.mxu0 %v12032_v47 }
 0xd25   : > { %9943 = vmatpush3.bf16.msra.mxu1 %v11367_v37  ;;  %v11379_v37 = vld [vmem:[#allocation3 + $0x7c0] sm:$0xff]  }
 0xd26   : > { %9944 = vmatprep.subr.bf16.mxu1 %v12032_v47 }
 0xd27   : > { %9925 = vmatpush3.bf16.msra.mxu0 %v11354_v21 }
 0xd28   : > { %9950 = vmatprep.subr.bf16.mxu0 %v12032_v47 }
 0xd29   : > { %9945 = vmatpush3.bf16.msra.mxu1 %v11369_v39  ;;  %v11381_v39 = vld [vmem:[#allocation3 + $0x7c8] sm:$0xff]  }
 0xd2a   : > { %9927 = vmatmul.mubr.msk.bf16.vlgmr.msra.gmra.mrb[48].mxu0 %vm12677_vm3, %v8417_v23  ;;  %9970 = vmatprep.subr.bf16.mxu1 %v12032_v47 }
 0xd2b   : > { %9966 = vmatprep.mubr.msk.bf16.mxu0 %vm12033_vm10, %v12032_v47  ;;  %9951 = vmatpush3.bf16.msra.mxu0 %v11356_v25  ;;  %v8452_v25 = vld [vmem:[#allocation5 + $0x9] ss:$0 sm:$0xff] }
 0xd2c   : > { %9952 = vmatprep.subr.bf16.mxu0 %v12032_v47 }
 0xd2f   : > { %9953 = vmatpush3.bf16.msra.mxu0 %v11358_v27 }
 0xd30   : > { %9954 = vmatprep.subr.bf16.mxu0 %v12032_v47 }
 0xd33   : > { %9955 = vmatpush3.bf16.msra.mxu0 %v11360_v29 }
 0xd34   : > { %9956 = vmatprep.subr.bf16.mxu0 %v12032_v47 }
 0xd37   : > { %9957 = vmatpush3.bf16.msra.mxu0 %v11362_v31 }
 0xd38   : > { %9958 = vmatprep.subr.bf16.mxu0 %v12032_v47 }
 0xd3b   : > { %9959 = vmatpush3.bf16.msra.mxu0 %v11364_v34 }
 0xd3c   : > { %9960 = vmatprep.subr.bf16.mxu0 %v12032_v47 }
 0xd3f   : > { %9961 = vmatpush3.bf16.msra.mxu0 %v11366_v36 }
 0xd40   : > { %9962 = vmatprep.subr.bf16.mxu0 %v12032_v47 }
 0xd43   : > { %9963 = vmatpush3.bf16.msra.mxu0 %v11368_v38  ;;  %v11380_v38 = vld [vmem:[#allocation3 + $0x780] sm:$0xff]  }
 0xd44   : > { %9964 = vmatprep.subr.bf16.mxu0 %v12032_v47 }
 0xd47   : > { %9965 = vmatpush3.bf16.msra.mxu0 %v11370_v41  ;;  %v11382_v41 = vld [vmem:[#allocation3 + $0x788] sm:$0xff]  }
 0xd48   : > { %9990 = vmatprep.subr.mxu0 %v12032_v47 }
 0xddd   : > { %v3724_v42 = vpop.f32.mrb[44].mxu0 }
 0xdde   : > { %v9888_v43 = vpop.f32.mrb[45].mxu0 }
 0xddf   : > { %v3727_v44 = vpop.f32.mrb[46].mxu0  ;;  %v3812_v45 = vpop.f32.mrb[44].mxu1  ;;  %v11384_v43 = vld [vmem:[#allocation3 + $0x790] sm:$0xff]  }
 0xde0   : > { %v3813_v46 = vadd.f32 %v3812_v45, %v3724_v42  ;;  %v9889_v49 = vpop.f32.mrb[47].mxu0  ;;  %v9908_v51 = vpop.f32.mrb[45].mxu1  ;;  %v11383_v42 = vld [vmem:[#allocation3 + $0x7d0] sm:$0xff]   ;;  %v11385_v44 = vld [vmem:[#allocation3 + $0x7d8] sm:$0xff]  }
 0xde1   : > { %v3815_v52 = vpop.f32.mrb[46].mxu1  ;;  %v11386_v45 = vld [vmem:[#allocation3 + $0x798] sm:$0xff]   ;;  %v11388_v49 = vld [vmem:[#allocation3 + $0x7a0] sm:$0xff]   ;;  %v11389_v51 = vld [vmem:[#allocation3 + $0x7e8] sm:$0xff]  }
 0xde2   : > { %v9909_v9 = vpop.f32.mrb[47].mxu1  ;;  %v11390_v52 = vld [vmem:[#allocation3 + $0x7a8] sm:$0xff]  }
 0xde3   : > { %v11391_v9 = vld [vmem:[#allocation3 + $0x7f0] sm:$0xff]  }
 0xdfd   : > { %v3918_v53 = vpop.f32.mrb[48].mxu0 }
 0xdfe   : > { %v3924_v55 = vadd.f32 %v3918_v53, %v3813_v46  ;;  %v9928_v57 = vpop.f32.mrb[49].mxu0  ;;  %v11387_v46 = vld [vmem:[#allocation3 + $0x7e0] sm:$0xff]   ;;  %v11392_v53 = vld [vmem:[#allocation3 + $0x7b0] sm:$0xff]  }
 0xdff   : > { %v3921_v58 = vpop.f32.mrb[50].mxu0 }
 0xe00   : > { %v3930_v59 = vadd.f32 %v8419_v54, %v3924_v55  ;;  %v9929_v61 = vpop.f32.mrb[51].mxu0  ;;  %v11393_v54 = vld [vmem:[#allocation3 + $0x7f8] sm:$0xff]  }
 0xe01   : > { %v11394_v55 = vld [vmem:[#allocation3 + $0x7b8] sm:$0xff]  }
 0xe02   : > { %v3931_v62 = vmax.f32 %v3930_v59, 0.0 }
 0xe04   : > { %v3933_v0 = vrot.slane %v3931_v62, 7  ;;  %v3957_v1 = vpack.c.bf16 %v3931_v62, %v3931_v62  ;;  %v3936_v11 = vrot.slane %v3931_v62, 1  ;;  %v11395_v62 = vld [vmem:[#allocation3 + $0x800] sm:$0xff]  }
 0xe06   : > { %v8439_v2 = vpack.c.bf16 %v3933_v0, %v3933_v0  ;;  %9947 = vmatmul.mubr.bf16.vlgmr.msra.gmra.mrb[48].mxu1 %v3957_v1  ;;  %v8450_v12 = vpack.c.bf16 %v3936_v11, %v3936_v11 }
 0xe07   : > { %9971 = vmatpush3.bf16.msra.mxu1 %v11371_v63  ;;  %9986 = vmatprep.mubr.msk.bf16.mxu1 %vm12033_vm10, %v12032_v47 }
 0xe08   : > { %9967 = vmatmul.mubr.msk.bf16.vlgmr.msra.gmra.mrb[52].mxu0 %vm12544_vm12, %v8439_v2  ;;  %9972 = vmatprep.subr.bf16.mxu1 %v12032_v47  ;;  %v11396_v2 = vld [vmem:[#allocation3 + $0x808] sm:$0xff]  }
 0xe09   : > { %9992 = vmatprep.mubr.msk.f32.mxu0 %vm12033_vm10, %v12032_v47 }
 0xe0b   : > { %9973 = vmatpush3.bf16.msra.mxu1 %v11372_v3  ;;  %v11397_v3 = vld [vmem:[#allocation3 + $0x810] sm:$0xff]  }
 0xe0c   : > { %9974 = vmatprep.subr.bf16.mxu1 %v12032_v47 }
 0xe0f   : > { %9975 = vmatpush3.bf16.msra.mxu1 %v11373_v4  ;;  %v11398_v4 = vld [vmem:[#allocation3 + $0x818] sm:$0xff]  }
 0xe10   : > { %9976 = vmatprep.subr.bf16.mxu1 %v12032_v47 }
 0xe13   : > { %9977 = vmatpush3.bf16.msra.mxu1 %v11374_v5  ;;  %v11399_v5 = vld [vmem:[#allocation3 + $0x820] sm:$0xff]  }
 0xe14   : > { %9978 = vmatprep.subr.bf16.mxu1 %v12032_v47 }
 0xe17   : > { %9979 = vmatpush3.bf16.msra.mxu1 %v11375_v6  ;;  %v11400_v6 = vld [vmem:[#allocation3 + $0x828] sm:$0xff]  }
 0xe18   : > { %9980 = vmatprep.subr.bf16.mxu1 %v12032_v47 }
 0xe1b   : > { %9981 = vmatpush3.bf16.msra.mxu1 %v11376_v7  ;;  %v11401_v7 = vld [vmem:[#allocation3 + $0x830] sm:$0xff]  }
 0xe1c   : > { %9982 = vmatprep.subr.bf16.mxu1 %v12032_v47 }
 0xe1f   : > { %9983 = vmatpush3.bf16.msra.mxu1 %v11377_v8  ;;  %v11402_v8 = vld [vmem:[#allocation3 + $0x838] sm:$0xff]  }
 0xe20   : > { %9984 = vmatprep.subr.bf16.mxu1 %v12032_v47 }
 0xe23   : > { %9985 = vmatpush3.bf16.msra.mxu1 %v11378_v10 }
 0xe24   : > { %10015 = vmatprep.subr.bf16.mxu1 %v12032_v47 }
 0xe26   : > { %9987 = vmatmul.mubr.msk.bf16.vlgmr.msra.gmra.mrb[52].mxu1 %vm12677_vm3, %v8450_v12 }
 0xe27   : > { %10031 = vmatprep.mubr.msk.bf16.mxu1 %vm12033_vm10, %v12032_v47  ;;  %10016 = vmatpush3.bf16.msra.mxu1 %v11380_v38 }
 0xe28   : > { %10017 = vmatprep.subr.bf16.mxu1 %v12032_v47 }
 0xe2b   : > { %10018 = vmatpush3.bf16.msra.mxu1 %v11382_v41  ;;  %v11409_v41 = vld [vmem:[#allocation3 + $0x850] sm:$0xff]  }
 0xe2c   : > { %10019 = vmatprep.subr.bf16.mxu1 %v12032_v47 }
 0xe2f   : > { %10020 = vmatpush3.bf16.msra.mxu1 %v11384_v43  ;;  %v11410_v43 = vld [vmem:[#allocation3 + $0x858] sm:$0xff]  }
 0xe30   : > { %10021 = vmatprep.subr.bf16.mxu1 %v12032_v47 }
 0xe33   : > { %10022 = vmatpush3.bf16.msra.mxu1 %v11386_v45  ;;  %v11411_v45 = vld [vmem:[#allocation3 + $0x8c0] sm:$0xff]  }
 0xe34   : > { %10023 = vmatprep.subr.bf16.mxu1 %v12032_v47 }
 0xe37   : > { %10024 = vmatpush3.bf16.msra.mxu1 %v11388_v49  ;;  %v11412_v49 = vld [vmem:[#allocation3 + $0x8c8] sm:$0xff]  }
 0xe38   : > { %10025 = vmatprep.subr.bf16.mxu1 %v12032_v47 }
 0xe3b   : > { %10026 = vmatpush3.bf16.msra.mxu1 %v11390_v52 }
 0xe3c   : > { %10027 = vmatprep.subr.bf16.mxu1 %v12032_v47 }
 0xe3f   : > { %10028 = vmatpush3.bf16.msra.mxu1 %v11392_v53 }
 0xe40   : > { %10029 = vmatprep.subr.bf16.mxu1 %v12032_v47 }
 0xe43   : > { %10030 = vmatpush3.bf16.msra.mxu1 %v11394_v55  ;;  %v11415_v55 = vld [vmem:[#allocation3 + $0x940] sm:$0xff]  }
 0xe44   : > { %10055 = vmatprep.subr.bf16.mxu1 %v12032_v47 }
 0xed9   : > { %v4057_v13 = vpop.f32.mrb[48].mxu1 }
 0xeda   : > { %v9948_v15 = vpop.f32.mrb[49].mxu1 }
 0xedb   : > { %v4060_v16 = vpop.f32.mrb[50].mxu1  ;;  %v4145_v17 = vpop.f32.mrb[52].mxu0  ;;  %v11404_v15 = vld [vmem:[#allocation3 + $0x888] sm:$0xff]  }
 0xedc   : > { %v4146_v18 = vadd.f32 %v4145_v17, %v4057_v13  ;;  %v9949_v20 = vpop.f32.mrb[51].mxu1  ;;  %v9968_v21 = vpop.f32.mrb[53].mxu0  ;;  %v11403_v13 = vld [vmem:[#allocation3 + $0x880] sm:$0xff]   ;;  %v11405_v16 = vld [vmem:[#allocation3 + $0x890] sm:$0xff]   ;;  %v11406_v17 = vld [vmem:[#allocation3 + $0x898] sm:$0xff]  }
 0xedd   : > { %v4148_v22 = vpop.f32.mrb[54].mxu0 }
 0xede   : > { %v9969_v23 = vpop.f32.mrb[55].mxu0 }
 0xef9   : > { %v4251_v24 = vpop.f32.mrb[52].mxu1 }
 0xefa   : > { %v4257_v26 = vadd.f32 %v4251_v24, %v4146_v18  ;;  %v9988_v27 = vpop.f32.mrb[53].mxu1 }
 0xefb   : > { %v4254_v28 = vpop.f32.mrb[54].mxu1 }
 0xefc   : > { %v4263_v29 = vadd.f32 %v8452_v25, %v4257_v26  ;;  %v9989_v30 = vpop.f32.mrb[55].mxu1 }
 0xefe   : > { %v4264_v31 = vmax.f32 %v4263_v29, 0.0  ;;  %v8487_v29 = vld [vmem:[#allocation5 + $0xa] ss:$0 sm:$0xff] }
 0xf00   : > { %v4266_v33 = vrot.slane %v4264_v31, 1  ;;  %v4268_v34 = vrot.slane %v4264_v31, 5 }
 0xf02   : > { %v4270_v35 = vsel %vm3271_vm15, %v4266_v33, %v4268_v34 }
 0xf03   : > { %v4271_v36 = vmax.f32 %v4264_v31, %v4270_v35 }
 0xf05   : > { %9991 = vmatpush3.msk.msra.mxu0 %vm13398_vm4, %v4271_v36  ;;  %vm5185_vm4 = vcmask 1048064  }
 0xf06   : > { %9993 = vmatmul.mubr.msk.f32.vlgmr.msra.gmra.mrb[56].mxu0 %vm13397_vm7, %v12419_v48  ;;  %9995 = vmatprep.subr.bf16.mxu0 %v12032_v47  ;;  %vm4736_vm7 = vcmask 523264  }
 0xf07   : > { %10011 = vmatprep.mubr.msk.bf16.mxu0 %vm12033_vm10, %v12032_v47  ;;  %9996 = vmatpush3.bf16.msra.mxu0 %v11379_v37  ;;  %v11407_v37 = vld [vmem:[#allocation3 + $0x840] sm:$0xff]  }
 0xf08   : > { %9997 = vmatprep.subr.bf16.mxu0 %v12032_v47 }
 0xf0b   : > { %9998 = vmatpush3.bf16.msra.mxu0 %v11381_v39  ;;  %v11408_v39 = vld [vmem:[#allocation3 + $0x848] sm:$0xff]  }
 0xf0c   : > { %9999 = vmatprep.subr.bf16.mxu0 %v12032_v47 }
 0xf0f   : > { %10000 = vmatpush3.bf16.msra.mxu0 %v11383_v42 }
 0xf10   : > { %10001 = vmatprep.subr.bf16.mxu0 %v12032_v47 }
 0xf13   : > { %10002 = vmatpush3.bf16.msra.mxu0 %v11385_v44 }
 0xf14   : > { %10003 = vmatprep.subr.bf16.mxu0 %v12032_v47 }
 0xf17   : > { %10004 = vmatpush3.bf16.msra.mxu0 %v11387_v46 }
 0xf18   : > { %10005 = vmatprep.subr.bf16.mxu0 %v12032_v47 }
 0xf1b   : > { %10006 = vmatpush3.bf16.msra.mxu0 %v11389_v51  ;;  %v11413_v51 = vld [vmem:[#allocation3 + $0x8d0] sm:$0xff]  }
 0xf1c   : > { %10007 = vmatprep.subr.bf16.mxu0 %v12032_v47 }
 0xf1f   : > { %10008 = vmatpush3.bf16.msra.mxu0 %v11391_v9  ;;  %v11414_v9 = vld [vmem:[#allocation3 + $0x8d8] sm:$0xff]  }
 0xf20   : > { %10009 = vmatprep.subr.bf16.mxu0 %v12032_v47 }
 0xf23   : > { %10010 = vmatpush3.bf16.msra.mxu0 %v11393_v54 }
 0xf24   : > { %10035 = vmatprep.subr.bf16.mxu0 %v12032_v47 }
 0xfd9   : > { %v4345_v57 = vpop.f32.mrb[56].mxu0 }
 0xfda   : > { %4349 = vrot.lane.b32.xlu1 %v4345_v57, %s12038_s30  ;;  %v9994_v58 = vpop.f32.mrb[57].mxu0 }
 0xfdb   : > { %v11416_v58 = vld [vmem:[#allocation3 + $0x948] sm:$0xff]  }
0x104c   : > { %v4350_v59 = vpop.permute.xlu1 %4349 }
0x104d   : > { %v4351_v61 = vmax.f32 %v4345_v57, %v4350_v59  ;;  %v11417_v57 = vld [vmem:[#allocation3 + $0x900] sm:$0xff]   ;;  %v11418_v59 = vld [vmem:[#allocation3 + $0x950] sm:$0xff]  }
0x104f   : > { %v4353_v63 = vrot.slane %v4351_v61, 7  ;;  %v4377_v0 = vpack.c.bf16 %v4351_v61, %v4351_v61  ;;  %v4356_v10 = vrot.slane %v4351_v61, 1  ;;  %v11419_v61 = vld [vmem:[#allocation3 + $0x908] sm:$0xff]  }
0x1051   : > { %v8474_v1 = vpack.c.bf16 %v4353_v63, %v4353_v63  ;;  %10012 = vmatmul.mubr.bf16.vlgmr.msra.gmra.mrb[60].mxu0 %v4377_v0  ;;  %v8485_v12 = vpack.c.bf16 %v4356_v10, %v4356_v10  ;;  %v11421_v63 = vld [vmem:[#allocation3 + $0x910] sm:$0xff]   ;;  %v11422_v0 = vld [vmem:[#allocation3 + $0x918] sm:$0xff]  }
0x1052   : > { %10036 = vmatpush3.bf16.msra.mxu0 %v11395_v62  ;;  %10051 = vmatprep.mubr.msk.bf16.mxu0 %vm12033_vm10, %v12032_v47  ;;  %v11420_v62 = vld [vmem:[#allocation3 + $0x958] sm:$0xff]  }
0x1053   : > { %10032 = vmatmul.mubr.msk.bf16.vlgmr.msra.gmra.mrb[56].mxu1 %vm12544_vm12, %v8474_v1  ;;  %10037 = vmatprep.subr.bf16.mxu0 %v12032_v47 }
0x1054   : > { %10063 = vmatprep.mubr.msk.bf16.mxu1 %vm12033_vm10, %v12032_v47  ;;  %10056 = vmatpush3.bf16.msra.mxu1 %v11403_v13  ;;  %v8503_v13 = vld [vmem:[#allocation5 + $0xb] ss:$0 sm:$0xff] }
0x1055   : > { %10057 = vmatprep.subr.bf16.mxu1 %v12032_v47 }
0x1056   : > { %10038 = vmatpush3.bf16.msra.mxu0 %v11396_v2 }
0x1057   : > { %10039 = vmatprep.subr.bf16.mxu0 %v12032_v47 }
0x1058   : > { %10058 = vmatpush3.bf16.msra.mxu1 %v11404_v15 }
0x1059   : > { %10059 = vmatprep.subr.bf16.mxu1 %v12032_v47 }
0x105a   : > { %10040 = vmatpush3.bf16.msra.mxu0 %v11397_v3 }
0x105b   : > { %10041 = vmatprep.subr.bf16.mxu0 %v12032_v47 }
0x105c   : > { %10060 = vmatpush3.bf16.msra.mxu1 %v11405_v16 }
0x105d   : > { %10061 = vmatprep.subr.bf16.mxu1 %v12032_v47 }
0x105e   : > { %10042 = vmatpush3.bf16.msra.mxu0 %v11398_v4 }
0x105f   : > { %10043 = vmatprep.subr.bf16.mxu0 %v12032_v47 }
0x1060   : > { %10062 = vmatpush3.bf16.msra.mxu1 %v11406_v17 }
0x1061   : > { %10067 = vmatprep.subr.bf16.mxu1 %v12032_v47 }
0x1062   : > { %10044 = vmatpush3.bf16.msra.mxu0 %v11399_v5 }
0x1063   : > { %10045 = vmatprep.subr.bf16.mxu0 %v12032_v47 }
0x1066   : > { %10046 = vmatpush3.bf16.msra.mxu0 %v11400_v6 }
0x1067   : > { %10047 = vmatprep.subr.bf16.mxu0 %v12032_v47 }
0x106a   : > { %10048 = vmatpush3.bf16.msra.mxu0 %v11401_v7 }
0x106b   : > { %10049 = vmatprep.subr.bf16.mxu0 %v12032_v47 }
0x106e   : > { %10050 = vmatpush3.bf16.msra.mxu0 %v11402_v8 }
0x106f   : > { %10103 = vmatprep.subr.bf16.mxu0 %v12032_v47 }
0x1071   : > { %10052 = vmatmul.mubr.msk.bf16.vlgmr.msra.gmra.mrb[64].mxu0 %vm12793_vm9, %v8485_v12 }
0x1072   : > { %10111 = vmatprep.mubr.msk.bf16.mxu0 %vm12033_vm10, %v12032_v47  ;;  %10104 = vmatpush3.bf16.msra.mxu0 %v11417_v57 }
0x1073   : > { %10105 = vmatprep.subr.bf16.mxu0 %v12032_v47 }
0x1076   : > { %10106 = vmatpush3.bf16.msra.mxu0 %v11419_v61  ;;  %v11428_v61 = vld [vmem:[#allocation7 + $0x8] sm:$0xff]  }
0x1077   : > { %10107 = vmatprep.subr.bf16.mxu0 %v12032_v47 }
0x107a   : > { %10108 = vmatpush3.bf16.msra.mxu0 %v11421_v63 }
0x107b   : > { %10109 = vmatprep.subr.bf16.mxu0 %v12032_v47 }
0x107e   : > { %10110 = vmatpush3.bf16.msra.mxu0 %v11422_v0 }
0x107f   : > { %10127 = vmatprep.subr.bf16.mxu0 %v12032_v47 }
0x1124   : > { %v4477_v18 = vpop.f32.mrb[60].mxu0 }
0x1125   : > { %v10013_v20 = vpop.f32.mrb[61].mxu0 }
0x1126   : > { %v4480_v21 = vpop.f32.mrb[62].mxu0  ;;  %v4565_v22 = vpop.f32.mrb[56].mxu1 }
0x1127   : > { %v4566_v23 = vadd.f32 %v4565_v22, %v4477_v18  ;;  %v10014_v24 = vpop.f32.mrb[63].mxu0  ;;  %v10033_v25 = vpop.f32.mrb[57].mxu1  ;;  %v11423_v22 = vld [vmem:[#allocation3 + $0x980] sm:$0xff]  }
0x1128   : > { %v4568_v26 = vpop.f32.mrb[58].mxu1 }
0x1129   : > { %v10034_v27 = vpop.f32.mrb[59].mxu1 }
0x112a   : > { %v11424_v27 = vld [vmem:[#allocation3 + $0x988] sm:$0xff]  }
0x1144   : > { %v4671_v28 = vpop.f32.mrb[64].mxu0 }
0x1145   : > { %v4677_v30 = vadd.f32 %v4671_v28, %v4566_v23  ;;  %v10053_v31 = vpop.f32.mrb[65].mxu0  ;;  %v11425_v28 = vld [vmem:[#allocation3 + $0x990] sm:$0xff]  }
0x1146   : > { %v4674_v33 = vpop.f32.mrb[66].mxu0 }
0x1147   : > { %v4683_v34 = vadd.f32 %v8487_v29, %v4677_v30  ;;  %v10054_v35 = vpop.f32.mrb[67].mxu0  ;;  %v11426_v30 = vld [vmem:[#allocation3 + $0x998] sm:$0xff]  }
0x1149   : > { %v4684_v36 = vmax.f32 %v4683_v34, 0.0 }
0x114b   : > { %v4702_v38 = vpack.c.bf16 %v4684_v36, %v4684_v36  ;;  %v4686_v42 = vrot.slane %v4684_v36, 7  ;;  %v4689_v52 = vrot.slane %v4684_v36, 1 }
0x114d   : > { %10064 = vmatmul.mubr.msk.bf16.vlgmr.msra.gmra.mrb[60].mxu1 %vm4736_vm7, %v4702_v38  ;;  %v4688_v44 = vsel %vm530_vm1, 0.0, %v4686_v42  ;;  %v4691_v53 = vsel %vm530_vm1, %v4689_v52, 0.0 }
0x114e   : > { %10068 = vmatpush3.bf16.msra.mxu1 %v11407_v37  ;;  %10075 = vmatprep.mubr.msk.bf16.mxu1 %vm12033_vm10, %v12032_v47  ;;  %v4692_v46 = vpack.c.bf16 %v4688_v44, %v4688_v44  ;;  %v4847_v54 = vpack.c.bf16 %v4691_v53, %v4691_v53 }
0x114f   : > { %10069 = vmatprep.subr.bf16.mxu1 %v12032_v47 }
0x1152   : > { %10070 = vmatpush3.bf16.msra.mxu1 %v11408_v39 }
0x1153   : > { %10071 = vmatprep.subr.bf16.mxu1 %v12032_v47 }
0x1156   : > { %10072 = vmatpush3.bf16.msra.mxu1 %v11409_v41 }
0x1157   : > { %10073 = vmatprep.subr.bf16.mxu1 %v12032_v47 }
0x115a   : > { %10074 = vmatpush3.bf16.msra.mxu1 %v11410_v43 }
0x115b   : > { %10079 = vmatprep.subr.bf16.mxu1 %v12032_v47 }
0x115d   : > { %10076 = vmatmul.mubr.msk.bf16.vlgmr.msra.gmra.mrb[64].mxu1 %vm4736_vm7, %v4692_v46 }
0x115e   : > { %10080 = vmatpush3.bf16.msra.mxu1 %v11411_v45  ;;  %10087 = vmatprep.mubr.msk.bf16.mxu1 %vm12033_vm10, %v12032_v47  ;;  %v8519_v45 = vld [vmem:[#allocation5 + $0xc] ss:$0 sm:$0xff] }
0x115f   : > { %10081 = vmatprep.subr.bf16.mxu1 %v12032_v47 }
0x1162   : > { %10082 = vmatpush3.bf16.msra.mxu1 %v11412_v49 }
0x1163   : > { %10083 = vmatprep.subr.bf16.mxu1 %v12032_v47 }
0x1166   : > { %10084 = vmatpush3.bf16.msra.mxu1 %v11413_v51 }
0x1167   : > { %10085 = vmatprep.subr.bf16.mxu1 %v12032_v47 }
0x116a   : > { %10086 = vmatpush3.bf16.msra.mxu1 %v11414_v9 }
0x116b   : > { %10091 = vmatprep.subr.bf16.mxu1 %v12032_v47 }
0x116d   : > { %10088 = vmatmul.mubr.msk.bf16.vlgmr.msra.gmra.mrb[68].mxu1 %vm4736_vm7, %v4847_v54 }
0x116e   : > { %10099 = vmatprep.mubr.msk.bf16.mxu1 %vm12033_vm10, %v12032_v47  ;;  %10092 = vmatpush3.bf16.msra.mxu1 %v11415_v55 }
0x116f   : > { %10093 = vmatprep.subr.bf16.mxu1 %v12032_v47 }
0x1172   : > { %10094 = vmatpush3.bf16.msra.mxu1 %v11416_v58 }
0x1173   : > { %10095 = vmatprep.subr.bf16.mxu1 %v12032_v47 }
0x1176   : > { %10096 = vmatpush3.bf16.msra.mxu1 %v11418_v59  ;;  %v11427_v59 = vld [vmem:[#allocation7] sm:$0xff]  }
0x1177   : > { %10097 = vmatprep.subr.bf16.mxu1 %v12032_v47 }
0x117a   : > { %10098 = vmatpush3.bf16.msra.mxu1 %v11420_v62  ;;  %v11429_v62 = vld [vmem:[#allocation7 + $0x10] sm:$0xff]  }
0x117b   : > { %10115 = vmatprep.subr.bf16.mxu1 %v12032_v47 }
0x1220   : > { %v4774_v1 = vpop.f32.mrb[60].mxu1 }
0x1221   : > { %v10065_v2 = vpop.f32.mrb[61].mxu1 }
0x1222   : > { %v4777_v3 = vpop.f32.mrb[62].mxu1  ;;  %v11459_v2 = vld [vmem:[#allocation3 + $0x40] sm:$0xff]  }
0x1223   : > { %v10066_v4 = vpop.f32.mrb[63].mxu1 }
0x1230   : > { %v4841_v5 = vpop.f32.mrb[64].mxu1 }
0x1231   : > { %v4842_v6 = vadd.f32 %v4841_v5, %v4774_v1  ;;  %v10077_v7 = vpop.f32.mrb[65].mxu1  ;;  %v11430_v1 = vld [vmem:[#allocation7 + $0x18] sm:$0xff]   ;;  %v11431_v5 = vld [vmem:[#allocation10] sm:$0xff]  }
0x1232   : > { %v4844_v8 = vpop.f32.mrb[66].mxu1  ;;  %v11433_v7 = vld [vmem:[#allocation10 + $0x10] sm:$0xff]  }
0x1233   : > { %v10078_v10 = vpop.f32.mrb[67].mxu1  ;;  %v11434_v8 = vld [vmem:[#allocation10 + $0x18] sm:$0xff]  }
0x1234   : > { %v11435_v10 = vld [vmem:[#allocation10 + $0x20] sm:$0xff]  }
0x1240   : > { %v4918_v12 = vpop.f32.mrb[68].mxu1 }
0x1241   : > { %v4924_v15 = vadd.f32 %v4918_v12, %v4842_v6  ;;  %v10089_v16 = vpop.f32.mrb[69].mxu1  ;;  %v11432_v6 = vld [vmem:[#allocation10 + $0x8] sm:$0xff]  }
0x1242   : > { %v4921_v17 = vpop.f32.mrb[70].mxu1  ;;  %v11436_v12 = vld [vmem:[#allocation10 + $0x28] sm:$0xff]  }
0x1243   : > { %v4930_v18 = vadd.f32 %v8503_v13, %v4924_v15  ;;  %v10090_v20 = vpop.f32.mrb[71].mxu1  ;;  %v8533_v13 = vld [vmem:[%s12346_s27 + $0x20] sm:$0xff]  ;;  %v8534_v15 = vld [vmem:[%s12346_s27 + $0x28] sm:$0xff] }
0x1245   : > { %v4931_v21 = vmax.f32 %v4930_v18, 0.0  ;;  %v5417_v18 = vpack.c.bf16 %v8534_v15, %v8533_v13 }
0x1247   : > { %v4933_v23 = vrot.slane %v4931_v21, 7  ;;  %v4949_v24 = vpack.c.bf16 %v4931_v21, %v4931_v21  ;;  %v4936_v29 = vrot.slane %v4931_v21, 1  ;;  %v11460_v21 = vld [vmem:[#allocation3 + $0x48] sm:$0xff]  }
0x1249   : > { %v4935_v25 = vsel %vm530_vm1, 0.0, %v4933_v23  ;;  %10100 = vmatmul.mubr.msk.bf16.vlgmr.msra.gmra.mrb[72].mxu1 %vm4736_vm7, %v4949_v24  ;;  %v4938_v31 = vsel %vm530_vm1, %v4936_v29, 0.0  ;;  %v11462_v23 = vld [vmem:[#allocation3 + $0x58] sm:$0xff]   ;;  %v11463_v24 = vld [vmem:[#allocation3 + $0x60] sm:$0xff]   ;;  %v11464_v29 = vld [vmem:[#allocation3 + $0x68] sm:$0xff]  }
0x124a   : > { %v4939_v26 = vpack.c.bf16 %v4935_v25, %v4935_v25  ;;  %10116 = vmatpush3.bf16.msra.mxu1 %v11423_v22  ;;  %10123 = vmatprep.mubr.msk.bf16.mxu1 %vm12033_vm10, %v12032_v47  ;;  %v5093_v33 = vpack.c.bf16 %v4938_v31, %v4938_v31  ;;  %v11461_v22 = vld [vmem:[#allocation3 + $0x50] sm:$0xff]   ;;  %v5392_v25 = vrot.slane %v8534_v15, 7 }
0x124b   : > { %10117 = vmatprep.subr.bf16.mxu1 %v12032_v47 }
0x124c   : > { %10112 = vmatmul.mubr.msk.bf16.vlgmr.msra.gmra.mrb[68].mxu0 %vm4736_vm7, %v4939_v26  ;;  %v5391_v26 = vrot.slane %v8533_v13, 7 }
0x124d   : > { %10135 = vmatprep.mubr.msk.bf16.mxu0 %vm12033_vm10, %v12032_v47  ;;  %10128 = vmatpush3.bf16.msra.mxu0 %v11427_v59  ;;  %v11474_v59 = vld [vmem:[#allocation3 + $0x98] sm:$0xff]  }
0x124e   : > { %10118 = vmatpush3.bf16.msra.mxu1 %v11424_v27  ;;  %10129 = vmatprep.subr.bf16.mxu0 %v12032_v47  ;;  %v8535_v27 = vld [vmem:[%s12346_s27 + $0x30] sm:$0xff]  ;;  %v5402_v31 = vsel %vm530_vm1, 0.0, %v5391_v26 }
0x124f   : > { %10119 = vmatprep.subr.bf16.mxu1 %v12032_v47 }
0x1251   : > { %10130 = vmatpush3.bf16.msra.mxu0 %v11428_v61 }
0x1252   : > { %10120 = vmatpush3.bf16.msra.mxu1 %v11425_v28  ;;  %10131 = vmatprep.subr.bf16.mxu0 %v12032_v47  ;;  %v8536_v28 = vld [vmem:[%s12346_s27 + $0x38] sm:$0xff] }
0x1253   : > { %10121 = vmatprep.subr.bf16.mxu1 %v12032_v47  ;;  %v5408_v61 = vrot.slane %v8536_v28, 1 }
0x1255   : > { %10132 = vmatpush3.bf16.msra.mxu0 %v11429_v62  ;;  %v11475_v62 = vld [vmem:[#allocation3 + $0xa0] sm:$0xff]  }
0x1256   : > { %10122 = vmatpush3.bf16.msra.mxu1 %v11426_v30  ;;  %10133 = vmatprep.subr.bf16.mxu0 %v12032_v47  ;;  %v5393_v30 = vsel %vm530_vm1, %v5391_v26, %v5392_v25 }
0x1257   : > { %10139 = vmatprep.subr.bf16.mxu1 %v12032_v47 }
0x1259   : > { %10124 = vmatmul.mubr.msk.bf16.vlgmr.msra.gmra.mrb[76].mxu1 %vm4736_vm7, %v5093_v33  ;;  %10134 = vmatpush3.bf16.msra.mxu0 %v11430_v1  ;;  %v5418_v33 = vpack.c.bf16 %v8536_v28, %v8535_v27  ;;  %v11476_v1 = vld [vmem:[#allocation3 + $0xa8] sm:$0xff]  }
0x125a   : > { %10155 = vmatprep.mubr.msk.bf16.mxu1 %vm12033_vm10, %v12032_v47  ;;  %10159 = vmatprep.subr.bf16.mxu0 %v11459_v2 }
0x125b   : > { %10140 = vmatpush3.bf16.msra.mxu1 %v11431_v5  ;;  %v11477_v5 = vld [vmem:[#allocation3 + $0x100] sm:$0xff]  }
0x125c   : > { %10141 = vmatprep.subr.bf16.mxu1 %v12032_v47 }
0x125f   : > { %10142 = vmatpush3.bf16.msra.mxu1 %v11432_v6  ;;  %v5206_v6 = vld [vmem:[#allocation8] sm:$0x1] }
0x1260   : > { %10143 = vmatprep.subr.bf16.mxu1 %v12032_v47 }
0x1263   : > { %10144 = vmatpush3.bf16.msra.mxu1 %v11433_v7 }
0x1264   : > { %10145 = vmatprep.subr.bf16.mxu1 %v12032_v47 }
0x1267   : > { %10146 = vmatpush3.bf16.msra.mxu1 %v11434_v8 }
0x1268   : > { %10147 = vmatprep.subr.bf16.mxu1 %v12032_v47 }
0x126b   : > { %10148 = vmatpush3.bf16.msra.mxu1 %v11435_v10 }
0x126c   : > { %10149 = vmatprep.subr.bf16.mxu1 %v12032_v47 }
0x126f   : > { %10150 = vmatpush3.bf16.msra.mxu1 %v11436_v12 }
0x1270   : > { %10151 = vmatprep.subr.bf16.mxu1 %v12032_v47 }
0x131c   : > { %v5020_v34 = vpop.f32.mrb[72].mxu1 }
0x131d   : > { %v10101_v35 = vpop.f32.mrb[73].mxu1 }
0x131e   : > { %v5023_v36 = vpop.f32.mrb[74].mxu1  ;;  %v11465_v35 = vld [vmem:[#allocation3] sm:$0xff]  }
0x131f   : > { %v10102_v37 = vpop.f32.mrb[75].mxu1  ;;  %v5087_v38 = vpop.f32.mrb[68].mxu0  ;;  %v11466_v36 = vld [vmem:[#allocation3 + $0x8] sm:$0xff]  }
0x1320   : > { %v5088_v39 = vadd.f32 %v5087_v38, %v5020_v34  ;;  %v10113_v41 = vpop.f32.mrb[69].mxu0  ;;  %v5415_v34 = vpack.c.bf16 %v5393_v30, %v5402_v31  ;;  %v11467_v37 = vld [vmem:[#allocation3 + $0x10] sm:$0xff]   ;;  %v11468_v38 = vld [vmem:[#allocation3 + $0x18] sm:$0xff]  }
0x1321   : > { %v5090_v42 = vpop.f32.mrb[70].mxu0  ;;  %v5396_v41 = vrot.slane %v8536_v28, 7 }
0x1322   : > { %v10114_v43 = vpop.f32.mrb[71].mxu0  ;;  %v5403_v42 = vrot.slane %v8533_v13, 1 }
0x1323   : > { %v5404_v43 = vrot.slane %v8534_v15, 1 }
0x132c   : > { %v5164_v44 = vpop.f32.mrb[76].mxu1 }
0x132d   : > { %v5170_v46 = vadd.f32 %v5164_v44, %v5088_v39  ;;  %v10125_v49 = vpop.f32.mrb[77].mxu1  ;;  %v5394_v39 = vrot.slane %v8535_v27, 7  ;;  %v11469_v44 = vld [vmem:[#allocation3 + $0x20] sm:$0xff]  }
0x132e   : > { %v5167_v51 = vpop.f32.mrb[78].mxu1 }
0x132f   : > { %v5176_v52 = vadd.f32 %v8519_v45, %v5170_v46  ;;  %v10126_v9 = vpop.f32.mrb[79].mxu1  ;;  %v5406_v45 = vrot.slane %v8535_v27, 1  ;;  %v5395_v46 = vsel %vm530_vm1, %v5392_v25, %v5394_v39  ;;  %v5397_v49 = vsel %vm530_vm1, %v5394_v39, %v5396_v41  ;;  %v11470_v51 = vld [vmem:[#allocation3 + $0x28] sm:$0xff]   ;;  %v11485_v25 = vld [vmem:[#allocation3 + $0xc0] sm:$0xff]  }
0x1330   : > { %v11486_v27 = vld [vmem:[#allocation5] ss:$0 sm:$0xff] }
0x1331   : > { %v5177_v53 = vmax.f32 %v5176_v52, 0.0  ;;  %v5405_v52 = vsel %vm543_vm2, %v5403_v42, %v5404_v43  ;;  %v5407_v9 = vsel %vm543_vm2, %v5404_v43, %v5406_v45 }
0x1333   : > { %v5179_v54 = vrot.slane %v5177_v53, 1  ;;  %v5181_v55 = vrot.slane %v5177_v53, 7 }
0x1335   : > { %v5183_v57 = vsel %vm530_vm1, %v5179_v54, %v5181_v55  ;;  %v5529_v54 = vpack.c.bf16 %v5407_v9, %v5405_v52  ;;  %v11471_v55 = vld [vmem:[#allocation3 + $0x80] sm:$0xff]  }
0x1336   : > { %v5184_v58 = vmax.f32 %v5177_v53, %v5183_v57  ;;  %v5416_v53 = vpack.c.bf16 %v5397_v49, %v5395_v46  ;;  %v11472_v57 = vld [vmem:[#allocation3 + $0x88] sm:$0xff]  }
0x1338   : > { %5186 = vrot.lane.b32.xlu0 %v5184_v58, %s12039_s22 }
0x13aa   : > { %v5187_v63 = vpop.permute.xlu0 %5186 }
0x13ab   : > { %v5188_v0 = vsel %vm5185_vm4, %v5187_v63, %v5184_v58  ;;  %v5409_v63 = vsel %vm543_vm2, %v5406_v45, %v5408_v61 }
0x13ac   : > { %5189 = vrot.lane.b32.xlu1 %v5188_v0, %s12039_s22  ;;  %v5414_v0 = vsel %vm543_vm2, %v5408_v61, 0.0 }
0x141e   : > { %v5190_v3 = vpop.permute.xlu1 %5189 }
0x141f   : > { %v5191_v4 = vsel %vm5185_vm4, %v5190_v3, %v5184_v58  ;;  %v11437_v3 = vld [vmem:[#allocation10 + $0x30] sm:$0xff]  }
0x1420   : > { %5193 = vrot.lane.b32.xlu0 %v5191_v4, %s12038_s30  ;;  %10152 = vmatpush3.bf16.msra.mxu1 %v11437_v3  ;;  %v11438_v4 = vld [vmem:[#allocation10 + $0x38] sm:$0xff]   ;;  %v11489_v3 = vld [vmem:[#allocation3 + $0xd8] sm:$0xff]  }
0x1421   : > { %10153 = vmatprep.subr.bf16.mxu1 %v12032_v47 }
0x1424   : > { %10154 = vmatpush3.bf16.msra.mxu1 %v11438_v4  ;;  %v11490_v4 = vld [vmem:[#allocation3 + $0xe0] sm:$0xff]  }
0x1425   : > { %10207 = vmatprep.subr.bf16.mxu1 %v11477_v5 }
0x1492   : > { %v5194_v16 = vpop.permute.xlu0 %5193 }
0x1493   : > { %v5196_v17 = vmax.f32 %v5184_v58, %v5194_v16  ;;  %v11473_v58 = vld [vmem:[#allocation3 + $0x90] sm:$0xff]  }
0x1495   : > { %v5197_v20 = vpack.c.bf16 %v5196_v17, %v5196_v17  ;;  %v11478_v17 = vld [vmem:[#allocation3 + $0x108] sm:$0xff]  }
0x1497   : > { %10136 = vmatmul.mubr.msk.bf16.vlgmr.msra.gmra.mrb[72].mxu0 %vm4736_vm7, %v5197_v20  ;;  %v11480_v20 = vld [vmem:[#allocation3 + $0x118] sm:$0xff]  }
0x1498   : > { %10160 = vmatpush3.bf16.msra.mxu0 %v11459_v2  ;;  %10171 = vmatprep.mubr.msk.bf16.mxu0 %vm621_vm0, %v5417_v18  ;;  %v5530_v2 = vpack.c.bf16 %v5414_v0, %v5409_v63  ;;  %v11479_v18 = vld [vmem:[#allocation3 + $0x110] sm:$0xff]  }
0x1499   : > { %10161 = vmatprep.subr.bf16.mxu0 %v11460_v21 }
0x149c   : > { %10162 = vmatpush3.bf16.msra.mxu0 %v11460_v21  ;;  %v11481_v21 = vld [vmem:[#allocation3 + $0x120] sm:$0xff]  }
0x149d   : > { %10163 = vmatprep.subr.bf16.mxu0 %v11461_v22 }
0x14a0   : > { %10164 = vmatpush3.bf16.msra.mxu0 %v11461_v22  ;;  %v11482_v22 = vld [vmem:[#allocation3 + $0x128] sm:$0xff]  }
0x14a1   : > { %10165 = vmatprep.subr.bf16.mxu0 %v11462_v23 }
0x14a4   : > { %10166 = vmatpush3.bf16.msra.mxu0 %v11462_v23  ;;  %v11483_v23 = vld [vmem:[#allocation3 + $0x130] sm:$0xff]  }
0x14a5   : > { %10167 = vmatprep.subr.bf16.mxu0 %v11463_v24 }
0x14a8   : > { %10168 = vmatpush3.bf16.msra.mxu0 %v11463_v24  ;;  %v11484_v24 = vld [vmem:[#allocation3 + $0x138] sm:$0xff]  }
0x14a9   : > { %10169 = vmatprep.subr.bf16.mxu0 %v11464_v29 }
0x14ac   : > { %10170 = vmatpush3.bf16.msra.mxu0 %v11464_v29 }
0x14ad   : > { %10175 = vmatprep.subr.bf16.mxu0 %v11465_v35 }
0x14af   : > { %10172 = vmatmul.mubr.msk.bf16.vlgmr.msra.gmra.mrb[76].mxu0 %vm621_vm0, %v5418_v33 }
0x14b0   : > { %10176 = vmatpush3.bf16.msra.mxu0 %v11465_v35  ;;  %10187 = vmatprep.mubr.msk.bf16.mxu0 %vm621_vm0, %v5415_v34 }
0x14b1   : > { %10177 = vmatprep.subr.bf16.mxu0 %v11466_v36 }
0x14b4   : > { %10178 = vmatpush3.bf16.msra.mxu0 %v11466_v36 }
0x14b5   : > { %10179 = vmatprep.subr.bf16.mxu0 %v11467_v37 }
0x14b8   : > { %10180 = vmatpush3.bf16.msra.mxu0 %v11467_v37 }
0x14b9   : > { %10181 = vmatprep.subr.bf16.mxu0 %v11468_v38 }
0x14bc   : > { %10182 = vmatpush3.bf16.msra.mxu0 %v11468_v38 }
0x14bd   : > { %10183 = vmatprep.subr.bf16.mxu0 %v11469_v44 }
0x14c0   : > { %10184 = vmatpush3.bf16.msra.mxu0 %v11469_v44 }
0x14c1   : > { %10185 = vmatprep.subr.bf16.mxu0 %v11470_v51 }
0x14c4   : > { %10186 = vmatpush3.bf16.msra.mxu0 %v11470_v51 }
0x14c5   : > { %10191 = vmatprep.subr.bf16.mxu0 %v11471_v55 }
0x14c7   : > { %10188 = vmatmul.mubr.msk.bf16.vlgmr.msra.gmra.mrb[76].mxu0 %vm621_vm0, %v5416_v53 }
0x14c8   : > { %10192 = vmatpush3.bf16.msra.mxu0 %v11471_v55  ;;  %10203 = vmatprep.mubr.msk.bf16.mxu0 %vm621_vm0, %v5529_v54 }
0x14c9   : > { %10193 = vmatprep.subr.bf16.mxu0 %v11472_v57 }
0x14cc   : > { %10194 = vmatpush3.bf16.msra.mxu0 %v11472_v57 }
0x14cd   : > { %10195 = vmatprep.subr.bf16.mxu0 %v11473_v58 }
0x14d0   : > { %10196 = vmatpush3.bf16.msra.mxu0 %v11473_v58 }
0x14d1   : > { %10197 = vmatprep.subr.bf16.mxu0 %v11474_v59 }
0x14d4   : > { %10198 = vmatpush3.bf16.msra.mxu0 %v11474_v59 }
0x14d5   : > { %10199 = vmatprep.subr.bf16.mxu0 %v11475_v62 }
0x14d8   : > { %10200 = vmatpush3.bf16.msra.mxu0 %v11475_v62 }
0x14d9   : > { %10201 = vmatprep.subr.bf16.mxu0 %v11476_v1 }
0x14dc   : > { %10202 = vmatpush3.bf16.msra.mxu0 %v11476_v1  ;;  %v11487_v1 = vld [vmem:[#allocation3 + $0xc8] sm:$0xff]  }
0x14df   : > { %10204 = vmatmul.mubr.msk.bf16.vlgmr.msra.gmra.mrb[76].mxu0 %vm621_vm0, %v5530_v2  ;;  %v11488_v2 = vld [vmem:[#allocation3 + $0xd0] sm:$0xff]   ;;  %vm13432_vm0 = vcmask 1043456  }
0x14e0   : > { %10275 = vmatprep.mubr.msk.f32.mxu0 %vm1318_vm8, %v12419_v48 }
0x156a   : > { %v5268_v7 = vpop.f32.mrb[72].mxu0 }
0x156b   : > { %v5269_v8 = vadd.f32 %v5268_v7, %v5206_v6  ;;  %v10137_v10 = vpop.f32.mrb[73].mxu0  ;;  %v11492_v6 = vld [vmem:[#allocation3 + $0xf0] sm:$0xff]   ;;  %v11493_v7 = vld [vmem:[#allocation3 + $0xf8] sm:$0xff]  }
0x156c   : > { %v5271_v12 = vpop.f32.mrb[74].mxu0  ;;  %v11495_v10 = vld [vmem:[#allocation3 + $0x148] sm:$0xff]  }
0x156d   : > { %v5274_v13 = vmax.f32 %v5269_v8, 0.0  ;;  %v10138_v15 = vpop.f32.mrb[75].mxu0  ;;  %v11494_v8 = vld [vmem:[#allocation3 + $0x140] sm:$0xff]   ;;  %v11496_v12 = vld [vmem:[#allocation3 + $0x150] sm:$0xff]  }
0x156e   : > { %v11498_v15 = vld [vmem:[#allocation3 + $0x160] sm:$0xff]  }
0x156f   : > { %v5275_v16 = vpack.c.bf16 %v5274_v13, %v5274_v13  ;;  %v11497_v13 = vld [vmem:[#allocation3 + $0x158] sm:$0xff]  }
0x1571   : > { %10156 = vmatmul.mubr.bf16.vlgmr.msra.gmra.mrb[80].mxu1 %v5275_v16  ;;  %v11499_v16 = vld [vmem:[#allocation3 + $0x168] sm:$0xff]  }
0x1572   : > { %10208 = vmatpush3.bf16.msra.mxu1 %v11477_v5  ;;  %v11491_v5 = vld [vmem:[#allocation3 + $0xe8] sm:$0xff]  }
0x1573   : > { %10209 = vmatprep.subr.bf16.mxu1 %v11478_v17 }
0x1576   : > { %10210 = vmatpush3.bf16.msra.mxu1 %v11478_v17  ;;  %v11500_v17 = vld [vmem:[#allocation3 + $0x170] sm:$0xff]  }
0x1577   : > { %10211 = vmatprep.subr.bf16.mxu1 %v11479_v18 }
0x157a   : > { %10212 = vmatpush3.bf16.msra.mxu1 %v11479_v18  ;;  %v11501_v18 = vld [vmem:[#allocation3 + $0x178] sm:$0xff]  }
0x157b   : > { %10213 = vmatprep.subr.bf16.mxu1 %v11480_v20 }
0x157e   : > { %10214 = vmatpush3.bf16.msra.mxu1 %v11480_v20  ;;  %v11502_v20 = vld [vmem:[#allocation3 + $0x200] sm:$0xff]  }
0x157f   : > { %10215 = vmatprep.subr.bf16.mxu1 %v11481_v21 }
0x1582   : > { %10216 = vmatpush3.bf16.msra.mxu1 %v11481_v21  ;;  %v11503_v21 = vld [vmem:[#allocation3 + $0x208] sm:$0xff]  }
0x1583   : > { %10217 = vmatprep.subr.bf16.mxu1 %v11482_v22 }
0x1586   : > { %10218 = vmatpush3.bf16.msra.mxu1 %v11482_v22  ;;  %v11504_v22 = vld [vmem:[#allocation3 + $0x210] sm:$0xff]  }
0x1587   : > { %10219 = vmatprep.subr.bf16.mxu1 %v11483_v23 }
0x158a   : > { %10220 = vmatpush3.bf16.msra.mxu1 %v11483_v23  ;;  %v11505_v23 = vld [vmem:[#allocation3 + $0x218] sm:$0xff]  }
0x158b   : > { %10221 = vmatprep.subr.bf16.mxu1 %v11484_v24 }
0x158e   : > { %10222 = vmatpush3.bf16.msra.mxu1 %v11484_v24  ;;  %v11506_v24 = vld [vmem:[#allocation3 + $0x220] sm:$0xff]  }
0x158f   : > { %10227 = vmatprep.subr.bf16.mxu1 %v11485_v25 }
0x15b2   : > { %v10205_v26 = vpop.f32.mrb[76].mxu0 }
0x15b3   : > { %v5592_v28 = vadd.f32 %v11486_v27, %v10205_v26  ;;  %v5571_v29 = vpop.f32.mrb[77].mxu0  ;;  %v11508_v26 = vld [vmem:[#allocation3 + $0x230] sm:$0xff]  }
0x15b4   : > { %v5590_v30 = vadd.f32 %v11486_v27, %v5571_v29  ;;  %v10206_v31 = vpop.f32.mrb[78].mxu0 }
0x15b5   : > { %v5596_v33 = vmax.f32 %v5592_v28, 0.0  ;;  %v5593_v34 = vadd.f32 %v11486_v27, %v10206_v31  ;;  %v5574_v35 = vpop.f32.mrb[79].mxu0 }
0x15b6   : > { %v5594_v36 = vmax.f32 %v5590_v30, 0.0  ;;  %v5591_v37 = vadd.f32 %v11486_v27, %v5574_v35  ;;  %v11509_v27 = vld [vmem:[#allocation3 + $0x238] sm:$0xff]  }
0x15b7   : > { %v5597_v38 = vmax.f32 %v5593_v34, 0.0  ;;  %v5605_v39 = vrot.slane %v5596_v33, 7  ;;  %v5617_v41 = vrot.slane %v5596_v33, 1  ;;  %v11510_v34 = vld [vmem:[#allocation5 + $0x1] ss:$0 sm:$0xff] }
0x15b8   : > { %v5595_v42 = vmax.f32 %v5591_v37, 0.0  ;;  %v5602_v43 = vrot.slane %v5594_v36, 7  ;;  %v5614_v49 = vrot.slane %v5594_v36, 1 }
0x15b9   : > { %v5607_v44 = vrot.slane %v5597_v38, 7  ;;  %v5619_v45 = vrot.slane %v5597_v38, 1  ;;  %v5629_v46 = vpack.c.bf16 %v5597_v38, %v5596_v33 }
0x15ba   : > { %v5603_v51 = vrot.slane %v5595_v42, 7  ;;  %v5615_v52 = vrot.slane %v5595_v42, 1  ;;  %v5628_v9 = vpack.c.bf16 %v5595_v42, %v5594_v36 }
0x15bb   : > { %v5620_v53 = vsel %vm543_vm2, %v5617_v41, %v5619_v45  ;;  %v5608_v54 = vsel %vm530_vm1, %v5605_v39, %v5607_v44 }
0x15bc   : > { %v8548_v55 = vpack.c.bf16 %v5619_v45, %v5620_v53  ;;  %10223 = vmatprep.mubr.bf16.mxu1 %v5628_v9  ;;  %v5604_v57 = vsel %vm530_vm1, %v5602_v43, %v5603_v51  ;;  %v5606_v58 = vsel %vm530_vm1, %v5603_v51, %v5605_v39  ;;  %v5616_v59 = vsel %vm543_vm2, %v5614_v49, %v5615_v52 }
0x15bd   : > { %10224 = vmatmul.mubr.bf16.vlgmr.msra.gmra.mrb[84].mxu1 %v5629_v46  ;;  %v8545_v61 = vpack.c.bf16 %v5604_v57, %v5602_v43  ;;  %v5627_v62 = vpack.c.bf16 %v5608_v54, %v5606_v58  ;;  %v5618_v63 = vsel %vm543_vm2, %v5615_v52, %v5617_v41 }
0x15be   : > { %10228 = vmatpush3.bf16.msra.mxu1 %v11485_v25  ;;  %v5728_v0 = vpack.c.bf16 %v5618_v63, %v5616_v59  ;;  %v11507_v25 = vld [vmem:[#allocation3 + $0x228] sm:$0xff]  }
0x15bf   : > { %10243 = vmatprep.mubr.msk.bf16.mxu1 %vm12401_vm5, %v8545_v61  ;;  %10229 = vmatprep.subr.bf16.mxu1 %v11487_v1 }
0x15c2   : > { %10230 = vmatpush3.bf16.msra.mxu1 %v11487_v1  ;;  %v11511_v1 = vld [vmem:[#allocation3 + $0x1c0] sm:$0xff]  }
0x15c3   : > { %10231 = vmatprep.subr.bf16.mxu1 %v11488_v2 }
0x15c6   : > { %10232 = vmatpush3.bf16.msra.mxu1 %v11488_v2  ;;  %v11512_v2 = vld [vmem:[#allocation3 + $0x1c8] sm:$0xff]  }
0x15c7   : > { %10233 = vmatprep.subr.bf16.mxu1 %v11489_v3 }
0x15ca   : > { %10234 = vmatpush3.bf16.msra.mxu1 %v11489_v3  ;;  %v11513_v3 = vld [vmem:[#allocation3 + $0x1d0] sm:$0xff]  }
0x15cb   : > { %10235 = vmatprep.subr.bf16.mxu1 %v11490_v4 }
0x15ce   : > { %10236 = vmatpush3.bf16.msra.mxu1 %v11490_v4  ;;  %v11514_v4 = vld [vmem:[#allocation3 + $0x1d8] sm:$0xff]  }
0x15cf   : > { %10237 = vmatprep.subr.bf16.mxu1 %v11491_v5 }
0x15d2   : > { %10238 = vmatpush3.bf16.msra.mxu1 %v11491_v5  ;;  %v11516_v5 = vld [vmem:[#allocation3 + $0x1e8] sm:$0xff]  }
0x15d3   : > { %10239 = vmatprep.subr.bf16.mxu1 %v11492_v6 }
0x15d6   : > { %10240 = vmatpush3.bf16.msra.mxu1 %v11492_v6  ;;  %v11517_v6 = vld [vmem:[#allocation3 + $0x1f0] sm:$0xff]  }
0x15d7   : > { %10241 = vmatprep.subr.bf16.mxu1 %v11493_v7 }
0x15da   : > { %10242 = vmatpush3.bf16.msra.mxu1 %v11493_v7  ;;  %v11518_v7 = vld [vmem:[#allocation3 + $0x1f8] sm:$0xff]  }
0x15db   : > { %10247 = vmatprep.subr.bf16.mxu1 %v11494_v8 }
0x15dd   : > { %10244 = vmatmul.mubr.bf16.vlgmr.msra.gmra.mrb[84].mxu1 %v5627_v62 }
0x15de   : > { %10248 = vmatpush3.bf16.msra.mxu1 %v11494_v8  ;;  %10263 = vmatprep.mubr.bf16.mxu1 %v5728_v0 }
0x15df   : > { %10249 = vmatprep.subr.bf16.mxu1 %v11495_v10 }
0x15e2   : > { %10250 = vmatpush3.bf16.msra.mxu1 %v11495_v10 }
0x15e3   : > { %10251 = vmatprep.subr.bf16.mxu1 %v11496_v12 }
0x15e6   : > { %10252 = vmatpush3.bf16.msra.mxu1 %v11496_v12 }
0x15e7   : > { %10253 = vmatprep.subr.bf16.mxu1 %v11497_v13 }
0x15ea   : > { %10254 = vmatpush3.bf16.msra.mxu1 %v11497_v13 }
0x15eb   : > { %10255 = vmatprep.subr.bf16.mxu1 %v11498_v15 }
0x15ee   : > { %10256 = vmatpush3.bf16.msra.mxu1 %v11498_v15 }
0x15ef   : > { %10257 = vmatprep.subr.bf16.mxu1 %v11499_v16 }
0x15f2   : > { %10258 = vmatpush3.bf16.msra.mxu1 %v11499_v16 }
0x15f3   : > { %10259 = vmatprep.subr.bf16.mxu1 %v11500_v17 }
0x15f6   : > { %10260 = vmatpush3.bf16.msra.mxu1 %v11500_v17 }
0x15f7   : > { %10261 = vmatprep.subr.bf16.mxu1 %v11501_v18 }
0x15fa   : > { %10262 = vmatpush3.bf16.msra.mxu1 %v11501_v18 }
0x15fb   : > { %10318 = vmatprep.subr.bf16.mxu1 %v12032_v47 }
0x15fd   : > { %10264 = vmatmul.mubr.msk.bf16.vlgmr.msra.gmra.mrb[84].mxu1 %vm12412_vm6, %v8548_v55 }
0x15fe   : > { %10319 = vmatpush3.bf16.msra.mxu1 %v11502_v20  ;;  %10334 = vmatprep.mubr.msk.bf16.mxu1 %vm12033_vm10, %v12032_v47 }
0x15ff   : > { %10320 = vmatprep.subr.bf16.mxu1 %v12032_v47 }
0x1602   : > { %10321 = vmatpush3.bf16.msra.mxu1 %v11503_v21 }
0x1603   : > { %10322 = vmatprep.subr.bf16.mxu1 %v12032_v47 }
0x1606   : > { %10323 = vmatpush3.bf16.msra.mxu1 %v11504_v22 }
0x1607   : > { %10324 = vmatprep.subr.bf16.mxu1 %v12032_v47 }
0x160a   : > { %10325 = vmatpush3.bf16.msra.mxu1 %v11505_v23 }
0x160b   : > { %10326 = vmatprep.subr.bf16.mxu1 %v12032_v47 }
0x160e   : > { %10327 = vmatpush3.bf16.msra.mxu1 %v11506_v24 }
0x160f   : > { %10328 = vmatprep.subr.bf16.mxu1 %v12032_v47 }
0x1612   : > { %10329 = vmatpush3.bf16.msra.mxu1 %v11507_v25 }
0x1613   : > { %10330 = vmatprep.subr.bf16.mxu1 %v12032_v47 }
0x1616   : > { %10331 = vmatpush3.bf16.msra.mxu1 %v11508_v26 }
0x1617   : > { %10332 = vmatprep.subr.bf16.mxu1 %v12032_v47 }
0x161a   : > { %10333 = vmatpush3.bf16.msra.mxu1 %v11509_v27 }
0x161b   : > { %10358 = vmatprep.subr.bf16.mxu1 %v12032_v47 }
0x1644   : > { %v12906_v28 = vpop.f32.mrb[80].mxu1 }
0x1645   : > { %v10157_v29 = vpop.f32.mrb[81].mxu1 }
0x1646   : > { %v5378_v30 = vpop.f32.mrb[82].mxu1 }
0x1647   : > { %v10158_v31 = vpop.f32.mrb[83].mxu1  ;;  %v11519_v30 = vld [vmem:[#allocation3 + $0x180] sm:$0xff]  }
0x1648   : > { %v11520_v31 = vld [vmem:[#allocation3 + $0x240] sm:$0xff]  }
0x16d0   : > { %v10265_v33 = vpop.f32.mrb[84].mxu1 }
0x16d1   : > { %v5785_v35 = vadd.f32 %v11510_v34, %v10265_v33  ;;  %v5764_v36 = vpop.f32.mrb[85].mxu1  ;;  %v11521_v33 = vld [vmem:[#allocation3 + $0x188] sm:$0xff]  }
0x16d2   : > { %v5783_v37 = vadd.f32 %v11510_v34, %v5764_v36  ;;  %v10266_v38 = vpop.f32.mrb[86].mxu1  ;;  %v11524_v36 = vld [vmem:[#allocation3 + $0x250] sm:$0xff]  }
0x16d3   : > { %v5789_v39 = vmax.f32 %v5785_v35, 0.0  ;;  %v5786_v41 = vadd.f32 %v11510_v34, %v10266_v38  ;;  %v5767_v42 = vpop.f32.mrb[87].mxu1  ;;  %v11523_v35 = vld [vmem:[#allocation3 + $0x190] sm:$0xff]   ;;  %v11526_v38 = vld [vmem:[#allocation3 + $0x258] sm:$0xff]  }
0x16d4   : > { %v5787_v43 = vmax.f32 %v5783_v37, 0.0  ;;  %v5784_v44 = vadd.f32 %v11510_v34, %v5767_v42  ;;  %v11522_v34 = vld [vmem:[#allocation3 + $0x248] sm:$0xff]   ;;  %v11525_v37 = vld [vmem:[#allocation3 + $0x198] sm:$0xff]  }
0x16d5   : > { %v5790_v45 = vmax.f32 %v5786_v41, 0.0  ;;  %v5798_v51 = vrot.slane %v5789_v39, 1  ;;  %v11528_v41 = vld [vmem:[#allocation3 + $0x260] sm:$0xff]   ;;  %v11529_v42 = vld [vmem:[#allocation3 + $0x1a8] sm:$0xff]  }
0x16d6   : > { %v5795_v46 = vrot.slane %v5787_v43, 1  ;;  %v5788_v49 = vmax.f32 %v5784_v44, 0.0  ;;  %v11531_v44 = vld [vmem:[#allocation3 + $0x1b0] sm:$0xff]  }
0x16d7   : > { %v5800_v52 = vrot.slane %v5790_v45, 1 }
0x16d8   : > { %v5796_v9 = vrot.slane %v5788_v49, 1 }
0x16d9   : > { %v5807_v53 = vsel %vm543_vm2, %v5800_v52, %v5795_v46  ;;  %v5801_v54 = vsel %vm543_vm2, %v5798_v51, %v5800_v52  ;;  %v11536_v52 = vld [vmem:[#allocation3 + $0x288] sm:$0xff]  }
0x16da   : > { %v5811_v55 = vmax.f32 %v5790_v45, %v5807_v53  ;;  %v5799_v57 = vsel %vm543_vm2, %v5796_v9, %v5798_v51  ;;  %v5797_v58 = vsel %vm543_vm2, %v5795_v46, %v5796_v9  ;;  %v5810_v59 = vmax.f32 %v5789_v39, %v5801_v54  ;;  %v11527_v39 = vld [vmem:[#allocation3 + $0x1a0] sm:$0xff]   ;;  %v11532_v45 = vld [vmem:[#allocation3 + $0x270] sm:$0xff]   ;;  %v11533_v46 = vld [vmem:[#allocation3 + $0x1b8] sm:$0xff]  }
0x16db   : > { %v5809_v61 = vmax.f32 %v5788_v49, %v5799_v57  ;;  %v5808_v62 = vmax.f32 %v5787_v43, %v5797_v58  ;;  %v11530_v43 = vld [vmem:[#allocation3 + $0x268] sm:$0xff]   ;;  %v11534_v49 = vld [vmem:[#allocation3 + $0x278] sm:$0xff]   ;;  %v11535_v51 = vld [vmem:[#allocation3 + $0x280] sm:$0xff]  }
0x16dc   : > { %v10994_v63 = vpack.c.bf16 %v5811_v55, %v5810_v59  ;;  %v11537_v9 = vld [vmem:[#allocation3 + $0x290] sm:$0xff]   ;;  %v11538_v53 = vld [vmem:[#allocation3 + $0x298] sm:$0xff]   ;;  %v11540_v54 = vld [vmem:[#allocation3 + $0x2a8] sm:$0xff]  }
0x16dd   : > { %v10990_v0 = vpack.c.bf16 %v5809_v61, %v5808_v62  ;;  %v11541_v55 = vld [vmem:[#allocation3 + $0x2b0] sm:$0xff]   ;;  %v11542_v57 = vld [vmem:[#allocation3 + $0x2b8] sm:$0xff]  }
0x16df   : > { %10991 = vmatprep.subr.bf16.mxu0 %v10990_v0 }
0x16e0   : > { %10993 = vmatpush3.bf16.msra.mxu0 %v10990_v0 }
0x16e1   : > { %10995 = vmatprep.subr.bf16.mxu0 %v10994_v63 }
0x16e4   : > { %10997 = vmatpush3.bf16.msra.mxu0 %v10994_v63 }
0x16e5   : > { %10278 = vmatprep.subr.bf16.mxu0 %v12032_v47 }
0x16e7   : > { %10276 = vmatmul.mubr.msk.f32.vlgmr.msra.gmra.mrb[58].mxu0 %vm1318_vm8, %v12435_v14  ;;  %v11515_v14 = vld [vmem:[#allocation3 + $0x1e0] sm:$0xff]  }
0x16e8   : > { %10279 = vmatpush3.bf16.msra.mxu0 %v11511_v1  ;;  %10294 = vmatprep.mubr.msk.bf16.mxu0 %vm12033_vm10, %v12032_v47 }
0x16e9   : > { %10280 = vmatprep.subr.bf16.mxu0 %v12032_v47 }
0x16ec   : > { %10281 = vmatpush3.bf16.msra.mxu0 %v11512_v2 }
0x16ed   : > { %10282 = vmatprep.subr.bf16.mxu0 %v12032_v47 }
0x16f0   : > { %10283 = vmatpush3.bf16.msra.mxu0 %v11513_v3 }
0x16f1   : > { %10284 = vmatprep.subr.bf16.mxu0 %v12032_v47 }
0x16f4   : > { %10285 = vmatpush3.bf16.msra.mxu0 %v11514_v4 }
0x16f5   : > { %10286 = vmatprep.subr.bf16.mxu0 %v12032_v47 }
0x16f8   : > { %10287 = vmatpush3.bf16.msra.mxu0 %v11515_v14 }
0x16f9   : > { %10288 = vmatprep.subr.bf16.mxu0 %v12032_v47 }
0x16fc   : > { %10289 = vmatpush3.bf16.msra.mxu0 %v11516_v5 }
0x16fd   : > { %10290 = vmatprep.subr.bf16.mxu0 %v12032_v47 }
0x1700   : > { %10291 = vmatpush3.bf16.msra.mxu0 %v11517_v6 }
0x1701   : > { %10292 = vmatprep.subr.bf16.mxu0 %v12032_v47 }
0x1704   : > { %10293 = vmatpush3.bf16.msra.mxu0 %v11518_v7 }
0x1705   : > { %10298 = vmatprep.subr.bf16.mxu0 %v12032_v47 }
0x17ba   : > { %v10277_v8 = vpop.f32.mrb[58].mxu0 }
0x17bb   : > { %v5878_v10 = vpop.f32.mrb[59].mxu0 }
0x17bc   : > { %v11140_v12 = vpack.i.bf16 %v10277_v8, %v5878_v10 }
0x17be   : > { %11141 = vrot.lane.b32.xlu1 %v11140_v12, %s12034_s13 }
0x1830   : > { %v11142_v13 = vpop.permute.xlu1 %11141 }
0x1831   : > { %v11144_v15 = vunpack.i.h.bf16 %v11142_v13  ;;  %v11143_v16 = vunpack.i.l.bf16 %v11142_v13 }
0x1833   : > { %v5892_v17 = vmax.f32 %v10277_v8, %v11144_v15  ;;  %v5891_v18 = vmax.f32 %v5878_v10, %v11143_v16  ;;  %v11543_v10 = vld [vmem:[#allocation5 + $0x2] ss:$0 sm:$0xff] }
0x1835   : > { %v5896_v20 = vrot.slane %v5892_v17, 7  ;;  %v5902_v21 = vrot.slane %v5892_v17, 1  ;;  %v5895_v22 = vrot.slane %v5891_v18, 7  ;;  %v5901_v23 = vrot.slane %v5891_v18, 1 }
0x1836   : > { %v5908_v24 = vpack.c.bf16 %v5892_v17, %v5891_v18 }
0x1837   : > { %v5897_v25 = vsel %vm530_vm1, %v5895_v22, %v5896_v20  ;;  %v5903_v26 = vsel %vm543_vm2, %v5901_v23, %v5902_v21 }
0x1838   : > { %v8554_v27 = vpack.c.bf16 %v5897_v25, %v5895_v22  ;;  %v8557_v29 = vpack.c.bf16 %v5902_v21, %v5903_v26  ;;  %10295 = vmatmul.mubr.bf16.vlgmr.msra.gmra.mrb[80].mxu0 %v5908_v24 }
0x1839   : > { %10299 = vmatpush3.bf16.msra.mxu0 %v11519_v30  ;;  %10314 = vmatprep.mubr.msk.bf16.mxu0 %vm12033_vm10, %v12032_v47  ;;  %v11545_v30 = vld [vmem:[#allocation3 + $0x2c8] sm:$0xff]  }
0x183a   : > { %10300 = vmatprep.subr.bf16.mxu0 %v12032_v47  ;;  %10335 = vmatmul.mubr.msk.bf16.vlgmr.msra.gmra.mrb[88].mxu1 %vm12412_vm6, %v8557_v29 }
0x183b   : > { %10359 = vmatpush3.bf16.msra.mxu1 %v11520_v31  ;;  %10374 = vmatprep.mubr.msk.bf16.mxu1 %vm12033_vm10, %v12032_v47  ;;  %v11546_v31 = vld [vmem:[#allocation3 + $0x2d0] sm:$0xff]  }
0x183c   : > { %10360 = vmatprep.subr.bf16.mxu1 %v12032_v47 }
0x183d   : > { %10301 = vmatpush3.bf16.msra.mxu0 %v11521_v33  ;;  %v11547_v33 = vld [vmem:[#allocation3 + $0x2d8] sm:$0xff]  }
0x183e   : > { %10302 = vmatprep.subr.bf16.mxu0 %v12032_v47 }
0x183f   : > { %10361 = vmatpush3.bf16.msra.mxu1 %v11522_v34  ;;  %v11548_v34 = vld [vmem:[#allocation3 + $0x2e0] sm:$0xff]  }
0x1840   : > { %10362 = vmatprep.subr.bf16.mxu1 %v12032_v47 }
0x1841   : > { %10303 = vmatpush3.bf16.msra.mxu0 %v11523_v35  ;;  %v11550_v35 = vld [vmem:[#allocation3 + $0x2f0] sm:$0xff]  }
0x1842   : > { %10304 = vmatprep.subr.bf16.mxu0 %v12032_v47 }
0x1843   : > { %10363 = vmatpush3.bf16.msra.mxu1 %v11524_v36  ;;  %v11551_v36 = vld [vmem:[#allocation3 + $0x2f8] sm:$0xff]  }
0x1844   : > { %10364 = vmatprep.subr.bf16.mxu1 %v12032_v47 }
0x1845   : > { %10305 = vmatpush3.bf16.msra.mxu0 %v11525_v37  ;;  %v11552_v37 = vld [vmem:[#allocation3 + $0x300] sm:$0xff]  }
0x1846   : > { %10306 = vmatprep.subr.bf16.mxu0 %v12032_v47 }
0x1847   : > { %10365 = vmatpush3.bf16.msra.mxu1 %v11526_v38  ;;  %v11553_v38 = vld [vmem:[#allocation3 + $0x308] sm:$0xff]  }
0x1848   : > { %10366 = vmatprep.subr.bf16.mxu1 %v12032_v47 }
0x1849   : > { %10307 = vmatpush3.bf16.msra.mxu0 %v11527_v39  ;;  %v11554_v39 = vld [vmem:[#allocation3 + $0x310] sm:$0xff]  }
0x184a   : > { %10308 = vmatprep.subr.bf16.mxu0 %v12032_v47 }
0x184b   : > { %10367 = vmatpush3.bf16.msra.mxu1 %v11528_v41  ;;  %v11555_v41 = vld [vmem:[#allocation3 + $0x318] sm:$0xff]  }
0x184c   : > { %10368 = vmatprep.subr.bf16.mxu1 %v12032_v47 }
0x184d   : > { %10309 = vmatpush3.bf16.msra.mxu0 %v11529_v42  ;;  %v11557_v42 = vld [vmem:[#allocation3 + $0x328] sm:$0xff]  }
0x184e   : > { %10310 = vmatprep.subr.bf16.mxu0 %v12032_v47 }
0x184f   : > { %10369 = vmatpush3.bf16.msra.mxu1 %v11530_v43  ;;  %v11558_v43 = vld [vmem:[#allocation3 + $0x330] sm:$0xff]  }
0x1850   : > { %10370 = vmatprep.subr.bf16.mxu1 %v12032_v47 }
0x1851   : > { %10311 = vmatpush3.bf16.msra.mxu0 %v11531_v44  ;;  %v11559_v44 = vld [vmem:[#allocation3 + $0x338] sm:$0xff]  }
0x1852   : > { %10312 = vmatprep.subr.bf16.mxu0 %v12032_v47 }
0x1853   : > { %10371 = vmatpush3.bf16.msra.mxu1 %v11532_v45 }
0x1854   : > { %10372 = vmatprep.subr.bf16.mxu1 %v12032_v47 }
0x1855   : > { %10313 = vmatpush3.bf16.msra.mxu0 %v11533_v46 }
0x1856   : > { %10338 = vmatprep.subr.bf16.mxu0 %v12032_v47 }
0x1857   : > { %10373 = vmatpush3.bf16.msra.mxu1 %v11534_v49 }
0x1858   : > { %10315 = vmatmul.mubr.msk.bf16.vlgmr.msra.gmra.mrb[84].mxu0 %vm12401_vm5, %v8554_v27  ;;  %10998 = vmatprep.subr.bf16.mxu1 %v12035_v56  ;;  %v11539_v56 = vld [vmem:[#allocation3 + $0x2a0] sm:$0xff]  }
0x1859   : > { %10339 = vmatpush3.bf16.msra.mxu0 %v11535_v51  ;;  %10354 = vmatprep.mubr.msk.bf16.mxu0 %vm12033_vm10, %v12032_v47  ;;  %v11544_v27 = vld [vmem:[#allocation3 + $0x2c0] sm:$0xff]  }
0x185a   : > { %10340 = vmatprep.subr.bf16.mxu0 %v12032_v47 }
0x185d   : > { %10341 = vmatpush3.bf16.msra.mxu0 %v11536_v52 }
0x185e   : > { %10342 = vmatprep.subr.bf16.mxu0 %v12032_v47 }
0x1861   : > { %10343 = vmatpush3.bf16.msra.mxu0 %v11537_v9 }
0x1862   : > { %10344 = vmatprep.subr.bf16.mxu0 %v12032_v47 }
0x1865   : > { %10345 = vmatpush3.bf16.msra.mxu0 %v11538_v53 }
0x1866   : > { %10346 = vmatprep.subr.bf16.mxu0 %v12032_v47 }
0x1869   : > { %10347 = vmatpush3.bf16.msra.mxu0 %v11539_v56 }
0x186a   : > { %10348 = vmatprep.subr.bf16.mxu0 %v12032_v47 }
0x186d   : > { %10349 = vmatpush3.bf16.msra.mxu0 %v11540_v54 }
0x186e   : > { %10350 = vmatprep.subr.bf16.mxu0 %v12032_v47 }
0x1871   : > { %10351 = vmatpush3.bf16.msra.mxu0 %v11541_v55 }
0x1872   : > { %10352 = vmatprep.subr.bf16.mxu0 %v12032_v47 }
0x1875   : > { %10353 = vmatpush3.bf16.msra.mxu0 %v11542_v57 }
0x1876   : > { %10378 = vmatprep.subr.bf16.mxu0 %v12032_v47 }
0x190b   : > { %v5943_v58 = vpop.f32.mrb[80].mxu0 }
0x190c   : > { %v10296_v59 = vpop.f32.mrb[81].mxu0 }
0x190d   : > { %v5946_v61 = vpop.f32.mrb[82].mxu0  ;;  %v6026_v62 = vpop.f32.mrb[88].mxu1 }
0x190e   : > { %v10297_v63 = vpop.f32.mrb[83].mxu0  ;;  %v10336_v0 = vpop.f32.mrb[89].mxu1 }
0x190f   : > { %v6029_v1 = vpop.f32.mrb[90].mxu1 }
0x1910   : > { %v10337_v2 = vpop.f32.mrb[91].mxu1 }
0x192b   : > { %v5984_v3 = vpop.f32.mrb[84].mxu0 }
0x192c   : > { %v5985_v4 = vadd.f32 %v5984_v3, %v5943_v58  ;;  %v10316_v14 = vpop.f32.mrb[85].mxu0 }
0x192d   : > { %v5987_v5 = vpop.f32.mrb[86].mxu0 }
0x192e   : > { %v6033_v6 = vadd.f32 %v6026_v62, %v5985_v4  ;;  %v5988_v7 = vadd.f32 %v5987_v5, %v5946_v61  ;;  %v10317_v8 = vpop.f32.mrb[87].mxu0  ;;  %v11560_v62 = vld [vmem:[#allocation5 + $0x3] ss:$0 sm:$0xff] }
0x1930   : > { %v6035_v12 = vadd.f32 %v11543_v10, %v6033_v6  ;;  %v6034_v13 = vadd.f32 %v6029_v1, %v5988_v7 }
0x1932   : > { %v6037_v15 = vmax.f32 %v6035_v12, 0.0  ;;  %v6036_v16 = vadd.f32 %v11543_v10, %v6034_v13  ;;  %v11561_v13 = vld [vmem:[#allocation3 + $0x340] sm:$0xff]  }
0x1934   : > { %v6038_v17 = vmax.f32 %v6036_v16, 0.0  ;;  %v6041_v18 = vrot.slane %v6037_v15, 7  ;;  %v6047_v20 = vrot.slane %v6037_v15, 1  ;;  %v11563_v16 = vld [vmem:[#allocation3 + $0x350] sm:$0xff]  }
0x1936   : > { %v6042_v21 = vrot.slane %v6038_v17, 7  ;;  %v6048_v22 = vrot.slane %v6038_v17, 1  ;;  %v6054_v23 = vpack.c.bf16 %v6038_v17, %v6037_v15  ;;  %v11562_v15 = vld [vmem:[#allocation3 + $0x348] sm:$0xff]   ;;  %v11564_v17 = vld [vmem:[#allocation3 + $0x358] sm:$0xff]  }
0x1938   : > { %v6049_v24 = vsel %vm543_vm2, %v6047_v20, %v6048_v22  ;;  %10355 = vmatmul.mubr.bf16.vlgmr.msra.gmra.mrb[88].mxu0 %v6054_v23  ;;  %v6043_v25 = vsel %vm530_vm1, %v6041_v18, %v6042_v21  ;;  %v11566_v20 = vld [vmem:[#allocation3 + $0x368] sm:$0xff]   ;;  %v11567_v21 = vld [vmem:[#allocation3 + $0x370] sm:$0xff]  }
0x1939   : > { %v8564_v26 = vpack.c.bf16 %v6048_v22, %v6049_v24  ;;  %10379 = vmatpush3.bf16.msra.mxu0 %v11544_v27  ;;  %v8561_v29 = vpack.c.bf16 %v6043_v25, %v6041_v18  ;;  %10394 = vmatprep.mubr.msk.bf16.mxu0 %vm12033_vm10, %v12032_v47  ;;  %v11565_v18 = vld [vmem:[#allocation3 + $0x360] sm:$0xff]   ;;  %v11568_v22 = vld [vmem:[#allocation3 + $0x378] sm:$0xff]  }
0x193a   : > { %10380 = vmatprep.subr.bf16.mxu0 %v12032_v47 }
0x193b   : > { %10375 = vmatmul.mubr.msk.bf16.vlgmr.msra.gmra.mrb[92].mxu1 %vm12401_vm5, %v8561_v29  ;;  %vm7977_vm5 = vcmask 0  }
0x193c   : > { %10402 = vmatprep.mubr.msk.f32.mxu1 %vm12033_vm10, %v12032_v47 }
0x193d   : > { %10381 = vmatpush3.bf16.msra.mxu0 %v11545_v30 }
0x193e   : > { %10382 = vmatprep.subr.bf16.mxu0 %v12032_v47 }
0x1941   : > { %10383 = vmatpush3.bf16.msra.mxu0 %v11546_v31  ;;  %v11569_v31 = vld [vmem:[#allocation3 + $0x380] sm:$0xff]  }
0x1942   : > { %10384 = vmatprep.subr.bf16.mxu0 %v12032_v47 }
0x1945   : > { %10385 = vmatpush3.bf16.msra.mxu0 %v11547_v33  ;;  %v11570_v33 = vld [vmem:[#allocation3 + $0x400] sm:$0xff]  }
0x1946   : > { %10386 = vmatprep.subr.bf16.mxu0 %v12032_v47 }
0x1949   : > { %10387 = vmatpush3.bf16.msra.mxu0 %v11548_v34  ;;  %v11571_v34 = vld [vmem:[#allocation3 + $0x388] sm:$0xff]  }
0x194a   : > { %10388 = vmatprep.subr.bf16.mxu0 %v12032_v47 }
0x194d   : > { %10389 = vmatpush3.bf16.msra.mxu0 %v11549_v19  ;;  %v11572_v19 = vld [vmem:[#allocation3 + $0x408] sm:$0xff]  }
0x194e   : > { %10390 = vmatprep.subr.bf16.mxu0 %v12032_v47 }
0x1951   : > { %10391 = vmatpush3.bf16.msra.mxu0 %v11550_v35  ;;  %v11573_v35 = vld [vmem:[#allocation3 + $0x390] sm:$0xff]  }
0x1952   : > { %10392 = vmatprep.subr.bf16.mxu0 %v12032_v47 }
0x1955   : > { %10393 = vmatpush3.bf16.msra.mxu0 %v11551_v36  ;;  %v11574_v36 = vld [vmem:[#allocation3 + $0x410] sm:$0xff]  }
0x1956   : > { %10425 = vmatprep.subr.bf16.mxu0 %v12032_v47 }
0x1958   : > { %10395 = vmatmul.mubr.msk.bf16.vlgmr.msra.gmra.mrb[92].mxu0 %vm12412_vm6, %v8564_v26 }
0x1959   : > { %10426 = vmatpush3.bf16.msra.mxu0 %v11552_v37  ;;  %10441 = vmatprep.mubr.msk.bf16.mxu0 %vm12033_vm10, %v12032_v47  ;;  %v11575_v37 = vld [vmem:[#allocation3 + $0x398] sm:$0xff]  }
0x195a   : > { %10427 = vmatprep.subr.bf16.mxu0 %v12032_v47 }
0x195d   : > { %10428 = vmatpush3.bf16.msra.mxu0 %v11553_v38  ;;  %v11576_v38 = vld [vmem:[#allocation3 + $0x418] sm:$0xff]  }
0x195e   : > { %10429 = vmatprep.subr.bf16.mxu0 %v12032_v47 }
0x1961   : > { %10430 = vmatpush3.bf16.msra.mxu0 %v11554_v39  ;;  %v11577_v39 = vld [vmem:[#allocation3 + $0x3a0] sm:$0xff]  }
0x1962   : > { %10431 = vmatprep.subr.bf16.mxu0 %v12032_v47 }
0x1965   : > { %10432 = vmatpush3.bf16.msra.mxu0 %v11555_v41  ;;  %v11578_v41 = vld [vmem:[#allocation3 + $0x420] sm:$0xff]  }
0x1966   : > { %10433 = vmatprep.subr.bf16.mxu0 %v12032_v47 }
0x1969   : > { %10434 = vmatpush3.bf16.msra.mxu0 %v11556_v40  ;;  %v11579_v40 = vld [vmem:[#allocation3 + $0x3a8] sm:$0xff]  }
0x196a   : > { %10435 = vmatprep.subr.bf16.mxu0 %v12032_v47 }
0x196d   : > { %10436 = vmatpush3.bf16.msra.mxu0 %v11557_v42  ;;  %v11580_v42 = vld [vmem:[#allocation3 + $0x428] sm:$0xff]  }
0x196e   : > { %10437 = vmatprep.subr.bf16.mxu0 %v12032_v47 }
0x1971   : > { %10438 = vmatpush3.bf16.msra.mxu0 %v11558_v43  ;;  %v11581_v43 = vld [vmem:[#allocation3 + $0x3b0] sm:$0xff]  }
0x1972   : > { %10439 = vmatprep.subr.bf16.mxu0 %v12032_v47 }
0x1975   : > { %10440 = vmatpush3.bf16.msra.mxu0 %v11559_v44 }
0x1976   : > { %10465 = vmatprep.subr.bf16.mxu0 %v12032_v47 }
0x1a0b   : > { %v6089_v45 = vpop.f32.mrb[88].mxu0 }
0x1a0c   : > { %v10356_v46 = vpop.f32.mrb[89].mxu0 }
0x1a0d   : > { %v6092_v49 = vpop.f32.mrb[90].mxu0  ;;  %v11583_v46 = vld [vmem:[#allocation3 + $0x3b8] sm:$0xff]  }
0x1a0e   : > { %v10357_v51 = vpop.f32.mrb[91].mxu0  ;;  %v6130_v52 = vpop.f32.mrb[92].mxu1 }
0x1a0f   : > { %v6131_v9 = vadd.f32 %v6130_v52, %v6089_v45  ;;  %v10376_v53 = vpop.f32.mrb[93].mxu1  ;;  %v11582_v45 = vld [vmem:[#allocation3 + $0x430] sm:$0xff]   ;;  %v11584_v51 = vld [vmem:[#allocation3 + $0x438] sm:$0xff]   ;;  %v11585_v52 = vld [vmem:[#allocation3 + $0x3c0] sm:$0xff]  }
0x1a10   : > { %v6133_v56 = vpop.f32.mrb[94].mxu1  ;;  %v11587_v53 = vld [vmem:[#allocation3 + $0x3d0] sm:$0xff]  }
0x1a11   : > { %v6134_v54 = vadd.f32 %v6133_v56, %v6092_v49  ;;  %v10377_v55 = vpop.f32.mrb[95].mxu1  ;;  %v11588_v56 = vld [vmem:[#allocation3 + $0x3d8] sm:$0xff]  }
0x1a12   : > { %v11590_v55 = vld [vmem:[#allocation3 + $0x3e8] sm:$0xff]  }
0x1a2b   : > { %v6172_v57 = vpop.f32.mrb[92].mxu0 }
0x1a2c   : > { %v6179_v58 = vadd.f32 %v6172_v57, %v6131_v9  ;;  %v10396_v59 = vpop.f32.mrb[93].mxu0  ;;  %v11586_v9 = vld [vmem:[#allocation3 + $0x3c8] sm:$0xff]   ;;  %v11591_v57 = vld [vmem:[#allocation3 + $0x3f0] sm:$0xff]  }
0x1a2d   : > { %v6175_v61 = vpop.f32.mrb[94].mxu0 }
0x1a2e   : > { %v6181_v63 = vadd.f32 %v11560_v62, %v6179_v58  ;;  %v6180_v0 = vadd.f32 %v6175_v61, %v6134_v54  ;;  %v10397_v1 = vpop.f32.mrb[95].mxu0  ;;  %v11589_v54 = vld [vmem:[#allocation3 + $0x3e0] sm:$0xff]   ;;  %v11592_v58 = vld [vmem:[#allocation3 + $0x3f8] sm:$0xff]  }
0x1a30   : > { %v6183_v2 = vmax.f32 %v6181_v63, 0.0  ;;  %v6182_v3 = vadd.f32 %v11560_v62, %v6180_v0 }
0x1a32   : > { %v6184_v4 = vmax.f32 %v6182_v3, 0.0  ;;  %v6187_v14 = vrot.slane %v6183_v2, 1 }
0x1a34   : > { %v6188_v5 = vrot.slane %v6184_v4, 1 }
0x1a36   : > { %v6189_v6 = vsel %vm543_vm2, %v6187_v14, %v6188_v5  ;;  %v6193_v7 = vsel %vm543_vm2, %v6188_v5, %v6187_v14  ;;  %vm13433_vm2 = vcmask 31744  }
0x1a37   : > { %v6194_v8 = vmax.f32 %v6183_v2, %v6189_v6  ;;  %v6195_v10 = vmax.f32 %v6184_v4, %v6193_v7 }
0x1a39   : > { %v10999_v12 = vpack.c.bf16 %v6195_v10, %v6194_v8  ;;  %v11593_v8 = vld [vmem:[#allocation5 + $0x4] ss:$0 sm:$0xff] }
0x1a3b   : > { %11000 = vmatpush3.bf16.msra.mxu1 %v10999_v12 }
0x1a3c   : > { %10405 = vmatprep.subr.bf16.mxu1 %v12032_v47 }
0x1a3e   : > { %10403 = vmatmul.mubr.msk.f32.vlgmr.msra.gmra.mrb[34].mxu1 %vm2109_vm11, %v12419_v48 }
0x1a3f   : > { %10406 = vmatpush3.bf16.msra.mxu1 %v11561_v13  ;;  %10421 = vmatprep.mubr.msk.bf16.mxu1 %vm12033_vm10, %v12032_v47 }
0x1a40   : > { %10407 = vmatprep.subr.bf16.mxu1 %v12032_v47 }
0x1a43   : > { %10408 = vmatpush3.bf16.msra.mxu1 %v11562_v15 }
0x1a44   : > { %10409 = vmatprep.subr.bf16.mxu1 %v12032_v47 }
0x1a47   : > { %10410 = vmatpush3.bf16.msra.mxu1 %v11563_v16 }
0x1a48   : > { %10411 = vmatprep.subr.bf16.mxu1 %v12032_v47 }
0x1a4b   : > { %10412 = vmatpush3.bf16.msra.mxu1 %v11564_v17 }
0x1a4c   : > { %10413 = vmatprep.subr.bf16.mxu1 %v12032_v47 }
0x1a4f   : > { %10414 = vmatpush3.bf16.msra.mxu1 %v11565_v18  ;;  %v11594_v18 = vld [vmem:[#allocation3 + $0x440] sm:$0xff]  }
0x1a50   : > { %10415 = vmatprep.subr.bf16.mxu1 %v12032_v47 }
0x1a53   : > { %10416 = vmatpush3.bf16.msra.mxu1 %v11566_v20  ;;  %v11595_v20 = vld [vmem:[#allocation3 + $0x4c0] sm:$0xff]  }
0x1a54   : > { %10417 = vmatprep.subr.bf16.mxu1 %v12032_v47 }
0x1a57   : > { %10418 = vmatpush3.bf16.msra.mxu1 %v11567_v21  ;;  %v11596_v21 = vld [vmem:[#allocation3 + $0x448] sm:$0xff]  }
0x1a58   : > { %10419 = vmatprep.subr.bf16.mxu1 %v12032_v47 }
0x1a5b   : > { %10420 = vmatpush3.bf16.msra.mxu1 %v11568_v22  ;;  %v11597_v22 = vld [vmem:[#allocation3 + $0x4c8] sm:$0xff]  }
0x1a5c   : > { %10445 = vmatprep.subr.bf16.mxu1 %v12032_v47 }
0x1b11   : > { %v6262_v23 = vpop.f32.mrb[34].mxu1 }
0x1b12   : > { %6266 = vrot.lane.b32.xlu0 %v6262_v23, %s12036_s24  ;;  %v10404_v24 = vpop.f32.mrb[35].mxu1  ;;  %s520_s24 = scalar_lea.vmem %s13393_s12, %s13436_s26 }
0x1b13   : > { %v11599_v24 = vld [vmem:[#allocation3 + $0x4d0] sm:$0xff]  }
0x1b84   : > { %v6267_v25 = vpop.permute.xlu0 %6266 }
0x1b85   : > { %v6268_v26 = vmax.f32 %v6262_v23, %v6267_v25  ;;  %v11598_v23 = vld [vmem:[#allocation3 + $0x450] sm:$0xff]   ;;  %v11600_v25 = vld [vmem:[#allocation3 + $0x458] sm:$0xff]  }
0x1b87   : > { %v6270_v27 = vrot.slane %v6268_v26, 7  ;;  %v6277_v29 = vpack.c.bf16 %v6268_v26, %v6268_v26  ;;  %v6273_v44 = vrot.slane %v6268_v26, 1  ;;  %v11601_v26 = vld [vmem:[#allocation3 + $0x4d8] sm:$0xff]  }
0x1b89   : > { %v8570_v30 = vpack.c.bf16 %v6270_v27, %v6270_v27  ;;  %10422 = vmatmul.mubr.bf16.vlgmr.msra.gmra.mrb[96].mxu1 %v6277_v29  ;;  %v8573_v49 = vpack.c.bf16 %v6273_v44, %v6273_v44  ;;  %v11602_v27 = vld [vmem:[#allocation3 + $0x460] sm:$0xff]   ;;  %v11616_v44 = vld [vmem:[#allocation3 + $0x4b0] sm:$0xff]  }
0x1b8a   : > { %10446 = vmatpush3.bf16.msra.mxu1 %v11569_v31  ;;  %10461 = vmatprep.mubr.msk.bf16.mxu1 %vm12033_vm10, %v12032_v47  ;;  %v11603_v29 = vld [vmem:[#allocation3 + $0x4e0] sm:$0xff]   ;;  %v11605_v31 = vld [vmem:[#allocation3 + $0x4e8] sm:$0xff]  }
0x1b8b   : > { %10442 = vmatmul.mubr.msk.bf16.vlgmr.msra.gmra.mrb[96].mxu0 %vm12544_vm12, %v8570_v30  ;;  %10447 = vmatprep.subr.bf16.mxu1 %v12032_v47  ;;  %v11604_v30 = vld [vmem:[#allocation3 + $0x468] sm:$0xff]  }
0x1b8c   : > { %10466 = vmatpush3.bf16.msra.mxu0 %v11570_v33  ;;  %10481 = vmatprep.mubr.msk.bf16.mxu0 %vm12033_vm10, %v12032_v47  ;;  %v11606_v33 = vld [vmem:[#allocation3 + $0x470] sm:$0xff]  }
0x1b8d   : > { %10467 = vmatprep.subr.bf16.mxu0 %v12032_v47 }
0x1b8e   : > { %10448 = vmatpush3.bf16.msra.mxu1 %v11571_v34 }
0x1b8f   : > { %10449 = vmatprep.subr.bf16.mxu1 %v12032_v47 }
0x1b90   : > { %10468 = vmatpush3.bf16.msra.mxu0 %v11572_v19  ;;  %v11607_v19 = vld [vmem:[#allocation3 + $0x4f0] sm:$0xff]  }
0x1b91   : > { %10469 = vmatprep.subr.bf16.mxu0 %v12032_v47 }
0x1b92   : > { %10450 = vmatpush3.bf16.msra.mxu1 %v11573_v35  ;;  %v11608_v35 = vld [vmem:[#allocation3 + $0x478] sm:$0xff]  }
0x1b93   : > { %10451 = vmatprep.subr.bf16.mxu1 %v12032_v47 }
0x1b94   : > { %10470 = vmatpush3.bf16.msra.mxu0 %v11574_v36 }
0x1b95   : > { %10471 = vmatprep.subr.bf16.mxu0 %v12032_v47 }
0x1b96   : > { %10452 = vmatpush3.bf16.msra.mxu1 %v11575_v37  ;;  %v11609_v37 = vld [vmem:[#allocation3 + $0x4f8] sm:$0xff]  }
0x1b97   : > { %10453 = vmatprep.subr.bf16.mxu1 %v12032_v47 }
0x1b98   : > { %10472 = vmatpush3.bf16.msra.mxu0 %v11576_v38  ;;  %v11610_v38 = vld [vmem:[#allocation3 + $0x480] sm:$0xff]  }
0x1b99   : > { %10473 = vmatprep.subr.bf16.mxu0 %v12032_v47 }
0x1b9a   : > { %10454 = vmatpush3.bf16.msra.mxu1 %v11577_v39  ;;  %v11611_v39 = vld [vmem:[#allocation3 + $0x488] sm:$0xff]  }
0x1b9b   : > { %10455 = vmatprep.subr.bf16.mxu1 %v12032_v47 }
0x1b9c   : > { %10474 = vmatpush3.bf16.msra.mxu0 %v11578_v41  ;;  %v11612_v41 = vld [vmem:[#allocation3 + $0x490] sm:$0xff]  }
0x1b9d   : > { %10475 = vmatprep.subr.bf16.mxu0 %v12032_v47 }
0x1b9e   : > { %10456 = vmatpush3.bf16.msra.mxu1 %v11579_v40  ;;  %v11613_v40 = vld [vmem:[#allocation3 + $0x498] sm:$0xff]  }
0x1b9f   : > { %10457 = vmatprep.subr.bf16.mxu1 %v12032_v47 }
0x1ba0   : > { %10476 = vmatpush3.bf16.msra.mxu0 %v11580_v42  ;;  %v11614_v42 = vld [vmem:[#allocation3 + $0x4a0] sm:$0xff]  }
0x1ba1   : > { %10477 = vmatprep.subr.bf16.mxu0 %v12032_v47 }
0x1ba2   : > { %10458 = vmatpush3.bf16.msra.mxu1 %v11581_v43  ;;  %v11615_v43 = vld [vmem:[#allocation3 + $0x4a8] sm:$0xff]  }
0x1ba3   : > { %10459 = vmatprep.subr.bf16.mxu1 %v12032_v47 }
0x1ba4   : > { %10478 = vmatpush3.bf16.msra.mxu0 %v11582_v45  ;;  %v11617_v45 = vld [vmem:[#allocation3 + $0x4b8] sm:$0xff]  }
0x1ba5   : > { %10479 = vmatprep.subr.bf16.mxu0 %v12032_v47 }
0x1ba6   : > { %10460 = vmatpush3.bf16.msra.mxu1 %v11583_v46 }
0x1ba7   : > { %10485 = vmatprep.subr.bf16.mxu1 %v12032_v47 }
0x1ba8   : > { %10480 = vmatpush3.bf16.msra.mxu0 %v11584_v51 }
0x1ba9   : > { %10462 = vmatmul.mubr.msk.bf16.vlgmr.msra.gmra.mrb[100].mxu1 %vm12563_vm13, %v8573_v49  ;;  %10505 = vmatprep.subr.bf16.mxu0 %v12032_v47 }
0x1baa   : > { %10486 = vmatpush3.bf16.msra.mxu1 %v11585_v52  ;;  %10501 = vmatprep.mubr.msk.bf16.mxu1 %vm12033_vm10, %v12032_v47 }
0x1bab   : > { %10487 = vmatprep.subr.bf16.mxu1 %v12032_v47 }
0x1bae   : > { %10488 = vmatpush3.bf16.msra.mxu1 %v11586_v9 }
0x1baf   : > { %10489 = vmatprep.subr.bf16.mxu1 %v12032_v47 }
0x1bb2   : > { %10490 = vmatpush3.bf16.msra.mxu1 %v11587_v53 }
0x1bb3   : > { %10491 = vmatprep.subr.bf16.mxu1 %v12032_v47 }
0x1bb6   : > { %10492 = vmatpush3.bf16.msra.mxu1 %v11588_v56 }
0x1bb7   : > { %10493 = vmatprep.subr.bf16.mxu1 %v12032_v47 }
0x1bba   : > { %10494 = vmatpush3.bf16.msra.mxu1 %v11589_v54 }
0x1bbb   : > { %10495 = vmatprep.subr.bf16.mxu1 %v12032_v47 }
0x1bbe   : > { %10496 = vmatpush3.bf16.msra.mxu1 %v11590_v55 }
0x1bbf   : > { %10497 = vmatprep.subr.bf16.mxu1 %v12032_v47 }
0x1bc2   : > { %10498 = vmatpush3.bf16.msra.mxu1 %v11591_v57 }
0x1bc3   : > { %10499 = vmatprep.subr.bf16.mxu1 %v12032_v47 }
0x1bc6   : > { %10500 = vmatpush3.bf16.msra.mxu1 %v11592_v58 }
0x1bc7   : > { %10525 = vmatprep.subr.bf16.mxu1 %v12032_v47 }
0x1c5c   : > { %v6312_v59 = vpop.f32.mrb[96].mxu1 }
0x1c5d   : > { %v10423_v61 = vpop.f32.mrb[97].mxu1 }
0x1c5e   : > { %v6315_v62 = vpop.f32.mrb[98].mxu1  ;;  %v6352_v63 = vpop.f32.mrb[96].mxu0 }
0x1c5f   : > { %v6353_v0 = vadd.f32 %v6352_v63, %v6312_v59  ;;  %v10424_v1 = vpop.f32.mrb[99].mxu1  ;;  %v10443_v2 = vpop.f32.mrb[97].mxu0  ;;  %v11618_v62 = vld [vmem:[#allocation5 + $0x5] ss:$0 sm:$0xff] }
0x1c60   : > { %v6355_v3 = vpop.f32.mrb[98].mxu0 }
0x1c61   : > { %v10444_v4 = vpop.f32.mrb[99].mxu0 }
0x1c7c   : > { %v6393_v14 = vpop.f32.mrb[100].mxu1 }
0x1c7d   : > { %v6399_v5 = vadd.f32 %v6393_v14, %v6353_v0  ;;  %v10463_v6 = vpop.f32.mrb[101].mxu1  ;;  %v11619_v14 = vld [vmem:[#allocation3 + $0x500] sm:$0xff]  }
0x1c7e   : > { %v6396_v7 = vpop.f32.mrb[102].mxu1  ;;  %v11621_v6 = vld [vmem:[#allocation3 + $0x510] sm:$0xff]  }
0x1c7f   : > { %v6400_v10 = vadd.f32 %v11593_v8, %v6399_v5  ;;  %v10464_v12 = vpop.f32.mrb[103].mxu1  ;;  %v11620_v5 = vld [vmem:[#allocation3 + $0x508] sm:$0xff]   ;;  %v11622_v7 = vld [vmem:[#allocation3 + $0x518] sm:$0xff]   ;;  %v11623_v8 = vld [vmem:[#allocation3 + $0x520] sm:$0xff]  }
0x1c80   : > { %v11625_v12 = vld [vmem:[#allocation3 + $0x530] sm:$0xff]  }
0x1c81   : > { %v6401_v13 = vmax.f32 %v6400_v10, 0.0  ;;  %v11624_v10 = vld [vmem:[#allocation3 + $0x528] sm:$0xff]  }
0x1c83   : > { %v6403_v15 = vrot.slane %v6401_v13, 7  ;;  %v6410_v16 = vpack.c.bf16 %v6401_v13, %v6401_v13  ;;  %v6406_v34 = vrot.slane %v6401_v13, 1 }
0x1c85   : > { %v8578_v17 = vpack.c.bf16 %v6403_v15, %v6403_v15  ;;  %10482 = vmatmul.mubr.bf16.vlgmr.msra.gmra.mrb[100].mxu0 %v6410_v16  ;;  %v8581_v36 = vpack.c.bf16 %v6406_v34, %v6406_v34  ;;  %v11626_v15 = vld [vmem:[#allocation3 + $0x538] sm:$0xff]  }
0x1c86   : > { %10506 = vmatpush3.bf16.msra.mxu0 %v11594_v18  ;;  %10521 = vmatprep.mubr.msk.bf16.mxu0 %vm12033_vm10, %v12032_v47  ;;  %v11628_v18 = vld [vmem:[#allocation3 + $0x548] sm:$0xff]  }
0x1c87   : > { %10502 = vmatmul.mubr.msk.bf16.vlgmr.msra.gmra.mrb[104].mxu1 %vm12544_vm12, %v8578_v17  ;;  %10507 = vmatprep.subr.bf16.mxu0 %v12032_v47  ;;  %v11627_v17 = vld [vmem:[#allocation3 + $0x540] sm:$0xff]  }
0x1c88   : > { %10526 = vmatpush3.bf16.msra.mxu1 %v11595_v20  ;;  %10541 = vmatprep.mubr.msk.bf16.mxu1 %vm12033_vm10, %v12032_v47  ;;  %v11629_v20 = vld [vmem:[#allocation3 + $0x550] sm:$0xff]  }
0x1c89   : > { %10527 = vmatprep.subr.bf16.mxu1 %v12032_v47 }
0x1c8a   : > { %10508 = vmatpush3.bf16.msra.mxu0 %v11596_v21  ;;  %v11630_v21 = vld [vmem:[#allocation3 + $0x558] sm:$0xff]  }
0x1c8b   : > { %10509 = vmatprep.subr.bf16.mxu0 %v12032_v47 }
0x1c8c   : > { %10528 = vmatpush3.bf16.msra.mxu1 %v11597_v22  ;;  %v11632_v22 = vld [vmem:[#allocation3 + $0x568] sm:$0xff]  }
0x1c8d   : > { %10529 = vmatprep.subr.bf16.mxu1 %v12032_v47 }
0x1c8e   : > { %10510 = vmatpush3.bf16.msra.mxu0 %v11598_v23  ;;  %v11633_v23 = vld [vmem:[#allocation3 + $0x570] sm:$0xff]  }
0x1c8f   : > { %10511 = vmatprep.subr.bf16.mxu0 %v12032_v47 }
0x1c90   : > { %10530 = vmatpush3.bf16.msra.mxu1 %v11599_v24  ;;  %v11634_v24 = vld [vmem:[#allocation3 + $0x578] sm:$0xff]  }
0x1c91   : > { %10531 = vmatprep.subr.bf16.mxu1 %v12032_v47 }
0x1c92   : > { %10512 = vmatpush3.bf16.msra.mxu0 %v11600_v25 }
0x1c93   : > { %10513 = vmatprep.subr.bf16.mxu0 %v12032_v47 }
0x1c94   : > { %10532 = vmatpush3.bf16.msra.mxu1 %v11601_v26 }
0x1c95   : > { %10533 = vmatprep.subr.bf16.mxu1 %v12032_v47 }
0x1c96   : > { %10514 = vmatpush3.bf16.msra.mxu0 %v11602_v27 }
0x1c97   : > { %10515 = vmatprep.subr.bf16.mxu0 %v12032_v47 }
0x1c98   : > { %10534 = vmatpush3.bf16.msra.mxu1 %v11603_v29 }
0x1c99   : > { %10535 = vmatprep.subr.bf16.mxu1 %v12032_v47 }
0x1c9a   : > { %10516 = vmatpush3.bf16.msra.mxu0 %v11604_v30 }
0x1c9b   : > { %10517 = vmatprep.subr.bf16.mxu0 %v12032_v47 }
0x1c9c   : > { %10536 = vmatpush3.bf16.msra.mxu1 %v11605_v31 }
0x1c9d   : > { %10537 = vmatprep.subr.bf16.mxu1 %v12032_v47 }
0x1c9e   : > { %10518 = vmatpush3.bf16.msra.mxu0 %v11606_v33 }
0x1c9f   : > { %10519 = vmatprep.subr.bf16.mxu0 %v12032_v47 }
0x1ca0   : > { %10538 = vmatpush3.bf16.msra.mxu1 %v11607_v19 }
0x1ca1   : > { %10539 = vmatprep.subr.bf16.mxu1 %v12032_v47 }
0x1ca2   : > { %10520 = vmatpush3.bf16.msra.mxu0 %v11608_v35 }
0x1ca3   : > { %10545 = vmatprep.subr.bf16.mxu0 %v12032_v47 }
0x1ca4   : > { %10540 = vmatpush3.bf16.msra.mxu1 %v11609_v37 }
0x1ca5   : > { %10522 = vmatmul.mubr.msk.bf16.vlgmr.msra.gmra.mrb[104].mxu0 %vm12563_vm13, %v8581_v36  ;;  %10565 = vmatprep.subr.bf16.mxu1 %v12032_v47 }
0x1ca6   : > { %10546 = vmatpush3.bf16.msra.mxu0 %v11610_v38  ;;  %10561 = vmatprep.mubr.msk.bf16.mxu0 %vm12033_vm10, %v12032_v47 }
0x1ca7   : > { %10547 = vmatprep.subr.bf16.mxu0 %v12032_v47 }
0x1caa   : > { %10548 = vmatpush3.bf16.msra.mxu0 %v11611_v39  ;;  %v11635_v39 = vld [vmem:[#allocation5 + $0x6] ss:$0 sm:$0xff] }
0x1cab   : > { %10549 = vmatprep.subr.bf16.mxu0 %v12032_v47 }
0x1cae   : > { %10550 = vmatpush3.bf16.msra.mxu0 %v11612_v41 }
0x1caf   : > { %10551 = vmatprep.subr.bf16.mxu0 %v12032_v47 }
0x1cb2   : > { %10552 = vmatpush3.bf16.msra.mxu0 %v11613_v40 }
0x1cb3   : > { %10553 = vmatprep.subr.bf16.mxu0 %v12032_v47 }
0x1cb6   : > { %10554 = vmatpush3.bf16.msra.mxu0 %v11614_v42 }
0x1cb7   : > { %10555 = vmatprep.subr.bf16.mxu0 %v12032_v47 }
0x1cba   : > { %10556 = vmatpush3.bf16.msra.mxu0 %v11615_v43 }
0x1cbb   : > { %10557 = vmatprep.subr.bf16.mxu0 %v12032_v47 }
0x1cbe   : > { %10558 = vmatpush3.bf16.msra.mxu0 %v11616_v44 }
0x1cbf   : > { %10559 = vmatprep.subr.bf16.mxu0 %v12032_v47 }
0x1cc2   : > { %10560 = vmatpush3.bf16.msra.mxu0 %v11617_v45  ;;  %v11636_v45 = vld [vmem:[#allocation3 + $0x580] sm:$0xff]  }
0x1cc3   : > { %10585 = vmatprep.subr.mxu0 %v12032_v47 }
0x1d58   : > { %v6445_v46 = vpop.f32.mrb[100].mxu0 }
0x1d59   : > { %v10483_v49 = vpop.f32.mrb[101].mxu0 }
0x1d5a   : > { %v6448_v51 = vpop.f32.mrb[102].mxu0  ;;  %v6485_v52 = vpop.f32.mrb[104].mxu1  ;;  %v11638_v49 = vld [vmem:[#allocation3 + $0x590] sm:$0xff]  }
0x1d5b   : > { %v6486_v9 = vadd.f32 %v6485_v52, %v6445_v46  ;;  %v10484_v53 = vpop.f32.mrb[103].mxu0  ;;  %v10503_v56 = vpop.f32.mrb[105].mxu1  ;;  %v11637_v46 = vld [vmem:[#allocation3 + $0x588] sm:$0xff]   ;;  %v11639_v51 = vld [vmem:[#allocation3 + $0x598] sm:$0xff]   ;;  %v11640_v52 = vld [vmem:[#allocation3 + $0x5a0] sm:$0xff]  }
0x1d5c   : > { %v6488_v54 = vpop.f32.mrb[106].mxu1  ;;  %v11642_v53 = vld [vmem:[#allocation3 + $0x5b0] sm:$0xff]   ;;  %v11643_v56 = vld [vmem:[#allocation3 + $0x5b8] sm:$0xff]  }
0x1d5d   : > { %v10504_v55 = vpop.f32.mrb[107].mxu1 }
0x1d78   : > { %v6526_v57 = vpop.f32.mrb[104].mxu0 }
0x1d79   : > { %v6532_v58 = vadd.f32 %v6526_v57, %v6486_v9  ;;  %v10523_v59 = vpop.f32.mrb[105].mxu0  ;;  %v11641_v9 = vld [vmem:[#allocation3 + $0x5a8] sm:$0xff]  }
0x1d7a   : > { %v6529_v61 = vpop.f32.mrb[106].mxu0 }
0x1d7b   : > { %v6533_v63 = vadd.f32 %v11618_v62, %v6532_v58  ;;  %v10524_v0 = vpop.f32.mrb[107].mxu0 }
0x1d7c   : > { %v11645_v0 = vld [vmem:[#allocation3 + $0x640] sm:$0xff]  }
0x1d7d   : > { %v6534_v1 = vmax.f32 %v6533_v63, 0.0  ;;  %v11644_v63 = vld [vmem:[#allocation3 + $0x5c0] sm:$0xff]  }
0x1d7f   : > { %v6536_v2 = vrot.slane %v6534_v1, 7  ;;  %v6543_v3 = vpack.c.bf16 %v6534_v1, %v6534_v1  ;;  %v6539_v13 = vrot.slane %v6534_v1, 1  ;;  %v11646_v1 = vld [vmem:[#allocation3 + $0x5c8] sm:$0xff]  }
0x1d81   : > { %v8586_v4 = vpack.c.bf16 %v6536_v2, %v6536_v2  ;;  %10542 = vmatmul.mubr.bf16.vlgmr.msra.gmra.mrb[108].mxu1 %v6543_v3  ;;  %v8589_v16 = vpack.c.bf16 %v6539_v13, %v6539_v13  ;;  %v11647_v2 = vld [vmem:[#allocation3 + $0x648] sm:$0xff]   ;;  %v11648_v3 = vld [vmem:[#allocation3 + $0x5d0] sm:$0xff]  }
0x1d82   : > { %10566 = vmatpush3.bf16.msra.mxu1 %v11619_v14  ;;  %10581 = vmatprep.mubr.msk.bf16.mxu1 %vm12033_vm10, %v12032_v47  ;;  %v11650_v14 = vld [vmem:[#allocation3 + $0x5d8] sm:$0xff]  }
0x1d83   : > { %10562 = vmatmul.mubr.msk.bf16.vlgmr.msra.gmra.mrb[108].mxu0 %vm12544_vm12, %v8586_v4  ;;  %10567 = vmatprep.subr.bf16.mxu1 %v12032_v47  ;;  %v11649_v4 = vld [vmem:[#allocation3 + $0x650] sm:$0xff]  }
0x1d84   : > { %10587 = vmatprep.mubr.msk.f32.mxu0 %vm12033_vm10, %v12032_v47 }
0x1d86   : > { %10568 = vmatpush3.bf16.msra.mxu1 %v11620_v5  ;;  %v11651_v5 = vld [vmem:[#allocation3 + $0x658] sm:$0xff]  }
0x1d87   : > { %10569 = vmatprep.subr.bf16.mxu1 %v12032_v47 }
0x1d8a   : > { %10570 = vmatpush3.bf16.msra.mxu1 %v11621_v6  ;;  %v11652_v6 = vld [vmem:[#allocation3 + $0x5e0] sm:$0xff]  }
0x1d8b   : > { %10571 = vmatprep.subr.bf16.mxu1 %v12032_v47 }
0x1d8e   : > { %10572 = vmatpush3.bf16.msra.mxu1 %v11622_v7  ;;  %v11653_v7 = vld [vmem:[#allocation3 + $0x660] sm:$0xff]  }
0x1d8f   : > { %10573 = vmatprep.subr.bf16.mxu1 %v12032_v47 }
0x1d92   : > { %10574 = vmatpush3.bf16.msra.mxu1 %v11623_v8  ;;  %v11654_v8 = vld [vmem:[#allocation3 + $0x5e8] sm:$0xff]  }
0x1d93   : > { %10575 = vmatprep.subr.bf16.mxu1 %v12032_v47 }
0x1d96   : > { %10576 = vmatpush3.bf16.msra.mxu1 %v11624_v10  ;;  %v11655_v10 = vld [vmem:[#allocation3 + $0x668] sm:$0xff]  }
0x1d97   : > { %10577 = vmatprep.subr.bf16.mxu1 %v12032_v47 }
0x1d9a   : > { %10578 = vmatpush3.bf16.msra.mxu1 %v11625_v12  ;;  %v11656_v12 = vld [vmem:[#allocation3 + $0x5f0] sm:$0xff]  }
0x1d9b   : > { %10579 = vmatprep.subr.bf16.mxu1 %v12032_v47 }
0x1d9e   : > { %10580 = vmatpush3.bf16.msra.mxu1 %v11626_v15  ;;  %v11657_v15 = vld [vmem:[#allocation3 + $0x670] sm:$0xff]  }
0x1d9f   : > { %10610 = vmatprep.subr.bf16.mxu1 %v12032_v47 }
0x1da1   : > { %10582 = vmatmul.mubr.msk.bf16.vlgmr.msra.gmra.mrb[112].mxu1 %vm12563_vm13, %v8589_v16  ;;  %v11658_v16 = vld [vmem:[#allocation3 + $0x5f8] sm:$0xff]  }
0x1da2   : > { %10611 = vmatpush3.bf16.msra.mxu1 %v11627_v17  ;;  %10626 = vmatprep.mubr.msk.bf16.mxu1 %vm12033_vm10, %v12032_v47 }
0x1da3   : > { %10612 = vmatprep.subr.bf16.mxu1 %v12032_v47 }
0x1da6   : > { %10613 = vmatpush3.bf16.msra.mxu1 %v11628_v18  ;;  %v11659_v18 = vld [vmem:[#allocation3 + $0x678] sm:$0xff]  }
0x1da7   : > { %10614 = vmatprep.subr.bf16.mxu1 %v12032_v47 }
0x1daa   : > { %10615 = vmatpush3.bf16.msra.mxu1 %v11629_v20  ;;  %v11660_v20 = vld [vmem:[#allocation3 + $0x600] sm:$0xff]  }
0x1dab   : > { %10616 = vmatprep.subr.bf16.mxu1 %v12032_v47 }
0x1dae   : > { %10617 = vmatpush3.bf16.msra.mxu1 %v11630_v21  ;;  %v11661_v21 = vld [vmem:[#allocation3 + $0x608] sm:$0xff]  }
0x1daf   : > { %10618 = vmatprep.subr.bf16.mxu1 %v12032_v47 }
0x1db2   : > { %10619 = vmatpush3.bf16.msra.mxu1 %v11631_v60  ;;  %v11662_v60 = vld [vmem:[#allocation3 + $0x610] sm:$0xff]  }
0x1db3   : > { %10620 = vmatprep.subr.bf16.mxu1 %v12032_v47 }
0x1db6   : > { %10621 = vmatpush3.bf16.msra.mxu1 %v11632_v22  ;;  %v11663_v22 = vld [vmem:[#allocation3 + $0x618] sm:$0xff]  }
0x1db7   : > { %10622 = vmatprep.subr.bf16.mxu1 %v12032_v47 }
0x1dba   : > { %10623 = vmatpush3.bf16.msra.mxu1 %v11633_v23  ;;  %v11664_v23 = vld [vmem:[#allocation3 + $0x620] sm:$0xff]  }
0x1dbb   : > { %10624 = vmatprep.subr.bf16.mxu1 %v12032_v47 }
0x1dbe   : > { %10625 = vmatpush3.bf16.msra.mxu1 %v11634_v24  ;;  %v11665_v24 = vld [vmem:[#allocation3 + $0x628] sm:$0xff]  }
0x1dbf   : > { %10650 = vmatprep.subr.bf16.mxu1 %v12032_v47 }
0x1e54   : > { %v6578_v25 = vpop.f32.mrb[108].mxu1 }
0x1e55   : > { %v10543_v26 = vpop.f32.mrb[109].mxu1 }
0x1e56   : > { %v6581_v27 = vpop.f32.mrb[110].mxu1  ;;  %v6618_v29 = vpop.f32.mrb[108].mxu0  ;;  %v11667_v26 = vld [vmem:[#allocation3 + $0x638] sm:$0xff]  }
0x1e57   : > { %v6619_v30 = vadd.f32 %v6618_v29, %v6578_v25  ;;  %v10544_v31 = vpop.f32.mrb[111].mxu1  ;;  %v10563_v33 = vpop.f32.mrb[109].mxu0  ;;  %v11666_v25 = vld [vmem:[#allocation3 + $0x630] sm:$0xff]  }
0x1e58   : > { %v6621_v34 = vpop.f32.mrb[110].mxu0 }
0x1e59   : > { %v10564_v19 = vpop.f32.mrb[111].mxu0 }
0x1e74   : > { %v6659_v35 = vpop.f32.mrb[112].mxu1 }
0x1e75   : > { %v6665_v36 = vadd.f32 %v6659_v35, %v6619_v30  ;;  %v10583_v37 = vpop.f32.mrb[113].mxu1 }
0x1e76   : > { %v6662_v38 = vpop.f32.mrb[114].mxu1 }
0x1e77   : > { %v6666_v41 = vadd.f32 %v11635_v39, %v6665_v36  ;;  %v10584_v40 = vpop.f32.mrb[115].mxu1 }
0x1e78   : > { %v11668_v40 = vld [vmem:[#allocation5 + $0x7] ss:$0 sm:$0xff] }
0x1e79   : > { %v6667_v42 = vmax.f32 %v6666_v41, 0.0 }
0x1e7b   : > { %v6669_v43 = vrot.slane %v6667_v42, 1 }
0x1e7d   : > { %v6672_v44 = vmax.f32 %v6667_v42, %v6669_v43 }
0x1e7f   : > { %10586 = vmatpush3.msra.mxu0 %v6672_v44 }
0x1e80   : > { %10588 = vmatmul.mubr.msk.f32.vlgmr.msra.gmra.mrb[112].mxu0 %vm3189_vm14, %v12419_v48  ;;  %10590 = vmatprep.subr.bf16.mxu0 %v12032_v47 }
0x1e81   : > { %10591 = vmatpush3.bf16.msra.mxu0 %v11636_v45  ;;  %10606 = vmatprep.mubr.msk.bf16.mxu0 %vm12033_vm10, %v12032_v47 }
0x1e82   : > { %10592 = vmatprep.subr.bf16.mxu0 %v12032_v47 }
0x1e85   : > { %10593 = vmatpush3.bf16.msra.mxu0 %v11637_v46 }
0x1e86   : > { %10594 = vmatprep.subr.bf16.mxu0 %v12032_v47 }
0x1e89   : > { %10595 = vmatpush3.bf16.msra.mxu0 %v11638_v49 }
0x1e8a   : > { %10596 = vmatprep.subr.bf16.mxu0 %v12032_v47 }
0x1e8d   : > { %10597 = vmatpush3.bf16.msra.mxu0 %v11639_v51  ;;  %v11669_v51 = vld [vmem:[#allocation3 + $0x680] sm:$0xff]  }
0x1e8e   : > { %10598 = vmatprep.subr.bf16.mxu0 %v12032_v47 }
0x1e91   : > { %10599 = vmatpush3.bf16.msra.mxu0 %v11640_v52  ;;  %v11670_v52 = vld [vmem:[#allocation3 + $0x700] sm:$0xff]  }
0x1e92   : > { %10600 = vmatprep.subr.bf16.mxu0 %v12032_v47 }
0x1e95   : > { %10601 = vmatpush3.bf16.msra.mxu0 %v11641_v9  ;;  %v11671_v9 = vld [vmem:[#allocation3 + $0x688] sm:$0xff]  }
0x1e96   : > { %10602 = vmatprep.subr.bf16.mxu0 %v12032_v47 }
0x1e99   : > { %10603 = vmatpush3.bf16.msra.mxu0 %v11642_v53  ;;  %v11672_v53 = vld [vmem:[#allocation3 + $0x708] sm:$0xff]  }
0x1e9a   : > { %10604 = vmatprep.subr.bf16.mxu0 %v12032_v47 }
0x1e9d   : > { %10605 = vmatpush3.bf16.msra.mxu0 %v11643_v56  ;;  %v11673_v56 = vld [vmem:[#allocation3 + $0x690] sm:$0xff]  }
0x1e9e   : > { %10630 = vmatprep.subr.bf16.mxu0 %v12032_v47 }
0x1f53   : > { %v6739_v54 = vpop.f32.mrb[112].mxu0 }
0x1f54   : > { %6743 = vrot.lane.b32.xlu1 %v6739_v54, %s12037_s14  ;;  %v10589_v55 = vpop.f32.mrb[113].mxu0 }
0x1f55   : > { %v11675_v55 = vld [vmem:[#allocation3 + $0x698] sm:$0xff]  }
0x1fc6   : > { %v6744_v57 = vpop.permute.xlu1 %6743 }
0x1fc7   : > { %v6745_v58 = vmax.f32 %v6739_v54, %v6744_v57  ;;  %v11674_v54 = vld [vmem:[#allocation3 + $0x710] sm:$0xff]   ;;  %v11676_v57 = vld [vmem:[#allocation3 + $0x718] sm:$0xff]  }
0x1fc9   : > { %v6747_v59 = vrot.slane %v6745_v58, 7  ;;  %v6754_v61 = vpack.c.bf16 %v6745_v58, %v6745_v58  ;;  %v6750_v13 = vrot.slane %v6745_v58, 1  ;;  %v11677_v58 = vld [vmem:[#allocation3 + $0x6a0] sm:$0xff]  }
0x1fcb   : > { %v8595_v62 = vpack.c.bf16 %v6747_v59, %v6747_v59  ;;  %10607 = vmatmul.mubr.bf16.vlgmr.msra.gmra.mrb[116].mxu0 %v6754_v61  ;;  %v8598_v17 = vpack.c.bf16 %v6750_v13, %v6750_v13  ;;  %v11678_v59 = vld [vmem:[#allocation3 + $0x720] sm:$0xff]   ;;  %v11679_v61 = vld [vmem:[#allocation3 + $0x6a8] sm:$0xff]   ;;  %v11692_v13 = vld [vmem:[#allocation3 + $0x6f8] sm:$0xff]  }
0x1fcc   : > { %10631 = vmatpush3.bf16.msra.mxu0 %v11644_v63  ;;  %10646 = vmatprep.mubr.msk.bf16.mxu0 %vm12033_vm10, %v12032_v47  ;;  %v11681_v63 = vld [vmem:[#allocation3 + $0x6b0] sm:$0xff]  }
0x1fcd   : > { %10627 = vmatmul.mubr.msk.bf16.vlgmr.msra.gmra.mrb[116].mxu1 %vm12544_vm12, %v8595_v62  ;;  %10632 = vmatprep.subr.bf16.mxu0 %v12032_v47  ;;  %v11680_v62 = vld [vmem:[#allocation3 + $0x728] sm:$0xff]  }
0x1fce   : > { %10651 = vmatpush3.bf16.msra.mxu1 %v11645_v0  ;;  %10666 = vmatprep.mubr.msk.bf16.mxu1 %vm12033_vm10, %v12032_v47 }
0x1fcf   : > { %10652 = vmatprep.subr.bf16.mxu1 %v12032_v47 }
0x1fd0   : > { %10633 = vmatpush3.bf16.msra.mxu0 %v11646_v1  ;;  %v11682_v1 = vld [vmem:[#allocation3 + $0x730] sm:$0xff]  }
0x1fd1   : > { %10634 = vmatprep.subr.bf16.mxu0 %v12032_v47 }
0x1fd2   : > { %10653 = vmatpush3.bf16.msra.mxu1 %v11647_v2  ;;  %v11683_v2 = vld [vmem:[#allocation3 + $0x6b8] sm:$0xff]  }
0x1fd3   : > { %10654 = vmatprep.subr.bf16.mxu1 %v12032_v47 }
0x1fd4   : > { %10635 = vmatpush3.bf16.msra.mxu0 %v11648_v3 }
0x1fd5   : > { %10636 = vmatprep.subr.bf16.mxu0 %v12032_v47 }
0x1fd6   : > { %10655 = vmatpush3.bf16.msra.mxu1 %v11649_v4  ;;  %v11684_v4 = vld [vmem:[#allocation3 + $0x738] sm:$0xff]  }
0x1fd7   : > { %10656 = vmatprep.subr.bf16.mxu1 %v12032_v47 }
0x1fd8   : > { %10637 = vmatpush3.bf16.msra.mxu0 %v11650_v14  ;;  %v11685_v14 = vld [vmem:[#allocation3 + $0x6c0] sm:$0xff]  }
0x1fd9   : > { %10638 = vmatprep.subr.bf16.mxu0 %v12032_v47 }
0x1fda   : > { %10657 = vmatpush3.bf16.msra.mxu1 %v11651_v5  ;;  %v11686_v5 = vld [vmem:[#allocation3 + $0x6c8] sm:$0xff]  }
0x1fdb   : > { %10658 = vmatprep.subr.bf16.mxu1 %v12032_v47 }
0x1fdc   : > { %10639 = vmatpush3.bf16.msra.mxu0 %v11652_v6  ;;  %v11687_v6 = vld [vmem:[#allocation3 + $0x6d0] sm:$0xff]  }
0x1fdd   : > { %10640 = vmatprep.subr.bf16.mxu0 %v12032_v47 }
0x1fde   : > { %10659 = vmatpush3.bf16.msra.mxu1 %v11653_v7  ;;  %v11688_v7 = vld [vmem:[#allocation3 + $0x6d8] sm:$0xff]  }
0x1fdf   : > { %10660 = vmatprep.subr.bf16.mxu1 %v12032_v47 }
0x1fe0   : > { %10641 = vmatpush3.bf16.msra.mxu0 %v11654_v8  ;;  %v11689_v8 = vld [vmem:[#allocation3 + $0x6e0] sm:$0xff]  }
0x1fe1   : > { %10642 = vmatprep.subr.bf16.mxu0 %v12032_v47 }
0x1fe2   : > { %10661 = vmatpush3.bf16.msra.mxu1 %v11655_v10  ;;  %v11690_v10 = vld [vmem:[#allocation3 + $0x6e8] sm:$0xff]  }
0x1fe3   : > { %10662 = vmatprep.subr.bf16.mxu1 %v12032_v47 }
0x1fe4   : > { %10643 = vmatpush3.bf16.msra.mxu0 %v11656_v12  ;;  %v11691_v12 = vld [vmem:[#allocation3 + $0x6f0] sm:$0xff]  }
0x1fe5   : > { %10644 = vmatprep.subr.bf16.mxu0 %v12032_v47 }
0x1fe6   : > { %10663 = vmatpush3.bf16.msra.mxu1 %v11657_v15 }
0x1fe7   : > { %10664 = vmatprep.subr.bf16.mxu1 %v12032_v47 }
0x1fe8   : > { %10645 = vmatpush3.bf16.msra.mxu0 %v11658_v16 }
0x1fe9   : > { %10670 = vmatprep.subr.bf16.mxu0 %v12032_v47 }
0x1fea   : > { %10665 = vmatpush3.bf16.msra.mxu1 %v11659_v18 }
0x1feb   : > { %10647 = vmatmul.mubr.msk.bf16.vlgmr.msra.gmra.mrb[120].mxu0 %vm12677_vm3, %v8598_v17  ;;  %10690 = vmatprep.subr.bf16.mxu1 %v12032_v47 }
0x1fec   : > { %10671 = vmatpush3.bf16.msra.mxu0 %v11660_v20  ;;  %10686 = vmatprep.mubr.msk.bf16.mxu0 %vm12033_vm10, %v12032_v47 }
0x1fed   : > { %10672 = vmatprep.subr.bf16.mxu0 %v12032_v47 }
0x1ff0   : > { %10673 = vmatpush3.bf16.msra.mxu0 %v11661_v21 }
0x1ff1   : > { %10674 = vmatprep.subr.bf16.mxu0 %v12032_v47 }
0x1ff4   : > { %10675 = vmatpush3.bf16.msra.mxu0 %v11662_v60 }
0x1ff5   : > { %10676 = vmatprep.subr.bf16.mxu0 %v12032_v47 }
0x1ff8   : > { %10677 = vmatpush3.bf16.msra.mxu0 %v11663_v22 }
0x1ff9   : > { %10678 = vmatprep.subr.bf16.mxu0 %v12032_v47 }
0x1ffc   : > { %10679 = vmatpush3.bf16.msra.mxu0 %v11664_v23 }
0x1ffd   : > { %10680 = vmatprep.subr.bf16.mxu0 %v12032_v47 }
0x2000   : > { %10681 = vmatpush3.bf16.msra.mxu0 %v11665_v24 }
0x2001   : > { %10682 = vmatprep.subr.bf16.mxu0 %v12032_v47 }
0x2004   : > { %10683 = vmatpush3.bf16.msra.mxu0 %v11666_v25 }
0x2005   : > { %10684 = vmatprep.subr.bf16.mxu0 %v12032_v47 }
0x2008   : > { %10685 = vmatpush3.bf16.msra.mxu0 %v11667_v26 }
0x2009   : > { %10710 = vmatprep.subr.bf16.mxu0 %v12032_v47 }
0x209e   : > { %v6789_v27 = vpop.f32.mrb[116].mxu0 }
0x209f   : > { %v10608_v29 = vpop.f32.mrb[117].mxu0 }
0x20a0   : > { %v6792_v30 = vpop.f32.mrb[118].mxu0  ;;  %v6829_v31 = vpop.f32.mrb[116].mxu1  ;;  %v11693_v29 = vld [vmem:[#allocation5 + $0x8] ss:$0 sm:$0xff] }
0x20a1   : > { %v6830_v33 = vadd.f32 %v6829_v31, %v6789_v27  ;;  %v10609_v34 = vpop.f32.mrb[119].mxu0  ;;  %v10628_v19 = vpop.f32.mrb[117].mxu1 }
0x20a2   : > { %v6832_v35 = vpop.f32.mrb[118].mxu1 }
0x20a3   : > { %v10629_v36 = vpop.f32.mrb[119].mxu1 }
0x20a4   : > { %v11694_v36 = vld [vmem:[#allocation3 + $0x740] sm:$0xff]  }
0x20be   : > { %v6870_v37 = vpop.f32.mrb[120].mxu0 }
0x20bf   : > { %v6876_v38 = vadd.f32 %v6870_v37, %v6830_v33  ;;  %v10648_v39 = vpop.f32.mrb[121].mxu0  ;;  %v11695_v37 = vld [vmem:[#allocation3 + $0x748] sm:$0xff]  }
0x20c0   : > { %v6873_v41 = vpop.f32.mrb[122].mxu0  ;;  %v11697_v39 = vld [vmem:[#allocation3 + $0x758] sm:$0xff]  }
0x20c1   : > { %v6877_v42 = vadd.f32 %v11668_v40, %v6876_v38  ;;  %v10649_v43 = vpop.f32.mrb[123].mxu0  ;;  %v11696_v38 = vld [vmem:[#allocation3 + $0x750] sm:$0xff]   ;;  %v11698_v41 = vld [vmem:[#allocation3 + $0x760] sm:$0xff]   ;;  %v11699_v40 = vld [vmem:[#allocation3 + $0x768] sm:$0xff]  }
0x20c3   : > { %v6878_v44 = vmax.f32 %v6877_v42, 0.0  ;;  %v11700_v42 = vld [vmem:[#allocation3 + $0x770] sm:$0xff]  }
0x20c5   : > { %v6880_v45 = vrot.slane %v6878_v44, 7  ;;  %v6887_v46 = vpack.c.bf16 %v6878_v44, %v6878_v44  ;;  %v6883_v0 = vrot.slane %v6878_v44, 1  ;;  %v11701_v44 = vld [vmem:[#allocation3 + $0x778] sm:$0xff]  }
0x20c7   : > { %v8603_v49 = vpack.c.bf16 %v6880_v45, %v6880_v45  ;;  %10667 = vmatmul.mubr.bf16.vlgmr.msra.gmra.mrb[120].mxu1 %v6887_v46  ;;  %v8606_v3 = vpack.c.bf16 %v6883_v0, %v6883_v0  ;;  %v11702_v46 = vld [vmem:[#allocation3 + $0x780] sm:$0xff]  }
0x20c8   : > { %10691 = vmatpush3.bf16.msra.mxu1 %v11669_v51  ;;  %10706 = vmatprep.mubr.msk.bf16.mxu1 %vm12033_vm10, %v12032_v47  ;;  %v11704_v51 = vld [vmem:[#allocation3 + $0x790] sm:$0xff]  }
0x20c9   : > { %10687 = vmatmul.mubr.msk.bf16.vlgmr.msra.gmra.mrb[124].mxu0 %vm12544_vm12, %v8603_v49  ;;  %10692 = vmatprep.subr.bf16.mxu1 %v12032_v47  ;;  %v11703_v49 = vld [vmem:[#allocation3 + $0x788] sm:$0xff]  }
0x20ca   : > { %10711 = vmatpush3.bf16.msra.mxu0 %v11670_v52  ;;  %10726 = vmatprep.mubr.msk.bf16.mxu0 %vm12033_vm10, %v12032_v47  ;;  %v11705_v52 = vld [vmem:[#allocation3 + $0x798] sm:$0xff]  }
0x20cb   : > { %10712 = vmatprep.subr.bf16.mxu0 %v12032_v47 }
0x20cc   : > { %10693 = vmatpush3.bf16.msra.mxu1 %v11671_v9  ;;  %v11707_v9 = vld [vmem:[#allocation3 + $0x7a8] sm:$0xff]  }
0x20cd   : > { %10694 = vmatprep.subr.bf16.mxu1 %v12032_v47 }
0x20ce   : > { %10713 = vmatpush3.bf16.msra.mxu0 %v11672_v53  ;;  %v11708_v53 = vld [vmem:[#allocation3 + $0x7b0] sm:$0xff]  }
0x20cf   : > { %10714 = vmatprep.subr.bf16.mxu0 %v12032_v47 }
0x20d0   : > { %10695 = vmatpush3.bf16.msra.mxu1 %v11673_v56  ;;  %v11709_v56 = vld [vmem:[#allocation3 + $0x7b8] sm:$0xff]  }
0x20d1   : > { %10696 = vmatprep.subr.bf16.mxu1 %v12032_v47 }
0x20d2   : > { %10715 = vmatpush3.bf16.msra.mxu0 %v11674_v54 }
0x20d3   : > { %10716 = vmatprep.subr.bf16.mxu0 %v12032_v47 }
0x20d4   : > { %10697 = vmatpush3.bf16.msra.mxu1 %v11675_v55 }
0x20d5   : > { %10698 = vmatprep.subr.bf16.mxu1 %v12032_v47 }
0x20d6   : > { %10717 = vmatpush3.bf16.msra.mxu0 %v11676_v57 }
0x20d7   : > { %10718 = vmatprep.subr.bf16.mxu0 %v12032_v47 }
0x20d8   : > { %10699 = vmatpush3.bf16.msra.mxu1 %v11677_v58 }
0x20d9   : > { %10700 = vmatprep.subr.bf16.mxu1 %v12032_v47 }
0x20da   : > { %10719 = vmatpush3.bf16.msra.mxu0 %v11678_v59 }
0x20db   : > { %10720 = vmatprep.subr.bf16.mxu0 %v12032_v47 }
0x20dc   : > { %10701 = vmatpush3.bf16.msra.mxu1 %v11679_v61 }
0x20dd   : > { %10702 = vmatprep.subr.bf16.mxu1 %v12032_v47 }
0x20de   : > { %10721 = vmatpush3.bf16.msra.mxu0 %v11680_v62 }
0x20df   : > { %10722 = vmatprep.subr.bf16.mxu0 %v12032_v47 }
0x20e0   : > { %10703 = vmatpush3.bf16.msra.mxu1 %v11681_v63 }
0x20e1   : > { %10704 = vmatprep.subr.bf16.mxu1 %v12032_v47 }
0x20e2   : > { %10723 = vmatpush3.bf16.msra.mxu0 %v11682_v1 }
0x20e3   : > { %10724 = vmatprep.subr.bf16.mxu0 %v12032_v47 }
0x20e4   : > { %10705 = vmatpush3.bf16.msra.mxu1 %v11683_v2 }
0x20e5   : > { %10730 = vmatprep.subr.bf16.mxu1 %v12032_v47 }
0x20e6   : > { %10725 = vmatpush3.bf16.msra.mxu0 %v11684_v4 }
0x20e7   : > { %10707 = vmatmul.mubr.msk.bf16.vlgmr.msra.gmra.mrb[124].mxu1 %vm12677_vm3, %v8606_v3  ;;  %10750 = vmatprep.subr.bf16.mxu0 %v12032_v47 }
0x20e8   : > { %10731 = vmatpush3.bf16.msra.mxu1 %v11685_v14  ;;  %10746 = vmatprep.mubr.msk.bf16.mxu1 %vm12033_vm10, %v12032_v47  ;;  %v11710_v14 = vld [vmem:[#allocation5 + $0x9] ss:$0 sm:$0xff] }
0x20e9   : > { %10732 = vmatprep.subr.bf16.mxu1 %v12032_v47 }
0x20ec   : > { %10733 = vmatpush3.bf16.msra.mxu1 %v11686_v5 }
0x20ed   : > { %10734 = vmatprep.subr.bf16.mxu1 %v12032_v47 }
0x20f0   : > { %10735 = vmatpush3.bf16.msra.mxu1 %v11687_v6 }
0x20f1   : > { %10736 = vmatprep.subr.bf16.mxu1 %v12032_v47 }
0x20f4   : > { %10737 = vmatpush3.bf16.msra.mxu1 %v11688_v7 }
0x20f5   : > { %10738 = vmatprep.subr.bf16.mxu1 %v12032_v47 }
0x20f8   : > { %10739 = vmatpush3.bf16.msra.mxu1 %v11689_v8 }
0x20f9   : > { %10740 = vmatprep.subr.bf16.mxu1 %v12032_v47 }
0x20fc   : > { %10741 = vmatpush3.bf16.msra.mxu1 %v11690_v10 }
0x20fd   : > { %10742 = vmatprep.subr.bf16.mxu1 %v12032_v47 }
0x2100   : > { %10743 = vmatpush3.bf16.msra.mxu1 %v11691_v12 }
0x2101   : > { %10744 = vmatprep.subr.bf16.mxu1 %v12032_v47 }
0x2104   : > { %10745 = vmatpush3.bf16.msra.mxu1 %v11692_v13 }
0x2105   : > { %10770 = vmatprep.subr.mxu1 %v12032_v47 }
0x219a   : > { %v6922_v15 = vpop.f32.mrb[120].mxu1 }
0x219b   : > { %v10668_v16 = vpop.f32.mrb[121].mxu1 }
0x219c   : > { %v6925_v17 = vpop.f32.mrb[122].mxu1  ;;  %v6962_v18 = vpop.f32.mrb[124].mxu0  ;;  %v11712_v16 = vld [vmem:[#allocation3 + $0x7c8] sm:$0xff]  }
0x219d   : > { %v6963_v20 = vadd.f32 %v6962_v18, %v6922_v15  ;;  %v10669_v21 = vpop.f32.mrb[123].mxu1  ;;  %v10688_v60 = vpop.f32.mrb[125].mxu0  ;;  %v11711_v15 = vld [vmem:[#allocation3 + $0x7c0] sm:$0xff]   ;;  %v11713_v17 = vld [vmem:[#allocation3 + $0x7d0] sm:$0xff]   ;;  %v11714_v18 = vld [vmem:[#allocation3 + $0x7d8] sm:$0xff]  }
0x219e   : > { %v6965_v22 = vpop.f32.mrb[126].mxu0  ;;  %v11717_v21 = vld [vmem:[#allocation3 + $0x7f0] sm:$0xff]   ;;  %v11718_v60 = vld [vmem:[#allocation3 + $0x7f8] sm:$0xff]  }
0x219f   : > { %v10689_v23 = vpop.f32.mrb[127].mxu0 }
0x21ba   : > { %v7003_v24 = vpop.f32.mrb[124].mxu1 }
0x21bb   : > { %v7009_v25 = vadd.f32 %v7003_v24, %v6963_v20  ;;  %v10708_v26 = vpop.f32.mrb[125].mxu1  ;;  %v11716_v20 = vld [vmem:[#allocation3 + $0x7e8] sm:$0xff]  }
0x21bc   : > { %v7006_v27 = vpop.f32.mrb[126].mxu1 }
0x21bd   : > { %v7010_v30 = vadd.f32 %v11693_v29, %v7009_v25  ;;  %v10709_v31 = vpop.f32.mrb[127].mxu1 }
0x21be   : > { %v11720_v31 = vld [vmem:[#allocation3 + $0x880] sm:$0xff]  }
0x21bf   : > { %v7011_v33 = vmax.f32 %v7010_v30, 0.0  ;;  %v11719_v30 = vld [vmem:[#allocation3 + $0x800] sm:$0xff]  }
0x21c1   : > { %v7013_v34 = vrot.slane %v7011_v33, 7  ;;  %v7020_v19 = vpack.c.bf16 %v7011_v33, %v7011_v33  ;;  %v7016_v43 = vrot.slane %v7011_v33, 1  ;;  %v11721_v33 = vld [vmem:[#allocation3 + $0x808] sm:$0xff]  }
0x21c3   : > { %v8611_v35 = vpack.c.bf16 %v7013_v34, %v7013_v34  ;;  %10727 = vmatmul.mubr.bf16.vlgmr.msra.gmra.mrb[128].mxu0 %v7020_v19  ;;  %v8614_v45 = vpack.c.bf16 %v7016_v43, %v7016_v43  ;;  %v11722_v34 = vld [vmem:[#allocation3 + $0x888] sm:$0xff]   ;;  %v11723_v19 = vld [vmem:[#allocation3 + $0x810] sm:$0xff]   ;;  %v11731_v43 = vld [vmem:[#allocation3 + $0x8c0] sm:$0xff]  }
0x21c4   : > { %10751 = vmatpush3.bf16.msra.mxu0 %v11694_v36  ;;  %10766 = vmatprep.mubr.msk.bf16.mxu0 %vm12033_vm10, %v12032_v47  ;;  %v11726_v36 = vld [vmem:[#allocation3 + $0x898] sm:$0xff]  }
0x21c5   : > { %10747 = vmatmul.mubr.msk.bf16.vlgmr.msra.gmra.mrb[128].mxu1 %vm12544_vm12, %v8611_v35  ;;  %10752 = vmatprep.subr.bf16.mxu0 %v12032_v47  ;;  %v11725_v35 = vld [vmem:[#allocation3 + $0x818] sm:$0xff]  }
0x21c6   : > { %10772 = vmatprep.mubr.msk.f32.mxu1 %vm12033_vm10, %v12032_v47 }
0x21c8   : > { %10753 = vmatpush3.bf16.msra.mxu0 %v11695_v37  ;;  %v11727_v37 = vld [vmem:[#allocation3 + $0x820] sm:$0xff]  }
0x21c9   : > { %10754 = vmatprep.subr.bf16.mxu0 %v12032_v47 }
0x21cc   : > { %10755 = vmatpush3.bf16.msra.mxu0 %v11696_v38  ;;  %v11728_v38 = vld [vmem:[#allocation3 + $0x828] sm:$0xff]  }
0x21cd   : > { %10756 = vmatprep.subr.bf16.mxu0 %v12032_v47 }
0x21d0   : > { %10757 = vmatpush3.bf16.msra.mxu0 %v11697_v39  ;;  %v11729_v39 = vld [vmem:[#allocation3 + $0x830] sm:$0xff]  }
0x21d1   : > { %10758 = vmatprep.subr.bf16.mxu0 %v12032_v47 }
0x21d4   : > { %10759 = vmatpush3.bf16.msra.mxu0 %v11698_v41 }
0x21d5   : > { %10760 = vmatprep.subr.bf16.mxu0 %v12032_v47 }
0x21d8   : > { %10761 = vmatpush3.bf16.msra.mxu0 %v11699_v40  ;;  %v11730_v40 = vld [vmem:[#allocation3 + $0x838] sm:$0xff]  }
0x21d9   : > { %10762 = vmatprep.subr.bf16.mxu0 %v12032_v47 }
0x21dc   : > { %10763 = vmatpush3.bf16.msra.mxu0 %v11700_v42 }
0x21dd   : > { %10764 = vmatprep.subr.bf16.mxu0 %v12032_v47 }
0x21e0   : > { %10765 = vmatpush3.bf16.msra.mxu0 %v11701_v44  ;;  %v11732_v44 = vld [vmem:[#allocation3 + $0x8c8] sm:$0xff]  }
0x21e1   : > { %10795 = vmatprep.subr.bf16.mxu0 %v12032_v47 }
0x21e3   : > { %10767 = vmatmul.mubr.msk.bf16.vlgmr.msra.gmra.mrb[132].mxu0 %vm12677_vm3, %v8614_v45  ;;  %v11733_v45 = vld [vmem:[#allocation3 + $0x8d0] sm:$0xff]  }
0x21e4   : > { %10796 = vmatpush3.bf16.msra.mxu0 %v11702_v46  ;;  %10811 = vmatprep.mubr.msk.bf16.mxu0 %vm12033_vm10, %v12032_v47  ;;  %v11734_v46 = vld [vmem:[#allocation3 + $0x8d8] sm:$0xff]  }
0x21e5   : > { %10797 = vmatprep.subr.bf16.mxu0 %v12032_v47 }
0x21e8   : > { %10798 = vmatpush3.bf16.msra.mxu0 %v11703_v49 }
0x21e9   : > { %10799 = vmatprep.subr.bf16.mxu0 %v12032_v47 }
0x21ec   : > { %10800 = vmatpush3.bf16.msra.mxu0 %v11704_v51 }
0x21ed   : > { %10801 = vmatprep.subr.bf16.mxu0 %v12032_v47 }
0x21f0   : > { %10802 = vmatpush3.bf16.msra.mxu0 %v11705_v52 }
0x21f1   : > { %10803 = vmatprep.subr.bf16.mxu0 %v12032_v47 }
0x21f4   : > { %10804 = vmatpush3.bf16.msra.mxu0 %v11706_v32 }
0x21f5   : > { %10805 = vmatprep.subr.bf16.mxu0 %v12032_v47 }
0x21f8   : > { %10806 = vmatpush3.bf16.msra.mxu0 %v11707_v9 }
0x21f9   : > { %10807 = vmatprep.subr.bf16.mxu0 %v12032_v47 }
0x21fc   : > { %10808 = vmatpush3.bf16.msra.mxu0 %v11708_v53 }
0x21fd   : > { %10809 = vmatprep.subr.bf16.mxu0 %v12032_v47 }
0x2200   : > { %10810 = vmatpush3.bf16.msra.mxu0 %v11709_v56 }
0x2201   : > { %10835 = vmatprep.subr.bf16.mxu0 %v12032_v47 }
0x2296   : > { %v7055_v54 = vpop.f32.mrb[128].mxu0 }
0x2297   : > { %v10728_v55 = vpop.f32.mrb[129].mxu0 }
0x2298   : > { %v7058_v57 = vpop.f32.mrb[130].mxu0  ;;  %v7095_v58 = vpop.f32.mrb[128].mxu1 }
0x2299   : > { %v7096_v59 = vadd.f32 %v7095_v58, %v7055_v54  ;;  %v10729_v61 = vpop.f32.mrb[131].mxu0  ;;  %v10748_v62 = vpop.f32.mrb[129].mxu1 }
0x229a   : > { %v7098_v63 = vpop.f32.mrb[130].mxu1  ;;  %v11735_v61 = vld [vmem:[#allocation5 + $0xa] ss:$0 sm:$0xff] }
0x229b   : > { %v10749_v0 = vpop.f32.mrb[131].mxu1 }
0x22b6   : > { %v7136_v1 = vpop.f32.mrb[132].mxu0 }
0x22b7   : > { %v7142_v2 = vadd.f32 %v7136_v1, %v7096_v59  ;;  %v10768_v3 = vpop.f32.mrb[133].mxu0 }
0x22b8   : > { %v7139_v4 = vpop.f32.mrb[134].mxu0 }
0x22b9   : > { %v7143_v5 = vadd.f32 %v11710_v14, %v7142_v2  ;;  %v10769_v6 = vpop.f32.mrb[135].mxu0  ;;  %v11736_v14 = vld [vmem:[#allocation3 + $0x840] sm:$0xff]  }
0x22ba   : > { %v11738_v6 = vld [vmem:[#allocation3 + $0x848] sm:$0xff]  }
0x22bb   : > { %v7144_v7 = vmax.f32 %v7143_v5, 0.0  ;;  %v11737_v5 = vld [vmem:[#allocation3 + $0x900] sm:$0xff]  }
0x22bd   : > { %v7146_v8 = vrot.slane %v7144_v7, 1  ;;  %v7148_v10 = vrot.slane %v7144_v7, 5 }
0x22bf   : > { %v7150_v12 = vsel %vm3271_vm15, %v7146_v8, %v7148_v10  ;;  %v11739_v8 = vld [vmem:[#allocation3 + $0x908] sm:$0xff]   ;;  %v11740_v10 = vld [vmem:[#allocation3 + $0x850] sm:$0xff]  }
0x22c0   : > { %v7151_v13 = vmax.f32 %v7144_v7, %v7150_v12 }
0x22c2   : > { %10771 = vmatpush3.msk.msra.mxu1 %vm13432_vm0, %v7151_v13  ;;  %v11741_v13 = vld [vmem:[#allocation3 + $0x910] sm:$0xff]  }
0x22c3   : > { %10773 = vmatmul.mubr.msk.f32.vlgmr.msra.gmra.mrb[132].mxu1 %vm13433_vm2, %v12419_v48  ;;  %10775 = vmatprep.subr.bf16.mxu1 %v12032_v47  ;;  %v11715_v48 = vld [vmem:[#allocation3 + $0x7e0] sm:$0xff]  }
0x22c4   : > { %10776 = vmatpush3.bf16.msra.mxu1 %v11711_v15  ;;  %10791 = vmatprep.mubr.msk.bf16.mxu1 %vm12033_vm10, %v12032_v47  ;;  %v11742_v15 = vld [vmem:[#allocation3 + $0x858] sm:$0xff]  }
0x22c5   : > { %10777 = vmatprep.subr.bf16.mxu1 %v12032_v47 }
0x22c8   : > { %10778 = vmatpush3.bf16.msra.mxu1 %v11712_v16 }
0x22c9   : > { %10779 = vmatprep.subr.bf16.mxu1 %v12032_v47 }
0x22cc   : > { %10780 = vmatpush3.bf16.msra.mxu1 %v11713_v17  ;;  %v11743_v17 = vld [vmem:[#allocation3 + $0x918] sm:$0xff]  }
0x22cd   : > { %10781 = vmatprep.subr.bf16.mxu1 %v12032_v47 }
0x22d0   : > { %10782 = vmatpush3.bf16.msra.mxu1 %v11714_v18  ;;  %v11744_v18 = vld [vmem:[#allocation3 + $0x940] sm:$0xff]  }
0x22d1   : > { %10783 = vmatprep.subr.bf16.mxu1 %v12032_v47 }
0x22d4   : > { %10784 = vmatpush3.bf16.msra.mxu1 %v11715_v48  ;;  %v11745_v48 = vld [vmem:[#allocation3 + $0x948] sm:$0xff]  }
0x22d5   : > { %10785 = vmatprep.subr.bf16.mxu1 %v12032_v47 }
0x22d8   : > { %10786 = vmatpush3.bf16.msra.mxu1 %v11716_v20  ;;  %v11746_v20 = vld [vmem:[#allocation3 + $0x950] sm:$0xff]  }
0x22d9   : > { %10787 = vmatprep.subr.bf16.mxu1 %v12032_v47 }
0x22dc   : > { %10788 = vmatpush3.bf16.msra.mxu1 %v11717_v21  ;;  %v11747_v21 = vld [vmem:[#allocation3 + $0x958] sm:$0xff]  }
0x22dd   : > { %10789 = vmatprep.subr.bf16.mxu1 %v12032_v47 }
0x22e0   : > { %10790 = vmatpush3.bf16.msra.mxu1 %v11718_v60 }
0x22e1   : > { %10815 = vmatprep.subr.bf16.mxu1 %v12032_v47 }
0x2396   : > { %v7221_v22 = vpop.f32.mrb[132].mxu1 }
0x2397   : > { %7225 = vrot.lane.b32.xlu0 %v7221_v22, %s12038_s30  ;;  %v10774_v23 = vpop.f32.mrb[133].mxu1 }
0x2409   : > { %v7226_v24 = vpop.permute.xlu0 %7225 }
0x240a   : > { %v7227_v25 = vmax.f32 %v7221_v22, %v7226_v24 }
0x240c   : > { %v7229_v26 = vrot.slane %v7227_v25, 7  ;;  %v7236_v27 = vpack.c.bf16 %v7227_v25, %v7227_v25  ;;  %v7232_v41 = vrot.slane %v7227_v25, 1 }
0x240e   : > { %v8621_v29 = vpack.c.bf16 %v7229_v26, %v7229_v26  ;;  %10792 = vmatmul.mubr.bf16.vlgmr.msra.gmra.mrb[136].mxu1 %v7236_v27  ;;  %v8624_v42 = vpack.c.bf16 %v7232_v41, %v7232_v41 }
0x240f   : > { %10816 = vmatpush3.bf16.msra.mxu1 %v11719_v30  ;;  %10831 = vmatprep.mubr.msk.bf16.mxu1 %vm12033_vm10, %v12032_v47 }
0x2410   : > { %10812 = vmatmul.mubr.msk.bf16.vlgmr.msra.gmra.mrb[136].mxu0 %vm12544_vm12, %v8621_v29  ;;  %10817 = vmatprep.subr.bf16.mxu1 %v12032_v47 }
0x2411   : > { %10836 = vmatpush3.bf16.msra.mxu0 %v11720_v31  ;;  %10843 = vmatprep.mubr.msk.bf16.mxu0 %vm12033_vm10, %v12032_v47 }
0x2412   : > { %10837 = vmatprep.subr.bf16.mxu0 %v12032_v47 }
0x2413   : > { %10818 = vmatpush3.bf16.msra.mxu1 %v11721_v33 }
0x2414   : > { %10819 = vmatprep.subr.bf16.mxu1 %v12032_v47 }
0x2415   : > { %10838 = vmatpush3.bf16.msra.mxu0 %v11722_v34 }
0x2416   : > { %10839 = vmatprep.subr.bf16.mxu0 %v12032_v47 }
0x2417   : > { %10820 = vmatpush3.bf16.msra.mxu1 %v11723_v19 }
0x2418   : > { %10821 = vmatprep.subr.bf16.mxu1 %v12032_v47 }
0x2419   : > { %10840 = vmatpush3.bf16.msra.mxu0 %v11724_v50 }
0x241a   : > { %10841 = vmatprep.subr.bf16.mxu0 %v12032_v47 }
0x241b   : > { %10822 = vmatpush3.bf16.msra.mxu1 %v11725_v35  ;;  %v11748_v35 = vld [vmem:[#allocation5 + $0xb] ss:$0 sm:$0xff] }
0x241c   : > { %10823 = vmatprep.subr.bf16.mxu1 %v12032_v47 }
0x241d   : > { %10842 = vmatpush3.bf16.msra.mxu0 %v11726_v36 }
0x241e   : > { %10847 = vmatprep.subr.bf16.mxu0 %v12032_v47 }
0x241f   : > { %10824 = vmatpush3.bf16.msra.mxu1 %v11727_v37 }
0x2420   : > { %10825 = vmatprep.subr.bf16.mxu1 %v12032_v47 }
0x2423   : > { %10826 = vmatpush3.bf16.msra.mxu1 %v11728_v38 }
0x2424   : > { %10827 = vmatprep.subr.bf16.mxu1 %v12032_v47 }
0x2427   : > { %10828 = vmatpush3.bf16.msra.mxu1 %v11729_v39 }
0x2428   : > { %10829 = vmatprep.subr.bf16.mxu1 %v12032_v47 }
0x242b   : > { %10830 = vmatpush3.bf16.msra.mxu1 %v11730_v40 }
0x242c   : > { %10859 = vmatprep.subr.bf16.mxu1 %v12032_v47 }
0x242e   : > { %10832 = vmatmul.mubr.msk.bf16.vlgmr.msra.gmra.mrb[140].mxu1 %vm12793_vm9, %v8624_v42  ;;  %v11749_v42 = vld [vmem:[#allocation3 + $0x980] sm:$0xff]  }
0x242f   : > { %10860 = vmatpush3.bf16.msra.mxu1 %v11731_v43  ;;  %10867 = vmatprep.mubr.msk.bf16.mxu1 %vm12033_vm10, %v12032_v47  ;;  %v11750_v43 = vld [vmem:[#allocation7] sm:$0xff]  }
0x2430   : > { %10861 = vmatprep.subr.bf16.mxu1 %v12032_v47 }
0x2433   : > { %10862 = vmatpush3.bf16.msra.mxu1 %v11732_v44  ;;  %v11751_v44 = vld [vmem:[#allocation3 + $0x988] sm:$0xff]  }
0x2434   : > { %10863 = vmatprep.subr.bf16.mxu1 %v12032_v47 }
0x2437   : > { %10864 = vmatpush3.bf16.msra.mxu1 %v11733_v45 }
0x2438   : > { %10865 = vmatprep.subr.bf16.mxu1 %v12032_v47 }
0x243b   : > { %10866 = vmatpush3.bf16.msra.mxu1 %v11734_v46  ;;  %v11752_v46 = vld [vmem:[#allocation7 + $0x8] sm:$0xff]  }
0x243c   : > { %10883 = vmatprep.subr.bf16.mxu1 %v12032_v47 }
0x24e1   : > { %v7271_v11 = vpop.f32.mrb[136].mxu1 }
0x24e2   : > { %v10793_v49 = vpop.f32.mrb[137].mxu1 }
0x24e3   : > { %v7274_v51 = vpop.f32.mrb[138].mxu1  ;;  %v7311_v52 = vpop.f32.mrb[136].mxu0 }
0x24e4   : > { %v7312_v32 = vadd.f32 %v7311_v52, %v7271_v11  ;;  %v10794_v9 = vpop.f32.mrb[139].mxu1  ;;  %v10813_v53 = vpop.f32.mrb[137].mxu0  ;;  %v11753_v11 = vld [vmem:[#allocation3 + $0x990] sm:$0xff]   ;;  %v11754_v51 = vld [vmem:[#allocation7 + $0x10] sm:$0xff]   ;;  %v11755_v52 = vld [vmem:[#allocation3 + $0x998] sm:$0xff]  }
0x24e5   : > { %v7314_v56 = vpop.f32.mrb[138].mxu0  ;;  %v11756_v9 = vld [vmem:[#allocation7 + $0x18] sm:$0xff]   ;;  %v11757_v53 = vld [vmem:[#allocation10] sm:$0xff]  }
0x24e6   : > { %v10814_v54 = vpop.f32.mrb[139].mxu0  ;;  %v11758_v56 = vld [vmem:[#allocation10 + $0x8] sm:$0xff]  }
0x24e7   : > { %v11759_v54 = vld [vmem:[#allocation10 + $0x10] sm:$0xff]  }
0x2501   : > { %v7352_v55 = vpop.f32.mrb[140].mxu1 }
0x2502   : > { %v7358_v57 = vadd.f32 %v7352_v55, %v7312_v32  ;;  %v10833_v58 = vpop.f32.mrb[141].mxu1  ;;  %v11760_v55 = vld [vmem:[#allocation10 + $0x18] sm:$0xff]  }
0x2503   : > { %v7355_v59 = vpop.f32.mrb[142].mxu1  ;;  %v11762_v58 = vld [vmem:[#allocation10 + $0x28] sm:$0xff]  }
0x2504   : > { %v7359_v62 = vadd.f32 %v11735_v61, %v7358_v57  ;;  %v10834_v63 = vpop.f32.mrb[143].mxu1  ;;  %v11761_v57 = vld [vmem:[#allocation10 + $0x20] sm:$0xff]   ;;  %v11763_v59 = vld [vmem:[#allocation10 + $0x30] sm:$0xff]   ;;  %v11764_v61 = vld [vmem:[#allocation10 + $0x38] sm:$0xff]  }
0x2506   : > { %v7360_v0 = vmax.f32 %v7359_v62, 0.0 }
0x2508   : > { %v7365_v1 = vrot.slane %v7360_v0, 1  ;;  %v7369_v2 = vpack.c.bf16 %v7360_v0, %v7360_v0  ;;  %v7362_v7 = vrot.slane %v7360_v0, 7 }
0x250a   : > { %v7367_v3 = vsel %vm530_vm1, %v7365_v1, 0.0  ;;  %10844 = vmatmul.mubr.msk.bf16.vlgmr.msra.gmra.mrb[140].mxu0 %vm4736_vm7, %v7369_v2  ;;  %v7364_v12 = vsel %vm530_vm1, 0.0, %v7362_v7 }
0x250b   : > { %v7456_v4 = vpack.c.bf16 %v7367_v3, %v7367_v3  ;;  %10848 = vmatpush3.bf16.msra.mxu0 %v11736_v14  ;;  %10855 = vmatprep.mubr.msk.bf16.mxu0 %vm12033_vm10, %v12032_v47  ;;  %v7368_v16 = vpack.c.bf16 %v7364_v12, %v7364_v12  ;;  %v11765_v12 = vld [vmem:[#allocation5 + $0xc] ss:$0 sm:$0xff] }
0x250c   : > { %10849 = vmatprep.subr.bf16.mxu0 %v12032_v47 }
0x250d   : > { %10868 = vmatmul.mubr.msk.bf16.vlgmr.msra.gmra.mrb[144].mxu1 %vm4736_vm7, %v7456_v4 }
0x250e   : > { %10884 = vmatpush3.bf16.msra.mxu1 %v11737_v5  ;;  %10891 = vmatprep.mubr.msk.bf16.mxu1 %vm12033_vm10, %v12032_v47 }
0x250f   : > { %10850 = vmatpush3.bf16.msra.mxu0 %v11738_v6  ;;  %10885 = vmatprep.subr.bf16.mxu1 %v12032_v47 }
0x2510   : > { %10851 = vmatprep.subr.bf16.mxu0 %v12032_v47 }
0x2512   : > { %10886 = vmatpush3.bf16.msra.mxu1 %v11739_v8 }
0x2513   : > { %10852 = vmatpush3.bf16.msra.mxu0 %v11740_v10  ;;  %10887 = vmatprep.subr.bf16.mxu1 %v12032_v47 }
0x2514   : > { %10853 = vmatprep.subr.bf16.mxu0 %v12032_v47 }
0x2516   : > { %10888 = vmatpush3.bf16.msra.mxu1 %v11741_v13 }
0x2517   : > { %10854 = vmatpush3.bf16.msra.mxu0 %v11742_v15  ;;  %10889 = vmatprep.subr.bf16.mxu1 %v12032_v47 }
0x2518   : > { %10871 = vmatprep.subr.bf16.mxu0 %v12032_v47 }
0x251a   : > { %10856 = vmatmul.mubr.msk.bf16.vlgmr.msra.gmra.mrb[144].mxu0 %vm4736_vm7, %v7368_v16  ;;  %10890 = vmatpush3.bf16.msra.mxu1 %v11743_v17 }
0x251b   : > { %10872 = vmatpush3.bf16.msra.mxu0 %v11744_v18  ;;  %10879 = vmatprep.mubr.msk.bf16.mxu0 %vm12033_vm10, %v12032_v47 }
0x251c   : > { %10873 = vmatprep.subr.bf16.mxu0 %v12032_v47  ;;  %10907 = vmatprep.subr.bf16.mxu1 %v12032_v47 }
0x251f   : > { %10874 = vmatpush3.bf16.msra.mxu0 %v11745_v48 }
0x2520   : > { %10875 = vmatprep.subr.bf16.mxu0 %v12032_v47 }
0x2523   : > { %10876 = vmatpush3.bf16.msra.mxu0 %v11746_v20 }
0x2524   : > { %10877 = vmatprep.subr.bf16.mxu0 %v12032_v47 }
0x2527   : > { %10878 = vmatpush3.bf16.msra.mxu0 %v11747_v21 }
0x2528   : > { %10895 = vmatprep.subr.bf16.mxu0 %v12032_v47 }
0x25dd   : > { %v7407_v60 = vpop.f32.mrb[140].mxu0 }
0x25de   : > { %v10845_v22 = vpop.f32.mrb[141].mxu0 }
0x25df   : > { %v7410_v23 = vpop.f32.mrb[142].mxu0 }
0x25e0   : > { %v10846_v24 = vpop.f32.mrb[143].mxu0  ;;  %v7494_v25 = vpop.f32.mrb[144].mxu1 }
0x25e1   : > { %v10869_v26 = vpop.f32.mrb[145].mxu1 }
0x25e2   : > { %v7497_v27 = vpop.f32.mrb[146].mxu1 }
0x25e3   : > { %v10870_v29 = vpop.f32.mrb[147].mxu1  ;;  %v11447_v27 = vld [vmem:[%s13389_s8] sm:$0xff]  }
0x25e4   : > { %v11448_v29 = vld [vmem:[%s13389_s8 + $0x8] sm:$0xff]  }
0x25ed   : > { %v7450_v30 = vpop.f32.mrb[144].mxu0 }
0x25ee   : > { %v7451_v31 = vadd.f32 %v7450_v30, %v7407_v60  ;;  %v10857_v33 = vpop.f32.mrb[145].mxu0  ;;  %v11449_v30 = vld [vmem:[%s13389_s8 + $0x10] sm:$0xff]  }
0x25ef   : > { %v7453_v34 = vpop.f32.mrb[146].mxu0  ;;  %v11451_v33 = vld [vmem:[%s13389_s8 + $0x20] sm:$0xff]  }
0x25f0   : > { %v7500_v19 = vadd.f32 %v7494_v25, %v7451_v31  ;;  %v10858_v50 = vpop.f32.mrb[147].mxu0  ;;  %v11450_v31 = vld [vmem:[%s13389_s8 + $0x18] sm:$0xff]   ;;  %v11452_v34 = vld [vmem:[%s13389_s8 + $0x28] sm:$0xff]  }
0x25f1   : > { %v11766_v50 = vld [vmem:[#allocation8] sm:$0x1] }
0x25f2   : > { %v7501_v36 = vadd.f32 %v11748_v35, %v7500_v19 }
0x25f4   : > { %v7502_v37 = vmax.f32 %v7501_v36, 0.0 }
0x25f6   : > { %v7504_v38 = vrot.slane %v7502_v37, 7  ;;  %v7511_v39 = vpack.c.bf16 %v7502_v37, %v7502_v37  ;;  %v7507_v45 = vrot.slane %v7502_v37, 1 }
0x25f8   : > { %v7506_v41 = vsel %vm530_vm1, 0.0, %v7504_v38  ;;  %10880 = vmatmul.mubr.msk.bf16.vlgmr.msra.gmra.mrb[148].mxu0 %vm4736_vm7, %v7511_v39  ;;  %v7509_v49 = vsel %vm530_vm1, %v7507_v45, 0.0  ;;  %v11443_v45 = vld [vmem:[%s13388_s7 + $0x20] sm:$0xff]  }
0x25f9   : > { %v7510_v40 = vpack.c.bf16 %v7506_v41, %v7506_v41  ;;  %10896 = vmatpush3.bf16.msra.mxu0 %v11749_v42  ;;  %10903 = vmatprep.mubr.msk.bf16.mxu0 %vm12033_vm10, %v12032_v47  ;;  %v7598_v32 = vpack.c.bf16 %v7509_v49, %v7509_v49  ;;  %v11439_v41 = vld [vmem:[%s13388_s7] sm:$0xff]   ;;  %v11440_v42 = vld [vmem:[%s13388_s7 + $0x8] sm:$0xff]   ;;  %v11445_v49 = vld [vmem:[%s13388_s7 + $0x30] sm:$0xff]  }
0x25fa   : > { %10897 = vmatprep.subr.bf16.mxu0 %v12032_v47 }
0x25fb   : > { %10892 = vmatmul.mubr.msk.bf16.vlgmr.msra.gmra.mrb[148].mxu1 %vm4736_vm7, %v7510_v40 }
0x25fc   : > { %10908 = vmatpush3.bf16.msra.mxu1 %v11750_v43  ;;  %10915 = vmatprep.mubr.msk.bf16.mxu1 %vm12033_vm10, %v12032_v47  ;;  %v11441_v43 = vld [vmem:[%s13388_s7 + $0x10] sm:$0xff]  }
0x25fd   : > { %10898 = vmatpush3.bf16.msra.mxu0 %v11751_v44  ;;  %10909 = vmatprep.subr.bf16.mxu1 %v12032_v47  ;;  %v11442_v44 = vld [vmem:[%s13388_s7 + $0x18] sm:$0xff]  }
0x25fe   : > { %10899 = vmatprep.subr.bf16.mxu0 %v12032_v47 }
0x2600   : > { %10910 = vmatpush3.bf16.msra.mxu1 %v11752_v46  ;;  %v11444_v46 = vld [vmem:[%s13388_s7 + $0x28] sm:$0xff]  }
0x2601   : > { %10900 = vmatpush3.bf16.msra.mxu0 %v11753_v11  ;;  %10911 = vmatprep.subr.bf16.mxu1 %v12032_v47  ;;  %v5292_v11 = vld [vmem:[#allocation11] sm:$0x1] }
0x2602   : > { %10901 = vmatprep.subr.bf16.mxu0 %v12032_v47 }
0x2604   : > { %10912 = vmatpush3.bf16.msra.mxu1 %v11754_v51  ;;  %v5376_v51 = vadd.f32 %v12906_v28, %v5292_v11  ;;  %v11454_v28 = vld [vmem:[%s13389_s8 + $0x38] sm:$0xff]  }
0x2605   : > { %10902 = vmatpush3.bf16.msra.mxu0 %v11755_v52  ;;  %10913 = vmatprep.subr.bf16.mxu1 %v12032_v47  ;;  %v11446_v52 = vld [vmem:[%s13388_s7 + $0x38] sm:$0xff]  }
0x2606   : > { %10919 = vmatprep.subr.bf16.mxu0 %v12032_v47 }
0x2608   : > { %10904 = vmatmul.mubr.msk.bf16.vlgmr.msra.gmra.mrb[152].mxu0 %vm4736_vm7, %v7598_v32  ;;  %10914 = vmatpush3.bf16.msra.mxu1 %v11756_v9  ;;  %v5381_v32 = vmax.f32 %v5376_v51, 0.0 }
0x2609   : > { %10920 = vmatpush3.bf16.msra.mxu0 %v11757_v53  ;;  %10935 = vmatprep.mubr.msk.bf16.mxu0 %vm12033_vm10, %v12032_v47  ;;  %v11453_v53 = vld [vmem:[%s13389_s8 + $0x30] sm:$0xff]  }
0x260a   : > { %10921 = vmatprep.subr.bf16.mxu0 %v12032_v47  ;;  %10939 = vmatprep.subr.bf16.mxu1 %v12032_v47  ;;  %v7750_v9 = vpack.c.bf16 %v5381_v32, %v5381_v32 }
0x260d   : > { %10922 = vmatpush3.bf16.msra.mxu0 %v11758_v56 }
0x260e   : > { %10923 = vmatprep.subr.bf16.mxu0 %v12032_v47 }
0x2611   : > { %10924 = vmatpush3.bf16.msra.mxu0 %v11759_v54 }
0x2612   : > { %10925 = vmatprep.subr.bf16.mxu0 %v12032_v47 }
0x2615   : > { %10926 = vmatpush3.bf16.msra.mxu0 %v11760_v55 }
0x2616   : > { %10927 = vmatprep.subr.bf16.mxu0 %v12032_v47 }
0x2619   : > { %10928 = vmatpush3.bf16.msra.mxu0 %v11761_v57 }
0x261a   : > { %10929 = vmatprep.subr.bf16.mxu0 %v12032_v47 }
0x261d   : > { %10930 = vmatpush3.bf16.msra.mxu0 %v11762_v58 }
0x261e   : > { %10931 = vmatprep.subr.bf16.mxu0 %v12032_v47 }
0x2621   : > { %10932 = vmatpush3.bf16.msra.mxu0 %v11763_v59 }
0x2622   : > { %10933 = vmatprep.subr.bf16.mxu0 %v12032_v47 }
0x2625   : > { %10934 = vmatpush3.bf16.msra.mxu0 %v11764_v61 }
0x2626   : > { %10959 = vmatprep.subr.bf16.mxu0 %v12032_v47 }
0x26cb   : > { %v7549_v62 = vpop.f32.mrb[148].mxu0 }
0x26cc   : > { %v10881_v63 = vpop.f32.mrb[149].mxu0 }
0x26cd   : > { %v7552_v0 = vpop.f32.mrb[150].mxu0 }
0x26ce   : > { %v10882_v1 = vpop.f32.mrb[151].mxu0  ;;  %v7592_v2 = vpop.f32.mrb[148].mxu1 }
0x26cf   : > { %v7593_v3 = vadd.f32 %v7592_v2, %v7549_v62  ;;  %v10893_v4 = vpop.f32.mrb[149].mxu1 }
0x26d0   : > { %v7595_v14 = vpop.f32.mrb[150].mxu1 }
0x26d1   : > { %v10894_v5 = vpop.f32.mrb[151].mxu1 }
0x26db   : > { %v7636_v6 = vpop.f32.mrb[152].mxu0 }
0x26dc   : > { %v7642_v7 = vadd.f32 %v7636_v6, %v7593_v3  ;;  %v10905_v8 = vpop.f32.mrb[153].mxu0  ;;  %v7960_v3 = vld [vmem:[#allocation13] sm:$0x1] }
0x26dd   : > { %v7639_v10 = vpop.f32.mrb[154].mxu0 }
0x26de   : > { %v7643_v13 = vadd.f32 %v11765_v12, %v7642_v7  ;;  %v10906_v15 = vpop.f32.mrb[155].mxu0  ;;  %v7963_v7 = vld [vmem:[#allocation14] sm:$0x1] }
0x26e0   : > { %v7644_v16 = vmax.f32 %v7643_v13, 0.0  ;;  %v7969_v13 = vld [vmem:[#allocation2] sm:$0x1] }
0x26e2   : > { %v7646_v17 = vrot.slane %v7644_v16, 1  ;;  %v7648_v18 = vrot.slane %v7644_v16, 7 }
0x26e4   : > { %v7650_v48 = vsel %vm530_vm1, %v7646_v17, %v7648_v18  ;;  %vm7965_vm1 = vcmask 516096  }
0x26e5   : > { %v7651_v20 = vmax.f32 %v7644_v16, %v7650_v48 }
0x26e7   : > { %7652 = vrot.lane.b32.xlu1 %v7651_v20, %s12039_s22 }
0x2759   : > { %v7653_v21 = vpop.permute.xlu1 %7652 }
0x275a   : > { %v7654_v60 = vsel %vm5185_vm4, %v7653_v21, %v7651_v20 }
0x275b   : > { %7655 = vrot.lane.b32.xlu0 %v7654_v60, %s12039_s22 }
0x27cd   : > { %v7656_v22 = vpop.permute.xlu0 %7655 }
0x27ce   : > { %v7657_v23 = vsel %vm5185_vm4, %v7656_v22, %v7651_v20 }
0x27cf   : > { %7659 = vrot.lane.b32.xlu1 %v7657_v23, %s12038_s30 }
0x2841   : > { %v7660_v24 = vpop.permute.xlu1 %7659 }
0x2842   : > { %v7662_v25 = vmax.f32 %v7651_v20, %v7660_v24 }
0x2844   : > { %v7663_v26 = vpack.c.bf16 %v7662_v25, %v7662_v25 }
0x2846   : > { %10916 = vmatmul.mubr.msk.bf16.vlgmr.msra.gmra.mrb[152].mxu1 %vm4736_vm7, %v7663_v26 }
0x2847   : > { %10955 = vmatprep.mubr.msk.bf16.mxu1 %vm12033_vm10, %v12032_v47  ;;  %10940 = vmatpush3.bf16.msra.mxu1 %v11447_v27 }
0x2848   : > { %10941 = vmatprep.subr.bf16.mxu1 %v12032_v47 }
0x284b   : > { %10942 = vmatpush3.bf16.msra.mxu1 %v11448_v29 }
0x284c   : > { %10943 = vmatprep.subr.bf16.mxu1 %v12032_v47 }
0x284f   : > { %10944 = vmatpush3.bf16.msra.mxu1 %v11449_v30 }
0x2850   : > { %10945 = vmatprep.subr.bf16.mxu1 %v12032_v47 }
0x2853   : > { %10946 = vmatpush3.bf16.msra.mxu1 %v11450_v31 }
0x2854   : > { %10947 = vmatprep.subr.bf16.mxu1 %v12032_v47 }
0x2857   : > { %10948 = vmatpush3.bf16.msra.mxu1 %v11451_v33 }
0x2858   : > { %10949 = vmatprep.subr.bf16.mxu1 %v12032_v47 }
0x285b   : > { %10950 = vmatpush3.bf16.msra.mxu1 %v11452_v34 }
0x285c   : > { %10951 = vmatprep.subr.bf16.mxu1 %v12032_v47 }
0x285f   : > { %10952 = vmatpush3.bf16.msra.mxu1 %v11453_v53 }
0x2860   : > { %10953 = vmatprep.subr.bf16.mxu1 %v12032_v47 }
0x2863   : > { %10954 = vmatpush3.bf16.msra.mxu1 %v11454_v28 }
0x2919   : > { %v7701_v19 = vpop.f32.mrb[152].mxu1 }
0x291a   : > { %v7702_v35 = vadd.f32 %v11766_v50, %v7701_v19  ;;  %v10917_v36 = vpop.f32.mrb[153].mxu1 }
0x291b   : > { %v7704_v37 = vpop.f32.mrb[154].mxu1 }
0x291c   : > { %v7707_v38 = vmax.f32 %v7702_v35, 0.0  ;;  %v10918_v39 = vpop.f32.mrb[155].mxu1 }
0x291e   : > { %v7708_v40 = vpack.c.bf16 %v7707_v38, %v7707_v38 }
0x2920   : > { %10936 = vmatmul.mubr.bf16.vlgmr.msra.gmra.mrb[156].mxu0 %v7708_v40 }
0x2921   : > { %10960 = vmatpush3.bf16.msra.mxu0 %v11439_v41  ;;  %10975 = vmatprep.mubr.msk.bf16.mxu0 %vm12033_vm10, %v12032_v47 }
0x2922   : > { %10961 = vmatprep.subr.bf16.mxu0 %v12032_v47 }
0x2925   : > { %10962 = vmatpush3.bf16.msra.mxu0 %v11440_v42 }
0x2926   : > { %10963 = vmatprep.subr.bf16.mxu0 %v12032_v47 }
0x2929   : > { %10964 = vmatpush3.bf16.msra.mxu0 %v11441_v43 }
0x292a   : > { %10965 = vmatprep.subr.bf16.mxu0 %v12032_v47 }
0x292d   : > { %10966 = vmatpush3.bf16.msra.mxu0 %v11442_v44 }
0x292e   : > { %10967 = vmatprep.subr.bf16.mxu0 %v12032_v47 }
0x2931   : > { %10968 = vmatpush3.bf16.msra.mxu0 %v11443_v45 }
0x2932   : > { %10969 = vmatprep.subr.bf16.mxu0 %v12032_v47 }
0x2935   : > { %10970 = vmatpush3.bf16.msra.mxu0 %v11444_v46 }
0x2936   : > { %10971 = vmatprep.subr.bf16.mxu0 %v12032_v47 }
0x2939   : > { %10972 = vmatpush3.bf16.msra.mxu0 %v11445_v49 }
0x293a   : > { %10973 = vmatprep.subr.bf16.mxu0 %v12032_v47 }
0x293d   : > { %10974 = vmatpush3.bf16.msra.mxu0 %v11446_v52 }
0x2940   : > { %10976 = vmatmul.mubr.bf16.vlgmr.msra.gmra.mrb[160].mxu0 %v7750_v9 }
0x29f3   : > { %v7743_v56 = vpop.f32.mrb[156].mxu0 }
0x29f4   : > { %v7744_v54 = vadd.f32 %v7743_v56, %v5292_v11  ;;  %v10937_v55 = vpop.f32.mrb[157].mxu0 }
0x29f5   : > { %v7746_v57 = vpop.f32.mrb[158].mxu0 }
0x29f6   : > { %v7749_v58 = vmax.f32 %v7744_v54, 0.0  ;;  %v10938_v59 = vpop.f32.mrb[159].mxu0 }
0x29f8   : > { %v7767_v61 = vpack.c.bf16 %v7749_v58, %v7749_v58 }
0x29fa   : > { %10956 = vmatmul.mubr.bf16.vlgmr.msra.gmra.mrb[156].mxu1 %v7767_v61 }
0x2a13   : > { %v7954_v62 = vpop.f32.mrb[160].mxu0 }
0x2a14   : > { %v10977_v63 = vpop.f32.mrb[161].mxu0 }
0x2a15   : > { %v7957_v0 = vpop.f32.mrb[162].mxu0 }
0x2a16   : > { %v10978_v1 = vpop.f32.mrb[163].mxu0 }
0x2acd   : > { %v7866_v2 = vpop.f32.mrb[156].mxu1 }
0x2ace   : > { %v7955_v47 = vadd.f32 %v7954_v62, %v7866_v2  ;;  %v10957_v4 = vpop.f32.mrb[157].mxu1 }
0x2acf   : > { %v7869_v14 = vpop.f32.mrb[158].mxu1 }
0x2ad0   : > { %v7961_v5 = vadd.f32 %v7960_v3, %v7955_v47  ;;  %v10958_v6 = vpop.f32.mrb[159].mxu1 }
0x2ad2   : > { %v7962_v8 = vmax.f32 %v7961_v5, 0.0 }
0x2ad4   : > { %v7964_v10 = vmul.f32 %v7963_v7, %v7962_v8 }
0x2ad6   : > { %v7966_v12 = vsel %vm7965_vm1, %v7964_v10, 0.0 }
0x2ad7   : > { %7967 = vadd.xlane.f32.xlu0 %v7966_v12 }
0x2b64   : > { %v7968_v15 = vpop.xlane.xlu0 %7967 }
0x2b65   : > { %v7970_v16 = vadd.f32 %v7969_v13, %v7968_v15 }
0x2b67   : > { %v8649_v17 = vmul.f32 -1.442695, %v7970_v16 }
0x2b69   : > { %11455 = vpow2.f32 %v8649_v17 }
0x2b73   : > { %v11456_v18 = vpop.eup %11455 }
0x2b74   : > { %v7974_v48 = vadd.f32 1.0, %v11456_v18 }
0x2b76   : > { %11457 = vrcp.f32 %v7974_v48 }
0x2b80   : > { %v11458_v20 = vpop.eup %11457 }
0x2b81   : > { %7978 = vst.msk [vmem:[%s520_s24] sm:$0x1] %vm7977_vm5, %v11458_v20 }
0x2b82 PF: > { %s13434_s14 = sld [smem:[#allocation21_spill]] }
0x2b88   : > { %s29_s23 = sadd.s32 1, %s13434_s14  }
0x2b89   : > { %p26_p11 = scmp.ge.s32.totalorder %s29_s23, 4  }
0x2b8b   :  { %28 = sbr.rel (!%p26_p11) target bundleno = 8 (0x8), region = 170 }
0x2b92   :  { %7996 = vsyncpa [#allocation4], 1 }
0x2b93   :  { %7998 = vsyncpa [#allocation4 + $0x1], 1 }
0x2b94   :  { %7999 = vsyncpa [#allocation6], 1 }
0x2b95   :  { %8000 = vsyncpa [#allocation9], 1 }
0x2b96   :  { %8001 = vsyncpa [#allocation12], 1 }
0x2b97   :  { %8002 = vsyncpa [#allocation15], 1 }

</bundles_post_ra>
